<compile_context>
chip_gen: v7x
topology: tpu7x:2x2x1
jax: 0.10.0
libtpu: 0.0.40
codegen_flags: <defaults>
</compile_context>

<pallas_src>
import numpy as np
import jax
import jax.numpy as jnp
from jax.experimental import pallas as pl
from jax.experimental.pallas import tpu as pltpu

# ----------------------- configuration (small shapes) -----------------------
EF_DIM = 8          # ef_dim (raw edge feature dim)
HIDDEN = 32         # hidden_dim == memory_dim == embedding_dim == time_dim
NUM_NODES = 16      # nodes in the (sub)graph block
NUM_HEADS = 4       # attention heads (module default is 8; 4 keeps it small)
B = 6               # number of src / pos-dst / neg-dst root nodes
NEG_SAMPLES = 1     # TODO(synk): neg_samples > 1 would tile h_src in-kernel

HD = NUM_HEADS * HIDDEN
N = NUM_NODES
H = NUM_HEADS
D = HIDDEN

# Static root-node ids -> static row slices of the in-VMEM embedding.
SRC_LO, SRC_HI = 0, B          # src roots      -> embed[0:6]
POS_LO, POS_HI = 6, 6 + B      # pos-dst roots  -> embed[6:12]
NEG_LO, NEG_HI = 10, 10 + B    # neg-dst roots  -> embed[10:16]


# ============================ fused Pallas kernel ============================
def _tgnn_kernel(mem_ref, ef_ref, td_ref, adj_ref,
                 wt_ref, bt_ref,
                 wn_ref, bn_ref,
                 wee_ref, wet_ref, be_ref,
                 al_ref, ar_ref, ae_ref,
                 ws_ref, bs_ref, wd_ref, bd_ref, wo_ref, bo_ref,
                 embed_ref, logit_ref):
    # ------------------ TemporalTransformerConv ------------------
    # TimeEncode: cos(t*w + b); td_ref is already lane-dense [N*N, HIDDEN].
    te = jnp.cos(td_ref[...] * wt_ref[...] + bt_ref[...])                      # [256, 32]

    # fc_node / fc_edge (edge input = concat(raw_edge_feat, time_encode),
    # realized as a split matmul) -> dense [., 128] MXU matmuls.
    node_feat = (jnp.dot(mem_ref[...], wn_ref[...],
                         preferred_element_type=jnp.float32) + bn_ref[...])    # [16, 128]
    edge_feat = (jnp.dot(ef_ref[...], wee_ref[...],
                         preferred_element_type=jnp.float32)
                 + jnp.dot(te, wet_ref[...],
                           preferred_element_type=jnp.float32)
                 + be_ref[...])                                                # [256, 128]

    # Attention logits: full-lane elementwise multiply with the flattened
    # [1, H*D] attention vectors, then reduce over D per head (no block-diag
    # matmuls, no 97%-zero MXU pushes).
    el = jnp.sum((node_feat * al_ref[...]).reshape(N, H, D), axis=-1)          # [16, 4] (per src)
    er = jnp.sum((node_feat * ar_ref[...]).reshape(N, H, D), axis=-1)          # [16, 4] (per dst)
    ee = jnp.sum((edge_feat * ae_ref[...]).reshape(N * N, H, D), axis=-1)      # [256, 4]

    # Re-layout so the softmax reduction axis (src) sits on lanes:
    # everything below lives as [dst, head, src].
    el_prime = jnp.transpose(ee.reshape(N, N, H) + el[None, :, :], (0, 2, 1))  # u_add_e -> [16, 4, 16]
    e = el_prime + er[:, :, None]                                              # e_add_v
    e = jnp.where(e >= 0.0, e, 0.2 * e)                                        # LeakyReLU(0.2)

    # masked edge softmax over incoming edges of each destination (lane reduce)
    mask = adj_ref[...][:, None, :]                                            # [dst, 1, src]
    e_m = jnp.where(mask > 0.0, e, jnp.float32(-1e30))
    m = jnp.max(e_m, axis=-1, keepdims=True)                                   # [16, 4, 1]
    p = jnp.exp(e_m - m) * mask
    denom = jnp.maximum(jnp.sum(p, axis=-1), 1e-30)                            # [16, 4]

    # message m = a * el_prime (exactly the reference msg_fn); 1/denom is
    # folded into the aggregate and computed on the EUP.
    agg = jnp.sum(p * el_prime, axis=-1) * pl.reciprocal(denom, approx=True)   # [16, 4]

    # residual (Identity: node_feats == out_feats) + mean over heads
    embed = jnp.mean(agg, axis=-1, keepdims=True) + mem_ref[...]               # [16, 32]
    embed_ref[...] = embed

    # ------------------ EdgePredictor (fused) ------------------
    # One dense src_fc and one dense dst_fc matmul over all nodes, then static
    # row slices for the root nodes.
    hs_all = jnp.dot(embed, ws_ref[...], preferred_element_type=jnp.float32) + bs_ref[...]
    hd_all = jnp.dot(embed, wd_ref[...], preferred_element_type=jnp.float32) + bd_ref[...]
    h_src = hs_all[SRC_LO:SRC_HI]
    h_pos = hd_all[POS_LO:POS_HI]
    h_neg = hd_all[NEG_LO:NEG_HI]
    pos_edge = jnp.maximum(h_src + h_pos, 0.0)
    neg_edge = jnp.maximum(h_src + h_neg, 0.0)        # NEG_SAMPLES == 1: tile == identity

    # out_fc ([., 32] @ [32, 1]) as a VPU multiply + lane reduce, both logits
    # written into one output slab.
    logit_ref[0, :, :] = jnp.sum(pos_edge * wo_ref[...], axis=-1, keepdims=True) + bo_ref[...]
    logit_ref[1, :, :] = jnp.sum(neg_edge * wo_ref[...], axis=-1, keepdims=True) + bo_ref[...]


# ================================ wrapper ====================================
_VMEM = pl.BlockSpec(memory_space=pltpu.MemorySpace.VMEM)


def tgnn_forward(mem, ef_flat, tdiff_b, adj, params):
    args = (mem, ef_flat, tdiff_b, adj,
            params["w_t"], params["b_t"],
            params["w_node"], params["b_node"],
            params["w_edge_e"], params["w_edge_t"], params["b_edge"],
            params["attn_l"], params["attn_r"], params["attn_e"],
            params["w_src"], params["b_src"],
            params["w_dst"], params["b_dst"],
            params["w_out"], params["b_out"])
    embed, logits = pl.pallas_call(
        _tgnn_kernel,
        out_shape=(jax.ShapeDtypeStruct((N, HIDDEN), jnp.float32),
                   jax.ShapeDtypeStruct((2, B, 1), jnp.float32)),
        in_specs=[_VMEM] * len(args),
        out_specs=(_VMEM, _VMEM),
    )(*args)
    return embed, logits[0], logits[1]


# ============================== plain-JAX ref ================================
def _ref_forward(mem, ef_flat, tdiff_b, adj, p):
    te = jnp.cos(tdiff_b * p["w_t"] + p["b_t"])
    node_feat = mem @ p["w_node"] + p["b_node"]
    edge_feat = ef_flat @ p["w_edge_e"] + te @ p["w_edge_t"] + p["b_edge"]
    el = jnp.sum((node_feat * p["attn_l"]).reshape(N, H, D), -1)
    er = jnp.sum((node_feat * p["attn_r"]).reshape(N, H, D), -1)
    ee = jnp.sum((edge_feat * p["attn_e"]).reshape(N * N, H, D), -1).reshape(N, N, H)
    el_prime = el[None, :, :] + ee                     # [dst, src, h]
    e = el_prime + er[:, None, :]
    e = jnp.where(e >= 0.0, e, 0.2 * e)
    mask = adj[:, :, None]
    e_m = jnp.where(mask > 0.0, e, -1e30)
    m = jnp.max(e_m, axis=1, keepdims=True)
    pr = jnp.exp(e_m - m) * mask
    a = pr / jnp.maximum(jnp.sum(pr, axis=1, keepdims=True), 1e-30)
    agg = jnp.sum(a * el_prime, axis=1)                # [N, H]
    embed = jnp.mean(agg, axis=-1, keepdims=True) + mem
    hs_all = embed @ p["w_src"] + p["b_src"]
    hd_all = embed @ p["w_dst"] + p["b_dst"]
    pos_edge = jnp.maximum(hs_all[SRC_LO:SRC_HI] + hd_all[POS_LO:POS_HI], 0.0)
    neg_edge = jnp.maximum(hs_all[SRC_LO:SRC_HI] + hd_all[NEG_LO:NEG_HI], 0.0)
    pos = pos_edge @ p["w_out"].T + p["b_out"]
    neg = neg_edge @ p["w_out"].T + p["b_out"]
    return embed, pos, neg


# =============================== param init ==================================
def _xavier(key, shape, gain=1.0):
    fan_in, fan_out = shape[0], shape[-1]
    std = gain * (2.0 / (fan_in + fan_out)) ** 0.5
    return std * jax.random.normal(key, shape, jnp.float32)


def init_params(key):
    ks = jax.random.split(key, 12)
    gain = float(np.sqrt(2.0))  # nn.init.calculate_gain('relu')
    p = {}
    # TimeEncode (deterministic, exactly as the PyTorch module)
    p["w_t"] = jnp.asarray(1.0 / 10.0 ** np.linspace(0, 9, HIDDEN),
                           jnp.float32).reshape(1, HIDDEN)
    p["b_t"] = jnp.zeros((1, HIDDEN), jnp.float32)
    # EdgeGATConv
    p["w_node"] = _xavier(ks[0], (HIDDEN, HD), gain)
    p["b_node"] = jnp.zeros((1, HD), jnp.float32)
    w_edge = _xavier(ks[1], (EF_DIM + HIDDEN, HD), gain)
    p["w_edge_e"] = w_edge[:EF_DIM, :]
    p["w_edge_t"] = w_edge[EF_DIM:, :]
    p["b_edge"] = jnp.zeros((1, HD), jnp.float32)
    # per-head attention vectors, flattened to lane-dense [1, H*D] rows
    p["attn_l"] = _xavier(ks[2], (NUM_HEADS, HIDDEN), gain).reshape(1, HD)
    p["attn_r"] = _xavier(ks[3], (NUM_HEADS, HIDDEN), gain).reshape(1, HD)
    p["attn_e"] = _xavier(ks[4], (NUM_HEADS, HIDDEN), gain).reshape(1, HD)
    # EdgePredictor
    p["w_src"] = _xavier(ks[5], (HIDDEN, HIDDEN))
    p["b_src"] = 0.01 * jax.random.normal(ks[6], (1, HIDDEN), jnp.float32)
    p["w_dst"] = _xavier(ks[7], (HIDDEN, HIDDEN))
    p["b_dst"] = 0.01 * jax.random.normal(ks[8], (1, HIDDEN), jnp.float32)
    p["w_out"] = _xavier(ks[9], (1, HIDDEN))        # out_fc weight as a [1, 32] row
    p["b_out"] = 0.01 * jax.random.normal(ks[10], (1, 1), jnp.float32)
    return p


# =================================== main ====================================
if __name__ == "__main__":
    key = jax.random.PRNGKey(0)
    k_adj, k_ef, k_et, k_nt, k_prm = jax.random.split(key, 5)

    # dense (sub)graph block
    adj = (jax.random.uniform(k_adj, (N, N)) < 0.4).astype(jnp.float32)      # adj[dst, src]
    ef_dense = jax.random.normal(k_ef, (N, N, EF_DIM), jnp.float32)          # raw edge feats
    edge_ts = 10.0 * jax.random.uniform(k_et, (N, N), jnp.float32)           # edge timestamps
    node_ts = 10.0 * jax.random.uniform(k_nt, (N,), jnp.float32)             # time_assoc per node
    memory = jnp.ones((N, HIDDEN), jnp.float32)                              # MemoryModule: ones

    # TemporalEdgePreprocess: time_diff = edge_ts - src_node_ts, passed as a
    # lane-dense [N*N, HIDDEN] slab (no [N*N, 1] column inside the kernel).
    tdiff = edge_ts - node_ts[None, :]
    tdiff_b = jnp.broadcast_to(tdiff.reshape(N * N, 1), (N * N, HIDDEN))
    ef_flat = ef_dense.reshape(N * N, EF_DIM)

    params = init_params(k_prm)

    embed, pos_logit, neg_logit = tgnn_forward(memory, ef_flat, tdiff_b, adj, params)
    jax.block_until_ready((embed, pos_logit, neg_logit))

    embed_ref, pos_ref, neg_ref = _ref_forward(memory, ef_flat, tdiff_b, adj, params)
    # 2e-2 tolerance: the kernel uses the EUP approximate reciprocal for the
    # softmax denominator; everything else is f32.
    np.testing.assert_allclose(np.asarray(embed), np.asarray(embed_ref),
                               rtol=2e-2, atol=2e-2)
    np.testing.assert_allclose(np.asarray(pos_logit), np.asarray(pos_ref),
                               rtol=2e-2, atol=2e-2)
    np.testing.assert_allclose(np.asarray(neg_logit), np.asarray(neg_ref),
                               rtol=2e-2, atol=2e-2)

    assert pos_logit.shape == (B, 1) and neg_logit.shape == (B * NEG_SAMPLES, 1)
    print("KERNEL_OK")
</pallas_src>

<mosaic_0001>
module attributes {stable_mosaic.version = 11 : i64} {
  func.func @_tgnn_kernel(%arg0: memref<16x32xf32, #tpu.memory_space<vmem>>, %arg1: memref<256x8xf32, #tpu.memory_space<vmem>>, %arg2: memref<256x32xf32, #tpu.memory_space<vmem>>, %arg3: memref<16x16xf32, #tpu.memory_space<vmem>>, %arg4: memref<1x32xf32, #tpu.memory_space<vmem>>, %arg5: memref<1x32xf32, #tpu.memory_space<vmem>>, %arg6: memref<32x128xf32, #tpu.memory_space<vmem>>, %arg7: memref<1x128xf32, #tpu.memory_space<vmem>>, %arg8: memref<8x128xf32, #tpu.memory_space<vmem>>, %arg9: memref<32x128xf32, #tpu.memory_space<vmem>>, %arg10: memref<1x128xf32, #tpu.memory_space<vmem>>, %arg11: memref<1x128xf32, #tpu.memory_space<vmem>>, %arg12: memref<1x128xf32, #tpu.memory_space<vmem>>, %arg13: memref<1x128xf32, #tpu.memory_space<vmem>>, %arg14: memref<32x32xf32, #tpu.memory_space<vmem>>, %arg15: memref<1x32xf32, #tpu.memory_space<vmem>>, %arg16: memref<32x32xf32, #tpu.memory_space<vmem>>, %arg17: memref<1x32xf32, #tpu.memory_space<vmem>>, %arg18: memref<1x32xf32, #tpu.memory_space<vmem>>, %arg19: memref<1x1xf32, #tpu.memory_space<vmem>>, %arg20: memref<16x32xf32, #tpu.memory_space<vmem>>, %arg21: memref<2x6x1xf32, #tpu.memory_space<vmem>>) attributes {dimension_semantics = [], scalar_prefetch = 0 : i64, scratch_operands = 0 : i64, tpu.core_type = #tpu.core_type<tc>} {
    %c0 = arith.constant 0 : index
    %c0_0 = arith.constant 0 : index
    %0 = vector.load %arg2[%c0, %c0_0] : memref<256x32xf32, #tpu.memory_space<vmem>>, vector<256x32xf32>
    %c0_1 = arith.constant 0 : index
    %c0_2 = arith.constant 0 : index
    %1 = vector.load %arg4[%c0_1, %c0_2] : memref<1x32xf32, #tpu.memory_space<vmem>>, vector<1x32xf32>
    %2 = vector.broadcast %1 : vector<1x32xf32> to vector<256x32xf32>
    %3 = arith.mulf %0, %2 : vector<256x32xf32>
    %c0_3 = arith.constant 0 : index
    %c0_4 = arith.constant 0 : index
    %4 = vector.load %arg5[%c0_3, %c0_4] : memref<1x32xf32, #tpu.memory_space<vmem>>, vector<1x32xf32>
    %5 = vector.broadcast %4 : vector<1x32xf32> to vector<256x32xf32>
    %6 = arith.addf %3, %5 : vector<256x32xf32>
    %7 = math.cos %6 : vector<256x32xf32>
    %c0_5 = arith.constant 0 : index
    %c0_6 = arith.constant 0 : index
    %8 = vector.load %arg0[%c0_5, %c0_6] : memref<16x32xf32, #tpu.memory_space<vmem>>, vector<16x32xf32>
    %c0_7 = arith.constant 0 : index
    %c0_8 = arith.constant 0 : index
    %9 = vector.load %arg6[%c0_7, %c0_8] : memref<32x128xf32, #tpu.memory_space<vmem>>, vector<32x128xf32>
    %cst = arith.constant dense<0.000000e+00> : vector<16x128xf32>
    %10 = tpu.matmul %8, %9, %cst {dimension_numbers = #tpu.dot_dimension_numbers<[1], [0], [0], [1], [0, 0, 1, 1], [], []>} : vector<16x32xf32>, vector<32x128xf32>, vector<16x128xf32> -> vector<16x128xf32>
    %c0_9 = arith.constant 0 : index
    %c0_10 = arith.constant 0 : index
    %11 = vector.load %arg7[%c0_9, %c0_10] : memref<1x128xf32, #tpu.memory_space<vmem>>, vector<1x128xf32>
    %12 = vector.broadcast %11 : vector<1x128xf32> to vector<16x128xf32>
    %13 = arith.addf %10, %12 : vector<16x128xf32>
    %c0_11 = arith.constant 0 : index
    %c0_12 = arith.constant 0 : index
    %14 = vector.load %arg1[%c0_11, %c0_12] : memref<256x8xf32, #tpu.memory_space<vmem>>, vector<256x8xf32>
    %c0_13 = arith.constant 0 : index
    %c0_14 = arith.constant 0 : index
    %15 = vector.load %arg8[%c0_13, %c0_14] : memref<8x128xf32, #tpu.memory_space<vmem>>, vector<8x128xf32>
    %cst_15 = arith.constant dense<0.000000e+00> : vector<256x128xf32>
    %16 = tpu.matmul %14, %15, %cst_15 {dimension_numbers = #tpu.dot_dimension_numbers<[1], [0], [0], [1], [0, 0, 1, 1], [], []>} : vector<256x8xf32>, vector<8x128xf32>, vector<256x128xf32> -> vector<256x128xf32>
    %c0_16 = arith.constant 0 : index
    %c0_17 = arith.constant 0 : index
    %17 = vector.load %arg9[%c0_16, %c0_17] : memref<32x128xf32, #tpu.memory_space<vmem>>, vector<32x128xf32>
    %cst_18 = arith.constant dense<0.000000e+00> : vector<256x128xf32>
    %18 = tpu.matmul %7, %17, %cst_18 {dimension_numbers = #tpu.dot_dimension_numbers<[1], [0], [0], [1], [0, 0, 1, 1], [], []>} : vector<256x32xf32>, vector<32x128xf32>, vector<256x128xf32> -> vector<256x128xf32>
    %19 = arith.addf %16, %18 : vector<256x128xf32>
    %c0_19 = arith.constant 0 : index
    %c0_20 = arith.constant 0 : index
    %20 = vector.load %arg10[%c0_19, %c0_20] : memref<1x128xf32, #tpu.memory_space<vmem>>, vector<1x128xf32>
    %21 = vector.broadcast %20 : vector<1x128xf32> to vector<256x128xf32>
    %22 = arith.addf %19, %21 : vector<256x128xf32>
    %c0_21 = arith.constant 0 : index
    %c0_22 = arith.constant 0 : index
    %23 = vector.load %arg11[%c0_21, %c0_22] : memref<1x128xf32, #tpu.memory_space<vmem>>, vector<1x128xf32>
    %24 = vector.broadcast %23 : vector<1x128xf32> to vector<16x128xf32>
    %25 = arith.mulf %13, %24 : vector<16x128xf32>
    %26 = vector.shape_cast %25 : vector<16x128xf32> to vector<16x4x32xf32>
    %cst_23 = arith.constant dense<0.000000e+00> : vector<16x4xf32>
    %27 = vector.multi_reduction <add>, %26, %cst_23 [2] : vector<16x4x32xf32> to vector<16x4xf32>
    %c0_24 = arith.constant 0 : index
    %c0_25 = arith.constant 0 : index
    %28 = vector.load %arg12[%c0_24, %c0_25] : memref<1x128xf32, #tpu.memory_space<vmem>>, vector<1x128xf32>
    %29 = vector.broadcast %28 : vector<1x128xf32> to vector<16x128xf32>
    %30 = arith.mulf %13, %29 : vector<16x128xf32>
    %31 = vector.shape_cast %30 : vector<16x128xf32> to vector<16x4x32xf32>
    %cst_26 = arith.constant dense<0.000000e+00> : vector<16x4xf32>
    %32 = vector.multi_reduction <add>, %31, %cst_26 [2] : vector<16x4x32xf32> to vector<16x4xf32>
    %c0_27 = arith.constant 0 : index
    %c0_28 = arith.constant 0 : index
    %33 = vector.load %arg13[%c0_27, %c0_28] : memref<1x128xf32, #tpu.memory_space<vmem>>, vector<1x128xf32>
    %34 = vector.broadcast %33 : vector<1x128xf32> to vector<256x128xf32>
    %35 = arith.mulf %22, %34 : vector<256x128xf32>
    %36 = vector.shape_cast %35 : vector<256x128xf32> to vector<256x4x32xf32>
    %cst_29 = arith.constant dense<0.000000e+00> : vector<256x4xf32>
    %37 = vector.multi_reduction <add>, %36, %cst_29 [2] : vector<256x4x32xf32> to vector<256x4xf32>
    %38 = vector.shape_cast %37 : vector<256x4xf32> to vector<16x16x4xf32>
    %39 = vector.shape_cast %27 : vector<16x4xf32> to vector<1x16x4xf32>
    %40 = vector.broadcast %39 : vector<1x16x4xf32> to vector<16x16x4xf32>
    %41 = arith.addf %38, %40 : vector<16x16x4xf32>
    %42 = tpu.transpose %41, [0, 2, 1] : vector<16x16x4xf32> -> vector<16x4x16xf32>
    %43 = vector.shape_cast %32 : vector<16x4xf32> to vector<16x4x1xf32>
    %44 = vector.broadcast %43 : vector<16x4x1xf32> to vector<16x4x16xf32>
    %45 = arith.addf %42, %44 : vector<16x4x16xf32>
    %cst_30 = arith.constant 0.000000e+00 : f32
    %46 = vector.broadcast %cst_30 : f32 to vector<16x4x16xf32>
    %47 = arith.cmpf oge, %45, %46 : vector<16x4x16xf32>
    %cst_31 = arith.constant 2.000000e-01 : f32
    %48 = vector.broadcast %cst_31 : f32 to vector<16x4x16xf32>
    %49 = arith.mulf %48, %45 : vector<16x4x16xf32>
    %50 = arith.select %47, %45, %49 : vector<16x4x16xi1>, vector<16x4x16xf32>
    %c0_32 = arith.constant 0 : index
    %c0_33 = arith.constant 0 : index
    %51 = vector.load %arg3[%c0_32, %c0_33] : memref<16x16xf32, #tpu.memory_space<vmem>>, vector<16x16xf32>
    %52 = vector.shape_cast %51 : vector<16x16xf32> to vector<16x1x16xf32>
    %cst_34 = arith.constant 0.000000e+00 : f32
    %53 = vector.broadcast %cst_34 : f32 to vector<16x1x16xf32>
    %54 = arith.cmpf ogt, %52, %53 : vector<16x1x16xf32>
    %cst_35 = arith.constant -1.000000e+30 : f32
    %55 = vector.shape_cast %54 : vector<16x1x16xi1> to vector<16x1x16xi1>
    %56 = vector.broadcast %55 : vector<16x1x16xi1> to vector<16x4x16xi1>
    %57 = vector.broadcast %cst_35 : f32 to vector<16x4x16xf32>
    %58 = arith.select %56, %50, %57 : vector<16x4x16xi1>, vector<16x4x16xf32>
    %cst_36 = arith.constant dense<0xFF800000> : vector<16x4xf32>
    %59 = vector.multi_reduction <maximumf>, %58, %cst_36 [2] : vector<16x4x16xf32> to vector<16x4xf32>
    %60 = vector.shape_cast %59 : vector<16x4xf32> to vector<16x4x1xf32>
    %61 = vector.broadcast %60 : vector<16x4x1xf32> to vector<16x4x16xf32>
    %62 = arith.subf %58, %61 : vector<16x4x16xf32>
    %63 = math.exp %62 : vector<16x4x16xf32>
    %64 = vector.broadcast %52 : vector<16x1x16xf32> to vector<16x4x16xf32>
    %65 = arith.mulf %63, %64 : vector<16x4x16xf32>
    %cst_37 = arith.constant dense<0.000000e+00> : vector<16x4xf32>
    %66 = vector.multi_reduction <add>, %65, %cst_37 [2] : vector<16x4x16xf32> to vector<16x4xf32>
    %cst_38 = arith.constant 1.000000e-30 : f32
    %67 = vector.broadcast %cst_38 : f32 to vector<16x4xf32>
    %68 = arith.maximumf %66, %67 : vector<16x4xf32>
    %69 = arith.mulf %65, %42 : vector<16x4x16xf32>
    %cst_39 = arith.constant dense<0.000000e+00> : vector<16x4xf32>
    %70 = vector.multi_reduction <add>, %69, %cst_39 [2] : vector<16x4x16xf32> to vector<16x4xf32>
    %71 = tpu.reciprocal %68 {approx = true} : vector<16x4xf32> -> vector<16x4xf32>
    %72 = arith.mulf %70, %71 : vector<16x4xf32>
    %cst_40 = arith.constant dense<0.000000e+00> : vector<16xf32>
    %73 = vector.multi_reduction <add>, %72, %cst_40 [1] : vector<16x4xf32> to vector<16xf32>
    %74 = vector.shape_cast %73 : vector<16xf32> to vector<16x1xf32>
    %cst_41 = arith.constant 4.000000e+00 : f32
    %75 = vector.broadcast %cst_41 : f32 to vector<16x1xf32>
    %76 = arith.divf %74, %75 : vector<16x1xf32>
    %c0_42 = arith.constant 0 : index
    %c0_43 = arith.constant 0 : index
    %77 = vector.load %arg0[%c0_42, %c0_43] : memref<16x32xf32, #tpu.memory_space<vmem>>, vector<16x32xf32>
    %78 = vector.broadcast %76 : vector<16x1xf32> to vector<16x32xf32>
    %79 = arith.addf %78, %77 : vector<16x32xf32>
    %c0_44 = arith.constant 0 : index
    %c0_45 = arith.constant 0 : index
    %80 = vector.load %arg20[%c0_44, %c0_45] : memref<16x32xf32, #tpu.memory_space<vmem>>, vector<16x32xf32>
    tpu.vector_store %arg20[%c0_44, %c0_45], %79 {strides = array<i32>} : memref<16x32xf32, #tpu.memory_space<vmem>>, vector<16x32xf32>,
    %c0_46 = arith.constant 0 : index
    %c0_47 = arith.constant 0 : index
    %81 = vector.load %arg14[%c0_46, %c0_47] : memref<32x32xf32, #tpu.memory_space<vmem>>, vector<32x32xf32>
    %cst_48 = arith.constant dense<0.000000e+00> : vector<16x32xf32>
    %82 = tpu.matmul %79, %81, %cst_48 {dimension_numbers = #tpu.dot_dimension_numbers<[1], [0], [0], [1], [0, 0, 1, 1], [], []>} : vector<16x32xf32>, vector<32x32xf32>, vector<16x32xf32> -> vector<16x32xf32>
    %c0_49 = arith.constant 0 : index
    %c0_50 = arith.constant 0 : index
    %83 = vector.load %arg15[%c0_49, %c0_50] : memref<1x32xf32, #tpu.memory_space<vmem>>, vector<1x32xf32>
    %84 = vector.broadcast %83 : vector<1x32xf32> to vector<16x32xf32>
    %85 = arith.addf %82, %84 : vector<16x32xf32>
    %c0_51 = arith.constant 0 : index
    %c0_52 = arith.constant 0 : index
    %86 = vector.load %arg16[%c0_51, %c0_52] : memref<32x32xf32, #tpu.memory_space<vmem>>, vector<32x32xf32>
    %cst_53 = arith.constant dense<0.000000e+00> : vector<16x32xf32>
    %87 = tpu.matmul %79, %86, %cst_53 {dimension_numbers = #tpu.dot_dimension_numbers<[1], [0], [0], [1], [0, 0, 1, 1], [], []>} : vector<16x32xf32>, vector<32x32xf32>, vector<16x32xf32> -> vector<16x32xf32>
    %c0_54 = arith.constant 0 : index
    %c0_55 = arith.constant 0 : index
    %88 = vector.load %arg17[%c0_54, %c0_55] : memref<1x32xf32, #tpu.memory_space<vmem>>, vector<1x32xf32>
    %89 = vector.broadcast %88 : vector<1x32xf32> to vector<16x32xf32>
    %90 = arith.addf %87, %89 : vector<16x32xf32>
    %91 = vector.extract_strided_slice %85 {offsets = [0, 0], sizes = [6, 32], strides = [1, 1]} : vector<16x32xf32> to vector<6x32xf32>
    %92 = vector.extract_strided_slice %90 {offsets = [6, 0], sizes = [6, 32], strides = [1, 1]} : vector<16x32xf32> to vector<6x32xf32>
    %93 = vector.extract_strided_slice %90 {offsets = [10, 0], sizes = [6, 32], strides = [1, 1]} : vector<16x32xf32> to vector<6x32xf32>
    %94 = arith.addf %91, %92 : vector<6x32xf32>
    %cst_56 = arith.constant 0.000000e+00 : f32
    %95 = vector.broadcast %cst_56 : f32 to vector<6x32xf32>
    %96 = arith.maximumf %94, %95 : vector<6x32xf32>
    %97 = arith.addf %91, %93 : vector<6x32xf32>
    %cst_57 = arith.constant 0.000000e+00 : f32
    %98 = vector.broadcast %cst_57 : f32 to vector<6x32xf32>
    %99 = arith.maximumf %97, %98 : vector<6x32xf32>
    %c0_58 = arith.constant 0 : index
    %c0_59 = arith.constant 0 : index
    %100 = vector.load %arg18[%c0_58, %c0_59] : memref<1x32xf32, #tpu.memory_space<vmem>>, vector<1x32xf32>
    %101 = vector.broadcast %100 : vector<1x32xf32> to vector<6x32xf32>
    %102 = arith.mulf %96, %101 : vector<6x32xf32>
    %cst_60 = arith.constant dense<0.000000e+00> : vector<6xf32>
    %103 = vector.multi_reduction <add>, %102, %cst_60 [1] : vector<6x32xf32> to vector<6xf32>
    %104 = vector.shape_cast %103 : vector<6xf32> to vector<6x1xf32>
    %c0_61 = arith.constant 0 : index
    %c0_62 = arith.constant 0 : index
    %105 = vector.load %arg19[%c0_61, %c0_62] : memref<1x1xf32, #tpu.memory_space<vmem>>, vector<1x1xf32>
    %106 = vector.broadcast %105 : vector<1x1xf32> to vector<6x1xf32>
    %107 = arith.addf %104, %106 : vector<6x1xf32>
    %c0_63 = arith.constant 0 : index
    %c0_64 = arith.constant 0 : index
    %c0_65 = arith.constant 0 : index
    %108 = vector.load %arg21[%c0_63, %c0_64, %c0_65] : memref<2x6x1xf32, #tpu.memory_space<vmem>>, vector<1x6x1xf32>
    %109 = vector.shape_cast %108 : vector<1x6x1xf32> to vector<6x1xf32>
    %110 = vector.shape_cast %107 : vector<6x1xf32> to vector<1x6x1xf32>
    tpu.vector_store %arg21[%c0_63, %c0_64, %c0_65], %110 {strides = array<i32>} : memref<2x6x1xf32, #tpu.memory_space<vmem>>, vector<1x6x1xf32>,
    %c0_66 = arith.constant 0 : index
    %c0_67 = arith.constant 0 : index
    %111 = vector.load %arg18[%c0_66, %c0_67] : memref<1x32xf32, #tpu.memory_space<vmem>>, vector<1x32xf32>
    %112 = vector.broadcast %111 : vector<1x32xf32> to vector<6x32xf32>
    %113 = arith.mulf %99, %112 : vector<6x32xf32>
    %cst_68 = arith.constant dense<0.000000e+00> : vector<6xf32>
    %114 = vector.multi_reduction <add>, %113, %cst_68 [1] : vector<6x32xf32> to vector<6xf32>
    %115 = vector.shape_cast %114 : vector<6xf32> to vector<6x1xf32>
    %c0_69 = arith.constant 0 : index
    %c0_70 = arith.constant 0 : index
    %116 = vector.load %arg19[%c0_69, %c0_70] : memref<1x1xf32, #tpu.memory_space<vmem>>, vector<1x1xf32>
    %117 = vector.broadcast %116 : vector<1x1xf32> to vector<6x1xf32>
    %118 = arith.addf %115, %117 : vector<6x1xf32>
    %c1 = arith.constant 1 : index
    %c0_71 = arith.constant 0 : index
    %c0_72 = arith.constant 0 : index
    %119 = vector.load %arg21[%c1, %c0_71, %c0_72] : memref<2x6x1xf32, #tpu.memory_space<vmem>>, vector<1x6x1xf32>
    %120 = vector.shape_cast %119 : vector<1x6x1xf32> to vector<6x1xf32>
    %121 = vector.shape_cast %118 : vector<6x1xf32> to vector<1x6x1xf32>
    tpu.vector_store %arg21[%c1, %c0_71, %c0_72], %121 {strides = array<i32>} : memref<2x6x1xf32, #tpu.memory_space<vmem>>, vector<1x6x1xf32>,
    return
  }
}

</mosaic_0001>

<bundles_post_ra>
// kernel: tpu_custom_call.1
= control target key start
LH: loop header
LB: loop body
LE: loop exit
PB: predicated region body
PF: predicated region fallthrough
CT: control target
= control target key end

     0   :  { %s19986_s0 = inlined_call_operand.vmem [shape: f32[16,32], index: 0, kind: input, shape index: {}]   ;;  %s19987_s1 = inlined_call_operand.vmem [shape: f32[256,8], index: 1, kind: input, shape index: {}]   ;;  %s19988_s2 = inlined_call_operand.vmem [shape: f32[256,32], index: 2, kind: input, shape index: {}]   ;;  %s19989_s3 = inlined_call_operand.vmem [shape: f32[16,16], index: 3, kind: input, shape index: {}]   ;;  %s19990_s4 = inlined_call_operand.vmem [shape: f32[1,32], index: 4, kind: input, shape index: {}]   ;;  %s19991_s5 = inlined_call_operand.vmem [shape: f32[1,32], index: 5, kind: input, shape index: {}]   ;;  %s19992_s6 = inlined_call_operand.vmem [shape: f32[32,128], index: 6, kind: input, shape index: {}]   ;;  %s19993_s7 = inlined_call_operand.vmem [shape: f32[1,128], index: 7, kind: input, shape index: {}]   ;;  %s19994_s8 = inlined_call_operand.vmem [shape: f32[8,128], index: 8, kind: input, shape index: {}]   ;;  %s19995_s9 = inlined_call_operand.vmem [shape: f32[32,128], index: 9, kind: input, shape index: {}]   ;;  %s19996_s10 = inlined_call_operand.vmem [shape: f32[1,128], index: 10, kind: input, shape index: {}]   ;;  %s19997_s11 = inlined_call_operand.vmem [shape: f32[1,128], index: 11, kind: input, shape index: {}]   ;;  %s19998_s12 = inlined_call_operand.vmem [shape: f32[1,128], index: 12, kind: input, shape index: {}]   ;;  %s19999_s13 = inlined_call_operand.vmem [shape: f32[1,128], index: 13, kind: input, shape index: {}]   ;;  %s20000_s14 = inlined_call_operand.vmem [shape: f32[32,32], index: 14, kind: input, shape index: {}]   ;;  %s20001_s15 = inlined_call_operand.vmem [shape: f32[1,32], index: 15, kind: input, shape index: {}]   ;;  %s20002_s16 = inlined_call_operand.vmem [shape: f32[32,32], index: 16, kind: input, shape index: {}]   ;;  %s20003_s17 = inlined_call_operand.vmem [shape: f32[1,32], index: 17, kind: input, shape index: {}]   ;;  %s20004_s18 = inlined_call_operand.vmem [shape: f32[1,32], index: 18, kind: input, shape index: {}]   ;;  %s20005_s19 = inlined_call_operand.<no memory space> [shape: f32[1,1], index: 19, kind: input, shape index: {}]   ;;  %s20006_s20 = inlined_call_operand.hbm [shape: f32[16,32], index: 20, kind: output, shape index: {0}]   ;;  %s20007_s21 = inlined_call_operand.vmem [shape: f32[2,6,1], index: 21, kind: output, shape index: {1}]  }
   0x1   :  { %20283 = sst [smem:[#allocation139_spill]] %s19986_s0  ;;  %v27_v0 = vstv %s20005_s19 }
   0x2   :  { %20284 = sst [smem:[#allocation140_spill]] %s19987_s1  ;;  %28 = vst [vmem:[#allocation2] sm:$0x1] %v27_v0 }
   0x3   :  { %20285 = sst [smem:[#allocation141_spill]] %s19988_s2 }
   0x4   :  { %20286 = sst [smem:[#allocation142_spill]] %s19989_s3 }
   0x5   :  { %20287 = sst [smem:[#allocation143_spill]] %s19990_s4 }
   0x6   :  { %20288 = sst [smem:[#allocation144_spill]] %s19991_s5 }
   0x7   :  { %v3478_v1 = vld [vmem:[%s19992_s6] sm:$0xff]  ;;  %v3479_v2 = vld [vmem:[%s19992_s6 + $0x8] sm:$0xff]  ;;  %v3480_v3 = vld [vmem:[%s19992_s6 + $0x10] sm:$0xff]  ;;  %vm20282_vm0 = vcmask 261120   ;;  %s20289_s22 = sld [smem:[#allocation139_spill]]  ;;  %s20290_s29 = sld [smem:[#allocation141_spill]] }
   0x8   :  { %v11797_v4 = vpack.c.bf16 %v3479_v2, %v3478_v1  ;;  %v3481_v5 = vld [vmem:[%s19992_s6 + $0x18] sm:$0xff]  ;;  %v3604_v8 = vld [vmem:[%s19995_s9] sm:$0xff]  ;;  %v3605_v9 = vld [vmem:[%s19995_s9 + $0x8] sm:$0xff]  ;;  %s20291_s30 = sld [smem:[#allocation143_spill]]  ;;  %s20292_s23 = sld [smem:[#allocation144_spill]] }
   0x9   :  { %v11801_v7 = vpack.c.bf16 %v3481_v5, %v3480_v3  ;;  %v11805_v10 = vpack.c.bf16 %v3605_v9, %v3604_v8  ;;  %v3606_v11 = vld [vmem:[%s19995_s9 + $0x10] sm:$0xff]  ;;  %v3607_v12 = vld [vmem:[%s19995_s9 + $0x18] sm:$0xff]  ;;  %v12418_v18 = vld [vmem:[%s19994_s8] sm:$0xff] }
   0xa   :  { %11798 = vmatprep.subr.bf16.mxu0 %v11797_v4  ;;  %v11809_v13 = vpack.c.bf16 %v3607_v12, %v3606_v11 }
   0xb   :  { %11800 = vmatpush3.bf16.msra.mxu0 %v11797_v4  ;;  %11806 = vmatprep.subr.bf16.mxu1 %v11805_v10 }
   0xc   :  { %11802 = vmatprep.subr.bf16.mxu0 %v11801_v7  ;;  %11808 = vmatpush3.bf16.msra.mxu1 %v11805_v10 }
   0xd   :  { %v3476_v6 = vld [vmem:[%s20289_s22] sm:$0xff]  ;;  %v71_v19 = vld [vmem:[%s20290_s29 + $0x8] sm:$0xff]  ;;  %v72_v20 = vld [vmem:[%s20290_s29 + $0x10] sm:$0xff]  ;;  %11810 = vmatprep.subr.bf16.mxu1 %v11809_v13 }
   0xe   :  { %11666 = vmatprep.mubr.msk.f32.mxu0 %vm20282_vm0, %v3476_v6  ;;  %v70_v14 = vld [vmem:[%s20290_s29] sm:$0xff]  ;;  %v3477_v24 = vld [vmem:[%s20289_s22 + $0x8] sm:$0xff] }
   0xf   :  { %v12407_v15 = vld [vmem:[%s20291_s30] ss:$0 sm:$0xff]  ;;  %11804 = vmatpush3.bf16.msra.mxu0 %v11801_v7 }
  0x10   :  { %v12412_v16 = vld [vmem:[%s20292_s23] ss:$0 sm:$0xff]  ;;  %v109_v17 = vmul.f32 %v12407_v15, %v70_v14  ;;  %v110_v22 = vmul.f32 %v12407_v15, %v71_v19  ;;  %v111_v23 = vmul.f32 %v12407_v15, %v72_v20 }
  0x12   :  { %v12427_v21 = vadd.f32 %v12412_v16, %v109_v17 }
  0x13   :  { %29 = vsyncpa [#allocation4], 0  ;;  %11725 = vmatprep.subr.mxu0 %v12418_v18  ;;  %s20293_s28 = sld [smem:[#allocation140_spill]]  ;;  %vm3929_vm1 = vcmask 64512   ;;  %11812 = vmatpush3.bf16.msra.mxu1 %v11809_v13  ;;  %v12441_v28 = vadd.f32 %v12412_v16, %v110_v22  ;;  %v12444_v29 = vadd.f32 %v12412_v16, %v111_v23  ;;  %v73_v45 = vld [vmem:[%s20290_s29 + $0x18] sm:$0xff]  ;;  %s12251_s27 = smov 32  }
  0x14   :  { %v180_v26 = vand.u32 2147483647, %v12427_v21  ;;  %v183_v27 = vand.u32 2139095040, %v12427_v21  ;;  %11667 = vmatmul.mubr.msk.f32.vlgmr.msra.gmra.mrb[0].mxu0 %vm20282_vm0, %v3477_v24  ;;  %11829 = vmatprep.subr.mxu1 %v12418_v18  ;;  %v12470_v51 = vmul.f32 %v12407_v15, %v73_v45  ;;  %v20025_v57 = vmov 683565275  }
  0x15   :  { %11726 = vmatpush3.msra.mxu0 %v12418_v18  ;;  %v283_v33 = vand.u32 2147483647, %v12441_v28  ;;  %v286_v34 = vand.u32 2139095040, %v12441_v28  ;;  %v389_v39 = vand.u32 2139095040, %v12444_v29  ;;  %v386_v50 = vand.u32 2147483647, %v12444_v29 }
  0x16   :  { %v184_v30 = vshrl.u32 %v183_v27, 23  ;;  %v187_v31 = vand.u32 8388607, %v180_v26  ;;  %v20023_v59 = vmov 2475754826   ;;  %vm182_vm15 = vcmp.lt.s32.totalorder %v12427_v21, 0 }
  0x17   :  { %v287_v37 = vshrl.u32 %v286_v34, 23  ;;  %v290_v38 = vand.u32 8388607, %v283_v33  ;;  %v390_v44 = vshrl.u32 %v389_v39, 23  ;;  %v20021_v61 = vmov 2131351028  }
  0x18   :  { %v11361_v35 = vadd.s32 4294967169, %v184_v30  ;;  %v188_v41 = vor.u32 8388608, %v187_v31  ;;  %v20019_v63 = vmov 2102212464   ;;  %v20017_v1 = vmov 920167782  }
  0x19   :  { %v3571_v25 = vld [vmem:[%s20293_s28] sm:$0xff]  ;;  %v3572_v32 = vld [vmem:[%s20293_s28 + $0x8] sm:$0xff]  ;;  %v3573_v36 = vld [vmem:[%s20293_s28 + $0x10] sm:$0xff]  ;;  %v11365_v42 = vadd.s32 4294967169, %v287_v37  ;;  %v291_v43 = vor.u32 8388608, %v290_v38  ;;  %v12476_v54 = vadd.s32 4294967169, %v390_v44 }
  0x1a   :  { %11727 = vmatprep.mubr.msk.f32.mxu0 %vm3929_vm1, %v3571_v25  ;;  %v190_v40 = vadd.s32 1, %v11361_v35  ;;  %v12472_v52 = vshll.u32 %v188_v41, 8  ;;  %v3574_v55 = vld [vmem:[%s20293_s28 + $0x18] sm:$0xff]  ;;  %v20015_v8 = vmov 1326507024  }
  0x1b   :  { %11728 = vmatmul.mubr.msk.f32.vlgmr.msra.gmra.mrb[2].mxu0 %vm3929_vm1, %v3572_v32  ;;  %v293_v47 = vadd.s32 1, %v11365_v42  ;;  %v12474_v53 = vshll.u32 %v291_v43, 8 }
  0x1c   :  { %11730 = vmatprep.mubr.msk.f32.mxu0 %vm3929_vm1, %v3573_v36  ;;  %vm191_vm2 = vcmp.gt.s32.totalorder %v190_v40, 0 }
  0x1d   :  { %v192_v46 = vsel %vm191_vm2, %v190_v40, 0  ;;  %vm294_vm3 = vcmp.gt.s32.totalorder %v293_v47, 0 }
  0x1e   :  { %v193_v48 = vshrl.u32 %v192_v46, 5  ;;  %v194_v49 = vand.u32 31, %v192_v46  ;;  %v295_v13 = vsel %vm294_vm3, %v293_v47, 0 }
  0x1f   :  { %11731 = vmatmul.mubr.msk.f32.gmra.mrb[4].mxu0 %vm3929_vm1, %v3574_v55  ;;  %v296_v19 = vshrl.u32 %v295_v13, 5  ;;  %v297_v20 = vand.u32 31, %v295_v13 }
  0x20   :  { %v195_v56 = vsub.s32 32, %v194_v49  ;;  %v197_v58 = vshll.u32 %v20025_v57, %v194_v49  ;;  %v200_v60 = vshll.u32 %v20023_v59, %v194_v49  ;;  %v203_v62 = vshll.u32 %v20021_v61, %v194_v49 }
  0x21   :  { %v206_v0 = vshll.u32 %v20019_v63, %v194_v49  ;;  %v209_v2 = vshll.u32 %v20017_v1, %v194_v49  ;;  %vm212_vm4 = vcmp.lt.s32.totalorder %v193_v48, 1  ;;  %vm213_vm5 = vcmp.lt.s32.totalorder %v193_v48, 2 }
  0x22   :  { %v196_v3 = vshrl.u32 %v20025_v57, %v195_v56  ;;  %v198_v4 = vshrl.u32 %v20023_v59, %v195_v56  ;;  %v201_v5 = vshrl.u32 %v20021_v61, %v195_v56  ;;  %v204_v6 = vshrl.u32 %v20019_v63, %v195_v56 }
  0x23   :  { %v207_v7 = vshrl.u32 %v20017_v1, %v195_v56  ;;  %v210_v9 = vshrl.u32 %v20015_v8, %v195_v56  ;;  %vm214_vm6 = vcmp.lt.s32.totalorder %v193_v48, 3  ;;  %vm215_vm7 = vcmp.lt.s32.totalorder %v193_v48, 4 }
  0x24   :  { %v199_v10 = vor.u32 %v198_v4, %v197_v58  ;;  %v202_v11 = vor.u32 %v201_v5, %v200_v60  ;;  %v205_v12 = vor.u32 %v204_v6, %v203_v62  ;;  %v298_v32 = vsub.s32 32, %v297_v20 }
  0x25   :  { %v208_v14 = vor.u32 %v207_v7, %v206_v0  ;;  %v211_v17 = vor.u32 %v210_v9, %v209_v2  ;;  %v300_v37 = vshll.u32 %v20025_v57, %v297_v20  ;;  %v303_v47 = vshll.u32 %v20023_v59, %v297_v20 }
  0x26   :  { %v216_v22 = vsel %vm212_vm4, %v196_v3, %v199_v10  ;;  %v217_v23 = vsel %vm215_vm7, %v205_v12, 2102212464  ;;  %v220_v24 = vsel %vm212_vm4, %v199_v10, %v202_v11  ;;  %v224_v25 = vsel %vm212_vm4, %v202_v11, %v205_v12 }
  0x27   :  { %v218_v27 = vsel %vm214_vm6, %v202_v11, %v217_v23  ;;  %v221_v30 = vsel %vm215_vm7, %v208_v14, 920167782  ;;  %v225_v31 = vsel %vm215_vm7, %v211_v17, 1326507024  ;;  %v299_v41 = vshrl.u32 %v20025_v57, %v298_v32 }
  0x28   :  { %v219_v34 = vsel %vm213_vm5, %v216_v22, %v218_v27  ;;  %v222_v35 = vsel %vm214_vm6, %v205_v12, %v221_v30  ;;  %v226_v36 = vsel %vm214_vm6, %v208_v14, %v225_v31  ;;  %v301_v46 = vshrl.u32 %v20023_v59, %v298_v32  ;;  %v74_v27 = vld [vmem:[%s20290_s29 + $0x20] sm:$0xff] }
  0x29   :  { %v223_v38 = vsel %vm213_vm5, %v220_v24, %v222_v35  ;;  %v227_v39 = vsel %vm213_vm5, %v224_v25, %v226_v36  ;;  %v235_v40 = vmul.u32 %v12472_v52, %v219_v34  ;;  %v304_v48 = vshrl.u32 %v20021_v61, %v298_v32 }
  0x2a   :  { %v12507_v42 = vmul.u32.u64.low %v12472_v52, %v227_v39  ;;  %v12508_v43 = vmul.u32.u64.high %v12472_v52, %v227_v39, %v12507_v42  ;;  %v12511_v44 = vmul.u32.u64.low %v12472_v52, %v223_v38  ;;  %v12512_v45 = vmul.u32.u64.high %v12472_v52, %v223_v38, %v12511_v44 }
  0x2b   :  { %v306_v49 = vshll.u32 %v20021_v61, %v297_v20  ;;  %v307_v55 = vshrl.u32 %v20019_v63, %v298_v32  ;;  %v309_v56 = vshll.u32 %v20019_v63, %v297_v20  ;;  %v310_v58 = vshrl.u32 %v20017_v1, %v298_v32 }
  0x2c   :  { %v312_v60 = vshll.u32 %v20017_v1, %v297_v20  ;;  %v302_v62 = vor.u32 %v301_v46, %v300_v37  ;;  %v305_v52 = vor.u32 %v304_v48, %v303_v47  ;;  %v313_v0 = vshrl.u32 %v20015_v8, %v298_v32  ;;  %v3575_v46 = vld [vmem:[%s20293_s28 + $0x20] sm:$0xff] }
  0x2d   :  { %vm315_vm8 = vcmp.lt.s32.totalorder %v296_v19, 1  ;;  %vm237_vm9 = vc.u32 %v12508_v43, %v12511_v44  ;;  %v238_v2 = vadd.s32 1, %v12512_v45  ;;  %v308_v3 = vor.u32 %v307_v55, %v306_v49  ;;  %11733 = vmatprep.mubr.msk.f32.mxu0 %vm3929_vm1, %v3575_v46 }
  0x2e   :  { %v396_v4 = vadd.s32 1, %v12476_v54  ;;  %v311_v5 = vor.u32 %v310_v58, %v309_v56  ;;  %v314_v6 = vor.u32 %v313_v0, %v312_v60  ;;  %vm316_vm10 = vcmp.lt.s32.totalorder %v296_v19, 2 }
  0x2f   :  { %vm317_vm11 = vcmp.lt.s32.totalorder %v296_v19, 3  ;;  %v239_v7 = vsel %vm237_vm9, %v238_v2, %v12512_v45  ;;  %vm318_vm12 = vcmp.lt.s32.totalorder %v296_v19, 4  ;;  %v319_v9 = vsel %vm315_vm8, %v299_v41, %v302_v62 }
  0x30   :  { %v323_v10 = vsel %vm315_vm8, %v302_v62, %v305_v52  ;;  %v240_v11 = vadd.s32 %v239_v7, %v235_v40  ;;  %v320_v12 = vsel %vm318_vm12, %v308_v3, 2102212464  ;;  %v324_v13 = vsel %vm318_vm12, %v311_v5, 920167782 }
  0x31   :  { %v327_v14 = vsel %vm315_vm8, %v305_v52, %v308_v3  ;;  %v321_v17 = vsel %vm317_vm11, %v305_v52, %v320_v12  ;;  %v325_v20 = vsel %vm317_vm11, %v308_v3, %v324_v13  ;;  %v328_v22 = vsel %vm318_vm12, %v314_v6, 1326507024 }
  0x32   :  { %vm397_vm13 = vcmp.gt.s32.totalorder %v396_v4, 0  ;;  %v241_v54 = vadd.s32 536870912, %v240_v11  ;;  %v326_v23 = vsel %vm316_vm10, %v323_v10, %v325_v20  ;;  %v329_v24 = vsel %vm317_vm11, %v311_v5, %v328_v22 }
  0x33   :  { %v393_v25 = vand.u32 8388607, %v386_v50  ;;  %v322_v30 = vsel %vm316_vm10, %v319_v9, %v321_v17  ;;  %v330_v31 = vsel %vm316_vm10, %v327_v14, %v329_v24  ;;  %v398_v38 = vsel %vm397_vm13, %v396_v4, 0 }
  0x34   :  { %v12541_v32 = vmul.u32.u64.low %v12474_v53, %v326_v23  ;;  %v12542_v34 = vmul.u32.u64.high %v12474_v53, %v326_v23, %v12541_v32  ;;  %v12545_v35 = vshrl.u32 %v241_v54, 30  ;;  %v400_v39 = vand.u32 31, %v398_v38 }
  0x35   :  { %v12548_v36 = vmul.u32.u64.low %v12474_v53, %v330_v31  ;;  %v12549_v37 = vmul.u32.u64.high %v12474_v53, %v330_v31, %v12548_v36  ;;  %v113_v40 = vmul.f32 %v12407_v15, %v74_v27  ;;  %v338_v19 = vmul.u32 %v12474_v53, %v322_v30 }
  0x36   :  { %v243_v41 = vshll.u32 %v12545_v35, 30  ;;  %v341_v42 = vadd.s32 1, %v12542_v34  ;;  %v401_v45 = vsub.s32 32, %v400_v39  ;;  %v394_v48 = vor.u32 8388608, %v393_v25 }
  0x37   :  { %vm340_vm14 = vc.u32 %v12549_v37, %v12541_v32  ;;  %v12564_v49 = vadd.f32 %v12412_v16, %v12470_v51  ;;  %v403_v55 = vshll.u32 %v20025_v57, %v400_v39  ;;  %v12570_v56 = vadd.f32 %v12412_v16, %v113_v40 }
  0x38   :  { %v12558_v47 = vsub.s32 %v240_v11, %v243_v41  ;;  %v342_v53 = vsel %vm340_vm14, %v341_v42, %v12542_v34  ;;  %v404_v62 = vshrl.u32 %v20023_v59, %v401_v45  ;;  %v406_v52 = vshll.u32 %v20023_v59, %v400_v39 }
  0x39   :  { %v343_v60 = vadd.s32 %v342_v53, %v338_v19  ;;  %v407_v0 = vshrl.u32 %v20021_v61, %v401_v45  ;;  %v409_v51 = vshll.u32 %v20021_v61, %v400_v39  ;;  %v410_v2 = vshrl.u32 %v20019_v63, %v401_v45 }
  0x3a   :  { %v246_v58 = vsub.s32 0, %v12558_v47  ;;  %v412_v3 = vshll.u32 %v20019_v63, %v400_v39  ;;  %v399_v5 = vshrl.u32 %v398_v38, 5  ;;  %v12580_v6 = vshll.u32 %v394_v48, 8 }
  0x3b   :  { %v492_v7 = vand.u32 2139095040, %v12564_v49  ;;  %v236_v9 = vadd.s32 %v12511_v44, %v12508_v43  ;;  %v344_v10 = vadd.s32 536870912, %v343_v60  ;;  %v402_v11 = vshrl.u32 %v20025_v57, %v401_v45 }
  0x3c   :  { %v11362_v4 = vmin.u32 %v246_v58, %v12558_v47  ;;  %v413_v12 = vshrl.u32 %v20017_v1, %v401_v45  ;;  %v405_v14 = vor.u32 %v404_v62, %v403_v55  ;;  %v415_v17 = vshll.u32 %v20017_v1, %v400_v39 }
  0x3d   :  { %v416_v20 = vshrl.u32 %v20015_v8, %v401_v45  ;;  %v345_v22 = vshrl.u32 %v344_v10, 30  ;;  %v408_v54 = vor.u32 %v407_v0, %v406_v52  ;;  %v411_v23 = vor.u32 %v410_v2, %v409_v51 }
  0x3e   :  { %v248_v13 = vclz %v11362_v4  ;;  %v414_v24 = vor.u32 %v413_v12, %v412_v3  ;;  %vm418_vm2 = vcmp.lt.s32.totalorder %v399_v5, 1  ;;  %vm421_vm3 = vcmp.lt.s32.totalorder %v399_v5, 4 }
  0x3f   :  { %v493_v43 = vshrl.u32 %v492_v7, 23  ;;  %v266_v44 = vsub.s32 4, %v12545_v35  ;;  %v346_v27 = vshll.u32 %v345_v22, 30  ;;  %v417_v30 = vor.u32 %v416_v20, %v415_v17 }
  0x40   :  { %v11363_v25 = vadd.s32 4294967294, %v248_v13  ;;  %v423_v31 = vsel %vm421_vm3, %v411_v23, 2102212464  ;;  %vm419_vm5 = vcmp.lt.s32.totalorder %v399_v5, 2  ;;  %vm420_vm6 = vcmp.lt.s32.totalorder %v399_v5, 3 }
  0x41   :  { %v427_v34 = vsel %vm421_vm3, %v414_v24, 920167782  ;;  %vm12595_vm7 = vcmp.le.f32.partialorder %v180_v26, 0.7853982  ;;  %vm285_vm8 = vcmp.lt.s32.totalorder %v12441_v28, 0  ;;  %v12600_v39 = vsub.s32 %v343_v60, %v346_v27 }
  0x42   :  { %vm11364_vm4 = vcmp.lt.s32.totalorder %v11363_v25, 0  ;;  %v422_v40 = vsel %vm418_vm2, %v402_v11, %v405_v14  ;;  %v426_v41 = vsel %vm418_vm2, %v405_v14, %v408_v54  ;;  %v424_v46 = vsel %vm420_vm6, %v408_v54, %v423_v31 }
  0x43   :  { %v251_v38 = vsel %vm11364_vm4, 0, %v11363_v25  ;;  %v349_v26 = vsub.s32 0, %v12600_v39  ;;  %v428_v48 = vsel %vm420_vm6, %v411_v23, %v427_v34  ;;  %v430_v53 = vsel %vm418_vm2, %v408_v54, %v411_v23 }
  0x44   :  { %v252_v19 = vsub.s32 32, %v251_v38  ;;  %v253_v42 = vshll.u32 %v12558_v47, %v251_v38  ;;  %v256_v45 = vsub.s32 4294967266, %v251_v38  ;;  %v431_v55 = vsel %vm421_vm3, %v417_v30, 1326507024 }
  0x45   :  { %v432_v62 = vsel %vm420_vm6, %v414_v24, %v431_v55  ;;  %v489_v52 = vand.u32 2147483647, %v12564_v49  ;;  %v267_v47 = vsel %vm182_vm15, %v266_v44, %v12545_v35  ;;  %v11366_v0 = vmin.u32 %v349_v26, %v12600_v39 }
  0x46   :  { %v254_v58 = vshrl.u32 %v236_v9, %v252_v19  ;;  %v257_v60 = vadd.s32 127, %v256_v45  ;;  %v369_v51 = vsub.s32 4, %v345_v22  ;;  %v429_v2 = vsel %vm419_vm5, %v426_v41, %v428_v48  ;;  %v3576_v45 = vld [vmem:[%s20293_s28 + $0x28] sm:$0xff] }
  0x47   :  { %v425_v7 = vsel %vm419_vm5, %v422_v40, %v424_v46  ;;  %v433_v9 = vsel %vm419_vm5, %v430_v53, %v432_v62  ;;  %v351_v10 = vclz %v11366_v0  ;;  %v11373_v13 = vadd.s32 4294967169, %v493_v43  ;;  %11734 = vmatmul.mubr.msk.f32.gmra.mrb[6].mxu0 %vm3929_vm1, %v3576_v45 }
  0x48   :  { %v255_v3 = vor.u32 %v254_v58, %v253_v42  ;;  %v258_v4 = vshll.u32 %v257_v60, 23  ;;  %v12620_v11 = vmul.u32.u64.low %v12580_v6, %v433_v9  ;;  %v12621_v12 = vmul.u32.u64.high %v12580_v6, %v433_v9, %v12620_v11 }
  0x49   :  { %v12624_v35 = vmul.u32.u64.low %v12580_v6, %v429_v2  ;;  %v12625_v20 = vmul.u32.u64.high %v12580_v6, %v429_v2, %v12624_v35  ;;  %vm12629_vm9 = vcmp.le.f32.partialorder %v283_v33, 0.7853982  ;;  %v11367_v5 = vadd.s32 4294967294, %v351_v10 }
  0x4a   :  { %v259_v14 = vor.u32 4788187, %v258_v4  ;;  %v262_v17 = vcvt.s32.f32 %v255_v3  ;;  %v496_v23 = vand.u32 8388607, %v489_v52  ;;  %v499_v24 = vadd.s32 1, %v11373_v13 }
  0x4b   :  { %v269_v43 = vsel %vm12595_vm7, 0, %v267_v47  ;;  %v339_v44 = vadd.s32 %v12541_v32, %v12549_v37  ;;  %v370_v27 = vsel %vm285_vm8, %v369_v51, %v345_v22  ;;  %vm11368_vm10 = vcmp.lt.s32.totalorder %v11367_v5, 0 }
  0x4c   :  { %v260_v25 = vand.u32 2147483647, %v259_v14  ;;  %v441_v33 = vmul.u32 %v12580_v6, %v425_v7  ;;  %vm443_vm11 = vc.u32 %v12621_v12, %v12624_v35  ;;  %vm500_vm12 = vcmp.gt.s32.totalorder %v499_v24, 0 }
  0x4d   :  { %v354_v31 = vsel %vm11368_vm10, 0, %v11367_v5  ;;  %v444_v34 = vadd.s32 1, %v12625_v20  ;;  %v501_v38 = vsel %vm500_vm12, %v499_v24, 0  ;;  %v372_v32 = vsel %vm12629_vm9, 0, %v370_v27 }
  0x4e   :  { %v263_v30 = vmul.f32 %v262_v17, %v260_v25  ;;  %v355_v40 = vsub.s32 32, %v354_v31  ;;  %v356_v41 = vshll.u32 %v12600_v39, %v354_v31  ;;  %v359_v19 = vsub.s32 4294967266, %v354_v31 }
  0x4f   :  { %v445_v22 = vsel %vm443_vm11, %v444_v34, %v12625_v20  ;;  %v497_v42 = vor.u32 8388608, %v496_v23  ;;  %v503_v6 = vand.u32 31, %v501_v38  ;;  %v12651_v46 = vand.u32 3, %v269_v43 }
  0x50   :  { %v264_v37 = vxor.u32 2147483648, %v263_v30  ;;  %v357_v26 = vshrl.u32 %v339_v44, %v355_v40  ;;  %v360_v48 = vadd.s32 127, %v359_v19  ;;  %v446_v53 = vadd.s32 %v445_v22, %v441_v33 }
  0x51   :  { %v12656_v55 = vand.u32 3, %v372_v32  ;;  %v504_v58 = vsub.s32 32, %v503_v6  ;;  %v506_v60 = vshll.u32 %v20025_v57, %v503_v6  ;;  %v509_v3 = vshll.u32 %v20023_v59, %v503_v6 }
  0x52   :  { %v265_v39 = vsel %vm182_vm15, %v264_v37, %v263_v30  ;;  %v358_v47 = vor.u32 %v357_v26, %v356_v41  ;;  %v361_v0 = vshll.u32 %v360_v48, 23  ;;  %v447_v51 = vadd.s32 536870912, %v446_v53 }
  0x53   :  { %v268_v62 = vsel %vm12595_vm7, %v12427_v21, %v265_v39  ;;  %v507_v2 = vshrl.u32 %v20023_v59, %v504_v58  ;;  %v510_v4 = vshrl.u32 %v20021_v61, %v504_v58  ;;  %vm278_vm13 = vcmp.eq.s32.totalorder %v12651_v46, 2 }
  0x54   :  { %12010 = vcosq.f32 %v268_v62  ;;  %v362_v7 = vor.u32 4788187, %v361_v0  ;;  %v365_v9 = vcvt.s32.f32 %v358_v47  ;;  %v12665_v10 = vshrl.u32 %v447_v51, 30 }
  0x55   :  { %12012 = vsinq.f32 %v268_v62  ;;  %v502_v11 = vshrl.u32 %v501_v38, 5  ;;  %v512_v36 = vshll.u32 %v20021_v61, %v503_v6  ;;  %v513_v13 = vshrl.u32 %v20019_v63, %v504_v58 }
  0x56   :  { %v12670_v14 = vshll.u32 %v497_v42, 8  ;;  %vm275_vm14 = vcmp.eq.s32.totalorder %v12651_v46, 0  ;;  %v363_v17 = vand.u32 2147483647, %v362_v7  ;;  %v449_v20 = vshll.u32 %v12665_v10, 30 }
  0x57   :  { %v515_v5 = vshll.u32 %v20019_v63, %v503_v6  ;;  %v595_v23 = vand.u32 2139095040, %v12570_v56  ;;  %vm274_vm15 = vcmp.lt.s32.totalorder %v12651_v46, 2  ;;  %v12678_v24 = vadd.s32 %v12624_v35, %v12621_v12 }
  0x58   :  { %v508_v25 = vor.u32 %v507_v2, %v506_v60  ;;  %v511_v43 = vor.u32 %v510_v4, %v509_v3  ;;  %v516_v44 = vshrl.u32 %v20017_v1, %v504_v58  ;;  %vm272_vm2 = vweird.f32 %v12427_v21 }
  0x59   :  { %v366_v27 = vmul.f32 %v365_v9, %v363_v17  ;;  %v12682_v33 = vsub.s32 %v446_v53, %v449_v20  ;;  %v518_v30 = vshll.u32 %v20017_v1, %v503_v6  ;;  %v519_v31 = vshrl.u32 %v20015_v8, %v504_v58 }
  0x5a   :  { %v505_v34 = vshrl.u32 %v20025_v57, %v504_v58  ;;  %v514_v38 = vor.u32 %v513_v13, %v512_v36  ;;  %v517_v40 = vor.u32 %v516_v44, %v515_v5  ;;  %vm521_vm3 = vcmp.lt.s32.totalorder %v502_v11, 1 }
  0x5b   :  { %v367_v12 = vxor.u32 2147483648, %v366_v27  ;;  %v452_v35 = vsub.s32 0, %v12682_v33  ;;  %vm523_vm4 = vcmp.lt.s32.totalorder %v502_v11, 3  ;;  %vm524_vm5 = vcmp.lt.s32.totalorder %v502_v11, 4 }
  0x5c   :  { %vm522_vm6 = vcmp.lt.s32.totalorder %v502_v11, 2  ;;  %v526_v41 = vsel %vm524_vm5, %v514_v38, 2102212464  ;;  %v530_v19 = vsel %vm524_vm5, %v517_v40, 920167782  ;;  %v596_v32 = vshrl.u32 %v595_v23, 23 }
  0x5d   :  { %v368_v37 = vsel %vm285_vm8, %v367_v12, %v366_v27  ;;  %v11370_v22 = vmin.u32 %v452_v35, %v12682_v33  ;;  %v520_v42 = vor.u32 %v519_v31, %v518_v30  ;;  %v529_v6 = vsel %vm521_vm3, %v508_v25, %v511_v43 }
  0x5e   :  { %v12011_v45 = vpop.eup %12010  ;;  %v371_v26 = vsel %vm12629_vm9, %v12441_v28, %v368_v37  ;;  %v525_v48 = vsel %vm521_vm3, %v505_v34, %v508_v25  ;;  %v527_v53 = vsel %vm523_vm4, %v511_v43, %v526_v41  ;;  %v531_v39 = vsel %vm523_vm4, %v514_v38, %v530_v19 }
  0x5f   :  { %v12013_v58 = vpop.eup %12012  ;;  %v279_v60 = vxor.u32 2147483648, %v12011_v45  ;;  %12014 = vcosq.f32 %v371_v26  ;;  %v454_v62 = vclz %v11370_v22  ;;  %v472_v47 = vsub.s32 4, %v12665_v10 }
  0x60   :  { %v276_v0 = vxor.u32 2147483648, %v12013_v58  ;;  %12016 = vsinq.f32 %v371_v26  ;;  %v532_v51 = vsel %vm522_vm6, %v529_v6, %v531_v39  ;;  %v533_v2 = vsel %vm521_vm3, %v511_v43, %v514_v38 }
  0x61   :  { %v280_v54 = vsel %vm278_vm13, %v279_v60, %v12013_v58  ;;  %v11371_v3 = vadd.s32 4294967294, %v454_v62  ;;  %v528_v4 = vsel %vm522_vm6, %v525_v48, %v527_v53  ;;  %v534_v7 = vsel %vm524_vm5, %v520_v42, 1326507024 }
  0x62   :  { %v277_v9 = vsel %vm275_vm14, %v12011_v45, %v276_v0  ;;  %v535_v36 = vsel %vm523_vm4, %v517_v40, %v534_v7  ;;  %v12711_v13 = vmul.u32.u64.low %v12670_v14, %v532_v51  ;;  %v12712_v17 = vmul.u32.u64.high %v12670_v14, %v532_v51, %v12711_v13  ;;  %v75_v7 = vld [vmem:[%s20290_s29 + $0x28] sm:$0xff] }
  0x63   :  { %v281_v20 = vsel %vm274_vm15, %v277_v9, %v280_v54  ;;  %vm11372_vm7 = vcmp.lt.s32.totalorder %v11371_v3, 0  ;;  %v536_v5 = vsel %vm522_vm6, %v533_v2, %v535_v36  ;;  %v11377_v23 = vadd.s32 4294967169, %v596_v32 }
  0x64   :  { %v282_v25 = vsel %vm272_vm2, nan, %v281_v20  ;;  %vm375_vm8 = vweird.f32 %v12441_v28  ;;  %v457_v43 = vsel %vm11372_vm7, 0, %v11371_v3  ;;  %vm388_vm9 = vcmp.lt.s32.totalorder %v12444_v29, 0 }
  0x65   :  { %v12722_v44 = vmul.u32.u64.low %v12670_v14, %v536_v5  ;;  %v12723_v27 = vmul.u32.u64.high %v12670_v14, %v536_v5, %v12722_v44  ;;  %11677 = vmatprep.mubr.msk.f32.mxu1 %vm20282_vm0, %v282_v25  ;;  %v458_v46 = vsub.s32 32, %v457_v43  ;;  %v459_v30 = vshll.u32 %v12682_v33, %v457_v43 }
  0x66   :  { %v462_v11 = vsub.s32 4294967266, %v457_v43  ;;  %vm12730_vm10 = vcmp.le.f32.partialorder %v386_v50, 0.7853982  ;;  %v544_v31 = vmul.u32 %v12670_v14, %v528_v4  ;;  %v547_v34 = vadd.s32 1, %v12712_v17 }
  0x67   :  { %v602_v38 = vadd.s32 1, %v11377_v23  ;;  %vm377_vm11 = vcmp.lt.s32.totalorder %v12656_v55, 2  ;;  %v460_v40 = vshrl.u32 %v12678_v24, %v458_v46  ;;  %v592_v35 = vand.u32 2147483647, %v12570_v56  ;;  %v3577_v24 = vld [vmem:[%s20293_s28 + $0x30] sm:$0xff] }
  0x68   :  { %v463_v12 = vadd.s32 127, %v462_v11  ;;  %vm381_vm12 = vcmp.eq.s32.totalorder %v12656_v55, 2  ;;  %v473_v50 = vsel %vm388_vm9, %v472_v47, %v12665_v10  ;;  %vm546_vm13 = vc.u32 %v12723_v27, %v12711_v13  ;;  %11736 = vmatprep.mubr.msk.f32.mxu0 %vm3929_vm1, %v3577_v24 }
  0x69   :  { %vm603_vm14 = vcmp.gt.s32.totalorder %v602_v38, 0  ;;  %v12015_v14 = vpop.eup %12014  ;;  %v461_v33 = vor.u32 %v460_v40, %v459_v30  ;;  %v548_v19 = vsel %vm546_vm13, %v547_v34, %v12712_v17  ;;  %vm378_vm15 = vcmp.eq.s32.totalorder %v12656_v55, 0 }
  0x6a   :  { %v464_v41 = vshll.u32 %v463_v12, 23  ;;  %v604_v32 = vsel %vm603_vm14, %v602_v38, 0  ;;  %v12017_v37 = vpop.eup %12016  ;;  %v382_v22 = vxor.u32 2147483648, %v12015_v14  ;;  %v549_v42 = vadd.s32 %v548_v19, %v544_v31 }
  0x6b   :  { %v606_v10 = vand.u32 31, %v604_v32  ;;  %v379_v6 = vxor.u32 2147483648, %v12017_v37  ;;  %v468_v26 = vcvt.s32.f32 %v461_v33  ;;  %v599_v48 = vand.u32 8388607, %v592_v35 }
  0x6c   :  { %v465_v45 = vor.u32 4788187, %v464_v41  ;;  %v383_v53 = vsel %vm381_vm12, %v382_v22, %v12017_v37  ;;  %v475_v39 = vsel %vm12730_vm10, 0, %v473_v50  ;;  %v550_v58 = vadd.s32 536870912, %v549_v42 }
  0x6d   :  { %v607_v60 = vsub.s32 32, %v606_v10  ;;  %v380_v62 = vsel %vm378_vm15, %v12015_v14, %v379_v6  ;;  %v609_v0 = vshll.u32 %v20025_v57, %v606_v10  ;;  %v612_v51 = vshll.u32 %v20023_v59, %v606_v10 }
  0x6e   :  { %v466_v47 = vand.u32 2147483647, %v465_v45  ;;  %v384_v2 = vsel %vm377_vm11, %v380_v62, %v383_v53  ;;  %v12761_v54 = vshrl.u32 %v550_v58, 30  ;;  %v615_v4 = vshll.u32 %v20021_v61, %v606_v10 }
  0x6f   :  { %v610_v3 = vshrl.u32 %v20023_v59, %v607_v60  ;;  %v385_v9 = vsel %vm375_vm8, nan, %v384_v2  ;;  %v613_v17 = vshrl.u32 %v20021_v61, %v607_v60  ;;  %v616_v20 = vshrl.u32 %v20019_v63, %v607_v60 }
  0x70   :  { %v469_v36 = vmul.f32 %v468_v26, %v466_v47  ;;  %11678 = vmatmul.mubr.msk.f32.vlgmr.msra.gmra.mrb[0].mxu1 %vm20282_vm0, %v385_v9  ;;  %v552_v55 = vshll.u32 %v12761_v54, 30  ;;  %v605_v5 = vshrl.u32 %v604_v32, 5  ;;  %v618_v23 = vshll.u32 %v20019_v63, %v606_v10 }
  0x71   :  { %v12775_v43 = vand.u32 3, %v475_v39  ;;  %v619_v44 = vshrl.u32 %v20017_v1, %v607_v60  ;;  %v114_v28 = vmul.f32 %v12407_v15, %v75_v7  ;;  %11830 = vmatpush3.msra.mxu1 %v12418_v18  ;;  %v600_v30 = vor.u32 8388608, %v599_v48 }
  0x72   :  { %v470_v25 = vxor.u32 2147483648, %v469_v36  ;;  %v12780_v46 = vsub.s32 %v549_v42, %v552_v55  ;;  %v621_v11 = vshll.u32 %v20017_v1, %v606_v10  ;;  %v622_v31 = vshrl.u32 %v20015_v8, %v607_v60 }
  0x73   :  { %v611_v38 = vor.u32 %v610_v3, %v609_v0  ;;  %v614_v40 = vor.u32 %v613_v17, %v612_v51  ;;  %v617_v12 = vor.u32 %v616_v20, %v615_v4  ;;  %v620_v18 = vor.u32 %v619_v44, %v618_v23 }
  0x74   :  { %v471_v34 = vsel %vm388_vm9, %v470_v25, %v469_v36  ;;  %v555_v14 = vsub.s32 0, %v12780_v46  ;;  %vm624_vm2 = vcmp.lt.s32.totalorder %v605_v5, 1  ;;  %v608_v33 = vshrl.u32 %v20025_v57, %v607_v60 }
  0x75   :  { %v474_v50 = vsel %vm12730_vm10, %v12444_v29, %v471_v34  ;;  %v623_v41 = vor.u32 %v622_v31, %v621_v11  ;;  %vm627_vm3 = vcmp.lt.s32.totalorder %v605_v5, 4  ;;  %vm626_vm4 = vcmp.lt.s32.totalorder %v605_v5, 3 }
  0x76   :  { %12018 = vcosq.f32 %v474_v50  ;;  %v11374_v19 = vmin.u32 %v555_v14, %v12780_v46  ;;  %v12793_v32 = vadd.f32 %v12412_v16, %v114_v28  ;;  %vm491_vm5 = vcmp.lt.s32.totalorder %v12564_v49, 0 }
  0x77   :  { %12020 = vsinq.f32 %v474_v50  ;;  %vm625_vm6 = vcmp.lt.s32.totalorder %v605_v5, 2  ;;  %v629_v21 = vsel %vm627_vm3, %v617_v12, 2102212464  ;;  %v632_v24 = vsel %vm624_vm2, %v611_v38, %v614_v40  ;;  %v3578_v50 = vld [vmem:[%s20293_s28 + $0x38] sm:$0xff] }
  0x78   :  { %v640_v37 = vshll.u32 %v600_v30, 8  ;;  %v545_v22 = vadd.s32 %v12711_v13, %v12723_v27  ;;  %v557_v42 = vclz %v11374_v19  ;;  %v633_v10 = vsel %vm627_vm3, %v620_v18, 920167782  ;;  %11737 = vmatmul.mubr.msk.f32.gmra.mrb[8].mxu0 %vm3929_vm1, %v3578_v50 }
  0x79   :  { %v636_v6 = vsel %vm624_vm2, %v614_v40, %v617_v12  ;;  %v628_v45 = vsel %vm624_vm2, %v608_v33, %v611_v38  ;;  %v630_v16 = vsel %vm626_vm4, %v614_v40, %v629_v21  ;;  %v634_v26 = vsel %vm626_vm4, %v617_v12, %v633_v10  ;;  %v76_v33 = vld [vmem:[%s20290_s29 + $0x30] sm:$0xff] }
  0x7a   :  { %v637_v48 = vsel %vm627_vm3, %v623_v41, 1326507024  ;;  %vm478_vm7 = vweird.f32 %v12444_v29  ;;  %v11375_v53 = vadd.s32 4294967294, %v557_v42  ;;  %v575_v39 = vsub.s32 4, %v12761_v54 }
  0x7b   :  { %v635_v13 = vsel %vm625_vm6, %v632_v24, %v634_v26  ;;  %v638_v27 = vsel %vm626_vm4, %v620_v18, %v637_v48  ;;  %v698_v47 = vand.u32 2139095040, %v12793_v32  ;;  %v631_v0 = vsel %vm625_vm6, %v628_v45, %v630_v16 }
  0x7c   :  { %v639_v58 = vsel %vm625_vm6, %v636_v6, %v638_v27  ;;  %v12811_v60 = vmul.u32.u64.low %v640_v37, %v635_v13  ;;  %v12812_v62 = vmul.u32.u64.high %v640_v37, %v635_v13, %v12811_v60  ;;  %vm11376_vm8 = vcmp.lt.s32.totalorder %v11375_v53, 0 }
  0x7d   :  { %v12817_v51 = vmul.u32.u64.low %v640_v37, %v639_v58  ;;  %v12818_v2 = vmul.u32.u64.high %v640_v37, %v639_v58, %v12817_v51  ;;  %vm480_vm9 = vcmp.lt.s32.totalorder %v12775_v43, 2  ;;  %vm12823_vm10 = vcmp.le.f32.partialorder %v489_v52, 0.7853982 }
  0x7e   :  { %v560_v4 = vsel %vm11376_vm8, 0, %v11375_v53  ;;  %v699_v7 = vshrl.u32 %v698_v47, 23  ;;  %vm481_vm11 = vcmp.eq.s32.totalorder %v12775_v43, 0  ;;  %vm484_vm12 = vcmp.eq.s32.totalorder %v12775_v43, 2 }
  0x7f   :  { %v561_v9 = vsub.s32 32, %v560_v4  ;;  %v562_v36 = vshll.u32 %v12780_v46, %v560_v4  ;;  %v565_v17 = vsub.s32 4294967266, %v560_v4  ;;  %v647_v55 = vmul.u32 %v640_v37, %v631_v0 }
  0x80   :  { %v12019_v20 = vpop.eup %12018  ;;  %v650_v5 = vadd.s32 1, %v12812_v62  ;;  %v11381_v23 = vadd.s32 4294967169, %v699_v7  ;;  %v576_v30 = vsel %vm491_vm5, %v575_v39, %v12761_v54  ;;  %vm649_vm13 = vc.u32 %v12818_v2, %v12811_v60 }
  0x81   :  { %v12021_v25 = vpop.eup %12020  ;;  %v485_v52 = vxor.u32 2147483648, %v12019_v20  ;;  %v563_v44 = vshrl.u32 %v545_v22, %v561_v9  ;;  %v566_v28 = vadd.s32 127, %v565_v17  ;;  %v695_v46 = vand.u32 2147483647, %v12793_v32  ;;  %v12877_v17 = vld [vmem:[%s20292_s23] ss:$0 sm:$0xff] }
  0x82   :  { %v482_v11 = vxor.u32 2147483648, %v12021_v25  ;;  %v705_v31 = vadd.s32 1, %v11381_v23  ;;  %v651_v12 = vsel %vm649_vm13, %v650_v5, %v12812_v62  ;;  %v578_v54 = vsel %vm12823_vm10, 0, %v576_v30 }
  0x83   :  { %v486_v34 = vsel %vm484_vm12, %v485_v52, %v12021_v25  ;;  %v564_v38 = vor.u32 %v563_v44, %v562_v36  ;;  %v567_v40 = vshll.u32 %v566_v28, 23  ;;  %v652_v18 = vadd.s32 %v651_v12, %v647_v55 }
  0x84   :  { %v483_v14 = vsel %vm481_vm11, %v12019_v20, %v482_v11  ;;  %vm706_vm14 = vcmp.gt.s32.totalorder %v705_v31, 0  ;;  %v12854_v6 = vand.u32 3, %v578_v54  ;;  %v115_v45 = vmul.f32 %v12407_v15, %v76_v33 }
  0x85   :  { %v487_v41 = vsel %vm480_vm9, %v483_v14, %v486_v34  ;;  %v568_v19 = vor.u32 4788187, %v567_v40  ;;  %v571_v21 = vcvt.s32.f32 %v564_v38  ;;  %v707_v24 = vsel %vm706_vm14, %v705_v31, 0 }
  0x86   :  { %v488_v37 = vsel %vm478_vm7, nan, %v487_v41  ;;  %v653_v22 = vadd.s32 536870912, %v652_v18  ;;  %v709_v42 = vand.u32 31, %v707_v24  ;;  %v702_v43 = vand.u32 8388607, %v695_v46 }
  0x87   :  { %11680 = vmatprep.mubr.msk.f32.mxu1 %vm20282_vm0, %v488_v37  ;;  %v569_v10 = vand.u32 2147483647, %v568_v19  ;;  %v708_v26 = vshrl.u32 %v707_v24, 5  ;;  %v12880_v20 = vadd.f32 %v12877_v17, %v115_v45  ;;  %v648_v5 = vadd.s32 %v12811_v60, %v12818_v2 }
  0x88   :  { %v12857_v16 = vshrl.u32 %v653_v22, 30  ;;  %v710_v48 = vsub.s32 32, %v709_v42  ;;  %v712_v29 = vshll.u32 %v20025_v57, %v709_v42  ;;  %v715_v39 = vshll.u32 %v20023_v59, %v709_v42 }
  0x89   :  { %v572_v53 = vmul.f32 %v571_v21, %v569_v10  ;;  %v718_v13 = vshll.u32 %v20021_v61, %v709_v42  ;;  %v721_v15 = vshll.u32 %v20019_v63, %v709_v42  ;;  %v724_v62 = vshll.u32 %v20017_v1, %v709_v42 }
  0x8a   :  { %v655_v27 = vshll.u32 %v12857_v16, 30  ;;  %v713_v58 = vshrl.u32 %v20023_v59, %v710_v48  ;;  %v716_v0 = vshrl.u32 %v20021_v61, %v710_v48  ;;  %v719_v51 = vshrl.u32 %v20019_v63, %v710_v48 }
  0x8b   :  { %v573_v47 = vxor.u32 2147483648, %v572_v53  ;;  %v722_v4 = vshrl.u32 %v20017_v1, %v710_v48  ;;  %v703_v9 = vor.u32 8388608, %v702_v43  ;;  %v725_v36 = vshrl.u32 %v20015_v8, %v710_v48 }
  0x8c   :  { %v12871_v7 = vsub.s32 %v652_v18, %v655_v27  ;;  %v711_v23 = vshrl.u32 %v20025_v57, %v710_v48  ;;  %v714_v25 = vor.u32 %v713_v58, %v712_v29  ;;  %v717_v28 = vor.u32 %v716_v0, %v715_v39 }
  0x8d   :  { %v574_v55 = vsel %vm491_vm5, %v573_v47, %v572_v53  ;;  %v723_v30 = vor.u32 %v722_v4, %v721_v15  ;;  %v720_v11 = vor.u32 %v719_v51, %v718_v13  ;;  %v726_v31 = vor.u32 %v725_v36, %v724_v62 }
  0x8e   :  { %v577_v52 = vsel %vm12823_vm10, %v12564_v49, %v574_v55  ;;  %v658_v44 = vsub.s32 0, %v12871_v7  ;;  %vm727_vm15 = vcmp.lt.s32.totalorder %v708_v26, 1  ;;  %v743_v38 = vshll.u32 %v703_v9, 8 }
  0x8f   :  { %12022 = vcosq.f32 %v577_v52  ;;  %v801_v60 = vand.u32 2139095040, %v12880_v20  ;;  %vm728_vm2 = vcmp.lt.s32.totalorder %v708_v26, 2  ;;  %vm729_vm3 = vcmp.lt.s32.totalorder %v708_v26, 3 }
  0x90   :  { %12024 = vsinq.f32 %v577_v52  ;;  %v11378_v34 = vmin.u32 %v658_v44, %v12871_v7  ;;  %vm730_vm4 = vcmp.lt.s32.totalorder %v708_v26, 4  ;;  %v731_v2 = vsel %vm727_vm15, %v711_v23, %v714_v25 }
  0x91   :  { %v732_v40 = vsel %vm730_vm4, %v720_v11, 2102212464  ;;  %v735_v12 = vsel %vm727_vm15, %v714_v25, %v717_v28  ;;  %v736_v50 = vsel %vm730_vm4, %v723_v30, 920167782  ;;  %v739_v18 = vsel %vm727_vm15, %v717_v28, %v720_v11 }
  0x92   :  { %v660_v3 = vclz %v11378_v34  ;;  %v733_v14 = vsel %vm729_vm3, %v717_v28, %v732_v40  ;;  %v737_v54 = vsel %vm729_vm3, %v720_v11, %v736_v50  ;;  %v740_v33 = vsel %vm730_vm4, %v726_v31, 1326507024 }
  0x93   :  { %vm581_vm5 = vweird.f32 %v12564_v49  ;;  %v678_v19 = vsub.s32 4, %v12857_v16  ;;  %v738_v21 = vsel %vm728_vm2, %v735_v12, %v737_v54  ;;  %v741_v24 = vsel %vm729_vm3, %v723_v30, %v740_v33 }
  0x94   :  { %v11379_v41 = vadd.s32 4294967294, %v660_v3  ;;  %v734_v37 = vsel %vm728_vm2, %v731_v2, %v733_v14  ;;  %v742_v22 = vsel %vm728_vm2, %v739_v18, %v741_v24  ;;  %v802_v48 = vshrl.u32 %v801_v60, 23  ;;  %v12949_v18 = vld [vmem:[%s20291_s30] ss:$0 sm:$0xff] }
  0x95   :  { %v12898_v42 = vmul.u32.u64.low %v743_v38, %v738_v21  ;;  %v12899_v10 = vmul.u32.u64.high %v743_v38, %v738_v21, %v12898_v42  ;;  %v12902_v45 = vmul.u32.u64.low %v743_v38, %v742_v22  ;;  %v12903_v43 = vmul.u32.u64.high %v743_v38, %v742_v22, %v12902_v45 }
  0x96   :  { %vm11380_vm6 = vcmp.lt.s32.totalorder %v11379_v41, 0  ;;  %vm583_vm7 = vcmp.lt.s32.totalorder %v12854_v6, 2  ;;  %vm12908_vm8 = vcmp.le.f32.partialorder %v592_v35, 0.7853982  ;;  %vm594_vm9 = vcmp.lt.s32.totalorder %v12570_v56, 0  ;;  %v78_v45 = vld [vmem:[%s20290_s29 + $0x40] sm:$0xff] }
  0x97   :  { %v663_v26 = vsel %vm11380_vm6, 0, %v11379_v41  ;;  %v11385_v27 = vadd.s32 4294967169, %v802_v48  ;;  %vm584_vm10 = vcmp.eq.s32.totalorder %v12854_v6, 0  ;;  %vm587_vm11 = vcmp.eq.s32.totalorder %v12854_v6, 2 }
  0x98   :  { %v664_v29 = vsub.s32 32, %v663_v26  ;;  %v665_v39 = vshll.u32 %v12871_v7, %v663_v26  ;;  %v668_v13 = vsub.s32 4294967266, %v663_v26  ;;  %v750_v15 = vmul.u32 %v743_v38, %v734_v37  ;;  %v3579_v7 = vld [vmem:[%s20293_s28 + $0x40] sm:$0xff]  ;;  %v77_v38 = vld [vmem:[%s20290_s29 + $0x38] sm:$0xff] }
  0x99   :  { %v12023_v58 = vpop.eup %12022  ;;  %v753_v62 = vadd.s32 1, %v12899_v10  ;;  %v679_v4 = vsel %vm594_vm9, %v678_v19, %v12857_v16  ;;  %vm752_vm12 = vc.u32 %v12903_v43, %v12898_v42  ;;  %v798_v36 = vand.u32 2147483647, %v12880_v20  ;;  %11739 = vmatprep.mubr.msk.f32.mxu0 %vm3929_vm1, %v3579_v7 }
  0x9a   :  { %v12025_v35 = vpop.eup %12024  ;;  %v588_v47 = vxor.u32 2147483648, %v12023_v58  ;;  %v666_v0 = vshrl.u32 %v648_v5, %v664_v29  ;;  %v669_v51 = vadd.s32 127, %v668_v13  ;;  %v808_v55 = vadd.s32 1, %v11385_v27 }
  0x9b   :  { %v585_v9 = vxor.u32 2147483648, %v12025_v35  ;;  %v754_v52 = vsel %vm752_vm12, %v753_v62, %v12899_v10  ;;  %v681_v44 = vsel %vm12908_vm8, 0, %v679_v4  ;;  %v805_v6 = vand.u32 8388607, %v798_v36 }
  0x9c   :  { %v589_v23 = vsel %vm587_vm11, %v588_v47, %v12025_v35  ;;  %v667_v5 = vor.u32 %v666_v0, %v665_v39  ;;  %v670_v25 = vshll.u32 %v669_v51, 23  ;;  %v755_v28 = vadd.s32 %v754_v52, %v750_v15 }
  0x9d   :  { %v586_v16 = vsel %vm584_vm10, %v12023_v58, %v585_v9  ;;  %vm809_vm13 = vcmp.gt.s32.totalorder %v808_v55, 0  ;;  %v12940_v12 = vand.u32 3, %v681_v44  ;;  %v116_v49 = vmul.f32 %v12949_v18, %v77_v38 }
  0x9e   :  { %v590_v30 = vsel %vm583_vm7, %v586_v16, %v589_v23  ;;  %v671_v11 = vor.u32 4788187, %v670_v25  ;;  %v674_v31 = vcvt.s32.f32 %v667_v5  ;;  %v810_v34 = vsel %vm809_vm13, %v808_v55, 0 }
  0x9f   :  { %v591_v60 = vsel %vm581_vm5, nan, %v590_v30  ;;  %v756_v2 = vadd.s32 536870912, %v755_v28  ;;  %v812_v3 = vand.u32 31, %v810_v34  ;;  %v811_v14 = vshrl.u32 %v810_v34, 5 }
  0xa0   :  { %11681 = vmatmul.mubr.msk.f32.gmra.mrb[2].mxu1 %vm20282_vm0, %v591_v60  ;;  %v672_v40 = vand.u32 2147483647, %v671_v11  ;;  %v806_v27 = vor.u32 8388608, %v805_v6  ;;  %v12969_v15 = vadd.f32 %v12877_v17, %v116_v49  ;;  %v117_v0 = vmul.f32 %v12949_v18, %v78_v45 }
  0xa1   :  { %v12944_v50 = vshrl.u32 %v756_v2, 30  ;;  %v813_v54 = vsub.s32 32, %v812_v3  ;;  %v815_v41 = vshll.u32 %v20025_v57, %v812_v3  ;;  %v818_v19 = vshll.u32 %v20023_v59, %v812_v3 }
  0xa2   :  { %v675_v33 = vmul.f32 %v674_v31, %v672_v40  ;;  %v821_v21 = vshll.u32 %v20021_v61, %v812_v3  ;;  %v824_v22 = vshll.u32 %v20019_v63, %v812_v3  ;;  %v827_v10 = vshll.u32 %v20017_v1, %v812_v3 }
  0xa3   :  { %v758_v24 = vshll.u32 %v12944_v50, 30  ;;  %v816_v37 = vshrl.u32 %v20023_v59, %v813_v54  ;;  %v819_v26 = vshrl.u32 %v20021_v61, %v813_v54  ;;  %v822_v29 = vshrl.u32 %v20019_v63, %v813_v54 }
  0xa4   :  { %v676_v48 = vxor.u32 2147483648, %v675_v33  ;;  %v825_v39 = vshrl.u32 %v20017_v1, %v813_v54  ;;  %v828_v58 = vshrl.u32 %v20015_v8, %v813_v54  ;;  %v814_v35 = vshrl.u32 %v20025_v57, %v813_v54 }
  0xa5   :  { %v12965_v13 = vsub.s32 %v755_v28, %v758_v24  ;;  %v817_v47 = vor.u32 %v816_v37, %v815_v41  ;;  %v820_v7 = vor.u32 %v819_v26, %v818_v19  ;;  %v823_v55 = vor.u32 %v822_v29, %v821_v21 }
  0xa6   :  { %v677_v62 = vsel %vm594_vm9, %v676_v48, %v675_v33  ;;  %v826_v9 = vor.u32 %v825_v39, %v824_v22  ;;  %v829_v23 = vor.u32 %v828_v58, %v827_v10  ;;  %vm830_vm14 = vcmp.lt.s32.totalorder %v811_v14, 1 }
  0xa7   :  { %v680_v51 = vsel %vm12908_vm8, %v12570_v56, %v677_v62  ;;  %v761_v4 = vsub.s32 0, %v12965_v13  ;;  %v846_v25 = vshll.u32 %v806_v27, 8  ;;  %v904_v52 = vand.u32 2139095040, %v12969_v15 }
  0xa8   :  { %12026 = vcosq.f32 %v680_v51  ;;  %vm831_vm15 = vcmp.lt.s32.totalorder %v811_v14, 2  ;;  %vm832_vm2 = vcmp.lt.s32.totalorder %v811_v14, 3  ;;  %vm833_vm3 = vcmp.lt.s32.totalorder %v811_v14, 4 }
  0xa9   :  { %12028 = vsinq.f32 %v680_v51  ;;  %v11382_v5 = vmin.u32 %v761_v4, %v12965_v13  ;;  %v834_v16 = vsel %vm830_vm14, %v814_v35, %v817_v47  ;;  %v835_v44 = vsel %vm833_vm3, %v823_v55, 2102212464 }
  0xaa   :  { %v838_v28 = vsel %vm830_vm14, %v817_v47, %v820_v7  ;;  %v839_v30 = vsel %vm833_vm3, %v826_v9, 920167782  ;;  %v836_v11 = vsel %vm832_vm2, %v820_v7, %v835_v44  ;;  %v842_v34 = vsel %vm830_vm14, %v820_v7, %v823_v55 }
  0xab   :  { %v763_v53 = vclz %v11382_v5  ;;  %v840_v31 = vsel %vm832_vm2, %v823_v55, %v839_v30  ;;  %v843_v38 = vsel %vm833_vm3, %v829_v23, 1326507024  ;;  %vm684_vm4 = vweird.f32 %v12570_v56 }
  0xac   :  { %v751_v60 = vadd.s32 %v12898_v42, %v12903_v43  ;;  %v841_v3 = vsel %vm831_vm15, %v838_v28, %v840_v31  ;;  %v844_v40 = vsel %vm832_vm2, %v826_v9, %v843_v38  ;;  %v837_v6 = vsel %vm831_vm15, %v834_v16, %v836_v11  ;;  %v3580_v9 = vld [vmem:[%s20293_s28 + $0x48] sm:$0xff] }
  0xad   :  { %v11383_v2 = vadd.s32 4294967294, %v763_v53  ;;  %v845_v54 = vsel %vm831_vm15, %v842_v34, %v844_v40  ;;  %v12987_v49 = vmul.u32.u64.low %v846_v25, %v841_v3  ;;  %v12988_v33 = vmul.u32.u64.high %v846_v25, %v841_v3, %v12987_v49  ;;  %11740 = vmatmul.mubr.msk.f32.gmra.mrb[10].mxu0 %vm3929_vm1, %v3580_v9 }
  0xae   :  { %v12991_v41 = vmul.u32.u64.low %v846_v25, %v845_v54  ;;  %v12992_v19 = vmul.u32.u64.high %v846_v25, %v845_v54, %v12991_v41  ;;  %v905_v21 = vshrl.u32 %v904_v52, 23  ;;  %vm686_vm6 = vcmp.lt.s32.totalorder %v12940_v12, 2 }
  0xaf   :  { %vm11384_vm5 = vcmp.lt.s32.totalorder %v11383_v2, 0  ;;  %vm687_vm7 = vcmp.eq.s32.totalorder %v12940_v12, 0  ;;  %vm697_vm8 = vcmp.lt.s32.totalorder %v12793_v32, 0  ;;  %vm690_vm9 = vcmp.eq.s32.totalorder %v12940_v12, 2 }
  0xb0   :  { %v766_v42 = vsel %vm11384_vm5, 0, %v11383_v2  ;;  %v11389_v37 = vadd.s32 4294967169, %v905_v21  ;;  %v781_v10 = vsub.s32 4, %v12944_v50  ;;  %v853_v45 = vmul.u32 %v846_v25, %v837_v6 }
  0xb1   :  { %v767_v43 = vsub.s32 32, %v766_v42  ;;  %v768_v14 = vshll.u32 %v12965_v13, %v766_v42  ;;  %v771_v24 = vsub.s32 4294967266, %v766_v42  ;;  %v856_v48 = vadd.s32 1, %v12988_v33 }
  0xb2   :  { %v12027_v22 = vpop.eup %12026  ;;  %v13002_v58 = vadd.f32 %v12877_v17, %v117_v0  ;;  %vm855_vm10 = vc.u32 %v12992_v19, %v12987_v49  ;;  %v901_v13 = vand.u32 2147483647, %v12969_v15  ;;  %v911_v35 = vadd.s32 1, %v11389_v37 }
  0xb3   :  { %v12029_v26 = vpop.eup %12028  ;;  %v691_v29 = vxor.u32 2147483648, %v12027_v22  ;;  %v769_v39 = vshrl.u32 %v751_v60, %v767_v43  ;;  %v772_v27 = vadd.s32 127, %v771_v24  ;;  %v857_v7 = vsel %vm855_vm10, %v856_v48, %v12988_v33 }
  0xb4   :  { %v688_v62 = vxor.u32 2147483648, %v12029_v26  ;;  %v782_v55 = vsel %vm697_vm8, %v781_v10, %v12944_v50  ;;  %v858_v23 = vadd.s32 %v857_v7, %v853_v45  ;;  %vm912_vm11 = vcmp.gt.s32.totalorder %v911_v35, 0 }
  0xb5   :  { %v692_v47 = vsel %vm690_vm9, %v691_v29, %v12029_v26  ;;  %v770_v51 = vor.u32 %v769_v39, %v768_v14  ;;  %v773_v4 = vshll.u32 %v772_v27, 23  ;;  %v913_v16 = vsel %vm912_vm11, %v911_v35, 0 }
  0xb6   :  { %v689_v0 = vsel %vm687_vm7, %v12027_v22, %v688_v62  ;;  %vm13023_vm12 = vcmp.le.f32.partialorder %v695_v46, 0.7853982  ;;  %v859_v50 = vadd.s32 536870912, %v858_v23  ;;  %v915_v28 = vand.u32 31, %v913_v16 }
  0xb7   :  { %v693_v5 = vsel %vm686_vm6, %v689_v0, %v692_v47  ;;  %v774_v25 = vor.u32 4788187, %v773_v4  ;;  %v777_v52 = vcvt.s32.f32 %v770_v51  ;;  %v784_v12 = vsel %vm13023_vm12, 0, %v782_v55 }
  0xb8   :  { %v694_v53 = vsel %vm684_vm4, nan, %v693_v5  ;;  %v908_v11 = vand.u32 8388607, %v901_v13  ;;  %v13032_v31 = vshrl.u32 %v859_v50, 30  ;;  %v914_v56 = vshrl.u32 %v913_v16, 5 }
  0xb9   :  { %11683 = vmatprep.mubr.msk.f32.mxu1 %vm20282_vm0, %v694_v53  ;;  %v775_v30 = vand.u32 2147483647, %v774_v25  ;;  %v916_v34 = vsub.s32 32, %v915_v28  ;;  %v1007_v46 = vand.u32 2139095040, %v13002_v58  ;;  %v918_v60 = vshll.u32 %v20025_v57, %v915_v28 }
  0xba   :  { %v921_v2 = vshll.u32 %v20023_v59, %v915_v28  ;;  %v924_v3 = vshll.u32 %v20021_v61, %v915_v28  ;;  %v861_v40 = vshll.u32 %v13032_v31, 30  ;;  %v927_v54 = vshll.u32 %v20019_v63, %v915_v28 }
  0xbb   :  { %v778_v38 = vmul.f32 %v777_v52, %v775_v30  ;;  %v919_v6 = vshrl.u32 %v20023_v59, %v916_v34  ;;  %v930_v33 = vshll.u32 %v20017_v1, %v915_v28  ;;  %v922_v21 = vshrl.u32 %v20021_v61, %v916_v34 }
  0xbc   :  { %v925_v42 = vshrl.u32 %v20019_v63, %v916_v34  ;;  %v928_v43 = vshrl.u32 %v20017_v1, %v916_v34  ;;  %v13045_v14 = vsub.s32 %v858_v23, %v861_v40  ;;  %v909_v24 = vor.u32 8388608, %v908_v11 }
  0xbd   :  { %v779_v41 = vxor.u32 2147483648, %v778_v38  ;;  %v931_v37 = vshrl.u32 %v20015_v8, %v916_v34  ;;  %v1008_v22 = vshrl.u32 %v1007_v46, 23  ;;  %v13050_v45 = vand.u32 3, %v784_v12 }
  0xbe   :  { %v917_v48 = vshrl.u32 %v20025_v57, %v916_v34  ;;  %v920_v26 = vor.u32 %v919_v6, %v918_v60  ;;  %v864_v39 = vsub.s32 0, %v13045_v14  ;;  %v923_v27 = vor.u32 %v922_v21, %v921_v2 }
  0xbf   :  { %v780_v10 = vsel %vm697_vm8, %v779_v41, %v778_v38  ;;  %v929_v62 = vor.u32 %v928_v43, %v927_v54  ;;  %v926_v35 = vor.u32 %v925_v42, %v924_v3  ;;  %v932_v47 = vor.u32 %v931_v37, %v930_v33 }
  0xc0   :  { %v783_v29 = vsel %vm13023_vm12, %v12793_v32, %v780_v10  ;;  %vm933_vm13 = vcmp.lt.s32.totalorder %v914_v56, 1  ;;  %v11386_v51 = vmin.u32 %v864_v39, %v13045_v14  ;;  %v949_v4 = vshll.u32 %v909_v24, 8 }
  0xc1   :  { %12030 = vcosq.f32 %v783_v29  ;;  %v11393_v7 = vadd.s32 4294967169, %v1008_v22  ;;  %vm934_vm14 = vcmp.lt.s32.totalorder %v914_v56, 2  ;;  %vm935_vm15 = vcmp.lt.s32.totalorder %v914_v56, 3  ;;  %v3581_v22 = vld [vmem:[%s20293_s28 + $0x50] sm:$0xff] }
  0xc2   :  { %12032 = vsinq.f32 %v783_v29  ;;  %vm936_vm2 = vcmp.lt.s32.totalorder %v914_v56, 4  ;;  %v937_v9 = vsel %vm933_vm13, %v917_v48, %v920_v26  ;;  %vm800_vm3 = vcmp.lt.s32.totalorder %v12880_v20, 0  ;;  %11742 = vmatprep.mubr.msk.f32.mxu0 %vm3929_vm1, %v3581_v22 }
  0xc3   :  { %v866_v0 = vclz %v11386_v51  ;;  %v938_v55 = vsel %vm936_vm2, %v926_v35, 2102212464  ;;  %v941_v23 = vsel %vm933_vm13, %v920_v26, %v923_v27  ;;  %v942_v5 = vsel %vm936_vm2, %v929_v62, 920167782 }
  0xc4   :  { %v939_v25 = vsel %vm935_vm15, %v923_v27, %v938_v55  ;;  %v943_v52 = vsel %vm935_vm15, %v926_v35, %v942_v5  ;;  %v945_v16 = vsel %vm933_vm13, %v923_v27, %v926_v35  ;;  %v946_v53 = vsel %vm936_vm2, %v932_v47, 1326507024 }
  0xc5   :  { %vm787_vm4 = vweird.f32 %v12793_v32  ;;  %v11387_v44 = vadd.s32 4294967294, %v866_v0  ;;  %v944_v50 = vsel %vm934_vm14, %v941_v23, %v943_v52  ;;  %v947_v28 = vsel %vm935_vm15, %v929_v62, %v946_v53 }
  0xc6   :  { %v1004_v30 = vand.u32 2147483647, %v13002_v58  ;;  %v854_v12 = vadd.s32 %v12987_v49, %v12992_v19  ;;  %v948_v11 = vsel %vm934_vm14, %v945_v16, %v947_v28  ;;  %v940_v38 = vsel %vm934_vm14, %v937_v9, %v939_v25 }
  0xc7   :  { %v13068_v34 = vmul.u32.u64.low %v949_v4, %v944_v50  ;;  %v13069_v46 = vmul.u32.u64.high %v949_v4, %v944_v50, %v13068_v34  ;;  %vm11388_vm5 = vcmp.lt.s32.totalorder %v11387_v44, 0  ;;  %vm789_vm6 = vcmp.lt.s32.totalorder %v13050_v45, 2  ;;  %v79_v50 = vld [vmem:[%s20290_s29 + $0x48] sm:$0xff] }
  0xc8   :  { %v13073_v60 = vmul.u32.u64.low %v949_v4, %v948_v11  ;;  %v13074_v2 = vmul.u32.u64.high %v949_v4, %v948_v11, %v13073_v60  ;;  %v869_v3 = vsel %vm11388_vm5, 0, %v11387_v44  ;;  %v884_v40 = vsub.s32 4, %v13032_v31 }
  0xc9   :  { %v1014_v6 = vadd.s32 1, %v11393_v7  ;;  %vm790_vm7 = vcmp.eq.s32.totalorder %v13050_v45, 0  ;;  %v870_v49 = vsub.s32 32, %v869_v3  ;;  %v871_v19 = vshll.u32 %v13045_v14, %v869_v3 }
  0xca   :  { %v874_v54 = vsub.s32 4294967266, %v869_v3  ;;  %vm793_vm8 = vcmp.eq.s32.totalorder %v13050_v45, 2  ;;  %v956_v56 = vmul.u32 %v949_v4, %v940_v38  ;;  %v959_v41 = vadd.s32 1, %v13069_v46 }
  0xcb   :  { %v12031_v33 = vpop.eup %12030  ;;  %vm1015_vm9 = vcmp.gt.s32.totalorder %v1014_v6, 0  ;;  %v872_v43 = vshrl.u32 %v854_v12, %v870_v49  ;;  %v1011_v37 = vand.u32 8388607, %v1004_v30  ;;  %v885_v10 = vsel %vm800_vm3, %v884_v40, %v13032_v31 }
  0xcc   :  { %v12033_v21 = vpop.eup %12032  ;;  %v794_v42 = vxor.u32 2147483648, %v12031_v33  ;;  %v875_v24 = vadd.s32 127, %v874_v54  ;;  %vm958_vm10 = vc.u32 %v13074_v2, %v13068_v34  ;;  %v1016_v48 = vsel %vm1015_vm9, %v1014_v6, 0 }
  0xcd   :  { %v791_v14 = vxor.u32 2147483648, %v12033_v21  ;;  %v873_v29 = vor.u32 %v872_v43, %v871_v19  ;;  %v960_v27 = vsel %vm958_vm10, %v959_v41, %v13069_v46  ;;  %vm13098_vm11 = vcmp.le.f32.partialorder %v798_v36, 0.7853982 }
  0xce   :  { %v795_v26 = vsel %vm793_vm8, %v794_v42, %v12033_v21  ;;  %v876_v39 = vshll.u32 %v875_v24, 23  ;;  %v961_v31 = vadd.s32 %v960_v27, %v956_v56  ;;  %v1018_v47 = vand.u32 31, %v1016_v48 }
  0xcf   :  { %v792_v62 = vsel %vm790_vm7, %v12031_v33, %v791_v14  ;;  %v880_v7 = vcvt.s32.f32 %v873_v29  ;;  %v887_v9 = vsel %vm13098_vm11, 0, %v885_v10  ;;  %v1012_v23 = vor.u32 8388608, %v1011_v37 }
  0xd0   :  { %v796_v51 = vsel %vm789_vm6, %v792_v62, %v795_v26  ;;  %v877_v4 = vor.u32 4788187, %v876_v39  ;;  %v962_v55 = vadd.s32 536870912, %v961_v31  ;;  %v1019_v5 = vsub.s32 32, %v1018_v47 }
  0xd1   :  { %v797_v0 = vsel %vm787_vm4, nan, %v796_v51  ;;  %v1017_v25 = vshrl.u32 %v1016_v48, 5  ;;  %v1021_v52 = vshll.u32 %v20025_v57, %v1018_v47  ;;  %v1024_v45 = vshll.u32 %v20023_v59, %v1018_v47 }
  0xd2   :  { %11684 = vmatmul.mubr.msk.f32.gmra.mrb[4].mxu1 %vm20282_vm0, %v797_v0  ;;  %v878_v36 = vand.u32 2147483647, %v877_v4  ;;  %v13111_v16 = vshrl.u32 %v962_v55, 30  ;;  %v1022_v53 = vshrl.u32 %v20023_v59, %v1019_v5  ;;  %v1025_v44 = vshrl.u32 %v20021_v61, %v1019_v5  ;;  %v80_v4 = vld [vmem:[%s20290_s29 + $0x50] sm:$0xff] }
  0xd3   :  { %v1027_v32 = vshll.u32 %v20021_v61, %v1018_v47  ;;  %v1028_v12 = vshrl.u32 %v20019_v63, %v1019_v5  ;;  %v1030_v11 = vshll.u32 %v20019_v63, %v1018_v47  ;;  %v1031_v46 = vshrl.u32 %v20017_v1, %v1019_v5 }
  0xd4   :  { %v881_v28 = vmul.f32 %v880_v7, %v878_v36  ;;  %v13122_v38 = vand.u32 3, %v887_v9  ;;  %v964_v60 = vshll.u32 %v13111_v16, 30  ;;  %v1033_v3 = vshll.u32 %v20017_v1, %v1018_v47 }
  0xd5   :  { %v1034_v6 = vshrl.u32 %v20015_v8, %v1019_v5  ;;  %v13127_v49 = vshll.u32 %v1012_v23, 8  ;;  %v118_v19 = vmul.f32 %v12949_v18, %v79_v50  ;;  %v1020_v33 = vshrl.u32 %v20025_v57, %v1019_v5 }
  0xd6   :  { %v882_v40 = vxor.u32 2147483648, %v881_v28  ;;  %v13130_v54 = vsub.s32 %v961_v31, %v964_v60  ;;  %v1023_v56 = vor.u32 %v1022_v53, %v1021_v52  ;;  %v1026_v41 = vor.u32 %v1025_v44, %v1024_v45 }
  0xd7   :  { %v1029_v42 = vor.u32 %v1028_v12, %v1027_v32  ;;  %v1032_v43 = vor.u32 %v1031_v46, %v1030_v11  ;;  %vm1036_vm12 = vcmp.lt.s32.totalorder %v1017_v25, 1  ;;  %v1035_v22 = vor.u32 %v1034_v6, %v1033_v3 }
  0xd8   :  { %v883_v21 = vsel %vm800_vm3, %v882_v40, %v881_v28  ;;  %v967_v37 = vsub.s32 0, %v13130_v54  ;;  %vm1039_vm13 = vcmp.lt.s32.totalorder %v1017_v25, 4  ;;  %vm1037_vm14 = vcmp.lt.s32.totalorder %v1017_v25, 2 }
  0xd9   :  { %v886_v24 = vsel %vm13098_vm11, %v12880_v20, %v883_v21  ;;  %vm1038_vm15 = vcmp.lt.s32.totalorder %v1017_v25, 3  ;;  %v1041_v14 = vsel %vm1039_vm13, %v1029_v42, 2102212464  ;;  %v1040_v48 = vsel %vm1036_vm12, %v1020_v33, %v1023_v56 }
  0xda   :  { %12034 = vcosq.f32 %v886_v24  ;;  %v11390_v10 = vmin.u32 %v967_v37, %v13130_v54  ;;  %v1044_v26 = vsel %vm1036_vm12, %v1023_v56, %v1026_v41  ;;  %v1042_v29 = vsel %vm1038_vm15, %v1026_v41, %v1041_v14 }
  0xdb   :  { %12036 = vsinq.f32 %v886_v24  ;;  %v1045_v39 = vsel %vm1039_vm13, %v1032_v43, 920167782  ;;  %v1048_v27 = vsel %vm1036_vm12, %v1026_v41, %v1029_v42  ;;  %v13144_v62 = vadd.f32 %v12877_v17, %v118_v19 }
  0xdc   :  { %vm13148_vm2 = vcmp.le.f32.partialorder %v901_v13, 0.7853982  ;;  %vm903_vm3 = vcmp.lt.s32.totalorder %v12969_v15, 0  ;;  %v969_v31 = vclz %v11390_v10  ;;  %v1046_v47 = vsel %vm1038_vm15, %v1029_v42, %v1045_v39 }
  0xdd   :  { %v1049_v51 = vsel %vm1039_vm13, %v1035_v22, 1326507024  ;;  %vm892_vm4 = vcmp.lt.s32.totalorder %v13122_v38, 2  ;;  %v987_v7 = vsub.s32 4, %v13111_v16  ;;  %v1043_v13 = vsel %vm1037_vm14, %v1040_v48, %v1042_v29 }
  0xde   :  { %v1047_v9 = vsel %vm1037_vm14, %v1044_v26, %v1046_v47  ;;  %v1050_v0 = vsel %vm1038_vm15, %v1032_v43, %v1049_v51  ;;  %vm890_vm5 = vweird.f32 %v12880_v20  ;;  %v11391_v55 = vadd.s32 4294967294, %v969_v31 }
  0xdf   :  { %v1051_v23 = vsel %vm1037_vm14, %v1048_v27, %v1050_v0  ;;  %v13166_v5 = vmul.u32.u64.low %v13127_v49, %v1047_v9  ;;  %v13167_v36 = vmul.u32.u64.high %v13127_v49, %v1047_v9, %v13166_v5  ;;  %v1110_v53 = vand.u32 2139095040, %v13144_v62 }
  0xe0   :  { %v13171_v52 = vmul.u32.u64.low %v13127_v49, %v1051_v23  ;;  %v13172_v45 = vmul.u32.u64.high %v13127_v49, %v1051_v23, %v13171_v52  ;;  %v119_v44 = vmul.f32 %v12949_v18, %v80_v4  ;;  %vm893_vm6 = vcmp.eq.s32.totalorder %v13122_v38, 0 }
  0xe1   :  { %v957_v32 = vadd.s32 %v13068_v34, %v13074_v2  ;;  %vm11392_vm7 = vcmp.lt.s32.totalorder %v11391_v55, 0  ;;  %v1107_v25 = vand.u32 2147483647, %v13144_v62  ;;  %v988_v28 = vsel %vm903_vm3, %v987_v7, %v13111_v16 }
  0xe2   :  { %v972_v50 = vsel %vm11392_vm7, 0, %v11391_v55  ;;  %v1059_v12 = vmul.u32 %v13127_v49, %v1043_v13  ;;  %v1111_v11 = vshrl.u32 %v1110_v53, 23  ;;  %v1062_v40 = vadd.s32 1, %v13167_v36 }
  0xe3   :  { %v973_v46 = vsub.s32 32, %v972_v50  ;;  %v974_v60 = vshll.u32 %v13130_v54, %v972_v50  ;;  %v977_v3 = vsub.s32 4294967266, %v972_v50  ;;  %vm896_vm8 = vcmp.eq.s32.totalorder %v13122_v38, 2 }
  0xe4   :  { %v12035_v6 = vpop.eup %12034  ;;  %vm1061_vm9 = vc.u32 %v13172_v45, %v13166_v5  ;;  %v11397_v34 = vadd.s32 4294967169, %v1111_v11  ;;  %v13190_v2 = vadd.f32 %v12877_v17, %v119_v44  ;;  %v990_v41 = vsel %vm13148_vm2, 0, %v988_v28  ;;  %v3582_v17 = vld [vmem:[%s20293_s28 + $0x58] sm:$0xff] }
  0xe5   :  { %v12037_v16 = vpop.eup %12036  ;;  %v897_v19 = vxor.u32 2147483648, %v12035_v6  ;;  %v975_v49 = vshrl.u32 %v957_v32, %v973_v46  ;;  %v978_v33 = vadd.s32 127, %v977_v3  ;;  %v1063_v56 = vsel %vm1061_vm9, %v1062_v40, %v13167_v36  ;;  %11743 = vmatmul.mubr.msk.f32.gmra.mrb[12].mxu0 %vm3929_vm1, %v3582_v17 }
  0xe6   :  { %v894_v54 = vxor.u32 2147483648, %v12037_v16  ;;  %v1064_v21 = vadd.s32 %v1063_v56, %v1059_v12  ;;  %v1117_v42 = vadd.s32 1, %v11397_v34  ;;  %v1114_v22 = vand.u32 8388607, %v1107_v25 }
  0xe7   :  { %v898_v43 = vsel %vm896_vm8, %v897_v19, %v12037_v16  ;;  %v976_v24 = vor.u32 %v975_v49, %v974_v60  ;;  %v979_v37 = vshll.u32 %v978_v33, 23  ;;  %v1213_v48 = vand.u32 2139095040, %v13190_v2 }
  0xe8   :  { %v895_v14 = vsel %vm893_vm6, %v12035_v6, %v894_v54  ;;  %v1065_v10 = vadd.s32 536870912, %v1064_v21  ;;  %vm1118_vm10 = vcmp.gt.s32.totalorder %v1117_v42, 0  ;;  %v13211_v7 = vand.u32 3, %v990_v41 }
  0xe9   :  { %v899_v26 = vsel %vm892_vm4, %v895_v14, %v898_v43  ;;  %v980_v29 = vor.u32 4788187, %v979_v37  ;;  %v983_v39 = vcvt.s32.f32 %v976_v24  ;;  %v1119_v27 = vsel %vm1118_vm10, %v1117_v42, 0 }
  0xea   :  { %v900_v31 = vsel %vm890_vm5, nan, %v899_v26  ;;  %v13208_v47 = vshrl.u32 %v1065_v10, 30  ;;  %v1121_v51 = vand.u32 31, %v1119_v27  ;;  %v1115_v9 = vor.u32 8388608, %v1114_v22 }
  0xeb   :  { %11686 = vmatprep.mubr.msk.f32.mxu1 %vm20282_vm0, %v900_v31  ;;  %v981_v4 = vand.u32 2147483647, %v980_v29  ;;  %v1210_v23 = vand.u32 2147483647, %v13190_v2  ;;  %v1214_v36 = vshrl.u32 %v1213_v48, 23  ;;  %v1120_v46 = vshrl.u32 %v1119_v27, 5 }
  0xec   :  { %v1067_v13 = vshll.u32 %v13208_v47, 30  ;;  %v1122_v0 = vsub.s32 32, %v1121_v51  ;;  %v1124_v55 = vshll.u32 %v20025_v57, %v1121_v51  ;;  %v1127_v53 = vshll.u32 %v20023_v59, %v1121_v51 }
  0xed   :  { %v984_v38 = vmul.f32 %v983_v39, %v981_v4  ;;  %v1130_v44 = vshll.u32 %v20021_v61, %v1121_v51  ;;  %v1133_v12 = vshll.u32 %v20019_v63, %v1121_v51  ;;  %v13226_v3 = vshll.u32 %v1115_v9, 8 }
  0xee   :  { %v13216_v20 = vsub.s32 %v1064_v21, %v1067_v13  ;;  %v1125_v52 = vshrl.u32 %v20023_v59, %v1122_v0  ;;  %v1128_v50 = vshrl.u32 %v20021_v61, %v1122_v0  ;;  %v1131_v28 = vshrl.u32 %v20019_v63, %v1122_v0 }
  0xef   :  { %v985_v32 = vxor.u32 2147483648, %v984_v38  ;;  %v1134_v60 = vshrl.u32 %v20017_v1, %v1122_v0  ;;  %v1123_v6 = vshrl.u32 %v20025_v57, %v1122_v0  ;;  %v1136_v34 = vshll.u32 %v20017_v1, %v1121_v51 }
  0xf0   :  { %v1070_v11 = vsub.s32 0, %v13216_v20  ;;  %v11401_v16 = vadd.s32 4294967169, %v1214_v36  ;;  %v1126_v33 = vor.u32 %v1125_v52, %v1124_v55  ;;  %v1129_v56 = vor.u32 %v1128_v50, %v1127_v53 }
  0xf1   :  { %v986_v40 = vsel %vm903_vm3, %v985_v32, %v984_v38  ;;  %v1132_v54 = vor.u32 %v1131_v28, %v1130_v44  ;;  %v1135_v41 = vor.u32 %v1134_v60, %v1133_v12  ;;  %v1137_v21 = vshrl.u32 %v20015_v8, %v1122_v0 }
  0xf2   :  { %v989_v19 = vsel %vm13148_vm2, %v12969_v15, %v986_v40  ;;  %v11394_v49 = vmin.u32 %v1070_v11, %v13216_v20  ;;  %vm1139_vm11 = vcmp.lt.s32.totalorder %v1120_v46, 1  ;;  %vm1140_vm12 = vcmp.lt.s32.totalorder %v1120_v46, 2 }
  0xf3   :  { %12038 = vcosq.f32 %v989_v19  ;;  %v1138_v43 = vor.u32 %v1137_v21, %v1136_v34  ;;  %vm1141_vm13 = vcmp.lt.s32.totalorder %v1120_v46, 3  ;;  %vm1142_vm14 = vcmp.lt.s32.totalorder %v1120_v46, 4 }
  0xf4   :  { %12040 = vsinq.f32 %v989_v19  ;;  %v1072_v42 = vclz %v11394_v49  ;;  %v1143_v24 = vsel %vm1139_vm11, %v1123_v6, %v1126_v33  ;;  %v1144_v35 = vsel %vm1142_vm14, %v1132_v54, 2102212464  ;;  %v3583_v49 = vld [vmem:[%s20293_s28 + $0x60] sm:$0xff] }
  0xf5   :  { %v1147_v22 = vsel %vm1139_vm11, %v1126_v33, %v1129_v56  ;;  %v1148_v17 = vsel %vm1142_vm14, %v1135_v41, 920167782  ;;  %v1145_v14 = vsel %vm1141_vm13, %v1129_v56, %v1144_v35  ;;  %v1151_v48 = vsel %vm1139_vm11, %v1129_v56, %v1132_v54  ;;  %11745 = vmatprep.mubr.msk.f32.mxu0 %vm3929_vm1, %v3583_v49  ;;  %v13328_v49 = vld [vmem:[%s20292_s23] ss:$0 sm:$0xff] }
  0xf6   :  { %v11395_v37 = vadd.s32 4294967294, %v1072_v42  ;;  %v1149_v10 = vsel %vm1141_vm13, %v1132_v54, %v1148_v17  ;;  %v1152_v26 = vsel %vm1142_vm14, %v1138_v43, 1326507024  ;;  %v1060_v29 = vadd.s32 %v13166_v5, %v13172_v45 }
  0xf7   :  { %v1150_v39 = vsel %vm1140_vm12, %v1147_v22, %v1149_v10  ;;  %v1153_v27 = vsel %vm1141_vm13, %v1135_v41, %v1152_v26  ;;  %v1146_v55 = vsel %vm1140_vm12, %v1143_v24, %v1145_v14  ;;  %vm993_vm2 = vweird.f32 %v12969_v15 }
  0xf8   :  { %vm11396_vm15 = vcmp.lt.s32.totalorder %v11395_v37, 0  ;;  %v1154_v51 = vsel %vm1140_vm12, %v1151_v48, %v1153_v27  ;;  %v13242_v4 = vmul.u32.u64.low %v13226_v3, %v1150_v39  ;;  %v13243_v13 = vmul.u32.u64.high %v13226_v3, %v1150_v39, %v13242_v4 }
  0xf9   :  { %v1075_v31 = vsel %vm11396_vm15, 0, %v11395_v37  ;;  %v13250_v5 = vmul.u32.u64.low %v13226_v3, %v1154_v51  ;;  %v13251_v45 = vmul.u32.u64.high %v13226_v3, %v1154_v51, %v13250_v5  ;;  %v1220_v36 = vadd.s32 1, %v11401_v16 }
  0xfa   :  { %v1076_v9 = vsub.s32 32, %v1075_v31  ;;  %v1077_v0 = vshll.u32 %v13216_v20, %v1075_v31  ;;  %v1080_v38 = vsub.s32 4294967266, %v1075_v31  ;;  %vm996_vm3 = vcmp.eq.s32.totalorder %v13211_v7, 0 }
  0xfb   :  { %vm999_vm4 = vcmp.eq.s32.totalorder %v13211_v7, 2  ;;  %v1162_v32 = vmul.u32 %v13226_v3, %v1146_v55  ;;  %v1165_v20 = vadd.s32 1, %v13243_v13  ;;  %v13259_v50 = vand.u32 8388607, %v1210_v23 }
  0xfc   :  { %v1078_v52 = vshrl.u32 %v1060_v29, %v1076_v9  ;;  %v1081_v53 = vadd.s32 127, %v1080_v38  ;;  %vm1221_vm5 = vcmp.gt.s32.totalorder %v1220_v36, 0  ;;  %vm13263_vm6 = vcmp.le.f32.partialorder %v1004_v30, 0.7853982 }
  0xfd   :  { %v12039_v44 = vpop.eup %12038  ;;  %v1222_v40 = vsel %vm1221_vm5, %v1220_v36, 0  ;;  %vm995_vm7 = vcmp.lt.s32.totalorder %v13211_v7, 2  ;;  %v1090_v6 = vsub.s32 4, %v13208_v47  ;;  %vm1164_vm8 = vc.u32 %v13251_v45, %v13242_v4 }
  0xfe   :  { %v12041_v28 = vpop.eup %12040  ;;  %v1000_v12 = vxor.u32 2147483648, %v12039_v44  ;;  %v1079_v46 = vor.u32 %v1078_v52, %v1077_v0  ;;  %v1082_v60 = vshll.u32 %v1081_v53, 23  ;;  %v1166_v30 = vsel %vm1164_vm8, %v1165_v20, %v13243_v13  ;;  %v81_v0 = vld [vmem:[%s20290_s29 + $0x58] sm:$0xff] }
  0xff   :  { %v997_v3 = vxor.u32 2147483648, %v12041_v28  ;;  %vm1006_vm9 = vcmp.lt.s32.totalorder %v13002_v58, 0  ;;  %v1167_v56 = vadd.s32 %v1166_v30, %v1162_v32  ;;  %v1224_v54 = vand.u32 31, %v1222_v40 }
 0x100   :  { %v1001_v34 = vsel %vm999_vm4, %v1000_v12, %v12041_v28  ;;  %v1083_v16 = vor.u32 4788187, %v1082_v60  ;;  %v1086_v19 = vcvt.s32.f32 %v1079_v46  ;;  %v1218_v42 = vor.u32 8388608, %v13259_v50 }
 0x101   :  { %v998_v33 = vsel %vm996_vm3, %v12039_v44, %v997_v3  ;;  %v1223_v43 = vshrl.u32 %v1222_v40, 5  ;;  %v1168_v37 = vadd.s32 536870912, %v1167_v56  ;;  %v1225_v35 = vsub.s32 32, %v1224_v54 }
 0x102   :  { %v1002_v41 = vsel %vm995_vm7, %v998_v33, %v1001_v34  ;;  %v1084_v21 = vand.u32 2147483647, %v1083_v16  ;;  %v1227_v22 = vshll.u32 %v20025_v57, %v1224_v54  ;;  %v1091_v17 = vsel %vm1006_vm9, %v1090_v6, %v13208_v47 }
 0x103   :  { %v1003_v24 = vsel %vm993_vm2, nan, %v1002_v41  ;;  %v1230_v14 = vshll.u32 %v20023_v59, %v1224_v54  ;;  %v1236_v10 = vshll.u32 %v20019_v63, %v1224_v54  ;;  %v13291_v48 = vshrl.u32 %v1168_v37, 30 }
 0x104   :  { %11687 = vmatmul.mubr.msk.f32.gmra.mrb[6].mxu1 %vm20282_vm0, %v1003_v24  ;;  %v1087_v7 = vmul.f32 %v1086_v19, %v1084_v21  ;;  %v1228_v15 = vshrl.u32 %v20023_v59, %v1225_v35  ;;  %v1231_v26 = vshrl.u32 %v20021_v61, %v1225_v35  ;;  %v1233_v29 = vshll.u32 %v20021_v61, %v1224_v54 }
 0x105   :  { %v1234_v27 = vshrl.u32 %v20019_v63, %v1225_v35  ;;  %v1237_v31 = vshrl.u32 %v20017_v1, %v1225_v35  ;;  %v1239_v51 = vshll.u32 %v20017_v1, %v1224_v54  ;;  %v1170_v47 = vshll.u32 %v13291_v48, 30 }
 0x106   :  { %v1088_v39 = vxor.u32 2147483648, %v1087_v7  ;;  %v1226_v13 = vshrl.u32 %v20025_v57, %v1225_v35  ;;  %v1229_v9 = vor.u32 %v1228_v15, %v1227_v22  ;;  %vm1242_vm10 = vcmp.lt.s32.totalorder %v1223_v43, 1 }
 0x107   :  { %v1232_v55 = vor.u32 %v1231_v26, %v1230_v14  ;;  %v1238_v5 = vor.u32 %v1237_v31, %v1236_v10  ;;  %v1240_v36 = vshrl.u32 %v20015_v8, %v1225_v35  ;;  %v13310_v53 = vsub.s32 %v1167_v56, %v1170_v47 }
 0x108   :  { %v1089_v38 = vsel %vm1006_vm9, %v1088_v39, %v1087_v7  ;;  %v1235_v44 = vor.u32 %v1234_v27, %v1233_v29  ;;  %vm1245_vm11 = vcmp.lt.s32.totalorder %v1223_v43, 4  ;;  %v1093_v32 = vsel %vm13263_vm6, 0, %v1091_v17 }
 0x109   :  { %v1092_v52 = vsel %vm13263_vm6, %v13002_v58, %v1089_v38  ;;  %v1241_v20 = vor.u32 %v1240_v36, %v1239_v51  ;;  %v120_v50 = vmul.f32 %v12949_v18, %v81_v0  ;;  %v1173_v28 = vsub.s32 0, %v13310_v53  ;;  %v82_v38 = vld [vmem:[%s20290_s29 + $0x60] sm:$0xff] }
 0x10a   :  { %12042 = vcosq.f32 %v1092_v52  ;;  %vm1244_vm12 = vcmp.lt.s32.totalorder %v1223_v43, 3  ;;  %v1247_v12 = vsel %vm1245_vm11, %v1235_v44, 2102212464  ;;  %vm1243_vm13 = vcmp.lt.s32.totalorder %v1223_v43, 2 }
 0x10b   :  { %12044 = vsinq.f32 %v1092_v52  ;;  %v1250_v46 = vsel %vm1242_vm10, %v1229_v9, %v1232_v55  ;;  %v1251_v60 = vsel %vm1245_vm11, %v1238_v5, 920167782  ;;  %v1258_v40 = vshll.u32 %v1218_v42, 8 }
 0x10c   :  { %v1097_v3 = vand.u32 3, %v1093_v32  ;;  %v11398_v11 = vmin.u32 %v1173_v28, %v13310_v53  ;;  %v1246_v6 = vsel %vm1242_vm10, %v1226_v13, %v1229_v9  ;;  %v1254_v34 = vsel %vm1242_vm10, %v1232_v55, %v1235_v44  ;;  %v3584_v9 = vld [vmem:[%s20293_s28 + $0x68] sm:$0xff] }
 0x10d   :  { %v1248_v16 = vsel %vm1244_vm12, %v1232_v55, %v1247_v12  ;;  %v1252_v19 = vsel %vm1244_vm12, %v1235_v44, %v1251_v60  ;;  %v1255_v30 = vsel %vm1245_vm11, %v1241_v20, 1326507024  ;;  %v13331_v33 = vadd.f32 %v13328_v49, %v120_v50  ;;  %11746 = vmatmul.mubr.msk.f32.gmra.mrb[14].mxu0 %vm3929_vm1, %v3584_v9  ;;  %v83_v60 = vld [vmem:[%s20290_s29 + $0x68] sm:$0xff] }
 0x10e   :  { %v1175_v56 = vclz %v11398_v11  ;;  %v1253_v54 = vsel %vm1243_vm13, %v1250_v46, %v1252_v19  ;;  %v1256_v41 = vsel %vm1244_vm12, %v1238_v5, %v1255_v30  ;;  %vm1096_vm14 = vweird.f32 %v13002_v58 }
 0x10f   :  { %v1257_v21 = vsel %vm1243_vm13, %v1254_v34, %v1256_v41  ;;  %v13337_v42 = vmul.u32.u64.low %v1258_v40, %v1253_v54  ;;  %v13338_v24 = vmul.u32.u64.high %v1258_v40, %v1253_v54, %v13337_v42  ;;  %v1249_v35 = vsel %vm1243_vm13, %v1246_v6, %v1248_v16 }
 0x110   :  { %v11399_v37 = vadd.s32 4294967294, %v1175_v56  ;;  %v13342_v22 = vmul.u32.u64.low %v1258_v40, %v1257_v21  ;;  %v13343_v7 = vmul.u32.u64.high %v1258_v40, %v1257_v21, %v13342_v22  ;;  %vm1098_vm15 = vcmp.lt.s32.totalorder %v1097_v3, 2  ;;  %v13394_v56 = vld [vmem:[%s20291_s30] ss:$0 sm:$0xff] }
 0x111   :  { %vm1099_vm2 = vcmp.eq.s32.totalorder %v1097_v3, 0  ;;  %vm13347_vm3 = vcmp.le.f32.partialorder %v1107_v25, 0.7853982  ;;  %vm1109_vm4 = vcmp.lt.s32.totalorder %v13144_v62, 0  ;;  %v1316_v14 = vand.u32 2139095040, %v13331_v33 }
 0x112   :  { %vm1102_vm5 = vcmp.eq.s32.totalorder %v1097_v3, 2  ;;  %v1163_v43 = vadd.s32 %v13242_v4, %v13251_v45  ;;  %vm11400_vm6 = vcmp.lt.s32.totalorder %v11399_v37, 0  ;;  %v1193_v10 = vsub.s32 4, %v13291_v48 }
 0x113   :  { %v1178_v26 = vsel %vm11400_vm6, 0, %v11399_v37  ;;  %v1265_v29 = vmul.u32 %v1258_v40, %v1249_v35  ;;  %v1268_v39 = vadd.s32 1, %v13338_v24  ;;  %v1317_v25 = vshrl.u32 %v1316_v14, 23 }
 0x114   :  { %v12043_v15 = vpop.eup %12042  ;;  %v1179_v51 = vsub.s32 32, %v1178_v26  ;;  %v1180_v47 = vshll.u32 %v13310_v53, %v1178_v26  ;;  %v1183_v13 = vsub.s32 4294967266, %v1178_v26  ;;  %vm1267_vm7 = vc.u32 %v13343_v7, %v13337_v42 }
 0x115   :  { %v12045_v27 = vpop.eup %12044  ;;  %v1103_v31 = vxor.u32 2147483648, %v12043_v15  ;;  %v1313_v45 = vand.u32 2147483647, %v13331_v33  ;;  %v11405_v0 = vadd.s32 4294967169, %v1317_v25  ;;  %v1269_v52 = vsel %vm1267_vm7, %v1268_v39, %v13338_v24 }
 0x116   :  { %v1100_v4 = vxor.u32 2147483648, %v12045_v27  ;;  %v1181_v5 = vshrl.u32 %v1163_v43, %v1179_v51  ;;  %v1184_v36 = vadd.s32 127, %v1183_v13  ;;  %v1194_v44 = vsel %vm1109_vm4, %v1193_v10, %v13291_v48  ;;  %v84_v48 = vld [vmem:[%s20290_s29 + $0x70] sm:$0xff] }
 0x117   :  { %v1104_v55 = vsel %vm1102_vm5, %v1103_v31, %v12045_v27  ;;  %v1270_v32 = vadd.s32 %v1269_v52, %v1265_v29  ;;  %v1323_v20 = vadd.s32 1, %v11405_v0  ;;  %v121_v46 = vmul.f32 %v12949_v18, %v82_v38 }
 0x118   :  { %v1101_v53 = vsel %vm1099_vm2, %v12043_v15, %v1100_v4  ;;  %v1182_v28 = vor.u32 %v1181_v5, %v1180_v47  ;;  %v1185_v12 = vshll.u32 %v1184_v36, 23  ;;  %v1320_v6 = vand.u32 8388607, %v1313_v45 }
 0x119   :  { %v1105_v50 = vsel %vm1098_vm15, %v1101_v53, %v1104_v55  ;;  %v1271_v11 = vadd.s32 536870912, %v1270_v32  ;;  %vm1324_vm8 = vcmp.gt.s32.totalorder %v1323_v20, 0  ;;  %v1196_v34 = vsel %vm13347_vm3, 0, %v1194_v44 }
 0x11a   :  { %v1106_v40 = vsel %vm1096_vm14, nan, %v1105_v50  ;;  %v1186_v3 = vor.u32 4788187, %v1185_v12  ;;  %v1189_v18 = vcvt.s32.f32 %v1182_v28  ;;  %v1325_v16 = vsel %vm1324_vm8, %v1323_v20, 0 }
 0x11b   :  { %11689 = vmatprep.mubr.msk.f32.mxu1 %vm20282_vm0, %v1106_v40  ;;  %v13389_v19 = vshrl.u32 %v1271_v11, 30  ;;  %v1327_v58 = vand.u32 31, %v1325_v16  ;;  %v13397_v54 = vmul.f32 %v13394_v56, %v83_v60  ;;  %v13400_v41 = vmul.f32 %v13394_v56, %v84_v48 }
 0x11c   :  { %v1187_v30 = vand.u32 2147483647, %v1186_v3  ;;  %v13402_v21 = vand.u32 3, %v1196_v34  ;;  %v1321_v37 = vor.u32 8388608, %v1320_v6  ;;  %v13407_v14 = vadd.s32 %v13337_v42, %v13343_v7 }
 0x11d   :  { %v1273_v24 = vshll.u32 %v13389_v19, 30  ;;  %v1328_v35 = vsub.s32 32, %v1327_v58  ;;  %v1330_v43 = vshll.u32 %v20025_v57, %v1327_v58  ;;  %v13411_v10 = vadd.f32 %v13328_v49, %v121_v46 }
 0x11e   :  { %v1190_v22 = vmul.f32 %v1189_v18, %v1187_v30  ;;  %v1333_v29 = vshll.u32 %v20023_v59, %v1327_v58  ;;  %v1336_v39 = vshll.u32 %v20021_v61, %v1327_v58  ;;  %v1339_v42 = vshll.u32 %v20019_v63, %v1327_v58 }
 0x11f   :  { %v13413_v15 = vsub.s32 %v1270_v32, %v1273_v24  ;;  %v1331_v26 = vshrl.u32 %v20023_v59, %v1328_v35  ;;  %v1334_v27 = vshrl.u32 %v20021_v61, %v1328_v35  ;;  %v1337_v31 = vshrl.u32 %v20019_v63, %v1328_v35 }
 0x120   :  { %v1191_v25 = vxor.u32 2147483648, %v1190_v22  ;;  %v1326_v51 = vshrl.u32 %v1325_v16, 5  ;;  %v1340_v47 = vshrl.u32 %v20017_v1, %v1328_v35  ;;  %v13423_v13 = vshll.u32 %v1321_v37, 8 }
 0x121   :  { %v1276_v7 = vsub.s32 0, %v13413_v15  ;;  %v1329_v4 = vshrl.u32 %v20025_v57, %v1328_v35  ;;  %v1342_v0 = vshll.u32 %v20017_v1, %v1327_v58  ;;  %v1419_v38 = vand.u32 2139095040, %v13411_v10 }
 0x122   :  { %v1192_v9 = vsel %vm1109_vm4, %v1191_v25, %v1190_v22  ;;  %v1332_v36 = vor.u32 %v1331_v26, %v1330_v43  ;;  %v1335_v52 = vor.u32 %v1334_v27, %v1333_v29  ;;  %v1338_v53 = vor.u32 %v1337_v31, %v1336_v39 }
 0x123   :  { %v1195_v55 = vsel %vm13347_vm3, %v13144_v62, %v1192_v9  ;;  %v11402_v5 = vmin.u32 %v1276_v7, %v13413_v15  ;;  %v1341_v44 = vor.u32 %v1340_v47, %v1339_v42  ;;  %v1343_v32 = vshrl.u32 %v20015_v8, %v1328_v35 }
 0x124   :  { %12046 = vcosq.f32 %v1195_v55  ;;  %vm1345_vm9 = vcmp.lt.s32.totalorder %v1326_v51, 1  ;;  %vm1346_vm10 = vcmp.lt.s32.totalorder %v1326_v51, 2  ;;  %vm1347_vm11 = vcmp.lt.s32.totalorder %v1326_v51, 3 }
 0x125   :  { %12048 = vsinq.f32 %v1195_v55  ;;  %v1278_v20 = vclz %v11402_v5  ;;  %v1344_v50 = vor.u32 %v1343_v32, %v1342_v0  ;;  %vm1348_vm12 = vcmp.lt.s32.totalorder %v1326_v51, 4 }
 0x126   :  { %v1349_v28 = vsel %vm1345_vm9, %v1329_v4, %v1332_v36  ;;  %vm1212_vm13 = vcmp.lt.s32.totalorder %v13190_v2, 0  ;;  %v1350_v12 = vsel %vm1348_vm12, %v1338_v53, 2102212464  ;;  %v1353_v46 = vsel %vm1345_vm9, %v1332_v36, %v1335_v52 }
 0x127   :  { %v11403_v17 = vadd.s32 4294967294, %v1278_v20  ;;  %v1354_v60 = vsel %vm1348_vm12, %v1341_v44, 920167782  ;;  %vm1201_vm14 = vcmp.lt.s32.totalorder %v13402_v21, 2  ;;  %v1351_v40 = vsel %vm1347_vm11, %v1335_v52, %v1350_v12 }
 0x128   :  { %v1355_v11 = vsel %vm1347_vm11, %v1338_v53, %v1354_v60  ;;  %v1357_v6 = vsel %vm1345_vm9, %v1335_v52, %v1338_v53  ;;  %v1358_v48 = vsel %vm1348_vm12, %v1344_v50, 1326507024  ;;  %vm1199_vm15 = vweird.f32 %v13144_v62 }
 0x129   :  { %vm11404_vm2 = vcmp.lt.s32.totalorder %v11403_v17, 0  ;;  %v1356_v3 = vsel %vm1346_vm10, %v1353_v46, %v1355_v11  ;;  %v1359_v18 = vsel %vm1347_vm11, %v1341_v44, %v1358_v48  ;;  %v1416_v34 = vand.u32 2147483647, %v13411_v10 }
 0x12a   :  { %v1281_v16 = vsel %vm11404_vm2, 0, %v11403_v17  ;;  %v1360_v58 = vsel %vm1346_vm10, %v1357_v6, %v1359_v18  ;;  %v13445_v30 = vmul.u32.u64.low %v13423_v13, %v1356_v3  ;;  %v13446_v24 = vmul.u32.u64.high %v13423_v13, %v1356_v3, %v13445_v30 }
 0x12b   :  { %v1282_v37 = vsub.s32 32, %v1281_v16  ;;  %v1283_v35 = vshll.u32 %v13413_v15, %v1281_v16  ;;  %v1286_v22 = vsub.s32 4294967266, %v1281_v16  ;;  %v1352_v43 = vsel %vm1346_vm10, %v1349_v28, %v1351_v40 }
 0x12c   :  { %v1296_v26 = vsub.s32 4, %v13389_v19  ;;  %v13453_v29 = vmul.u32.u64.low %v13423_v13, %v1360_v58  ;;  %v13454_v39 = vmul.u32.u64.high %v13423_v13, %v1360_v58, %v13453_v29  ;;  %v1420_v25 = vshrl.u32 %v1419_v38, 23 }
 0x12d   :  { %vm1202_vm3 = vcmp.eq.s32.totalorder %v13402_v21, 0  ;;  %vm1205_vm4 = vcmp.eq.s32.totalorder %v13402_v21, 2  ;;  %v1284_v27 = vshrl.u32 %v13407_v14, %v1282_v37  ;;  %v1287_v31 = vadd.s32 127, %v1286_v22 }
 0x12e   :  { %v12047_v42 = vpop.eup %12046  ;;  %v1368_v15 = vmul.u32 %v13423_v13, %v1352_v43  ;;  %v1371_v7 = vadd.s32 1, %v13446_v24  ;;  %v11409_v51 = vadd.s32 4294967169, %v1420_v25  ;;  %v13463_v47 = vadd.f32 %v13328_v49, %v13397_v54  ;;  %v3585_v54 = vld [vmem:[%s20293_s28 + $0x70] sm:$0xff] }
 0x12f   :  { %v12049_v9 = vpop.eup %12048  ;;  %v1206_v4 = vxor.u32 2147483648, %v12047_v42  ;;  %v1285_v0 = vor.u32 %v1284_v27, %v1283_v35  ;;  %v1288_v38 = vshll.u32 %v1287_v31, 23  ;;  %v1423_v55 = vand.u32 8388607, %v1416_v34  ;;  %11748 = vmatprep.mubr.msk.f32.mxu0 %vm3929_vm1, %v3585_v54 }
 0x130   :  { %v1203_v5 = vxor.u32 2147483648, %v12049_v9  ;;  %v1297_v14 = vsel %vm1212_vm13, %v1296_v26, %v13389_v19  ;;  %vm1370_vm5 = vc.u32 %v13454_v39, %v13445_v30  ;;  %v1426_v13 = vadd.s32 1, %v11409_v51 }
 0x131   :  { %v1207_v36 = vsel %vm1205_vm4, %v1206_v4, %v12049_v9  ;;  %v1289_v52 = vor.u32 4788187, %v1288_v38  ;;  %v1292_v53 = vcvt.s32.f32 %v1285_v0  ;;  %v1372_v44 = vsel %vm1370_vm5, %v1371_v7, %v13446_v24 }
 0x132   :  { %v1204_v19 = vsel %vm1202_vm3, %v12047_v42, %v1203_v5  ;;  %v1373_v32 = vadd.s32 %v1372_v44, %v1368_v15  ;;  %vm1427_vm6 = vcmp.gt.s32.totalorder %v1426_v13, 0  ;;  %v1522_v20 = vand.u32 2139095040, %v13463_v47 }
 0x133   :  { %v1208_v50 = vsel %vm1201_vm14, %v1204_v19, %v1207_v36  ;;  %v1290_v28 = vand.u32 2147483647, %v1289_v52  ;;  %v1428_v17 = vsel %vm1427_vm6, %v1426_v13, 0  ;;  %vm13488_vm7 = vcmp.le.f32.partialorder %v1210_v23, 0.7853982 }
 0x134   :  { %v1209_v12 = vsel %vm1199_vm15, nan, %v1208_v50  ;;  %v1374_v60 = vadd.s32 536870912, %v1373_v32  ;;  %v1430_v40 = vand.u32 31, %v1428_v17  ;;  %v1299_v21 = vsel %vm13488_vm7, 0, %v1297_v14 }
 0x135   :  { %11690 = vmatmul.mubr.msk.f32.gmra.mrb[8].mxu1 %vm20282_vm0, %v1209_v12  ;;  %v1293_v11 = vmul.f32 %v1292_v53, %v1290_v28  ;;  %v1519_v6 = vand.u32 2147483647, %v13463_v47  ;;  %v13498_v62 = vadd.f32 %v13328_v49, %v13400_v41  ;;  %v1424_v23 = vor.u32 8388608, %v1423_v55 }
 0x136   :  { %v13500_v48 = vshrl.u32 %v1374_v60, 30  ;;  %v1431_v3 = vsub.s32 32, %v1430_v40  ;;  %v1523_v18 = vshrl.u32 %v1522_v20, 23  ;;  %v1429_v58 = vshrl.u32 %v1428_v17, 5 }
 0x137   :  { %v1294_v16 = vxor.u32 2147483648, %v1293_v11  ;;  %v1433_v24 = vshll.u32 %v20025_v57, %v1430_v40  ;;  %v1436_v37 = vshll.u32 %v20023_v59, %v1430_v40  ;;  %v1439_v43 = vshll.u32 %v20021_v61, %v1430_v40 }
 0x138   :  { %v1376_v35 = vshll.u32 %v13500_v48, 30  ;;  %v1434_v22 = vshrl.u32 %v20023_v59, %v1431_v3  ;;  %v1442_v41 = vshll.u32 %v20019_v63, %v1430_v40  ;;  %v1437_v29 = vshrl.u32 %v20021_v61, %v1431_v3 }
 0x139   :  { %v1295_v26 = vsel %vm1212_vm13, %v1294_v16, %v1293_v11  ;;  %v1440_v25 = vshrl.u32 %v20019_v63, %v1431_v3  ;;  %v1443_v27 = vshrl.u32 %v20017_v1, %v1431_v3  ;;  %v13516_v42 = vand.u32 3, %v1299_v21 }
 0x13a   :  { %v1298_v31 = vsel %vm13488_vm7, %v13190_v2, %v1295_v26  ;;  %v13518_v15 = vsub.s32 %v1373_v32, %v1376_v35  ;;  %v1445_v7 = vshll.u32 %v20017_v1, %v1430_v40  ;;  %v1432_v51 = vshrl.u32 %v20025_v57, %v1431_v3 }
 0x13b   :  { %12050 = vcosq.f32 %v1298_v31  ;;  %v1435_v9 = vor.u32 %v1434_v22, %v1433_v24  ;;  %v1438_v4 = vor.u32 %v1437_v29, %v1436_v37  ;;  %v1441_v38 = vor.u32 %v1440_v25, %v1439_v43 }
 0x13c   :  { %12052 = vsinq.f32 %v1298_v31  ;;  %v1379_v0 = vsub.s32 0, %v13518_v15  ;;  %v1444_v55 = vor.u32 %v1443_v27, %v1442_v41  ;;  %v1446_v5 = vshrl.u32 %v20015_v8, %v1431_v3 }
 0x13d   :  { %vm1448_vm8 = vcmp.lt.s32.totalorder %v1429_v58, 1  ;;  %v13524_v14 = vshll.u32 %v1424_v23, 8  ;;  %v11413_v13 = vadd.s32 4294967169, %v1523_v18  ;;  %vm1449_vm9 = vcmp.lt.s32.totalorder %v1429_v58, 2 }
 0x13e   :  { %v11406_v54 = vmin.u32 %v1379_v0, %v13518_v15  ;;  %vm1450_vm10 = vcmp.lt.s32.totalorder %v1429_v58, 3  ;;  %v13529_v36 = vand.u32 8388607, %v1519_v6  ;;  %vm1304_vm11 = vcmp.lt.s32.totalorder %v13516_v42, 2 }
 0x13f   :  { %v1447_v52 = vor.u32 %v1446_v5, %v1445_v7  ;;  %vm1451_vm12 = vcmp.lt.s32.totalorder %v1429_v58, 4  ;;  %v1452_v53 = vsel %vm1448_vm8, %v1432_v51, %v1435_v9  ;;  %v1456_v44 = vsel %vm1448_vm8, %v1435_v9, %v1438_v4 }
 0x140   :  { %vm1302_vm13 = vweird.f32 %v13190_v2  ;;  %v1381_v19 = vclz %v11406_v54  ;;  %v1453_v32 = vsel %vm1451_vm12, %v1441_v38, 2102212464  ;;  %v1457_v20 = vsel %vm1451_vm12, %v1444_v55, 920167782 }
 0x141   :  { %v1460_v50 = vsel %vm1448_vm8, %v1438_v4, %v1441_v38  ;;  %v1454_v28 = vsel %vm1450_vm10, %v1438_v4, %v1453_v32  ;;  %v1458_v17 = vsel %vm1450_vm10, %v1441_v38, %v1457_v20  ;;  %v1461_v12 = vsel %vm1451_vm12, %v1447_v52, 1326507024 }
 0x142   :  { %v1529_v46 = vadd.s32 1, %v11413_v13  ;;  %v1369_v60 = vadd.s32 %v13445_v30, %v13454_v39  ;;  %v11407_v40 = vadd.s32 4294967294, %v1381_v19  ;;  %v1459_v11 = vsel %vm1449_vm9, %v1456_v44, %v1458_v17 }
 0x143   :  { %v1462_v21 = vsel %vm1450_vm10, %v1444_v55, %v1461_v12  ;;  %v1455_v23 = vsel %vm1449_vm9, %v1452_v53, %v1454_v28  ;;  %v13545_v18 = vmul.u32.u64.low %v13524_v14, %v1459_v11  ;;  %v13546_v16 = vmul.u32.u64.high %v13524_v14, %v1459_v11, %v13545_v18 }
 0x144   :  { %v1463_v3 = vsel %vm1449_vm9, %v1460_v50, %v1462_v21  ;;  %vm11408_vm14 = vcmp.lt.s32.totalorder %v11407_v40, 0  ;;  %vm1530_vm15 = vcmp.gt.s32.totalorder %v1529_v46, 0  ;;  %vm1305_vm2 = vcmp.eq.s32.totalorder %v13516_v42, 0 }
 0x145   :  { %v13550_v24 = vmul.u32.u64.low %v13524_v14, %v1463_v3  ;;  %v13551_v37 = vmul.u32.u64.high %v13524_v14, %v1463_v3, %v13550_v24  ;;  %v12051_v30 = vpop.eup %12050  ;;  %vm1308_vm3 = vcmp.eq.s32.totalorder %v13516_v42, 2  ;;  %v1384_v39 = vsel %vm11408_vm14, 0, %v11407_v40 }
 0x146   :  { %v1531_v35 = vsel %vm1530_vm15, %v1529_v46, 0  ;;  %v12053_v58 = vpop.eup %12052  ;;  %v1309_v22 = vxor.u32 2147483648, %v12051_v30  ;;  %v1385_v43 = vsub.s32 32, %v1384_v39  ;;  %v1386_v41 = vshll.u32 %v13518_v15, %v1384_v39 }
 0x147   :  { %v1389_v26 = vsub.s32 4294967266, %v1384_v39  ;;  %v1306_v29 = vxor.u32 2147483648, %v12053_v58  ;;  %v1471_v25 = vmul.u32 %v13524_v14, %v1455_v23  ;;  %v1474_v27 = vadd.s32 1, %v13546_v16 }
 0x148   :  { %v1533_v31 = vand.u32 31, %v1531_v35  ;;  %v1310_v7 = vsel %vm1308_vm3, %v1309_v22, %v12053_v58  ;;  %vm1315_vm4 = vcmp.lt.s32.totalorder %v13331_v33, 0  ;;  %v1387_v51 = vshrl.u32 %v1369_v60, %v1385_v43 }
 0x149   :  { %v1390_v9 = vadd.s32 127, %v1389_v26  ;;  %v1527_v4 = vor.u32 8388608, %v13529_v36  ;;  %v1307_v0 = vsel %vm1305_vm2, %v12051_v30, %v1306_v29  ;;  %vm1473_vm5 = vc.u32 %v13551_v37, %v13545_v18  ;;  %v3586_v36 = vld [vmem:[%s20293_s28 + $0x78] sm:$0xff] }
 0x14a   :  { %v1534_v15 = vsub.s32 32, %v1533_v31  ;;  %v1536_v38 = vshll.u32 %v20025_v57, %v1533_v31  ;;  %v1311_v55 = vsel %vm1304_vm11, %v1307_v0, %v1310_v7  ;;  %vm13569_vm6 = vcmp.le.f32.partialorder %v1313_v45, 0.7853982  ;;  %11749 = vmatmul.mubr.msk.f32.gmra.mrb[16].mxu0 %vm3929_vm1, %v3586_v36 }
 0x14b   :  { %v1388_v14 = vor.u32 %v1387_v51, %v1386_v41  ;;  %v1391_v13 = vshll.u32 %v1390_v9, 23  ;;  %v1475_v54 = vsel %vm1473_vm5, %v1474_v27, %v13546_v16  ;;  %v1312_v52 = vsel %vm1302_vm13, nan, %v1311_v55 }
 0x14c   :  { %v1476_v53 = vadd.s32 %v1475_v54, %v1471_v25  ;;  %v1532_v42 = vshrl.u32 %v1531_v35, 5  ;;  %v1537_v44 = vshrl.u32 %v20023_v59, %v1534_v15  ;;  %11692 = vmatprep.mubr.msk.f32.mxu1 %vm20282_vm0, %v1312_v52  ;;  %v1539_v32 = vshll.u32 %v20023_v59, %v1533_v31 }
 0x14d   :  { %v1392_v45 = vor.u32 4788187, %v1391_v13  ;;  %v1395_v19 = vcvt.s32.f32 %v1388_v14  ;;  %v1540_v20 = vshrl.u32 %v20021_v61, %v1534_v15  ;;  %v1399_v50 = vsub.s32 4, %v13500_v48 }
 0x14e   :  { %v1477_v28 = vadd.s32 536870912, %v1476_v53  ;;  %v1542_v2 = vshll.u32 %v20021_v61, %v1533_v31  ;;  %v1543_v17 = vshrl.u32 %v20019_v63, %v1534_v15  ;;  %v1538_v46 = vor.u32 %v1537_v44, %v1536_v38 }
 0x14f   :  { %v1393_v12 = vand.u32 2147483647, %v1392_v45  ;;  %v1545_v60 = vshll.u32 %v20019_v63, %v1533_v31  ;;  %v1546_v40 = vshrl.u32 %v20017_v1, %v1534_v15  ;;  %v1541_v21 = vor.u32 %v1540_v20, %v1539_v32 }
 0x150   :  { %v1478_v11 = vshrl.u32 %v1477_v28, 30  ;;  %v1548_v23 = vshll.u32 %v20017_v1, %v1533_v31  ;;  %v1549_v3 = vshrl.u32 %v20015_v8, %v1534_v15  ;;  %v1544_v24 = vor.u32 %v1543_v17, %v1542_v2 }
 0x151   :  { %v1396_v16 = vmul.f32 %v1395_v19, %v1393_v12  ;;  %v1547_v30 = vor.u32 %v1546_v40, %v1545_v60  ;;  %vm1551_vm7 = vcmp.lt.s32.totalorder %v1532_v42, 1  ;;  %v1400_v39 = vsel %vm1315_vm4, %v1399_v50, %v13500_v48 }
 0x152   :  { %v1479_v35 = vshll.u32 %v1478_v11, 30  ;;  %v1535_v58 = vshrl.u32 %v20025_v57, %v1534_v15  ;;  %vm1553_vm8 = vcmp.lt.s32.totalorder %v1532_v42, 3  ;;  %v1550_v43 = vor.u32 %v1549_v3, %v1548_v23  ;;  %v3587_v23 = vld [vmem:[%s20293_s28 + $0x80] sm:$0xff] }
 0x153   :  { %v1397_v22 = vxor.u32 2147483648, %v1396_v16  ;;  %vm1552_vm9 = vcmp.lt.s32.totalorder %v1532_v42, 2  ;;  %vm1554_vm10 = vcmp.lt.s32.totalorder %v1532_v42, 4  ;;  %v1559_v29 = vsel %vm1551_vm7, %v1538_v46, %v1541_v21  ;;  %11751 = vmatprep.mubr.msk.f32.mxu0 %vm3929_vm1, %v3587_v23 }
 0x154   :  { %v13595_v41 = vsub.s32 %v1476_v53, %v1479_v35  ;;  %v1556_v26 = vsel %vm1554_vm10, %v1544_v24, 2102212464  ;;  %v1560_v25 = vsel %vm1554_vm10, %v1547_v30, 920167782  ;;  %v1402_v48 = vsel %vm13569_vm6, 0, %v1400_v39 }
 0x155   :  { %v1398_v27 = vsel %vm1315_vm4, %v1397_v22, %v1396_v16  ;;  %v1561_v31 = vsel %vm1553_vm8, %v1544_v24, %v1560_v25  ;;  %v1567_v7 = vshll.u32 %v1527_v4, 8  ;;  %v1555_v0 = vsel %vm1551_vm7, %v1535_v58, %v1538_v46  ;;  %v86_v16 = vld [vmem:[%s20290_s29 + $0x80] sm:$0xff] }
 0x156   :  { %v1401_v51 = vsel %vm13569_vm6, %v13331_v33, %v1398_v27  ;;  %v1482_v9 = vsub.s32 0, %v13595_v41  ;;  %v1557_v15 = vsel %vm1553_vm8, %v1541_v21, %v1556_v26  ;;  %v1562_v38 = vsel %vm1552_vm9, %v1559_v29, %v1561_v31 }
 0x157   :  { %12054 = vcosq.f32 %v1401_v51  ;;  %v1563_v55 = vsel %vm1551_vm7, %v1541_v21, %v1544_v24  ;;  %v1564_v14 = vsel %vm1554_vm10, %v1550_v43, 1326507024  ;;  %v1406_v13 = vand.u32 3, %v1402_v48  ;;  %v85_v21 = vld [vmem:[%s20290_s29 + $0x78] sm:$0xff] }
 0x158   :  { %12056 = vsinq.f32 %v1401_v51  ;;  %v11410_v4 = vmin.u32 %v1482_v9, %v13595_v41  ;;  %v1565_v5 = vsel %vm1553_vm8, %v1547_v30, %v1564_v14  ;;  %v1502_v53 = vsub.s32 4, %v1478_v11 }
 0x159   :  { %v13616_v54 = vmul.u32.u64.low %v1567_v7, %v1562_v38  ;;  %v13617_v36 = vmul.u32.u64.high %v1567_v7, %v1562_v38, %v13616_v54  ;;  %v1558_v44 = vsel %vm1552_vm9, %v1555_v0, %v1557_v15  ;;  %v1566_v45 = vsel %vm1552_vm9, %v1563_v55, %v1565_v5 }
 0x15a   :  { %v1484_v52 = vclz %v11410_v4  ;;  %v13622_v19 = vmul.u32.u64.low %v1567_v7, %v1566_v45  ;;  %v13623_v32 = vmul.u32.u64.high %v1567_v7, %v1566_v45, %v13622_v19  ;;  %v1625_v20 = vand.u32 2139095040, %v13498_v62 }
 0x15b   :  { %vm1405_vm11 = vweird.f32 %v13331_v33  ;;  %vm1407_vm12 = vcmp.lt.s32.totalorder %v1406_v13, 2  ;;  %vm13629_vm13 = vcmp.le.f32.partialorder %v1416_v34, 0.7853982  ;;  %vm1418_vm14 = vcmp.lt.s32.totalorder %v13411_v10, 0 }
 0x15c   :  { %v11411_v28 = vadd.s32 4294967294, %v1484_v52  ;;  %v1574_v2 = vmul.u32 %v1567_v7, %v1558_v44  ;;  %v1577_v42 = vadd.s32 1, %v13617_v36  ;;  %v1622_v17 = vand.u32 2147483647, %v13498_v62 }
 0x15d   :  { %v1626_v12 = vshrl.u32 %v1625_v20, 23  ;;  %vm1408_vm15 = vcmp.eq.s32.totalorder %v1406_v13, 0  ;;  %v1472_v46 = vadd.s32 %v13545_v18, %v13551_v37  ;;  %v1503_v34 = vsel %vm1418_vm14, %v1502_v53, %v1478_v11 }
 0x15e   :  { %vm11412_vm2 = vcmp.lt.s32.totalorder %v11411_v28, 0  ;;  %vm1411_vm3 = vcmp.eq.s32.totalorder %v1406_v13, 2  ;;  %vm1576_vm4 = vc.u32 %v13623_v32, %v13616_v54  ;;  %v1505_v30 = vsel %vm13629_vm13, 0, %v1503_v34 }
 0x15f   :  { %v1487_v60 = vsel %vm11412_vm2, 0, %v11411_v28  ;;  %v11417_v40 = vadd.s32 4294967169, %v1626_v12  ;;  %v1578_v11 = vsel %vm1576_vm4, %v1577_v42, %v13617_v36  ;;  %v1629_v35 = vand.u32 8388607, %v1622_v17 }
 0x160   :  { %v1488_v3 = vsub.s32 32, %v1487_v60  ;;  %v1489_v18 = vshll.u32 %v13595_v41, %v1487_v60  ;;  %v1492_v37 = vsub.s32 4294967266, %v1487_v60  ;;  %v1579_v39 = vadd.s32 %v1578_v11, %v1574_v2 }
 0x161   :  { %v12055_v24 = vpop.eup %12054  ;;  %v1632_v58 = vadd.s32 1, %v11417_v40  ;;  %v124_v29 = vmul.f32 %v13394_v56, %v85_v21  ;;  %v125_v48 = vmul.f32 %v13394_v56, %v86_v16  ;;  %v13662_v15 = vand.u32 3, %v1505_v30 }
 0x162   :  { %v12057_v22 = vpop.eup %12056  ;;  %v1412_v43 = vxor.u32 2147483648, %v12055_v24  ;;  %v1490_v41 = vshrl.u32 %v1472_v46, %v1488_v3  ;;  %v1493_v26 = vadd.s32 127, %v1492_v37  ;;  %v1580_v27 = vadd.s32 536870912, %v1579_v39 }
 0x163   :  { %v1409_v25 = vxor.u32 2147483648, %v12057_v22  ;;  %vm1633_vm5 = vcmp.gt.s32.totalorder %v1632_v58, 0  ;;  %v1630_v36 = vor.u32 8388608, %v1629_v35  ;;  %v13671_v45 = vadd.f32 %v13328_v49, %v124_v29 }
 0x164   :  { %v1413_v31 = vsel %vm1411_vm3, %v1412_v43, %v12057_v22  ;;  %v1491_v7 = vor.u32 %v1490_v41, %v1489_v18  ;;  %v1494_v51 = vshll.u32 %v1493_v26, 23  ;;  %v1634_v9 = vsel %vm1633_vm5, %v1632_v58, 0 }
 0x165   :  { %v1410_v0 = vsel %vm1408_vm15, %v12055_v24, %v1409_v25  ;;  %v13664_v38 = vshrl.u32 %v1580_v27, 30  ;;  %v1636_v55 = vand.u32 31, %v1634_v9  ;;  %v1575_v20 = vadd.s32 %v13616_v54, %v13623_v32 }
 0x166   :  { %v1414_v14 = vsel %vm1407_vm12, %v1410_v0, %v1413_v31  ;;  %v1495_v4 = vor.u32 4788187, %v1494_v51  ;;  %v1498_v5 = vcvt.s32.f32 %v1491_v7  ;;  %v13678_v28 = vadd.f32 %v13328_v49, %v125_v48 }
 0x167   :  { %v1415_v52 = vsel %vm1405_vm11, nan, %v1414_v14  ;;  %v1582_v53 = vshll.u32 %v13664_v38, 30  ;;  %v1637_v44 = vsub.s32 32, %v1636_v55  ;;  %v1639_v13 = vshll.u32 %v20025_v57, %v1636_v55 }
 0x168   :  { %11693 = vmatmul.mubr.msk.f32.gmra.mrb[10].mxu1 %vm20282_vm0, %v1415_v52  ;;  %v1496_v19 = vand.u32 2147483647, %v1495_v4  ;;  %v1642_v42 = vshll.u32 %v20023_v59, %v1636_v55  ;;  %v1645_v12 = vshll.u32 %v20021_v61, %v1636_v55  ;;  %v13687_v40 = vshll.u32 %v1630_v36, 8 }
 0x169   :  { %v13680_v2 = vsub.s32 %v1579_v39, %v1582_v53  ;;  %v1640_v33 = vshrl.u32 %v20023_v59, %v1637_v44  ;;  %v1643_v34 = vshrl.u32 %v20021_v61, %v1637_v44  ;;  %v1646_v60 = vshrl.u32 %v20019_v63, %v1637_v44 }
 0x16a   :  { %v1499_v46 = vmul.f32 %v1498_v5, %v1496_v19  ;;  %v1635_v32 = vshrl.u32 %v1634_v9, 5  ;;  %v1648_v49 = vshll.u32 %v20019_v63, %v1636_v55  ;;  %v1725_v21 = vand.u32 2147483647, %v13671_v45 }
 0x16b   :  { %v1585_v54 = vsub.s32 0, %v13680_v2  ;;  %v1638_v3 = vshrl.u32 %v20025_v57, %v1637_v44  ;;  %v1649_v18 = vshrl.u32 %v20017_v1, %v1637_v44  ;;  %v1728_v37 = vand.u32 2139095040, %v13671_v45 }
 0x16c   :  { %v1500_v23 = vxor.u32 2147483648, %v1499_v46  ;;  %v1641_v16 = vor.u32 %v1640_v33, %v1639_v13  ;;  %v1644_v24 = vor.u32 %v1643_v34, %v1642_v42  ;;  %v1647_v30 = vor.u32 %v1646_v60, %v1645_v12 }
 0x16d   :  { %v11414_v11 = vmin.u32 %v1585_v54, %v13680_v2  ;;  %v1650_v35 = vor.u32 %v1649_v18, %v1648_v49  ;;  %v1651_v58 = vshll.u32 %v20017_v1, %v1636_v55  ;;  %v1652_v22 = vshrl.u32 %v20015_v8, %v1637_v44 }
 0x16e   :  { %v1501_v39 = vsel %vm1418_vm14, %v1500_v23, %v1499_v46  ;;  %vm1654_vm6 = vcmp.lt.s32.totalorder %v1635_v32, 1  ;;  %vm1655_vm7 = vcmp.lt.s32.totalorder %v1635_v32, 2  ;;  %vm1656_vm8 = vcmp.lt.s32.totalorder %v1635_v32, 3 }
 0x16f   :  { %v1504_v43 = vsel %vm13629_vm13, %v13411_v10, %v1501_v39  ;;  %v1587_v41 = vclz %v11414_v11  ;;  %v1653_v26 = vor.u32 %v1652_v22, %v1651_v58  ;;  %vm1657_vm9 = vcmp.lt.s32.totalorder %v1635_v32, 4 }
 0x170   :  { %12058 = vcosq.f32 %v1504_v43  ;;  %v1658_v25 = vsel %vm1654_vm6, %v1638_v3, %v1641_v16  ;;  %v1659_v27 = vsel %vm1657_vm9, %v1647_v30, 2102212464  ;;  %v1662_v31 = vsel %vm1654_vm6, %v1641_v16, %v1644_v24 }
 0x171   :  { %12060 = vsinq.f32 %v1504_v43  ;;  %v11415_v29 = vadd.s32 4294967294, %v1587_v41  ;;  %v1660_v48 = vsel %vm1656_vm8, %v1644_v24, %v1659_v27  ;;  %v1663_v7 = vsel %vm1657_vm9, %v1650_v35, 920167782  ;;  %v87_v43 = vld [vmem:[%s20290_s29 + $0x88] sm:$0xff]  ;;  %v88_v41 = vld [vmem:[%s20290_s29 + $0x90] sm:$0xff] }
 0x172   :  { %v1666_v51 = vsel %vm1654_vm6, %v1644_v24, %v1647_v30  ;;  %v1605_v50 = vsub.s32 4, %v13664_v38  ;;  %v1664_v9 = vsel %vm1656_vm8, %v1647_v30, %v1663_v7  ;;  %v1667_v0 = vsel %vm1657_vm9, %v1653_v26, 1326507024 }
 0x173   :  { %vm11416_vm10 = vcmp.lt.s32.totalorder %v11415_v29, 0  ;;  %v1661_v14 = vsel %vm1655_vm7, %v1658_v25, %v1660_v48  ;;  %v1665_v4 = vsel %vm1655_vm7, %v1662_v31, %v1664_v9  ;;  %v1668_v5 = vsel %vm1656_vm8, %v1650_v35, %v1667_v0 }
 0x174   :  { %v1590_v55 = vsel %vm11416_vm10, 0, %v11415_v29  ;;  %vm1508_vm11 = vweird.f32 %v13411_v10  ;;  %v1669_v44 = vsel %vm1655_vm7, %v1666_v51, %v1668_v5  ;;  %vm1521_vm12 = vcmp.lt.s32.totalorder %v13463_v47, 0  ;;  %v3588_v51 = vld [vmem:[%s20293_s28 + $0x88] sm:$0xff] }
 0x175   :  { %v1591_v36 = vsub.s32 32, %v1590_v55  ;;  %v1592_v52 = vshll.u32 %v13680_v2, %v1590_v55  ;;  %v1595_v53 = vsub.s32 4294967266, %v1590_v55  ;;  %v1729_v34 = vshrl.u32 %v1728_v37, 23  ;;  %11752 = vmatmul.mubr.msk.f32.gmra.mrb[18].mxu0 %vm3929_vm1, %v3588_v51 }
 0x176   :  { %v13713_v19 = vmul.u32.u64.low %v13687_v40, %v1669_v44  ;;  %v13714_v13 = vmul.u32.u64.high %v13687_v40, %v1669_v44, %v13713_v19  ;;  %v13717_v33 = vmul.u32.u64.low %v13687_v40, %v1665_v4  ;;  %v13718_v42 = vmul.u32.u64.high %v13687_v40, %v1665_v4, %v13717_v33 }
 0x177   :  { %v1593_v12 = vshrl.u32 %v1575_v20, %v1591_v36  ;;  %v1596_v46 = vadd.s32 127, %v1595_v53  ;;  %vm1511_vm13 = vcmp.eq.s32.totalorder %v13662_v15, 0  ;;  %vm1514_vm14 = vcmp.eq.s32.totalorder %v13662_v15, 2 }
 0x178   :  { %vm13726_vm15 = vcmp.le.f32.partialorder %v1519_v6, 0.7853982  ;;  %v1606_v60 = vsel %vm1521_vm12, %v1605_v50, %v13664_v38  ;;  %v1677_v20 = vmul.u32 %v13687_v40, %v1661_v14  ;;  %v11421_v49 = vadd.s32 4294967169, %v1729_v34 }
 0x179   :  { %v1594_v54 = vor.u32 %v1593_v12, %v1592_v52  ;;  %v1597_v32 = vshll.u32 %v1596_v46, 23  ;;  %vm1679_vm2 = vc.u32 %v13714_v13, %v13717_v33  ;;  %v1680_v3 = vadd.s32 1, %v13718_v42 }
 0x17a   :  { %v12059_v23 = vpop.eup %12058  ;;  %v1732_v6 = vand.u32 8388607, %v1725_v21  ;;  %v1831_v18 = vand.u32 2139095040, %v13678_v28  ;;  %v1735_v24 = vadd.s32 1, %v11421_v49  ;;  %vm1510_vm3 = vcmp.lt.s32.totalorder %v13662_v15, 2 }
 0x17b   :  { %v12061_v37 = vpop.eup %12060  ;;  %v1515_v11 = vxor.u32 2147483648, %v12059_v23  ;;  %v1598_v16 = vor.u32 4788187, %v1597_v32  ;;  %v1601_v38 = vcvt.s32.f32 %v1594_v54  ;;  %v1608_v30 = vsel %vm13726_vm15, 0, %v1606_v60 }
 0x17c   :  { %v1512_v40 = vxor.u32 2147483648, %v12061_v37  ;;  %v1681_v39 = vsel %vm1679_vm2, %v1680_v3, %v13718_v42  ;;  %vm1736_vm4 = vcmp.gt.s32.totalorder %v1735_v24, 0  ;;  %v1733_v29 = vor.u32 8388608, %v1732_v6 }
 0x17d   :  { %v1516_v35 = vsel %vm1514_vm14, %v1515_v11, %v12061_v37  ;;  %v1599_v58 = vand.u32 2147483647, %v1598_v16  ;;  %v1682_v22 = vadd.s32 %v1681_v39, %v1677_v20  ;;  %v1737_v25 = vsel %vm1736_vm4, %v1735_v24, 0 }
 0x17e   :  { %v1513_v26 = vsel %vm1511_vm13, %v12059_v23, %v1512_v40  ;;  %v1832_v27 = vshrl.u32 %v1831_v18, 23  ;;  %v1739_v9 = vand.u32 31, %v1737_v25  ;;  %v13760_v0 = vmul.f32 %v13394_v56, %v87_v43 }
 0x17f   :  { %v1517_v48 = vsel %vm1510_vm3, %v1513_v26, %v1516_v35  ;;  %v1602_v31 = vmul.f32 %v1601_v38, %v1599_v58  ;;  %v1683_v7 = vadd.s32 536870912, %v1682_v22  ;;  %v13764_v15 = vmul.f32 %v13394_v56, %v88_v41 }
 0x180   :  { %v1518_v50 = vsel %vm1508_vm11, nan, %v1517_v48  ;;  %v13767_v14 = vand.u32 3, %v1608_v30  ;;  %v1828_v5 = vand.u32 2147483647, %v13678_v28  ;;  %v1740_v10 = vsub.s32 32, %v1739_v9 }
 0x181   :  { %11695 = vmatprep.mubr.msk.f32.mxu1 %vm20282_vm0, %v1518_v50  ;;  %v1603_v55 = vxor.u32 2147483648, %v1602_v31  ;;  %v13769_v4 = vshrl.u32 %v1683_v7, 30  ;;  %v1742_v36 = vshll.u32 %v20025_v57, %v1739_v9  ;;  %v13773_v52 = vshll.u32 %v1733_v29, 8 }
 0x182   :  { %v11425_v53 = vadd.s32 4294967169, %v1832_v27  ;;  %v1745_v19 = vshll.u32 %v20023_v59, %v1739_v9  ;;  %v1748_v42 = vshll.u32 %v20021_v61, %v1739_v9  ;;  %v1738_v46 = vshrl.u32 %v1737_v25, 5 }
 0x183   :  { %v1604_v44 = vsel %vm1521_vm12, %v1603_v55, %v1602_v31  ;;  %v1685_v56 = vshll.u32 %v13769_v4, 30  ;;  %v1743_v34 = vshrl.u32 %v20023_v59, %v1740_v10  ;;  %v1746_v60 = vshrl.u32 %v20021_v61, %v1740_v10 }
 0x184   :  { %v1607_v12 = vsel %vm13726_vm15, %v13463_v47, %v1604_v44  ;;  %v1749_v32 = vshrl.u32 %v20019_v63, %v1740_v10  ;;  %v13790_v20 = vand.u32 8388607, %v1828_v5  ;;  %v1741_v49 = vshrl.u32 %v20025_v57, %v1740_v10 }
 0x185   :  { %12062 = vcosq.f32 %v1607_v12  ;;  %v13785_v54 = vsub.s32 %v1682_v22, %v1685_v56  ;;  %v1744_v23 = vor.u32 %v1743_v34, %v1742_v36  ;;  %v1751_v2 = vshll.u32 %v20019_v63, %v1739_v9 }
 0x186   :  { %12064 = vsinq.f32 %v1607_v12  ;;  %v1747_v6 = vor.u32 %v1746_v60, %v1745_v19  ;;  %v1750_v18 = vor.u32 %v1749_v32, %v1748_v42  ;;  %v1752_v37 = vshrl.u32 %v20017_v1, %v1740_v10  ;;  %v3589_v42 = vld [vmem:[%s20293_s28 + $0x90] sm:$0xff] }
 0x187   :  { %v1688_v3 = vsub.s32 0, %v13785_v54  ;;  %vm1614_vm5 = vcmp.eq.s32.totalorder %v13767_v14, 0  ;;  %v1754_v11 = vshll.u32 %v20017_v1, %v1739_v9  ;;  %v1755_v16 = vshrl.u32 %v20015_v8, %v1740_v10  ;;  %11754 = vmatprep.mubr.msk.f32.mxu0 %vm3929_vm1, %v3589_v42 }
 0x188   :  { %vm1757_vm6 = vcmp.lt.s32.totalorder %v1738_v46, 1  ;;  %v1838_v38 = vadd.s32 1, %v11425_v53  ;;  %vm1613_vm7 = vcmp.lt.s32.totalorder %v13767_v14, 2  ;;  %vm1758_vm8 = vcmp.lt.s32.totalorder %v1738_v46, 2 }
 0x189   :  { %v11418_v24 = vmin.u32 %v1688_v3, %v13785_v54  ;;  %vm1759_vm9 = vcmp.lt.s32.totalorder %v1738_v46, 3  ;;  %vm1760_vm10 = vcmp.lt.s32.totalorder %v1738_v46, 4  ;;  %vm1611_vm11 = vweird.f32 %v13463_v47 }
 0x18a   :  { %v1753_v40 = vor.u32 %v1752_v37, %v1751_v2  ;;  %v1756_v30 = vor.u32 %v1755_v16, %v1754_v11  ;;  %v1761_v39 = vsel %vm1757_vm6, %v1741_v49, %v1744_v23  ;;  %v1762_v35 = vsel %vm1760_vm10, %v1750_v18, 2102212464 }
 0x18b   :  { %v1690_v58 = vclz %v11418_v24  ;;  %v1763_v22 = vsel %vm1759_vm9, %v1747_v6, %v1762_v35  ;;  %v1765_v43 = vsel %vm1757_vm6, %v1744_v23, %v1747_v6  ;;  %v1769_v41 = vsel %vm1757_vm6, %v1747_v6, %v1750_v18 }
 0x18c   :  { %vm1617_vm12 = vcmp.eq.s32.totalorder %v13767_v14, 2  ;;  %v1766_v26 = vsel %vm1760_vm10, %v1753_v40, 920167782  ;;  %v1770_v29 = vsel %vm1760_vm10, %v1756_v30, 1326507024  ;;  %vm1839_vm13 = vcmp.gt.s32.totalorder %v1838_v38, 0 }
 0x18d   :  { %vm1624_vm14 = vcmp.lt.s32.totalorder %v13498_v62, 0  ;;  %v1678_v25 = vadd.s32 %v13717_v33, %v13714_v13  ;;  %v11419_v27 = vadd.s32 4294967294, %v1690_v58  ;;  %v1767_v48 = vsel %vm1759_vm9, %v1750_v18, %v1766_v26 }
 0x18e   :  { %v1771_v31 = vsel %vm1759_vm9, %v1753_v40, %v1770_v29  ;;  %v1764_v7 = vsel %vm1758_vm8, %v1761_v39, %v1763_v22  ;;  %v1768_v51 = vsel %vm1758_vm8, %v1765_v43, %v1767_v48  ;;  %v1836_v9 = vor.u32 8388608, %v13790_v20 }
 0x18f   :  { %v1772_v50 = vsel %vm1758_vm8, %v1769_v41, %v1771_v31  ;;  %v12063_v55 = vpop.eup %12062  ;;  %vm11420_vm15 = vcmp.lt.s32.totalorder %v11419_v27, 0  ;;  %v1840_v13 = vsel %vm1839_vm13, %v1838_v38, 0  ;;  %v1708_v20 = vsub.s32 4, %v13769_v4 }
 0x190   :  { %v13814_v10 = vmul.u32.u64.low %v13773_v52, %v1772_v50  ;;  %v13815_v36 = vmul.u32.u64.high %v13773_v52, %v1772_v50, %v13814_v10  ;;  %v12065_v33 = vpop.eup %12064  ;;  %v1618_v53 = vxor.u32 2147483648, %v12063_v55  ;;  %v1693_v44 = vsel %vm11420_vm15, 0, %v11419_v27 }
 0x191   :  { %v13818_v56 = vmul.u32.u64.low %v13773_v52, %v1768_v51  ;;  %v13819_v19 = vmul.u32.u64.high %v13773_v52, %v1768_v51, %v13818_v56  ;;  %v1615_v12 = vxor.u32 2147483648, %v12065_v33  ;;  %v1694_v46 = vsub.s32 32, %v1693_v44 }
 0x192   :  { %v1695_v34 = vshll.u32 %v13785_v54, %v1693_v44  ;;  %v1698_v60 = vsub.s32 4294967266, %v1693_v44  ;;  %v1619_v32 = vsel %vm1617_vm12, %v1618_v53, %v12065_v33  ;;  %v1780_v49 = vmul.u32 %v13773_v52, %v1764_v7 }
 0x193   :  { %v1842_v23 = vand.u32 31, %v1840_v13  ;;  %v1616_v2 = vsel %vm1614_vm5, %v12063_v55, %v1615_v12  ;;  %v1696_v3 = vshrl.u32 %v1678_v25, %v1694_v46  ;;  %v13833_v18 = vshrl.u32 %v1840_v13, 5 }
 0x194   :  { %v1699_v6 = vadd.s32 127, %v1698_v60  ;;  %v1620_v54 = vsel %vm1613_vm7, %v1616_v2, %v1619_v32  ;;  %vm1782_vm2 = vc.u32 %v13815_v36, %v13818_v56  ;;  %v1783_v37 = vadd.s32 1, %v13819_v19 }
 0x195   :  { %v1843_v11 = vsub.s32 32, %v1842_v23  ;;  %v1621_v52 = vsel %vm1611_vm11, nan, %v1620_v54  ;;  %vm13844_vm3 = vcmp.le.f32.partialorder %v1622_v17, 0.7853982  ;;  %v1697_v38 = vor.u32 %v1696_v3, %v1695_v34 }
 0x196   :  { %v1700_v24 = vshll.u32 %v1699_v6, 23  ;;  %v1845_v14 = vshll.u32 %v20025_v57, %v1842_v23  ;;  %11696 = vmatmul.mubr.msk.f32.gmra.mrb[12].mxu1 %vm20282_vm0, %v1621_v52  ;;  %v1709_v40 = vsel %vm1624_vm14, %v1708_v20, %v13769_v4  ;;  %v1784_v30 = vsel %vm1782_vm2, %v1783_v37, %v13819_v19 }
 0x197   :  { %v1846_v47 = vshrl.u32 %v20023_v59, %v1843_v11  ;;  %v1848_v39 = vshll.u32 %v20023_v59, %v1842_v23  ;;  %v1704_v35 = vcvt.s32.f32 %v1697_v38  ;;  %v1785_v58 = vadd.s32 %v1784_v30, %v1780_v49 }
 0x198   :  { %v1701_v17 = vor.u32 4788187, %v1700_v24  ;;  %v1849_v22 = vshrl.u32 %v20021_v61, %v1843_v11  ;;  %v1851_v43 = vshll.u32 %v20021_v61, %v1842_v23  ;;  %v1852_v41 = vshrl.u32 %v20019_v63, %v1843_v11 }
 0x199   :  { %v1854_v26 = vshll.u32 %v20019_v63, %v1842_v23  ;;  %vm1860_vm4 = vcmp.lt.s32.totalorder %v13833_v18, 1  ;;  %v1786_v29 = vadd.s32 536870912, %v1785_v58  ;;  %v1847_v25 = vor.u32 %v1846_v47, %v1845_v14  ;;  %v13907_v47 = vld [vmem:[%s20292_s23] ss:$0 sm:$0xff] }
 0x19a   :  { %v1702_v4 = vand.u32 2147483647, %v1701_v17  ;;  %v1855_v27 = vshrl.u32 %v20017_v1, %v1843_v11  ;;  %v1850_v48 = vor.u32 %v1849_v22, %v1848_v39  ;;  %v1853_v31 = vor.u32 %v1852_v41, %v1851_v43 }
 0x19b   :  { %v1857_v7 = vshll.u32 %v20017_v1, %v1842_v23  ;;  %v1858_v51 = vshrl.u32 %v20015_v8, %v1843_v11  ;;  %v1787_v55 = vshrl.u32 %v1786_v29, 30  ;;  %vm1863_vm5 = vcmp.lt.s32.totalorder %v13833_v18, 4 }
 0x19c   :  { %v1705_v50 = vmul.f32 %v1704_v35, %v1702_v4  ;;  %v1856_v10 = vor.u32 %v1855_v27, %v1854_v26  ;;  %v1844_v13 = vshrl.u32 %v20025_v57, %v1843_v11  ;;  %vm1862_vm6 = vcmp.lt.s32.totalorder %v13833_v18, 3 }
 0x19d   :  { %v1859_v33 = vor.u32 %v1858_v51, %v1857_v7  ;;  %v1876_v53 = vshll.u32 %v1836_v9, 8  ;;  %v1788_v19 = vshll.u32 %v1787_v55, 30  ;;  %vm1861_vm7 = vcmp.lt.s32.totalorder %v13833_v18, 2 }
 0x19e   :  { %v1706_v44 = vxor.u32 2147483648, %v1705_v50  ;;  %v1865_v42 = vsel %vm1863_vm5, %v1853_v31, 2102212464  ;;  %v1868_v12 = vsel %vm1860_vm4, %v1847_v25, %v1850_v48  ;;  %v1869_v46 = vsel %vm1863_vm5, %v1856_v10, 920167782 }
 0x19f   :  { %v1872_v34 = vsel %vm1860_vm4, %v1850_v48, %v1853_v31  ;;  %v1873_v60 = vsel %vm1863_vm5, %v1859_v33, 1326507024  ;;  %v1711_v20 = vsel %vm13844_vm3, 0, %v1709_v40  ;;  %v13876_v9 = vsub.s32 %v1785_v58, %v1788_v19 }
 0x1a0   :  { %v1707_v32 = vsel %vm1624_vm14, %v1706_v44, %v1705_v50  ;;  %v1870_v49 = vsel %vm1862_vm6, %v1853_v31, %v1869_v46  ;;  %v1864_v2 = vsel %vm1860_vm4, %v1844_v13, %v1847_v25  ;;  %v1866_v3 = vsel %vm1862_vm6, %v1850_v48, %v1865_v42 }
 0x1a1   :  { %v1710_v23 = vsel %vm13844_vm3, %v13498_v62, %v1707_v32  ;;  %v1874_v6 = vsel %vm1862_vm6, %v1856_v10, %v1873_v60  ;;  %v1791_v54 = vsub.s32 0, %v13876_v9  ;;  %v1871_v37 = vsel %vm1861_vm7, %v1868_v12, %v1870_v49  ;;  %v3590_v32 = vld [vmem:[%s20293_s28 + $0x98] sm:$0xff] }
 0x1a2   :  { %12066 = vcosq.f32 %v1710_v23  ;;  %v1875_v11 = vsel %vm1861_vm7, %v1872_v34, %v1874_v6  ;;  %v1715_v52 = vand.u32 3, %v1711_v20  ;;  %v1867_v14 = vsel %vm1861_vm7, %v1864_v2, %v1866_v3  ;;  %11755 = vmatmul.mubr.msk.f32.gmra.mrb[20].mxu0 %vm3929_vm1, %v3590_v32 }
 0x1a3   :  { %12068 = vsinq.f32 %v1710_v23  ;;  %v13894_v16 = vmul.u32.u64.low %v1876_v53, %v1875_v11  ;;  %v13895_v38 = vmul.u32.u64.high %v1876_v53, %v1875_v11, %v13894_v16  ;;  %v11422_v24 = vmin.u32 %v1791_v54, %v13876_v9 }
 0x1a4   :  { %v13900_v40 = vmul.u32.u64.low %v1876_v53, %v1871_v37  ;;  %v13901_v30 = vmul.u32.u64.high %v1876_v53, %v1871_v37, %v13900_v40  ;;  %v13911_v39 = vadd.f32 %v13907_v47, %v13760_v0  ;;  %v13915_v35 = vadd.f32 %v13907_v47, %v13764_v15 }
 0x1a5   :  { %v1793_v17 = vclz %v11422_v24  ;;  %vm1714_vm8 = vweird.f32 %v13498_v62  ;;  %vm1716_vm9 = vcmp.lt.s32.totalorder %v1715_v52, 2  ;;  %vm13920_vm10 = vcmp.le.f32.partialorder %v1725_v21, 0.7853982  ;;  %v89_v24 = vld [vmem:[%s20290_s29 + $0x98] sm:$0xff] }
 0x1a6   :  { %vm1727_vm11 = vcmp.lt.s32.totalorder %v13671_v45, 0  ;;  %v1811_v58 = vsub.s32 4, %v1787_v55  ;;  %v1883_v0 = vmul.u32 %v1876_v53, %v1867_v14  ;;  %vm1885_vm12 = vc.u32 %v13895_v38, %v13900_v40 }
 0x1a7   :  { %v11423_v22 = vadd.s32 4294967294, %v1793_v17  ;;  %v1934_v15 = vand.u32 2139095040, %v13911_v39  ;;  %vm1717_vm13 = vcmp.eq.s32.totalorder %v1715_v52, 0  ;;  %vm1720_vm14 = vcmp.eq.s32.totalorder %v1715_v52, 2 }
 0x1a8   :  { %v1886_v43 = vadd.s32 1, %v13901_v30  ;;  %v1931_v41 = vand.u32 2147483647, %v13911_v39  ;;  %v1781_v21 = vadd.s32 %v13818_v56, %v13815_v36  ;;  %v2037_v4 = vand.u32 2139095040, %v13915_v35 }
 0x1a9   :  { %vm11424_vm15 = vcmp.lt.s32.totalorder %v11423_v22, 0  ;;  %v1935_v26 = vshrl.u32 %v1934_v15, 23  ;;  %v1812_v25 = vsel %vm1727_vm11, %v1811_v58, %v1787_v55  ;;  %v2034_v48 = vand.u32 2147483647, %v13915_v35  ;;  %v13969_v15 = vld [vmem:[%s20291_s30] ss:$0 sm:$0xff] }
 0x1aa   :  { %v1796_v29 = vsel %vm11424_vm15, 0, %v11423_v22  ;;  %v1887_v27 = vsel %vm1885_vm12, %v1886_v43, %v13901_v30  ;;  %v1938_v33 = vand.u32 8388607, %v1931_v41  ;;  %v2038_v53 = vshrl.u32 %v2037_v4, 23 }
 0x1ab   :  { %v1797_v7 = vsub.s32 32, %v1796_v29  ;;  %v1798_v51 = vshll.u32 %v13876_v9, %v1796_v29  ;;  %v1801_v50 = vsub.s32 4294967266, %v1796_v29  ;;  %v1888_v10 = vadd.s32 %v1887_v27, %v1883_v0 }
 0x1ac   :  { %v12067_v31 = vpop.eup %12066  ;;  %v11429_v56 = vadd.s32 4294967169, %v1935_v26  ;;  %v1814_v46 = vsel %vm13920_vm10, 0, %v1812_v25  ;;  %v2041_v60 = vand.u32 8388607, %v2034_v48  ;;  %v1939_v3 = vor.u32 8388608, %v1938_v33 }
 0x1ad   :  { %v12069_v13 = vpop.eup %12068  ;;  %v1721_v36 = vxor.u32 2147483648, %v12067_v31  ;;  %v1799_v19 = vshrl.u32 %v1781_v21, %v1797_v7  ;;  %v1802_v55 = vadd.s32 127, %v1801_v50  ;;  %v1889_v42 = vadd.s32 536870912, %v1888_v10 }
 0x1ae   :  { %v1718_v44 = vxor.u32 2147483648, %v12069_v13  ;;  %v1941_v34 = vadd.s32 1, %v11429_v56  ;;  %v11433_v6 = vadd.s32 4294967169, %v2038_v53  ;;  %v2042_v30 = vor.u32 8388608, %v2041_v60 }
 0x1af   :  { %v1722_v12 = vsel %vm1720_vm14, %v1721_v36, %v12069_v13  ;;  %v1800_v9 = vor.u32 %v1799_v19, %v1798_v51  ;;  %v1803_v49 = vshll.u32 %v1802_v55, 23  ;;  %v13949_v23 = vshrl.u32 %v1889_v42, 30 }
 0x1b0   :  { %v1719_v20 = vsel %vm1717_vm13, %v12067_v31, %v1718_v44  ;;  %vm1942_vm2 = vcmp.gt.s32.totalorder %v1941_v34, 0  ;;  %v13962_v22 = vand.u32 3, %v1814_v46  ;;  %v1884_v62 = vadd.s32 %v13900_v40, %v13895_v38 }
 0x1b1   :  { %v1723_v2 = vsel %vm1716_vm9, %v1719_v20, %v1722_v12  ;;  %v1804_v37 = vor.u32 4788187, %v1803_v49  ;;  %v1807_v11 = vcvt.s32.f32 %v1800_v9  ;;  %v1891_v16 = vshll.u32 %v13949_v23, 30 }
 0x1b2   :  { %v1724_v54 = vsel %vm1714_vm8, nan, %v1723_v2  ;;  %v1943_v14 = vsel %vm1942_vm2, %v1941_v34, 0  ;;  %v2044_v0 = vadd.s32 1, %v11433_v6  ;;  %v13972_v43 = vmul.f32 %v13969_v15, %v89_v24 }
 0x1b3   :  { %11698 = vmatprep.mubr.msk.f32.mxu1 %vm20282_vm0, %v1724_v54  ;;  %v1805_v52 = vand.u32 2147483647, %v1804_v37  ;;  %v13960_v17 = vsub.s32 %v1888_v10, %v1891_v16  ;;  %v1945_v58 = vand.u32 31, %v1943_v14  ;;  %v13975_v29 = vshll.u32 %v1939_v3, 8 }
 0x1b4   :  { %v1914_v25 = vsub.s32 4, %v13949_v23  ;;  %v13980_v40 = vshll.u32 %v2042_v30, 8  ;;  %v1944_v10 = vshrl.u32 %v1943_v14, 5  ;;  %vm2045_vm3 = vcmp.gt.s32.totalorder %v2044_v0, 0 }
 0x1b5   :  { %v1808_v21 = vmul.f32 %v1807_v11, %v1805_v52  ;;  %v1894_v26 = vsub.s32 0, %v13960_v17  ;;  %v1946_v4 = vsub.s32 32, %v1945_v58  ;;  %v1948_v27 = vshll.u32 %v20025_v57, %v1945_v58 }
 0x1b6   :  { %v1951_v38 = vshll.u32 %v20023_v59, %v1945_v58  ;;  %v1954_v50 = vshll.u32 %v20021_v61, %v1945_v58  ;;  %vm1830_vm4 = vcmp.lt.s32.totalorder %v13678_v28, 0  ;;  %v1957_v42 = vshll.u32 %v20019_v63, %v1945_v58 }
 0x1b7   :  { %v1809_v31 = vxor.u32 2147483648, %v1808_v21  ;;  %v11426_v7 = vmin.u32 %v1894_v26, %v13960_v17  ;;  %v1949_v51 = vshrl.u32 %v20023_v59, %v1946_v4  ;;  %v1947_v13 = vshrl.u32 %v20025_v57, %v1946_v4 }
 0x1b8   :  { %v1952_v36 = vshrl.u32 %v20021_v61, %v1946_v4  ;;  %v1955_v44 = vshrl.u32 %v20019_v63, %v1946_v4  ;;  %v1958_v12 = vshrl.u32 %v20017_v1, %v1946_v4  ;;  %v1960_v60 = vshll.u32 %v20017_v1, %v1945_v58 }
 0x1b9   :  { %v1810_v56 = vsel %vm1727_vm11, %v1809_v31, %v1808_v21  ;;  %v1896_v33 = vclz %v11426_v7  ;;  %v1950_v53 = vor.u32 %v1949_v51, %v1948_v27  ;;  %v1961_v20 = vshrl.u32 %v20015_v8, %v1946_v4 }
 0x1ba   :  { %v1813_v19 = vsel %vm13920_vm10, %v13671_v45, %v1810_v56  ;;  %v1953_v55 = vor.u32 %v1952_v36, %v1951_v38  ;;  %v1956_v34 = vor.u32 %v1955_v44, %v1954_v50  ;;  %v1959_v32 = vor.u32 %v1958_v12, %v1957_v42 }
 0x1bb   :  { %12070 = vcosq.f32 %v1813_v19  ;;  %v11427_v46 = vadd.s32 4294967294, %v1896_v33  ;;  %vm1963_vm5 = vcmp.lt.s32.totalorder %v1944_v10, 1  ;;  %vm1823_vm6 = vcmp.eq.s32.totalorder %v13962_v22, 2 }
 0x1bc   :  { %12072 = vsinq.f32 %v1813_v19  ;;  %vm1964_vm8 = vcmp.lt.s32.totalorder %v1944_v10, 2  ;;  %vm1965_vm9 = vcmp.lt.s32.totalorder %v1944_v10, 3  ;;  %vm1966_vm10 = vcmp.lt.s32.totalorder %v1944_v10, 4 }
 0x1bd   :  { %vm11428_vm7 = vcmp.lt.s32.totalorder %v11427_v46, 0  ;;  %vm1820_vm11 = vcmp.eq.s32.totalorder %v13962_v22, 0  ;;  %v1962_v9 = vor.u32 %v1961_v20, %v1960_v60  ;;  %v1967_v49 = vsel %vm1963_vm5, %v1947_v13, %v1950_v53 }
 0x1be   :  { %v1899_v18 = vsel %vm11428_vm7, 0, %v11427_v46  ;;  %v1968_v2 = vsel %vm1966_vm10, %v1956_v34, 2102212464  ;;  %vm1819_vm12 = vcmp.lt.s32.totalorder %v13962_v22, 2  ;;  %vm1817_vm13 = vweird.f32 %v13671_v45 }
 0x1bf   :  { %v1900_v3 = vsub.s32 32, %v1899_v18  ;;  %v1901_v6 = vshll.u32 %v13960_v17, %v1899_v18  ;;  %v1904_v54 = vsub.s32 4294967266, %v1899_v18  ;;  %v1969_v37 = vsel %vm1965_vm9, %v1953_v55, %v1968_v2 }
 0x1c0   :  { %v1971_v11 = vsel %vm1963_vm5, %v1950_v53, %v1953_v55  ;;  %v1972_v16 = vsel %vm1966_vm10, %v1959_v32, 920167782  ;;  %v1975_v24 = vsel %vm1963_vm5, %v1953_v55, %v1956_v34  ;;  %v2046_v14 = vsel %vm2045_vm3, %v2044_v0, 0 }
 0x1c1   :  { %v1902_v30 = vshrl.u32 %v1884_v62, %v1900_v3  ;;  %v1905_v52 = vadd.s32 127, %v1904_v54  ;;  %v1973_v58 = vsel %vm1965_vm9, %v1956_v34, %v1972_v16  ;;  %v1976_v21 = vsel %vm1966_vm10, %v1962_v9, 1326507024 }
 0x1c2   :  { %v14015_v17 = vsel %vm1830_vm4, %v1914_v25, %v13949_v23  ;;  %v1970_v26 = vsel %vm1964_vm8, %v1967_v49, %v1969_v37  ;;  %v1974_v4 = vsel %vm1964_vm8, %v1971_v11, %v1973_v58  ;;  %v1977_v27 = vsel %vm1965_vm9, %v1959_v32, %v1976_v21 }
 0x1c3   :  { %vm14022_vm14 = vcmp.le.f32.partialorder %v1828_v5, 0.7853982  ;;  %v1903_v0 = vor.u32 %v1902_v30, %v1901_v6  ;;  %v1906_v38 = vshll.u32 %v1905_v52, 23  ;;  %v1978_v31 = vsel %vm1964_vm8, %v1975_v24, %v1977_v27  ;;  %v3591_v5 = vld [vmem:[%s20293_s28 + $0xa0] sm:$0xff] }
 0x1c4   :  { %v2048_v7 = vand.u32 31, %v2046_v14  ;;  %v14028_v23 = vmul.u32.u64.low %v13975_v29, %v1978_v31  ;;  %v14029_v25 = vmul.u32.u64.high %v13975_v29, %v1978_v31, %v14028_v23  ;;  %v1986_v10 = vmul.u32 %v13975_v29, %v1970_v26  ;;  %11757 = vmatprep.mubr.msk.f32.mxu0 %vm3929_vm1, %v3591_v5 }
 0x1c5   :  { %v14032_v51 = vmul.u32.u64.low %v13975_v29, %v1974_v4  ;;  %v14033_v50 = vmul.u32.u64.high %v13975_v29, %v1974_v4, %v14032_v51  ;;  %v12071_v13 = vpop.eup %12070  ;;  %v1907_v36 = vor.u32 4788187, %v1906_v38  ;;  %v1910_v56 = vcvt.s32.f32 %v1903_v0 }
 0x1c6   :  { %v2049_v33 = vsub.s32 32, %v2048_v7  ;;  %v12073_v53 = vpop.eup %12072  ;;  %v1824_v44 = vxor.u32 2147483648, %v12071_v13  ;;  %v2047_v19 = vshrl.u32 %v2046_v14, 5  ;;  %v2051_v55 = vshll.u32 %v20025_v57, %v2048_v7 }
 0x1c7   :  { %v2054_v42 = vshll.u32 %v20023_v59, %v2048_v7  ;;  %v1821_v12 = vxor.u32 2147483648, %v12073_v53  ;;  %v1908_v46 = vand.u32 2147483647, %v1907_v36  ;;  %v2057_v60 = vshll.u32 %v20021_v61, %v2048_v7 }
 0x1c8   :  { %v2052_v34 = vshrl.u32 %v20023_v59, %v2049_v33  ;;  %v1825_v32 = vsel %vm1823_vm6, %v1824_v44, %v12073_v53  ;;  %vm1988_vm15 = vc.u32 %v14029_v25, %v14032_v51  ;;  %v1989_v29 = vadd.s32 1, %v14033_v50 }
 0x1c9   :  { %v2060_v20 = vshll.u32 %v20019_v63, %v2048_v7  ;;  %v1822_v18 = vsel %vm1820_vm11, %v12071_v13, %v1821_v12  ;;  %v1911_v9 = vmul.f32 %v1910_v56, %v1908_v46  ;;  %v2050_v49 = vshrl.u32 %v20025_v57, %v2049_v33 }
 0x1ca   :  { %v2055_v2 = vshrl.u32 %v20021_v61, %v2049_v33  ;;  %v1826_v3 = vsel %vm1819_vm12, %v1822_v18, %v1825_v32  ;;  %v1990_v6 = vsel %vm1988_vm15, %v1989_v29, %v14033_v50  ;;  %v2058_v54 = vshrl.u32 %v20019_v63, %v2049_v33  ;;  %v90_v50 = vld [vmem:[%s20290_s29 + $0xa0] sm:$0xff] }
 0x1cb   :  { %v2061_v37 = vshrl.u32 %v20017_v1, %v2049_v33  ;;  %v1827_v11 = vsel %vm1817_vm13, nan, %v1826_v3  ;;  %v1912_v16 = vxor.u32 2147483648, %v1911_v9  ;;  %v1991_v24 = vadd.s32 %v1990_v6, %v1986_v10 }
 0x1cc   :  { %v2053_v14 = vor.u32 %v2052_v34, %v2051_v55  ;;  %11699 = vmatmul.mubr.msk.f32.gmra.mrb[14].mxu1 %vm20282_vm0, %v1827_v11  ;;  %v2056_v30 = vor.u32 %v2055_v2, %v2054_v42  ;;  %v2063_v58 = vshll.u32 %v20017_v1, %v2048_v7  ;;  %v2064_v22 = vshrl.u32 %v20015_v8, %v2049_v33 }
 0x1cd   :  { %v2062_v52 = vor.u32 %v2061_v37, %v2060_v20  ;;  %v1913_v21 = vsel %vm1830_vm4, %v1912_v16, %v1911_v9  ;;  %v1992_v26 = vadd.s32 536870912, %v1991_v24  ;;  %v2059_v4 = vor.u32 %v2058_v54, %v2057_v60 }
 0x1ce   :  { %vm2066_vm2 = vcmp.lt.s32.totalorder %v2047_v19, 1  ;;  %v1916_v45 = vsel %vm14022_vm14, %v13678_v28, %v1913_v21  ;;  %v2065_v27 = vor.u32 %v2064_v22, %v2063_v58  ;;  %vm2068_vm3 = vcmp.lt.s32.totalorder %v2047_v19, 3 }
 0x1cf   :  { %vm2069_vm5 = vcmp.lt.s32.totalorder %v2047_v19, 4  ;;  %12074 = vcosq.f32 %v1916_v45  ;;  %v1993_v0 = vshrl.u32 %v1992_v26, 30  ;;  %vm2067_vm6 = vcmp.lt.s32.totalorder %v2047_v19, 2 }
 0x1d0   :  { %v2071_v38 = vsel %vm2069_vm5, %v2059_v4, 2102212464  ;;  %v1917_v31 = vsel %vm14022_vm14, 0, %v14015_v17  ;;  %12076 = vsinq.f32 %v1916_v45  ;;  %v2074_v7 = vsel %vm2066_vm2, %v2053_v14, %v2056_v30 }
 0x1d1   :  { %v2075_v23 = vsel %vm2069_vm5, %v2062_v52, 920167782  ;;  %v1994_v5 = vshll.u32 %v1993_v0, 30  ;;  %v2070_v13 = vsel %vm2066_vm2, %v2050_v49, %v2053_v14  ;;  %v2072_v36 = vsel %vm2068_vm3, %v2056_v30, %v2071_v38 }
 0x1d2   :  { %v2076_v56 = vsel %vm2068_vm3, %v2059_v4, %v2075_v23  ;;  %v2078_v17 = vsel %vm2066_vm2, %v2056_v30, %v2059_v4  ;;  %v2079_v62 = vsel %vm2069_vm5, %v2065_v27, 1326507024  ;;  %v14087_v33 = vadd.f32 %v13907_v47, %v13972_v43 }
 0x1d3   :  { %v2077_v10 = vsel %vm2067_vm6, %v2074_v7, %v2076_v56  ;;  %v1921_v53 = vand.u32 3, %v1917_v31  ;;  %v14089_v44 = vsub.s32 %v1991_v24, %v1994_v5  ;;  %v2080_v55 = vsel %vm2068_vm3, %v2062_v52, %v2079_v62  ;;  %v3592_v5 = vld [vmem:[%s20293_s28 + $0xa8] sm:$0xff] }
 0x1d4   :  { %v129_v42 = vmul.f32 %v13969_v15, %v90_v50  ;;  %v2073_v12 = vsel %vm2067_vm6, %v2070_v13, %v2072_v36  ;;  %v2081_v46 = vsel %vm2067_vm6, %v2078_v17, %v2080_v55  ;;  %v2140_v20 = vand.u32 2139095040, %v14087_v33  ;;  %11758 = vmatmul.mubr.msk.f32.gmra.mrb[22].mxu0 %vm3929_vm1, %v3592_v5 }
 0x1d5   :  { %v14096_v34 = vmul.u32.u64.low %v13980_v40, %v2077_v10  ;;  %v14097_v60 = vmul.u32.u64.high %v13980_v40, %v2077_v10, %v14096_v34  ;;  %v1997_v32 = vsub.s32 0, %v14089_v44  ;;  %vm1920_vm4 = vweird.f32 %v13678_v28 }
 0x1d6   :  { %v14101_v43 = vmul.u32.u64.low %v13980_v40, %v2081_v46  ;;  %v14102_v29 = vmul.u32.u64.high %v13980_v40, %v2081_v46, %v14101_v43  ;;  %vm1933_vm7 = vcmp.lt.s32.totalorder %v13911_v39, 0  ;;  %v2089_v19 = vmul.u32 %v13980_v40, %v2073_v12 }
 0x1d7   :  { %v11430_v18 = vmin.u32 %v1997_v32, %v14089_v44  ;;  %vm1923_vm8 = vcmp.eq.s32.totalorder %v1921_v53, 0  ;;  %v2092_v9 = vadd.s32 1, %v14097_v60  ;;  %v2141_v49 = vshrl.u32 %v2140_v20, 23 }
 0x1d8   :  { %v14111_v2 = vadd.f32 %v13907_v47, %v129_v42  ;;  %vm1926_vm9 = vcmp.eq.s32.totalorder %v1921_v53, 2  ;;  %v2017_v54 = vsub.s32 4, %v1993_v0  ;;  %vm2091_vm10 = vc.u32 %v14102_v29, %v14096_v34 }
 0x1d9   :  { %v12075_v3 = vpop.eup %12074  ;;  %v1999_v6 = vclz %v11430_v18  ;;  %v2093_v16 = vsel %vm2091_vm10, %v2092_v9, %v14097_v60  ;;  %v2137_v24 = vand.u32 2147483647, %v14087_v33  ;;  %v11437_v40 = vadd.s32 4294967169, %v2141_v49 }
 0x1da   :  { %v12077_v37 = vpop.eup %12076  ;;  %v1927_v11 = vxor.u32 2147483648, %v12075_v3  ;;  %vm1922_vm11 = vcmp.lt.s32.totalorder %v1921_v53, 2  ;;  %v2094_v52 = vadd.s32 %v2093_v16, %v2089_v19  ;;  %v1987_v22 = vadd.s32 %v14032_v51, %v14029_v25 }
 0x1db   :  { %v1924_v14 = vxor.u32 2147483648, %v12077_v37  ;;  %v11431_v30 = vadd.s32 4294967294, %v1999_v6  ;;  %v2147_v21 = vadd.s32 1, %v11437_v40  ;;  %v2243_v26 = vand.u32 2139095040, %v14111_v2 }
 0x1dc   :  { %v1928_v58 = vsel %vm1926_vm9, %v1927_v11, %v12077_v37  ;;  %v14122_v45 = vsel %vm1933_vm7, %v2017_v54, %v1993_v0  ;;  %v2095_v27 = vadd.s32 536870912, %v2094_v52  ;;  %v2144_v7 = vand.u32 8388607, %v2137_v24 }
 0x1dd   :  { %v1925_v4 = vsel %vm1923_vm8, %v12075_v3, %v1924_v14  ;;  %vm11432_vm12 = vcmp.lt.s32.totalorder %v11431_v30, 0  ;;  %vm2148_vm13 = vcmp.gt.s32.totalorder %v2147_v21, 0  ;;  %v2244_v36 = vshrl.u32 %v2243_v26, 23 }
 0x1de   :  { %v1929_v38 = vsel %vm1922_vm11, %v1925_v4, %v1928_v58  ;;  %v2002_v31 = vsel %vm11432_vm12, 0, %v11431_v30  ;;  %v14133_v0 = vshrl.u32 %v2095_v27, 30  ;;  %v2149_v13 = vsel %vm2148_vm13, %v2147_v21, 0 }
 0x1df   :  { %v1930_v25 = vsel %vm1920_vm4, nan, %v1929_v38  ;;  %v2003_v51 = vsub.s32 32, %v2002_v31  ;;  %v2004_v23 = vshll.u32 %v14089_v44, %v2002_v31  ;;  %v2007_v50 = vsub.s32 4294967266, %v2002_v31 }
 0x1e0   :  { %11701 = vmatprep.mubr.msk.f32.mxu1 %vm20282_vm0, %v1930_v25  ;;  %vm14138_vm14 = vcmp.le.f32.partialorder %v1931_v41, 0.7853982  ;;  %v2151_v17 = vand.u32 31, %v2149_v13  ;;  %v2097_v53 = vshll.u32 %v14133_v0, 30  ;;  %v2145_v44 = vor.u32 8388608, %v2144_v7 }
 0x1e1   :  { %v2005_v56 = vshrl.u32 %v1987_v22, %v2003_v51  ;;  %v2008_v10 = vadd.s32 127, %v2007_v50  ;;  %v2020_v62 = vsel %vm14138_vm14, 0, %v14122_v45  ;;  %v2090_v12 = vadd.s32 %v14096_v34, %v14102_v29 }
 0x1e2   :  { %v2152_v46 = vsub.s32 32, %v2151_v17  ;;  %v14147_v60 = vsub.s32 %v2094_v52, %v2097_v53  ;;  %v2154_v41 = vshll.u32 %v20025_v57, %v2151_v17  ;;  %v2240_v32 = vand.u32 2147483647, %v14111_v2 }
 0x1e3   :  { %v2006_v55 = vor.u32 %v2005_v56, %v2004_v23  ;;  %v2009_v42 = vshll.u32 %v2008_v10, 23  ;;  %v11441_v43 = vadd.s32 4294967169, %v2244_v36  ;;  %v2157_v19 = vshll.u32 %v20023_v59, %v2151_v17 }
 0x1e4   :  { %v2160_v9 = vshll.u32 %v20021_v61, %v2151_v17  ;;  %v2100_v49 = vsub.s32 0, %v14147_v60  ;;  %v2150_v3 = vshrl.u32 %v2149_v13, 5  ;;  %v2155_v6 = vshrl.u32 %v20023_v59, %v2152_v46 }
 0x1e5   :  { %v2010_v20 = vor.u32 4788187, %v2009_v42  ;;  %v2013_v18 = vcvt.s32.f32 %v2006_v55  ;;  %v2158_v34 = vshrl.u32 %v20021_v61, %v2152_v46  ;;  %v2161_v54 = vshrl.u32 %v20019_v63, %v2152_v46 }
 0x1e6   :  { %v2163_v37 = vshll.u32 %v20019_v63, %v2151_v17  ;;  %v2164_v11 = vshrl.u32 %v20017_v1, %v2152_v46  ;;  %v11434_v16 = vmin.u32 %v2100_v49, %v14147_v60  ;;  %v2120_v40 = vsub.s32 4, %v14133_v0 }
 0x1e7   :  { %v2011_v29 = vand.u32 2147483647, %v2010_v20  ;;  %v2153_v14 = vshrl.u32 %v20025_v57, %v2152_v46  ;;  %v14162_v30 = vshll.u32 %v2145_v44, 8  ;;  %v2156_v58 = vor.u32 %v2155_v6, %v2154_v41 }
 0x1e8   :  { %v2159_v22 = vor.u32 %v2158_v34, %v2157_v19  ;;  %v2162_v21 = vor.u32 %v2161_v54, %v2160_v9  ;;  %v2102_v26 = vclz %v11434_v16  ;;  %v2165_v4 = vor.u32 %v2164_v11, %v2163_v37 }
 0x1e9   :  { %v2014_v52 = vmul.f32 %v2013_v18, %v2011_v29  ;;  %v2166_v27 = vshll.u32 %v20017_v1, %v2151_v17  ;;  %v2167_v38 = vshrl.u32 %v20015_v8, %v2152_v46  ;;  %vm2169_vm15 = vcmp.lt.s32.totalorder %v2150_v3, 1 }
 0x1ea   :  { %vm2171_vm2 = vcmp.lt.s32.totalorder %v2150_v3, 3  ;;  %v2250_v7 = vadd.s32 1, %v11441_v43  ;;  %vm2036_vm3 = vcmp.lt.s32.totalorder %v13915_v35, 0  ;;  %v11435_v25 = vadd.s32 4294967294, %v2102_v26 }
 0x1eb   :  { %v2015_v31 = vxor.u32 2147483648, %v2014_v52  ;;  %v2168_v51 = vor.u32 %v2167_v38, %v2166_v27  ;;  %vm2170_vm5 = vcmp.lt.s32.totalorder %v2150_v3, 2  ;;  %vm2172_vm6 = vcmp.lt.s32.totalorder %v2150_v3, 4 }
 0x1ec   :  { %v2174_v50 = vsel %vm2172_vm6, %v2162_v21, 2102212464  ;;  %v2177_v5 = vsel %vm2169_vm15, %v2156_v58, %v2159_v22  ;;  %v2178_v13 = vsel %vm2172_vm6, %v2165_v4, 920167782  ;;  %vm11436_vm4 = vcmp.lt.s32.totalorder %v11435_v25, 0 }
 0x1ed   :  { %v2016_v23 = vsel %vm1933_vm7, %v2015_v31, %v2014_v52  ;;  %v2173_v56 = vsel %vm2169_vm15, %v2153_v14, %v2156_v58  ;;  %v2179_v10 = vsel %vm2171_vm2, %v2162_v21, %v2178_v13  ;;  %v2105_v17 = vsel %vm11436_vm4, 0, %v11435_v25 }
 0x1ee   :  { %v2019_v36 = vsel %vm14138_vm14, %v13911_v39, %v2016_v23  ;;  %v2175_v53 = vsel %vm2171_vm2, %v2159_v22, %v2174_v50  ;;  %v2180_v44 = vsel %vm2170_vm5, %v2177_v5, %v2179_v10  ;;  %v2106_v55 = vsub.s32 32, %v2105_v17 }
 0x1ef   :  { %12078 = vcosq.f32 %v2019_v36  ;;  %v2107_v42 = vshll.u32 %v14147_v60, %v2105_v17  ;;  %v2110_v46 = vsub.s32 4294967266, %v2105_v17  ;;  %v2181_v41 = vsel %vm2169_vm15, %v2159_v22, %v2162_v21  ;;  %v91_v60 = vld [vmem:[%s20290_s29 + $0xa8] sm:$0xff]  ;;  %v3593_v21 = vld [vmem:[%s20293_s28 + $0xb0] sm:$0xff] }
 0x1f0   :  { %12080 = vsinq.f32 %v2019_v36  ;;  %v2182_v43 = vsel %vm2172_vm6, %v2168_v51, 1326507024  ;;  %v14183_v20 = vmul.u32.u64.low %v14162_v30, %v2180_v44  ;;  %v14184_v18 = vmul.u32.u64.high %v14162_v30, %v2180_v44, %v14183_v20  ;;  %11760 = vmatprep.mubr.msk.f32.mxu0 %vm3929_vm1, %v3593_v21 }
 0x1f1   :  { %v2024_v19 = vand.u32 3, %v2020_v62  ;;  %v2108_v9 = vshrl.u32 %v2090_v12, %v2106_v55  ;;  %v2111_v49 = vadd.s32 127, %v2110_v46  ;;  %v2183_v6 = vsel %vm2171_vm2, %v2165_v4, %v2182_v43 }
 0x1f2   :  { %v2176_v34 = vsel %vm2170_vm5, %v2173_v56, %v2175_v53  ;;  %v2184_v29 = vsel %vm2170_vm5, %v2181_v41, %v2183_v6  ;;  %v14199_v54 = vand.u32 8388607, %v2240_v32  ;;  %vm2251_vm7 = vcmp.gt.s32.totalorder %v2250_v7, 0 }
 0x1f3   :  { %vm2023_vm8 = vweird.f32 %v13911_v39  ;;  %v2109_v45 = vor.u32 %v2108_v9, %v2107_v42  ;;  %v2112_v28 = vshll.u32 %v2111_v49, 23  ;;  %v2121_v37 = vsel %vm2036_vm3, %v2120_v40, %v14133_v0 }
 0x1f4   :  { %v14203_v62 = vmul.u32.u64.low %v14162_v30, %v2184_v29  ;;  %v14204_v12 = vmul.u32.u64.high %v14162_v30, %v2184_v29, %v14203_v62  ;;  %v2195_v3 = vadd.s32 1, %v14184_v18  ;;  %v2252_v11 = vsel %vm2251_vm7, %v2250_v7, 0 }
 0x1f5   :  { %v130_v16 = vmul.f32 %v13969_v15, %v91_v60  ;;  %v2113_v14 = vor.u32 4788187, %v2112_v28  ;;  %v2116_v52 = vcvt.s32.f32 %v2109_v45  ;;  %v2192_v58 = vmul.u32 %v14162_v30, %v2176_v34 }
 0x1f6   :  { %v2254_v22 = vand.u32 31, %v2252_v11  ;;  %vm2025_vm9 = vcmp.lt.s32.totalorder %v2024_v19, 2  ;;  %vm2026_vm10 = vcmp.eq.s32.totalorder %v2024_v19, 0  ;;  %vm2029_vm11 = vcmp.eq.s32.totalorder %v2024_v19, 2 }
 0x1f7   :  { %vm14217_vm12 = vcmp.le.f32.partialorder %v2034_v48, 0.7853982  ;;  %v2114_v40 = vand.u32 2147483647, %v2113_v14  ;;  %vm2194_vm13 = vc.u32 %v14204_v12, %v14183_v20  ;;  %v2248_v30 = vor.u32 8388608, %v14199_v54 }
 0x1f8   :  { %v2255_v26 = vsub.s32 32, %v2254_v22  ;;  %v2123_v27 = vsel %vm14217_vm12, 0, %v2121_v37  ;;  %v2196_v38 = vsel %vm2194_vm13, %v2195_v3, %v14184_v18  ;;  %v2257_v48 = vshll.u32 %v20025_v57, %v2254_v22 }
 0x1f9   :  { %v12079_v4 = vpop.eup %12078  ;;  %v14230_v31 = vadd.f32 %v13907_v47, %v130_v16  ;;  %v2117_v51 = vmul.f32 %v2116_v52, %v2114_v40  ;;  %v2197_v23 = vadd.s32 %v2196_v38, %v2192_v58  ;;  %v2253_v50 = vshrl.u32 %v2252_v11, 5 }
 0x1fa   :  { %v12081_v7 = vpop.eup %12080  ;;  %v2030_v25 = vxor.u32 2147483648, %v12079_v4  ;;  %v2258_v13 = vshrl.u32 %v20023_v59, %v2255_v26  ;;  %v2260_v36 = vshll.u32 %v20023_v59, %v2254_v22  ;;  %v2261_v56 = vshrl.u32 %v20021_v61, %v2255_v26 }
 0x1fb   :  { %v2027_v5 = vxor.u32 2147483648, %v12081_v7  ;;  %v2118_v17 = vxor.u32 2147483648, %v2117_v51  ;;  %v2198_v53 = vadd.s32 536870912, %v2197_v23  ;;  %v2266_v44 = vshll.u32 %v20019_v63, %v2254_v22 }
 0x1fc   :  { %v2031_v10 = vsel %vm2029_vm11, %v2030_v25, %v12081_v7  ;;  %v2259_v42 = vor.u32 %v2258_v13, %v2257_v48  ;;  %v2263_v46 = vshll.u32 %v20021_v61, %v2254_v22  ;;  %v2264_v41 = vshrl.u32 %v20019_v63, %v2255_v26  ;;  %v92_v48 = vld [vmem:[%s20290_s29 + $0xb0] sm:$0xff] }
 0x1fd   :  { %v2028_v55 = vsel %vm2026_vm10, %v12079_v4, %v2027_v5  ;;  %v2119_v18 = vsel %vm2036_vm3, %v2118_v17, %v2117_v51  ;;  %v14243_v9 = vshrl.u32 %v2198_v53, 30  ;;  %v2267_v49 = vshrl.u32 %v20017_v1, %v2255_v26 }
 0x1fe   :  { %v2032_v43 = vsel %vm2025_vm9, %v2028_v55, %v2031_v10  ;;  %v2122_v60 = vsel %vm14217_vm12, %v13915_v35, %v2119_v18  ;;  %v2269_v34 = vshll.u32 %v20017_v1, %v2254_v22  ;;  %v2270_v29 = vshrl.u32 %v20015_v8, %v2255_v26 }
 0x1ff   :  { %v2033_v6 = vsel %vm2023_vm8, nan, %v2032_v43  ;;  %12082 = vcosq.f32 %v2122_v60  ;;  %v2200_v19 = vshll.u32 %v14243_v9, 30  ;;  %v2262_v54 = vor.u32 %v2261_v56, %v2260_v36 }
 0x200   :  { %11702 = vmatmul.mubr.msk.f32.gmra.mrb[16].mxu1 %vm20282_vm0, %v2033_v6  ;;  %v2268_v45 = vor.u32 %v2267_v49, %v2266_v44  ;;  %12084 = vsinq.f32 %v2122_v60  ;;  %v2265_v28 = vor.u32 %v2264_v41, %v2263_v46  ;;  %v2271_v62 = vor.u32 %v2270_v29, %v2269_v34 }
 0x201   :  { %vm2272_vm14 = vcmp.lt.s32.totalorder %v2253_v50, 1  ;;  %v14255_v39 = vsub.s32 %v2197_v23, %v2200_v19  ;;  %v2256_v37 = vshrl.u32 %v20025_v57, %v2255_v26  ;;  %vm2274_vm15 = vcmp.lt.s32.totalorder %v2253_v50, 3  ;;  %v3594_v19 = vld [vmem:[%s20293_s28 + $0xb8] sm:$0xff] }
 0x202   :  { %vm2275_vm2 = vcmp.lt.s32.totalorder %v2253_v50, 4  ;;  %v2127_v3 = vand.u32 3, %v2123_v27  ;;  %v2288_v16 = vshll.u32 %v2248_v30, 8  ;;  %vm2273_vm3 = vcmp.lt.s32.totalorder %v2253_v50, 2  ;;  %11761 = vmatmul.mubr.msk.f32.gmra.mrb[24].mxu0 %vm3929_vm1, %v3594_v19 }
 0x203   :  { %v2277_v11 = vsel %vm2275_vm2, %v2265_v28, 2102212464  ;;  %v2203_v14 = vsub.s32 0, %v14255_v39  ;;  %v2280_v52 = vsel %vm2272_vm14, %v2259_v42, %v2262_v54  ;;  %v2281_v58 = vsel %vm2275_vm2, %v2268_v45, 920167782 }
 0x204   :  { %v2282_v22 = vsel %vm2274_vm15, %v2265_v28, %v2281_v58  ;;  %v2284_v21 = vsel %vm2272_vm14, %v2262_v54, %v2265_v28  ;;  %v2285_v0 = vsel %vm2275_vm2, %v2271_v62, 1326507024  ;;  %v2346_v40 = vand.u32 2139095040, %v14230_v31  ;;  %v14298_v62 = vpop.f32.mrb[0].mxu0 }
 0x205   :  { %v11438_v26 = vmin.u32 %v2203_v14, %v14255_v39  ;;  %v2276_v4 = vsel %vm2272_vm14, %v2256_v37, %v2259_v42  ;;  %v2278_v27 = vsel %vm2274_vm15, %v2262_v54, %v2277_v11  ;;  %vm2126_vm5 = vweird.f32 %v13915_v35 }
 0x206   :  { %vm2128_vm6 = vcmp.lt.s32.totalorder %v2127_v3, 2  ;;  %v2283_v30 = vsel %vm2273_vm3, %v2280_v52, %v2282_v22  ;;  %v2286_v38 = vsel %vm2274_vm15, %v2268_v45, %v2285_v0  ;;  %v2279_v5 = vsel %vm2273_vm3, %v2276_v4, %v2278_v27  ;;  %v14311_v0 = vpop.f32.mrb[1].mxu0 }
 0x207   :  { %v2205_v7 = vclz %v11438_v26  ;;  %v2287_v25 = vsel %vm2273_vm3, %v2284_v21, %v2286_v38  ;;  %v14273_v51 = vmul.u32.u64.low %v2288_v16, %v2283_v30  ;;  %v14274_v23 = vmul.u32.u64.high %v2288_v16, %v2283_v30, %v14273_v51 }
 0x208   :  { %v14278_v13 = vmul.u32.u64.low %v2288_v16, %v2287_v25  ;;  %v14279_v36 = vmul.u32.u64.high %v2288_v16, %v2287_v25, %v14278_v13  ;;  %v2347_v56 = vshrl.u32 %v2346_v40, 23  ;;  %vm2129_vm4 = vcmp.eq.s32.totalorder %v2127_v3, 0 }
 0x209   :  { %v12083_v10 = vpop.eup %12082  ;;  %vm2132_vm7 = vcmp.eq.s32.totalorder %v2127_v3, 2  ;;  %v11439_v17 = vadd.s32 4294967294, %v2205_v7  ;;  %v131_v53 = vmul.f32 %v13969_v15, %v92_v48  ;;  %v2193_v42 = vadd.s32 %v14183_v20, %v14204_v12 }
 0x20a   :  { %v12085_v44 = vpop.eup %12084  ;;  %v2133_v55 = vxor.u32 2147483648, %v12083_v10  ;;  %v2343_v46 = vand.u32 2147483647, %v14230_v31  ;;  %v11445_v41 = vadd.s32 4294967169, %v2347_v56  ;;  %v2295_v43 = vmul.u32 %v2288_v16, %v2279_v5 }
 0x20b   :  { %v2130_v50 = vxor.u32 2147483648, %v12085_v44  ;;  %vm11440_vm8 = vcmp.lt.s32.totalorder %v11439_v17, 0  ;;  %v2298_v18 = vadd.s32 1, %v14274_v23  ;;  %v2223_v60 = vsub.s32 4, %v14243_v9 }
 0x20c   :  { %v2134_v49 = vsel %vm2132_vm7, %v2133_v55, %v12085_v44  ;;  %v2208_v6 = vsel %vm11440_vm8, 0, %v11439_v17  ;;  %vm2297_vm9 = vc.u32 %v14279_v36, %v14273_v51  ;;  %vm2139_vm10 = vcmp.lt.s32.totalorder %v14087_v33, 0 }
 0x20d   :  { %v2131_v34 = vsel %vm2129_vm4, %v12083_v10, %v2130_v50  ;;  %v2209_v29 = vsub.s32 32, %v2208_v6  ;;  %v2210_v20 = vshll.u32 %v14255_v39, %v2208_v6  ;;  %v2213_v12 = vsub.s32 4294967266, %v2208_v6 }
 0x20e   :  { %v2135_v54 = vsel %vm2128_vm6, %v2131_v34, %v2134_v49  ;;  %v2299_v45 = vsel %vm2297_vm9, %v2298_v18, %v14274_v23  ;;  %v2353_v28 = vadd.s32 1, %v11445_v41  ;;  %v2224_v3 = vsel %vm2139_vm10, %v2223_v60, %v14243_v9 }
 0x20f   :  { %v2136_v37 = vsel %vm2126_vm5, nan, %v2135_v54  ;;  %v2211_v39 = vshrl.u32 %v2193_v42, %v2209_v29  ;;  %v2214_v11 = vadd.s32 127, %v2213_v12  ;;  %v2300_v16 = vadd.s32 %v2299_v45, %v2295_v43 }
 0x210   :  { %11704 = vmatprep.mubr.msk.f32.mxu1 %vm20282_vm0, %v2136_v37  ;;  %v2350_v14 = vand.u32 8388607, %v2343_v46  ;;  %vm2354_vm11 = vcmp.gt.s32.totalorder %v2353_v28, 0  ;;  %v14309_v52 = vadd.f32 %v13907_v47, %v131_v53  ;;  %vm14315_vm12 = vcmp.le.f32.partialorder %v2137_v24, 0.7853982 }
 0x211   :  { %v2212_v58 = vor.u32 %v2211_v39, %v2210_v20  ;;  %v2215_v22 = vshll.u32 %v2214_v11, 23  ;;  %v2301_v35 = vadd.s32 536870912, %v2300_v16  ;;  %v2355_v21 = vsel %vm2354_vm11, %v2353_v28, 0 }
 0x212   :  { %v2357_v9 = vand.u32 31, %v2355_v21  ;;  %v2226_v27 = vsel %vm14315_vm12, 0, %v2224_v3  ;;  %v2351_v30 = vor.u32 8388608, %v2350_v14  ;;  %v2356_v38 = vshrl.u32 %v2355_v21, 5 }
 0x213   :  { %v2216_v26 = vor.u32 4788187, %v2215_v22  ;;  %v2219_v4 = vcvt.s32.f32 %v2212_v58  ;;  %v14321_v47 = vshrl.u32 %v2301_v35, 30  ;;  %v2449_v7 = vand.u32 2139095040, %v14309_v52 }
 0x214   :  { %v2358_v48 = vsub.s32 32, %v2357_v9  ;;  %v2360_v24 = vshll.u32 %v20025_v57, %v2357_v9  ;;  %v2363_v5 = vshll.u32 %v20023_v59, %v2357_v9  ;;  %v2366_v10 = vshll.u32 %v20021_v61, %v2357_v9 }
 0x215   :  { %v2217_v25 = vand.u32 2147483647, %v2216_v26  ;;  %v2303_v23 = vshll.u32 %v14321_v47, 30  ;;  %v2369_v17 = vshll.u32 %v20019_v63, %v2357_v9  ;;  %v14335_v41 = vand.u32 3, %v2226_v27 }
 0x216   :  { %v2361_v13 = vshrl.u32 %v20023_v59, %v2358_v48  ;;  %v2364_v56 = vshrl.u32 %v20021_v61, %v2358_v48  ;;  %v2367_v55 = vshrl.u32 %v20019_v63, %v2358_v48  ;;  %v2370_v42 = vshrl.u32 %v20017_v1, %v2358_v48 }
 0x217   :  { %v2220_v53 = vmul.f32 %v2219_v4, %v2217_v25  ;;  %v14331_v44 = vsub.s32 %v2300_v16, %v2303_v23  ;;  %v14337_v50 = vshll.u32 %v2351_v30, 8  ;;  %v2446_v43 = vand.u32 2147483647, %v14309_v52 }
 0x218   :  { %v2450_v18 = vshrl.u32 %v2449_v7, 23  ;;  %v2359_v60 = vshrl.u32 %v20025_v57, %v2358_v48  ;;  %v2362_v34 = vor.u32 %v2361_v13, %v2360_v24  ;;  %v2365_v29 = vor.u32 %v2364_v56, %v2363_v5  ;;  %v93_v56 = vld [vmem:[%s20290_s29 + $0xb8] sm:$0xff] }
 0x219   :  { %v2221_v49 = vxor.u32 2147483648, %v2220_v53  ;;  %v2306_v6 = vsub.s32 0, %v14331_v44  ;;  %v2371_v20 = vor.u32 %v2370_v42, %v2369_v17  ;;  %v2372_v12 = vshll.u32 %v20017_v1, %v2357_v9 }
 0x21a   :  { %v2373_v19 = vshrl.u32 %v20015_v8, %v2358_v48  ;;  %v2368_v28 = vor.u32 %v2367_v55, %v2366_v10  ;;  %vm2375_vm13 = vcmp.lt.s32.totalorder %v2356_v38, 1  ;;  %vm2376_vm14 = vcmp.lt.s32.totalorder %v2356_v38, 2 }
 0x21b   :  { %v2222_v54 = vsel %vm2139_vm10, %v2221_v49, %v2220_v53  ;;  %v11442_v45 = vmin.u32 %v2306_v6, %v14331_v44  ;;  %vm2377_vm15 = vcmp.lt.s32.totalorder %v2356_v38, 3  ;;  %vm2378_vm2 = vcmp.lt.s32.totalorder %v2356_v38, 4 }
 0x21c   :  { %v2225_v37 = vsel %vm14315_vm12, %v14087_v33, %v2222_v54  ;;  %v2374_v39 = vor.u32 %v2373_v19, %v2372_v12  ;;  %v2379_v16 = vsel %vm2375_vm13, %v2359_v60, %v2362_v34  ;;  %v2380_v3 = vsel %vm2378_vm2, %v2368_v28, 2102212464 }
 0x21d   :  { %12086 = vcosq.f32 %v2225_v37  ;;  %v2308_v11 = vclz %v11442_v45  ;;  %v2383_v14 = vsel %vm2375_vm13, %v2362_v34, %v2365_v29  ;;  %v2384_v58 = vsel %vm2378_vm2, %v2371_v20, 920167782 }
 0x21e   :  { %12088 = vsinq.f32 %v2225_v37  ;;  %vm2242_vm3 = vcmp.lt.s32.totalorder %v14111_v2, 0  ;;  %v2381_v35 = vsel %vm2377_vm15, %v2365_v29, %v2380_v3  ;;  %v2385_v21 = vsel %vm2377_vm15, %v2368_v28, %v2384_v58  ;;  %v14400_v3 = vld [vmem:[%s20292_s23] ss:$0 sm:$0xff] }
 0x21f   :  { %v11443_v22 = vadd.s32 4294967294, %v2308_v11  ;;  %v2387_v40 = vsel %vm2375_vm13, %v2365_v29, %v2368_v28  ;;  %v2296_v9 = vadd.s32 %v14273_v51, %v14279_v36  ;;  %v2386_v26 = vsel %vm2376_vm14, %v2383_v14, %v2385_v21 }
 0x220   :  { %v2388_v4 = vsel %vm2378_vm2, %v2374_v39, 1326507024  ;;  %v11449_v27 = vadd.s32 4294967169, %v2450_v18  ;;  %v14361_v48 = vmul.u32.u64.low %v14337_v50, %v2386_v26  ;;  %v14362_v7 = vmul.u32.u64.high %v14337_v50, %v2386_v26, %v14361_v48 }
 0x221   :  { %vm11444_vm5 = vcmp.lt.s32.totalorder %v11443_v22, 0  ;;  %v2389_v30 = vsel %vm2377_vm15, %v2371_v20, %v2388_v4  ;;  %vm2229_vm6 = vweird.f32 %v14087_v33  ;;  %vm2231_vm4 = vcmp.lt.s32.totalorder %v14335_v41, 2 }
 0x222   :  { %v2311_v25 = vsel %vm11444_vm5, 0, %v11443_v22  ;;  %v2382_v23 = vsel %vm2376_vm14, %v2379_v16, %v2381_v35  ;;  %v2390_v51 = vsel %vm2376_vm14, %v2387_v40, %v2389_v30  ;;  %v2456_v13 = vadd.s32 1, %v11449_v27 }
 0x223   :  { %v2312_v36 = vsub.s32 32, %v2311_v25  ;;  %v2313_v24 = vshll.u32 %v14331_v44, %v2311_v25  ;;  %v2316_v5 = vsub.s32 4294967266, %v2311_v25  ;;  %v2326_v10 = vsub.s32 4, %v14321_v47 }
 0x224   :  { %v14375_v17 = vmul.u32.u64.low %v14337_v50, %v2390_v51  ;;  %v14376_v53 = vmul.u32.u64.high %v14337_v50, %v2390_v51, %v14375_v17  ;;  %v2453_v55 = vand.u32 8388607, %v2446_v43  ;;  %v2401_v18 = vadd.s32 1, %v14362_v7 }
 0x225   :  { %v2314_v38 = vshrl.u32 %v2296_v9, %v2312_v36  ;;  %v2317_v42 = vadd.s32 127, %v2316_v5  ;;  %vm2457_vm7 = vcmp.gt.s32.totalorder %v2456_v13, 0  ;;  %vm2232_vm8 = vcmp.eq.s32.totalorder %v14335_v41, 0 }
 0x226   :  { %vm14384_vm9 = vcmp.le.f32.partialorder %v2240_v32, 0.7853982  ;;  %v2398_v49 = vmul.u32 %v14337_v50, %v2382_v23  ;;  %v2458_v6 = vsel %vm2457_vm7, %v2456_v13, 0  ;;  %v132_v60 = vmul.f32 %v13969_v15, %v93_v56 }
 0x227   :  { %v12087_v34 = vpop.eup %12086  ;;  %vm2235_vm10 = vcmp.eq.s32.totalorder %v14335_v41, 2  ;;  %v2315_v29 = vor.u32 %v2314_v38, %v2313_v24  ;;  %v2318_v20 = vshll.u32 %v2317_v42, 23  ;;  %v2460_v12 = vand.u32 31, %v2458_v6 }
 0x228   :  { %v12089_v19 = vpop.eup %12088  ;;  %v2236_v54 = vxor.u32 2147483648, %v12087_v34  ;;  %v2327_v32 = vsel %vm2242_vm3, %v2326_v10, %v14321_v47  ;;  %vm2400_vm11 = vc.u32 %v14376_v53, %v14361_v48  ;;  %v2454_v45 = vor.u32 8388608, %v2453_v55  ;;  %v3595_v47 = vld [vmem:[%s20293_s28 + $0xc0] sm:$0xff] }
 0x229   :  { %v2233_v50 = vxor.u32 2147483648, %v12089_v19  ;;  %v2319_v28 = vor.u32 4788187, %v2318_v20  ;;  %v2322_v37 = vcvt.s32.f32 %v2315_v29  ;;  %v2402_v15 = vsel %vm2400_vm11, %v2401_v18, %v14362_v7  ;;  %11763 = vmatprep.mubr.msk.f32.mxu0 %vm3929_vm1, %v3595_v47 }
 0x22a   :  { %v2237_v39 = vsel %vm2235_vm10, %v2236_v54, %v12089_v19  ;;  %v2403_v11 = vadd.s32 %v2402_v15, %v2398_v49  ;;  %v2461_v16 = vsub.s32 32, %v2460_v12  ;;  %v14403_v14 = vadd.f32 %v14400_v3, %v132_v60 }
 0x22b   :  { %v2234_v58 = vsel %vm2232_vm8, %v12087_v34, %v2233_v50  ;;  %v2320_v22 = vand.u32 2147483647, %v2319_v28  ;;  %v2459_v35 = vshrl.u32 %v2458_v6, 5  ;;  %v2463_v21 = vshll.u32 %v20025_v57, %v2460_v12 }
 0x22c   :  { %v2238_v40 = vsel %vm2231_vm4, %v2234_v58, %v2237_v39  ;;  %v2404_v9 = vadd.s32 536870912, %v2403_v11  ;;  %v2466_v26 = vshll.u32 %v20023_v59, %v2460_v12  ;;  %v2469_v4 = vshll.u32 %v20021_v61, %v2460_v12 }
 0x22d   :  { %v2239_v27 = vsel %vm2229_vm6, nan, %v2238_v40  ;;  %v2323_v30 = vmul.f32 %v2322_v37, %v2320_v22  ;;  %v2464_v7 = vshrl.u32 %v20023_v59, %v2461_v16  ;;  %v2467_v25 = vshrl.u32 %v20021_v61, %v2461_v16  ;;  %v14454_v22 = vld [vmem:[%s19993_s7] ss:$0 sm:$0xff]  ;;  %s12249_s7 = smov 64  }
 0x22e   :  { %11705 = vmatmul.mubr.msk.f32.gmra.mrb[18].mxu1 %vm20282_vm0, %v2239_v27  ;;  %v14421_v23 = vshrl.u32 %v2404_v9, 30  ;;  %v2470_v41 = vshrl.u32 %v20019_v63, %v2461_v16  ;;  %v2472_v51 = vshll.u32 %v20019_v63, %v2460_v12  ;;  %v2473_v36 = vshrl.u32 %v20017_v1, %v2461_v16 }
 0x22f   :  { %v2324_v24 = vxor.u32 2147483648, %v2323_v30  ;;  %v2329_v33 = vsel %vm14384_vm9, 0, %v2327_v32  ;;  %v2475_v5 = vshll.u32 %v20017_v1, %v2460_v12  ;;  %v14429_v13 = vshll.u32 %v2454_v45, 8 }
 0x230   :  { %v2406_v56 = vshll.u32 %v14421_v23, 30  ;;  %v2462_v10 = vshrl.u32 %v20025_v57, %v2461_v16  ;;  %v2476_v17 = vshrl.u32 %v20015_v8, %v2461_v16  ;;  %v2552_v55 = vand.u32 2139095040, %v14403_v14 }
 0x231   :  { %v2325_v38 = vsel %vm2242_vm3, %v2324_v24, %v2323_v30  ;;  %v2465_v42 = vor.u32 %v2464_v7, %v2463_v21  ;;  %v2468_v18 = vor.u32 %v2467_v25, %v2466_v26  ;;  %v2474_v49 = vor.u32 %v2473_v36, %v2472_v51  ;;  %v14469_v7 = vld [vmem:[%s19997_s11] ss:$0 sm:$0xff]  ;;  %s12250_s11 = smov 96  }
 0x232   :  { %v2328_v6 = vsel %vm14384_vm9, %v14111_v2, %v2325_v38  ;;  %v14440_v60 = vsub.s32 %v2403_v11, %v2406_v56  ;;  %v2471_v34 = vor.u32 %v2470_v41, %v2469_v4  ;;  %vm2478_vm12 = vcmp.lt.s32.totalorder %v2459_v35, 1 }
 0x233   :  { %12090 = vcosq.f32 %v2328_v6  ;;  %v2477_v29 = vor.u32 %v2476_v17, %v2475_v5  ;;  %vm2479_vm13 = vcmp.lt.s32.totalorder %v2459_v35, 2  ;;  %vm2481_vm14 = vcmp.lt.s32.totalorder %v2459_v35, 4 }
 0x234   :  { %12092 = vsinq.f32 %v2328_v6  ;;  %v2409_v20 = vsub.s32 0, %v14440_v60  ;;  %vm2480_vm15 = vcmp.lt.s32.totalorder %v2459_v35, 3  ;;  %v2483_v12 = vsel %vm2481_vm14, %v2471_v34, 2102212464 }
 0x235   :  { %v2482_v19 = vsel %vm2478_vm12, %v2462_v10, %v2465_v42  ;;  %v2484_v54 = vsel %vm2480_vm15, %v2468_v18, %v2483_v12  ;;  %v2486_v32 = vsel %vm2478_vm12, %v2465_v42, %v2468_v18  ;;  %v2487_v45 = vsel %vm2481_vm14, %v2474_v49, 920167782 }
 0x236   :  { %v2333_v44 = vand.u32 3, %v2329_v33  ;;  %v11446_v50 = vmin.u32 %v2409_v20, %v14440_v60  ;;  %v2490_v28 = vsel %vm2478_vm12, %v2468_v18, %v2471_v34  ;;  %v2488_v37 = vsel %vm2480_vm15, %v2471_v34, %v2487_v45  ;;  %v3596_v45 = vld [vmem:[%s20293_s28 + $0xc8] sm:$0xff] }
 0x237   :  { %v2491_v15 = vsel %vm2481_vm14, %v2477_v29, 1326507024  ;;  %v2553_v39 = vshrl.u32 %v2552_v55, 23  ;;  %vm2332_vm2 = vweird.f32 %v14111_v2  ;;  %vm2345_vm3 = vcmp.lt.s32.totalorder %v14230_v31, 0  ;;  %11764 = vmatmul.mubr.msk.f32.gmra.mrb[26].mxu0 %vm3929_vm1, %v3596_v45 }
 0x238   :  { %v2411_v11 = vclz %v11446_v50  ;;  %v2485_v16 = vsel %vm2479_vm13, %v2482_v19, %v2484_v54  ;;  %v2489_v47 = vsel %vm2479_vm13, %v2486_v32, %v2488_v37  ;;  %v2492_v58 = vsel %vm2480_vm15, %v2474_v49, %v2491_v15  ;;  %v14512_v50 = vpop.f32.mrb[2].mxu0 }
 0x239   :  { %v2493_v21 = vsel %vm2479_vm13, %v2490_v28, %v2492_v58  ;;  %v14458_v40 = vmul.u32.u64.low %v14429_v13, %v2489_v47  ;;  %v14459_v9 = vmul.u32.u64.high %v14429_v13, %v2489_v47, %v14458_v40  ;;  %v11453_v26 = vadd.s32 4294967169, %v2553_v39  ;;  %v14514_v28 = vpop.f32.mrb[0].mxu1  ;;  %v14523_v39 = vpop.f32.mrb[3].mxu0  ;;  %v94_v58 = vld [vmem:[%s20290_s29 + $0xc0] sm:$0xff] }
 0x23a   :  { %vm2335_vm5 = vcmp.eq.s32.totalorder %v2333_v44, 0  ;;  %v11447_v4 = vadd.s32 4294967294, %v2411_v11  ;;  %v14463_v27 = vmul.u32.u64.low %v14429_v13, %v2493_v21  ;;  %v14464_v30 = vmul.u32.u64.high %v14429_v13, %v2493_v21, %v14463_v27  ;;  %v95_v21 = vld [vmem:[%s20290_s29 + $0xc8] sm:$0xff] }
 0x23b   :  { %vm2338_vm6 = vcmp.eq.s32.totalorder %v2333_v44, 2  ;;  %v20014_v35 = vand.u32 2147483647, %v14403_v14  ;;  %v2559_v25 = vadd.s32 1, %v11453_v26  ;;  %v14474_v41 = vadd.f32 %v14298_v62, %v14454_v22  ;;  %v14536_v26 = vpop.f32.mrb[4].mxu0 }
 0x23c   :  { %v2399_v51 = vadd.s32 %v14361_v48, %v14376_v53  ;;  %vm11448_vm4 = vcmp.lt.s32.totalorder %v11447_v4, 0  ;;  %v2429_v36 = vsub.s32 4, %v14421_v23  ;;  %v2501_v24 = vmul.u32 %v14429_v13, %v2485_v16 }
 0x23d   :  { %v12091_v33 = vpop.eup %12090  ;;  %v2414_v5 = vsel %vm11448_vm4, 0, %v11447_v4  ;;  %v2504_v56 = vadd.s32 1, %v14459_v9  ;;  %vm2560_vm7 = vcmp.gt.s32.totalorder %v2559_v25, 0  ;;  %v14483_v10 = vmul.f32 %v14469_v7, %v14474_v41 }
 0x23e   :  { %v12093_v17 = vpop.eup %12092  ;;  %v2339_v62 = vxor.u32 2147483648, %v12091_v33  ;;  %v2415_v55 = vsub.s32 32, %v2414_v5  ;;  %v2416_v38 = vshll.u32 %v14440_v60, %v2414_v5  ;;  %v2419_v48 = vsub.s32 4294967266, %v2414_v5 }
 0x23f   :  { %20336 = vst [vmem:[#allocation6_spill] sm:$0xff] %v14483_v10  ;;  %vm2334_vm8 = vcmp.lt.s32.totalorder %v2333_v44, 2  ;;  %v2336_v53 = vxor.u32 2147483648, %v12093_v17  ;;  %vm14488_vm9 = vcmp.le.f32.partialorder %v2343_v46, 0.7853982  ;;  %vm2503_vm10 = vc.u32 %v14464_v30, %v14458_v40  ;;  %4309 = vrot.lane.b32.xlu1 %v14483_v10, %s12249_s7  ;;  %4303 = vrot.lane.b32.xlu0 %v14483_v10, %s12250_s11 }
 0x240   :  { %v2561_v42 = vsel %vm2560_vm7, %v2559_v25, 0  ;;  %v2340_v18 = vsel %vm2338_vm6, %v2339_v62, %v12093_v17  ;;  %v2417_v49 = vshrl.u32 %v2399_v51, %v2415_v55  ;;  %v2420_v6 = vadd.s32 127, %v2419_v48 }
 0x241   :  { %v2505_v46 = vsel %vm2503_vm10, %v2504_v56, %v14459_v9  ;;  %v2337_v60 = vsel %vm2335_vm5, %v12091_v33, %v2336_v53  ;;  %v14504_v34 = vsel %vm2345_vm3, %v2429_v36, %v14421_v23  ;;  %v2563_v20 = vand.u32 31, %v2561_v42  ;;  %v14534_v9 = vpop.f32.mrb[1].mxu1  ;;  %v14558_v53 = vld [vmem:[%s20291_s30] ss:$0 sm:$0xff] }
 0x242   :  { %v2506_v29 = vadd.s32 %v2505_v46, %v2501_v24  ;;  %v2341_v12 = vsel %vm2334_vm8, %v2337_v60, %v2340_v18  ;;  %v2418_v19 = vor.u32 %v2417_v49, %v2416_v38  ;;  %v2421_v54 = vshll.u32 %v2420_v6, 23  ;;  %v14543_v36 = vpop.f32.mrb[2].mxu1  ;;  %v14545_v24 = vpop.f32.mrb[5].mxu0  ;;  %20339 = vst [vmem:[#allocation7_spill] sm:$0xff] %v14558_v53 }
 0x243   :  { %v2556_v32 = vand.u32 8388607, %v20014_v35  ;;  %v2342_v23 = vsel %vm2332_vm2, nan, %v2341_v12  ;;  %v14518_v15 = vshrl.u32 %v2561_v42, 5  ;;  %v2564_v44 = vsub.s32 32, %v2563_v20  ;;  %4315 = vrot.lane.b32.xlu1 %v14483_v10, %s12251_s27  ;;  %v14550_v62 = vpop.f32.mrb[3].mxu1 }
 0x244   :  { %v2507_v37 = vadd.s32 536870912, %v2506_v29  ;;  %11707 = vmatprep.mubr.msk.f32.mxu1 %vm20282_vm0, %v2342_v23  ;;  %v2422_v11 = vor.u32 4788187, %v2421_v54  ;;  %v2425_v16 = vcvt.s32.f32 %v2418_v19  ;;  %v2566_v47 = vshll.u32 %v20025_v57, %v2563_v20  ;;  %v14552_v55 = vpop.f32.mrb[6].mxu0  ;;  %v14564_v49 = vpop.f32.mrb[4].mxu1 }
 0x245   :  { %v2569_v2 = vshll.u32 %v20023_v59, %v2563_v20  ;;  %v2567_v27 = vshrl.u32 %v20023_v59, %v2564_v44  ;;  %v2570_v25 = vshrl.u32 %v20021_v61, %v2564_v44  ;;  %v2572_v51 = vshll.u32 %v20021_v61, %v2563_v20  ;;  %v14566_v6 = vpop.f32.mrb[7].mxu0  ;;  %v14573_v54 = vpop.f32.mrb[5].mxu1 }
 0x246   :  { %v14538_v4 = vshrl.u32 %v2507_v37, 30  ;;  %v2423_v33 = vand.u32 2147483647, %v2422_v11  ;;  %v2573_v5 = vshrl.u32 %v20019_v63, %v2564_v44  ;;  %v2575_v56 = vshll.u32 %v20019_v63, %v2563_v20 }
 0x247   :  { %v2576_v17 = vshrl.u32 %v20017_v1, %v2564_v44  ;;  %v2557_v48 = vor.u32 8388608, %v2556_v32  ;;  %v133_v42 = vmul.f32 %v14558_v53, %v94_v58  ;;  %v14562_v18 = vmul.f32 %v14558_v53, %v95_v21  ;;  %v14575_v32 = vpop.f32.mrb[8].mxu0  ;;  %v14580_v58 = vpop.f32.mrb[6].mxu1 }
 0x248   :  { %v2509_v38 = vshll.u32 %v14538_v4, 30  ;;  %v2426_v46 = vmul.f32 %v2425_v16, %v2423_v33  ;;  %v2432_v60 = vsel %vm14488_vm9, 0, %v14504_v34  ;;  %v2565_v12 = vshrl.u32 %v20025_v57, %v2564_v44  ;;  %v14582_v16 = vpop.f32.mrb[9].mxu0 }
 0x249   :  { %v2578_v19 = vshll.u32 %v20017_v1, %v2563_v20  ;;  %v2568_v23 = vor.u32 %v2567_v27, %v2566_v47  ;;  %v2571_v37 = vor.u32 %v2570_v25, %v2569_v2  ;;  %v2579_v11 = vshrl.u32 %v20015_v8, %v2564_v44  ;;  %v14585_v20 = vpop.f32.mrb[7].mxu1  ;;  %v14587_v35 = vpop.f32.mrb[10].mxu0  ;;  %v14634_v8 = vld [vmem:[%s19998_s12] ss:$0 sm:$0xff] }
 0x24a   :  { %v14577_v45 = vsub.s32 %v2506_v29, %v2509_v38  ;;  %v2427_v21 = vxor.u32 2147483648, %v2426_v46  ;;  %v2574_v34 = vor.u32 %v2573_v5, %v2572_v51  ;;  %v2577_v33 = vor.u32 %v2576_v17, %v2575_v56  ;;  %v14594_v47 = vpop.f32.mrb[8].mxu1  ;;  %v14596_v2 = vpop.f32.mrb[11].mxu0 }
 0x24b   :  { %vm2581_vm11 = vcmp.lt.s32.totalorder %v14518_v15, 1  ;;  %vm2582_vm12 = vcmp.lt.s32.totalorder %v14518_v15, 2  ;;  %vm2584_vm13 = vcmp.lt.s32.totalorder %v14518_v15, 4  ;;  %v14592_v44 = vshll.u32 %v2557_v48, 8  ;;  %v14603_v5 = vpop.f32.mrb[9].mxu1  ;;  %v14605_v56 = vpop.f32.mrb[12].mxu0 }
 0x24c   :  { %v2512_v29 = vsub.s32 0, %v14577_v45  ;;  %v2428_v27 = vsel %vm2345_vm3, %v2427_v21, %v2426_v46  ;;  %v2580_v25 = vor.u32 %v2579_v11, %v2578_v19  ;;  %vm2583_vm14 = vcmp.lt.s32.totalorder %v14518_v15, 3  ;;  %v14615_v19 = vpop.f32.mrb[10].mxu1  ;;  %v14617_v11 = vpop.f32.mrb[13].mxu0 }
 0x24d   :  { %v2586_v51 = vsel %vm2584_vm13, %v2574_v34, 2102212464  ;;  %v2431_v17 = vsel %vm14488_vm9, %v14230_v31, %v2428_v27  ;;  %v2585_v48 = vsel %vm2581_vm11, %v2565_v12, %v2568_v23  ;;  %v2589_v46 = vsel %vm2581_vm11, %v2568_v23, %v2571_v37  ;;  %v14627_v27 = vpop.f32.mrb[11].mxu1 }
 0x24e   :  { %v11450_v38 = vmin.u32 %v2512_v29, %v14577_v45  ;;  %12094 = vcosq.f32 %v2431_v17  ;;  %v2587_v21 = vsel %vm2583_vm14, %v2571_v37, %v2586_v51  ;;  %v2590_v13 = vsel %vm2584_vm13, %v2577_v33, 920167782 }
 0x24f   :  { %v14625_v29 = vadd.f32 %v14454_v22, %v14311_v0  ;;  %12096 = vsinq.f32 %v2431_v17  ;;  %v2591_v23 = vsel %vm2583_vm14, %v2574_v34, %v2590_v13  ;;  %v14637_v51 = vadd.f32 %v14400_v3, %v133_v42 }
 0x250   :  { %v2514_v12 = vclz %v11450_v38  ;;  %v2588_v1 = vsel %vm2582_vm12, %v2585_v48, %v2587_v21  ;;  %v2592_v0 = vsel %vm2582_vm12, %v2589_v46, %v2591_v23  ;;  %v2593_v22 = vsel %vm2581_vm11, %v2571_v37, %v2574_v34 }
 0x251   :  { %v2594_v17 = vsel %vm2584_vm13, %v2580_v25, 1326507024  ;;  %vm14649_vm15 = vcmp.le.f32.partialorder %v2446_v43, 0.7853982  ;;  %v14656_v48 = vmul.u32.u64.low %v14592_v44, %v2592_v0  ;;  %v14657_v21 = vmul.u32.u64.high %v14592_v44, %v2592_v0, %v14656_v48  ;;  %v14668_v25 = vpop.f32.mrb[14].mxu0 }
 0x252   :  { %v11451_v42 = vadd.s32 4294967294, %v2514_v12  ;;  %v2595_v13 = vsel %vm2583_vm14, %v2577_v33, %v2594_v17  ;;  %v2436_v46 = vand.u32 3, %v2432_v60  ;;  %v2502_v37 = vadd.s32 %v14458_v40, %v14464_v30  ;;  %20343 = vst [vmem:[#allocation9_spill] sm:$0xff] %v14668_v25  ;;  %v14676_v23 = vpop.f32.mrb[15].mxu0 }
 0x253   :  { %v2596_v34 = vsel %vm2582_vm12, %v2593_v22, %v2595_v13  ;;  %v14666_v43 = vmul.f32 %v14634_v8, %v14474_v41  ;;  %vm2435_vm2 = vweird.f32 %v14230_v31  ;;  %v2532_v33 = vsub.s32 4, %v14538_v4  ;;  %20344 = vst [vmem:[#allocation10_spill] sm:$0xff] %v14676_v23 }
 0x254   :  { %vm11452_vm3 = vcmp.lt.s32.totalorder %v11451_v42, 0  ;;  %v14673_v12 = vmul.u32.u64.low %v14592_v44, %v2596_v34  ;;  %v14674_v60 = vmul.u32.u64.high %v14592_v44, %v2596_v34, %v14673_v12  ;;  %v2604_v30 = vmul.u32 %v14592_v44, %v2588_v1 }
 0x255   :  { %20342 = vst [vmem:[#allocation8_spill] sm:$0xff] %v14666_v43  ;;  %v2517_v40 = vsel %vm11452_vm3, 0, %v11451_v42  ;;  %v14681_v41 = vmul.f32 %v14469_v7, %v14625_v29  ;;  %4523 = vrot.lane.b32.xlu1 %v14666_v43, %s12249_s7  ;;  %4517 = vrot.lane.b32.xlu0 %v14666_v43, %s12250_s11  ;;  %v2655_v15 = vand.u32 2139095040, %v14637_v51  ;;  %v2607_v42 = vadd.s32 1, %v14657_v21 }
 0x256   :  { %v2518_v0 = vsub.s32 32, %v2517_v40  ;;  %v2519_v22 = vshll.u32 %v14577_v45, %v2517_v40  ;;  %v2522_v17 = vsub.s32 4294967266, %v2517_v40  ;;  %vm2437_vm5 = vcmp.lt.s32.totalorder %v2436_v46, 2 }
 0x257   :  { %20345 = vst [vmem:[#allocation11_spill] sm:$0xff] %v14681_v41  ;;  %vm2438_vm6 = vcmp.eq.s32.totalorder %v2436_v46, 0  ;;  %vm2448_vm4 = vcmp.lt.s32.totalorder %v14309_v52, 0  ;;  %v2656_v1 = vshrl.u32 %v2655_v15, 23  ;;  %vm2606_vm7 = vc.u32 %v14674_v60, %v14656_v48 }
 0x258   :  { %v2520_v7 = vshrl.u32 %v2502_v37, %v2518_v0  ;;  %v2523_v44 = vadd.s32 127, %v2522_v17  ;;  %v2533_v13 = vsel %vm2448_vm4, %v2532_v33, %v14538_v4  ;;  %v12095_v34 = vpop.eup %12094  ;;  %vm2441_vm8 = vcmp.eq.s32.totalorder %v2436_v46, 2  ;;  %v14702_v17 = vpop.f32.mrb[16].mxu0 }
 0x259   :  { %v2608_v45 = vsel %vm2606_vm7, %v2607_v42, %v14657_v21  ;;  %4529 = vrot.lane.b32.xlu1 %v14666_v43, %s12251_s27  ;;  %4301 = vrot.lane.b32.xlu0 %v14681_v41, %s12250_s11  ;;  %v11457_v12 = vadd.s32 4294967169, %v2656_v1  ;;  %v12097_v40 = vpop.eup %12096  ;;  %v2442_v15 = vxor.u32 2147483648, %v12095_v34  ;;  %20346 = vst [vmem:[#allocation12_spill] sm:$0xff] %v14702_v17  ;;  %v2535_v21 = vsel %vm14649_vm15, 0, %v2533_v13  ;;  %v14710_v59 = vpop.f32.mrb[17].mxu0 }
 0x25a   :  { %v2521_v0 = vor.u32 %v2520_v7, %v2519_v22  ;;  %v2524_v4 = vshll.u32 %v2523_v44, 23  ;;  %v2609_v33 = vadd.s32 %v2608_v45, %v2604_v30  ;;  %v2439_v63 = vxor.u32 2147483648, %v12097_v40  ;;  %20347 = vst [vmem:[#allocation13_spill] sm:$0xff] %v14710_v59 }
 0x25b   :  { %v2662_v42 = vadd.s32 1, %v11457_v12  ;;  %v14708_v61 = vadd.f32 %v14400_v3, %v14562_v18  ;;  %v2443_v1 = vsel %vm2441_vm8, %v2442_v15, %v12097_v40  ;;  %v14716_v7 = vmul.f32 %v14634_v8, %v14625_v29 }
 0x25c   :  { %v2525_v57 = vor.u32 4788187, %v2524_v4  ;;  %v2528_v37 = vcvt.s32.f32 %v2521_v0  ;;  %v2610_v22 = vadd.s32 536870912, %v2609_v33  ;;  %v2440_v30 = vsel %vm2438_vm6, %v12095_v34, %v2439_v63 }
 0x25d   :  { %20348 = vst [vmem:[#allocation14_spill] sm:$0xff] %v14716_v7  ;;  %4307 = vrot.lane.b32.xlu1 %v14681_v41, %s12249_s7  ;;  %4313 = vrot.lane.b32.xlu0 %v14681_v41, %s12251_s27  ;;  %v20349_v3 = vand.u32 2147483647, %v14637_v51  ;;  %vm2663_vm9 = vcmp.gt.s32.totalorder %v2662_v42, 0  ;;  %v2444_v44 = vsel %vm2437_vm5, %v2440_v30, %v2443_v1  ;;  %v14730_v12 = vand.u32 3, %v2535_v21 }
 0x25e   :  { %v2526_v13 = vand.u32 2147483647, %v2525_v57  ;;  %v14725_v45 = vshrl.u32 %v2610_v22, 30  ;;  %v2664_v63 = vsel %vm2663_vm9, %v2662_v42, 0  ;;  %v2445_v8 = vsel %vm2435_vm2, nan, %v2444_v44 }
 0x25f   :  { %v2659_v18 = vand.u32 8388607, %v20349_v3  ;;  %v2666_v29 = vand.u32 31, %v2664_v63  ;;  %11708 = vmatmul.mubr.msk.f32.gmra.mrb[20].mxu1 %vm20282_vm0, %v2445_v8  ;;  %v14734_v40 = vadd.s32 %v14656_v48, %v14674_v60  ;;  %v20350_v21 = vmov 683565275  }
 0x260   :  { %v2529_v34 = vmul.f32 %v2528_v37, %v2526_v13  ;;  %v2612_v46 = vshll.u32 %v14725_v45, 30  ;;  %v2758_v37 = vand.u32 2139095040, %v14708_v61  ;;  %v20351_v60 = vmov 2475754826  }
 0x261   :  { %4515 = vrot.lane.b32.xlu1 %v14716_v7, %s12250_s11  ;;  %4527 = vrot.lane.b32.xlu0 %v14716_v7, %s12251_s27  ;;  %v2660_v57 = vor.u32 8388608, %v2659_v18  ;;  %v2667_v31 = vsub.s32 32, %v2666_v29  ;;  %v2669_v48 = vshll.u32 %v20350_v21, %v2666_v29  ;;  %v2672_v42 = vshll.u32 %v20351_v60, %v2666_v29 }
 0x262   :  { %v2530_v0 = vxor.u32 2147483648, %v2529_v34  ;;  %v14743_v4 = vsub.s32 %v2609_v33, %v2612_v46  ;;  %v20352_v22 = vmov 2131351028   ;;  %v20353_v44 = vmov 2102212464  }
 0x263   :  { %v2670_v1 = vshrl.u32 %v20351_v60, %v2667_v31  ;;  %v2673_v30 = vshrl.u32 %v20352_v22, %v2667_v31  ;;  %v2675_v3 = vshll.u32 %v20352_v22, %v2666_v29  ;;  %v2678_v18 = vshll.u32 %v20353_v44, %v2666_v29 }
 0x264   :  { %v2531_v13 = vsel %vm2448_vm4, %v2530_v0, %v2529_v34  ;;  %v2615_v8 = vsub.s32 0, %v14743_v4  ;;  %v2665_v15 = vshrl.u32 %v2664_v63, 5  ;;  %v2676_v33 = vshrl.u32 %v20353_v44, %v2667_v31 }
 0x265   :  { %v2534_v46 = vsel %vm14649_vm15, %v14309_v52, %v2531_v13  ;;  %4521 = vrot.lane.b32.xlu1 %v14716_v7, %s12249_s7  ;;  %v2668_v43 = vshrl.u32 %v20350_v21, %v2667_v31  ;;  %v20354_v10 = vmov 920167782   ;;  %v14762_v59 = vshll.u32 %v2660_v57, 8 }
 0x266   :  { %v2679_v41 = vshrl.u32 %v20354_v10, %v2667_v31  ;;  %12098 = vcosq.f32 %v2534_v46  ;;  %v11454_v34 = vmin.u32 %v2615_v8, %v14743_v4  ;;  %v2671_v0 = vor.u32 %v2670_v1, %v2669_v48 }
 0x267   :  { %v2674_v63 = vor.u32 %v2673_v30, %v2672_v42  ;;  %12100 = vsinq.f32 %v2534_v46  ;;  %v2677_v17 = vor.u32 %v2676_v33, %v2675_v3  ;;  %v2759_v23 = vshrl.u32 %v2758_v37, 23 }
 0x268   :  { %v2680_v53 = vor.u32 %v2679_v41, %v2678_v18  ;;  %vm2544_vm10 = vcmp.eq.s32.totalorder %v14730_v12, 2  ;;  %v2617_v38 = vclz %v11454_v34  ;;  %v2681_v13 = vshll.u32 %v20354_v10, %v2666_v29 }
 0x269   :  { %v20355_v7 = vmov 1326507024   ;;  %vm2684_vm11 = vcmp.lt.s32.totalorder %v2665_v15, 1  ;;  %vm2541_vm12 = vcmp.eq.s32.totalorder %v14730_v12, 0  ;;  %vm2685_vm13 = vcmp.lt.s32.totalorder %v2665_v15, 2  ;;  %v14770_v48 = vpop.f32.mrb[12].mxu1 }
 0x26a   :  { %v2682_v25 = vshrl.u32 %v20355_v7, %v2667_v31  ;;  %vm2686_vm14 = vcmp.lt.s32.totalorder %v2665_v15, 3  ;;  %vm2687_vm15 = vcmp.lt.s32.totalorder %v2665_v15, 4  ;;  %v2688_v57 = vsel %vm2684_vm11, %v2668_v43, %v2671_v0  ;;  %v14776_v42 = vpop.f32.mrb[13].mxu1 }
 0x26b   :  { %vm2540_vm2 = vcmp.lt.s32.totalorder %v14730_v12, 2  ;;  %vm2551_vm3 = vcmp.lt.s32.totalorder %v14403_v14, 0  ;;  %v11455_v41 = vadd.s32 4294967294, %v2617_v38  ;;  %v2689_v29 = vsel %vm2687_vm15, %v2677_v17, 2102212464  ;;  %20356 = vst [vmem:[#allocation15_spill] sm:$0xff] %v14776_v42 }
 0x26c   :  { %v2683_v37 = vor.u32 %v2682_v25, %v2681_v13  ;;  %v2692_v31 = vsel %vm2684_vm11, %v2671_v0, %v2674_v63  ;;  %vm2538_vm5 = vweird.f32 %v14309_v52  ;;  %v2635_v1 = vsub.s32 4, %v14725_v45 }
 0x26d   :  { %v2690_v43 = vsel %vm2686_vm14, %v2674_v63, %v2689_v29  ;;  %v2693_v30 = vsel %vm2687_vm15, %v2680_v53, 920167782  ;;  %v2696_v3 = vsel %vm2684_vm11, %v2674_v63, %v2677_v17  ;;  %vm11456_vm6 = vcmp.lt.s32.totalorder %v11455_v41, 0 }
 0x26e   :  { %v2694_v18 = vsel %vm2686_vm14, %v2677_v17, %v2693_v30  ;;  %v2697_v25 = vsel %vm2687_vm15, %v2683_v37, 1326507024  ;;  %v11461_v8 = vadd.s32 4294967169, %v2759_v23  ;;  %v20357_v33 = vand.u32 2147483647, %v14403_v14 }
 0x26f   :  { %v2620_v34 = vsel %vm11456_vm6, 0, %v11455_v41  ;;  %v2691_v0 = vsel %vm2685_vm13, %v2688_v57, %v2690_v43  ;;  %v2695_v38 = vsel %vm2685_vm13, %v2692_v31, %v2694_v18  ;;  %v2698_v13 = vsel %vm2686_vm14, %v2680_v53, %v2697_v25 }
 0x270   :  { %vm14787_vm4 = vcmp.le.f32.partialorder %v20357_v33, 0.7853982  ;;  %v2621_v63 = vsub.s32 32, %v2620_v34  ;;  %v2622_v29 = vshll.u32 %v14743_v4, %v2620_v34  ;;  %v2625_v17 = vsub.s32 4294967266, %v2620_v34  ;;  %v12099_v57 = vpop.eup %12098 }
 0x271   :  { %v2699_v37 = vsel %vm2685_vm13, %v2696_v3, %v2698_v13  ;;  %v14801_v33 = vmul.u32.u64.low %v14762_v59, %v2695_v38  ;;  %v14802_v42 = vmul.u32.u64.high %v14762_v59, %v2695_v38, %v14801_v33  ;;  %v20360_v53 = vand.u32 2147483647, %v14708_v61  ;;  %v12101_v18 = vpop.eup %12100 }
 0x272   :  { %v14797_v23 = vmul.u32.u64.low %v14762_v59, %v2699_v37  ;;  %v14798_v30 = vmul.u32.u64.high %v14762_v59, %v2699_v37, %v14797_v23  ;;  %v2623_v41 = vshrl.u32 %v14734_v40, %v2621_v63  ;;  %v2626_v31 = vadd.s32 127, %v2625_v17 }
 0x273   :  { %v2762_v43 = vand.u32 8388607, %v20360_v53  ;;  %v2765_v4 = vadd.s32 1, %v11461_v8  ;;  %v2545_v15 = vxor.u32 2147483648, %v12099_v57  ;;  %v2707_v3 = vmul.u32 %v14762_v59, %v2691_v0 }
 0x274   :  { %v4098_v25 = vadd.f32 %v14512_v50, %v14514_v28  ;;  %v14813_v34 = vadd.f32 %v14523_v39, %v14534_v9  ;;  %v2542_v38 = vxor.u32 2147483648, %v12101_v18  ;;  %v2624_v13 = vor.u32 %v2623_v41, %v2622_v29 }
 0x275   :  { %v2627_v37 = vshll.u32 %v2626_v31, 23  ;;  %vm2766_vm7 = vcmp.gt.s32.totalorder %v2765_v4, 0  ;;  %v2546_v40 = vsel %vm2544_vm10, %v2545_v15, %v12101_v18  ;;  %v2636_v8 = vsel %vm2551_vm3, %v2635_v1, %v14725_v45  ;;  %v14832_v31 = vpop.f32.mrb[18].mxu0 }
 0x276   :  { %vm2709_vm8 = vc.u32 %v14798_v30, %v14801_v33  ;;  %v2710_v59 = vadd.s32 1, %v14802_v42  ;;  %v2543_v50 = vsel %vm2541_vm12, %v12099_v57, %v2542_v38  ;;  %v2631_v39 = vcvt.s32.f32 %v2624_v13  ;;  %v3597_v57 = vld [vmem:[%s20293_s28 + $0xd0] sm:$0xff] }
 0x277   :  { %v2628_v28 = vor.u32 4788187, %v2627_v37  ;;  %v2767_v9 = vsel %vm2766_vm7, %v2765_v4, 0  ;;  %v2547_v0 = vsel %vm2540_vm2, %v2543_v50, %v2546_v40  ;;  %v2763_v29 = vor.u32 8388608, %v2762_v43  ;;  %11766 = vmatprep.mubr.msk.f32.mxu0 %vm3929_vm1, %v3597_v57 }
 0x278   :  { %v2711_v63 = vsel %vm2709_vm8, %v2710_v59, %v14802_v42  ;;  %v2769_v17 = vand.u32 31, %v2767_v9  ;;  %v2548_v45 = vsel %vm2538_vm5, nan, %v2547_v0  ;;  %v2638_v23 = vsel %vm14787_vm4, 0, %v2636_v8 }
 0x279   :  { %v2629_v1 = vand.u32 2147483647, %v2628_v28  ;;  %v2712_v41 = vadd.s32 %v2711_v63, %v2707_v3  ;;  %11710 = vmatprep.mubr.msk.f32.mxu1 %vm20282_vm0, %v2548_v45  ;;  %v2768_v12 = vshrl.u32 %v2767_v9, 5  ;;  %v14851_v28 = vand.u32 3, %v2638_v23 }
 0x27a   :  { %v2770_v42 = vsub.s32 32, %v2769_v17  ;;  %v2772_v53 = vshll.u32 %v20350_v21, %v2769_v17  ;;  %v2775_v52 = vshll.u32 %v20351_v60, %v2769_v17  ;;  %v2778_v18 = vshll.u32 %v20352_v22, %v2769_v17 }
 0x27b   :  { %v2632_v43 = vmul.f32 %v2631_v39, %v2629_v1  ;;  %v2713_v4 = vadd.s32 536870912, %v2712_v41  ;;  %v2781_v15 = vshll.u32 %v20353_v44, %v2769_v17  ;;  %v2784_v37 = vshll.u32 %v20354_v10, %v2769_v17  ;;  %v14862_v1 = vld [vmem:[%s19996_s10] ss:$0 sm:$0xff] }
 0x27c   :  { %v2773_v3 = vshrl.u32 %v20351_v60, %v2770_v42  ;;  %v2776_v38 = vshrl.u32 %v20352_v22, %v2770_v42  ;;  %v2779_v13 = vshrl.u32 %v20353_v44, %v2770_v42  ;;  %v2782_v59 = vshrl.u32 %v20354_v10, %v2770_v42 }
 0x27d   :  { %v2633_v40 = vxor.u32 2147483648, %v2632_v43  ;;  %v14847_v8 = vshrl.u32 %v2713_v4, 30  ;;  %v2785_v50 = vshrl.u32 %v20355_v7, %v2770_v42  ;;  %v2771_v39 = vshrl.u32 %v20350_v21, %v2770_v42 }
 0x27e   :  { %v14854_v9 = vshll.u32 %v2763_v29, 8  ;;  %v2774_v45 = vor.u32 %v2773_v3, %v2772_v53  ;;  %v2777_v17 = vor.u32 %v2776_v38, %v2775_v52  ;;  %v2780_v57 = vor.u32 %v2779_v13, %v2778_v18  ;;  %v14875_v18 = vld [vmem:[%s19999_s13] ss:$0 sm:$0xff] }
 0x27f   :  { %v2634_v0 = vsel %vm2551_vm3, %v2633_v40, %v2632_v43  ;;  %v2715_v63 = vshll.u32 %v14847_v8, 30  ;;  %v2783_v42 = vor.u32 %v2782_v59, %v2781_v15  ;;  %v2786_v29 = vor.u32 %v2785_v50, %v2784_v37 }
 0x280   :  { %v2637_v23 = vsel %vm14787_vm4, %v14403_v14, %v2634_v0  ;;  %vm2787_vm9 = vcmp.lt.s32.totalorder %v2768_v12, 1  ;;  %vm2790_vm10 = vcmp.lt.s32.totalorder %v2768_v12, 4  ;;  %vm2789_vm11 = vcmp.lt.s32.totalorder %v2768_v12, 3 }
 0x281   :  { %12102 = vcosq.f32 %v2637_v23  ;;  %v14867_v4 = vsub.s32 %v2712_v41, %v2715_v63  ;;  %v2792_v53 = vsel %vm2790_vm10, %v2780_v57, 2102212464  ;;  %v4259_v52 = vadd.f32 %v14862_v1, %v4098_v25 }
 0x282   :  { %12104 = vsinq.f32 %v2637_v23  ;;  %vm2788_vm12 = vcmp.lt.s32.totalorder %v2768_v12, 2  ;;  %v2791_v3 = vsel %vm2787_vm9, %v2771_v39, %v2774_v45  ;;  %v2793_v46 = vsel %vm2789_vm11, %v2777_v17, %v2792_v53 }
 0x283   :  { %v2718_v43 = vsub.s32 0, %v14867_v4  ;;  %v2795_v41 = vsel %vm2787_vm9, %v2774_v45, %v2777_v17  ;;  %v2796_v15 = vsel %vm2790_vm10, %v2783_v42, 920167782  ;;  %v2799_v38 = vsel %vm2787_vm9, %v2777_v17, %v2780_v57 }
 0x284   :  { %v2800_v13 = vsel %vm2790_vm10, %v2786_v29, 1326507024  ;;  %vm2643_vm13 = vcmp.lt.s32.totalorder %v14851_v28, 2  ;;  %vm2644_vm14 = vcmp.eq.s32.totalorder %v14851_v28, 0  ;;  %vm2647_vm15 = vcmp.eq.s32.totalorder %v14851_v28, 2 }
 0x285   :  { %v2708_v25 = vadd.s32 %v14801_v33, %v14798_v30  ;;  %v11458_v37 = vmin.u32 %v2718_v43, %v14867_v4  ;;  %v2794_v40 = vsel %vm2788_vm12, %v2791_v3, %v2793_v46  ;;  %v2797_v59 = vsel %vm2789_vm11, %v2780_v57, %v2796_v15 }
 0x286   :  { %v2801_v50 = vsel %vm2789_vm11, %v2783_v42, %v2800_v13  ;;  %v14887_v39 = vmul.f32 %v14875_v18, %v4259_v52  ;;  %v2798_v63 = vsel %vm2788_vm12, %v2795_v41, %v2797_v59  ;;  %v4258_v17 = vadd.f32 %v14862_v1, %v14813_v34 }
 0x287   :  { %v2720_v0 = vclz %v11458_v37  ;;  %v2802_v45 = vsel %vm2788_vm12, %v2799_v38, %v2801_v50  ;;  %v14898_v23 = vmul.u32.u64.low %v14854_v9, %v2798_v63  ;;  %v14899_v57 = vmul.u32.u64.high %v14854_v9, %v2798_v63, %v14898_v23 }
 0x288   :  { %20361 = vst [vmem:[#allocation16_spill] sm:$0xff] %v14887_v39  ;;  %v14894_v30 = vmul.u32.u64.low %v14854_v9, %v2802_v45  ;;  %v14895_v33 = vmul.u32.u64.high %v14854_v9, %v2802_v45, %v14894_v30  ;;  %4886 = vrot.lane.b32.xlu1 %v14887_v39, %s12249_s7  ;;  %4790 = vrot.lane.b32.xlu0 %v14887_v39, %s12250_s11  ;;  %v14907_v42 = vmul.f32 %v14875_v18, %v4258_v17  ;;  %v4108_v34 = vadd.f32 %v14536_v26, %v14543_v36 }
 0x289   :  { %v11459_v12 = vadd.s32 4294967294, %v2720_v0  ;;  %v4103_v29 = vadd.f32 %v14545_v24, %v14550_v62  ;;  %v14915_v53 = vadd.f32 %v14552_v55, %v14564_v49  ;;  %v4113_v52 = vadd.f32 %v14566_v6, %v14573_v54  ;;  %v14933_v62 = vpop.f32.mrb[19].mxu0  ;;  %v3598_v55 = vld [vmem:[%s20293_s28 + $0xd8] sm:$0xff] }
 0x28a   :  { %20362 = vst [vmem:[#allocation17_spill] sm:$0xff] %v14907_v42  ;;  %v14921_v43 = vadd.f32 %v14575_v32, %v14580_v58  ;;  %v14925_v3 = vadd.f32 %v14582_v16, %v14585_v20  ;;  %v2810_v26 = vmul.u32 %v14854_v9, %v2794_v40  ;;  %v4261_v36 = vadd.f32 %v14862_v1, %v4108_v34 }
 0x28b   :  { %v12103_v46 = vpop.eup %12102  ;;  %vm11460_vm2 = vcmp.lt.s32.totalorder %v11459_v12, 0  ;;  %v14931_v24 = vadd.f32 %v14587_v35, %v14594_v47  ;;  %vm2812_vm3 = vc.u32 %v14895_v33, %v14898_v23  ;;  %v4260_v35 = vadd.f32 %v14862_v1, %v4103_v29  ;;  %11767 = vmatmul.mubr.msk.f32.gmra.mrb[28].mxu0 %vm3929_vm1, %v3598_v55 }
 0x28c   :  { %v12105_v49 = vpop.eup %12104  ;;  %v2648_v6 = vxor.u32 2147483648, %v12103_v46  ;;  %v2723_v54 = vsel %vm11460_vm2, 0, %v11459_v12  ;;  %4982 = vrot.lane.b32.xlu1 %v14887_v39, %s12251_s27  ;;  %4884 = vrot.lane.b32.xlu0 %v14907_v42, %s12249_s7  ;;  %vm2641_vm5 = vweird.f32 %v14403_v14  ;;  %v2813_v9 = vadd.s32 1, %v14899_v57 }
 0x28d   :  { %v2645_v32 = vxor.u32 2147483648, %v12105_v49  ;;  %v2724_v58 = vsub.s32 32, %v2723_v54  ;;  %v2725_v16 = vshll.u32 %v14867_v4, %v2723_v54  ;;  %v2728_v20 = vsub.s32 4294967266, %v2723_v54  ;;  %v20369_v54 = vld [vmem:[#allocation10_spill] sm:$0xff] }
 0x28e   :  { %v2649_v47 = vsel %vm2647_vm15, %v2648_v6, %v12105_v49  ;;  %v14954_v13 = vmul.f32 %v14875_v18, %v4261_v36  ;;  %v2814_v14 = vsel %vm2812_vm3, %v2813_v9, %v14899_v57  ;;  %v14963_v37 = vmul.f32 %v14875_v18, %v4260_v35  ;;  %v20368_v6 = vld [vmem:[#allocation15_spill] sm:$0xff] }
 0x28f   :  { %v2646_v41 = vsel %vm2644_vm14, %v12103_v46, %v2645_v32  ;;  %v2726_v15 = vshrl.u32 %v2708_v25, %v2724_v58  ;;  %v2729_v38 = vadd.s32 127, %v2728_v20  ;;  %v2815_v50 = vadd.s32 %v2814_v14, %v2810_v26  ;;  %v20370_v58 = vld [vmem:[#allocation7_spill] sm:$0xff] }
 0x290   :  { %20363 = vst [vmem:[#allocation18_spill] sm:$0xff] %v14954_v13  ;;  %v2650_v4 = vsel %vm2643_vm13, %v2646_v41, %v2649_v47  ;;  %20364 = vst [vmem:[#allocation19_spill] sm:$0xff] %v14963_v37  ;;  %4980 = vrot.lane.b32.xlu0 %v14907_v42, %s12251_s27  ;;  %4788 = vrot.lane.b32.xlu1 %v14907_v42, %s12250_s11  ;;  %v2738_v63 = vsub.s32 4, %v14847_v8  ;;  %v4262_v17 = vadd.f32 %v14862_v1, %v4113_v52 }
 0x291   :  { %v2651_v25 = vsel %vm2641_vm5, nan, %v2650_v4  ;;  %v2727_v40 = vor.u32 %v2726_v15, %v2725_v16  ;;  %v2730_v59 = vshll.u32 %v2729_v38, 23  ;;  %v2816_v45 = vadd.s32 536870912, %v2815_v50  ;;  %v15030_v15 = vld [vmem:[%s20292_s23] ss:$0 sm:$0xff]  ;;  %v97_v4 = vld [vmem:[%s20290_s29 + $0xd8] sm:$0xff] }
 0x292   :  { %11711 = vmatmul.mubr.msk.f32.gmra.mrb[22].mxu1 %vm20282_vm0, %v2651_v25  ;;  %v4133_v30 = vadd.f32 %v14596_v2, %v14603_v5  ;;  %vm2654_vm6 = vcmp.lt.s32.totalorder %v14637_v51, 0  ;;  %v14983_v34 = vadd.f32 %v14605_v56, %v14615_v19  ;;  %v14987_v29 = vadd.f32 %v14617_v11, %v14627_v27  ;;  %v96_v11 = vld [vmem:[%s20290_s29 + $0xd0] sm:$0xff] }
 0x293   :  { %v2731_v28 = vor.u32 4788187, %v2730_v59  ;;  %v2734_v0 = vcvt.s32.f32 %v2727_v40  ;;  %v14978_v12 = vshrl.u32 %v2816_v45, 30  ;;  %v2739_v26 = vsel %vm2654_vm6, %v2738_v63, %v14847_v8  ;;  %v20367_v8 = vld [vmem:[#allocation9_spill] sm:$0xff] }
 0x294   :  { %4794 = vrot.lane.b32.xlu1 %v14954_v13, %s12250_s11  ;;  %4888 = vrot.lane.b32.xlu0 %v14963_v37, %s12249_s7  ;;  %v14992_v2 = vmul.f32 %v14875_v18, %v4262_v17  ;;  %v20366_v5 = vand.u32 2147483647, %v14637_v51  ;;  %v15007_v36 = vadd.f32 %v20367_v8, %v14770_v48  ;;  %v15012_v35 = vadd.f32 %v20369_v54, %v20368_v6 }
 0x295   :  { %v2732_v57 = vand.u32 2147483647, %v2731_v28  ;;  %v2818_v52 = vshll.u32 %v14978_v12, 30  ;;  %v135_v16 = vmul.f32 %v20370_v58, %v96_v11  ;;  %v4263_v47 = vadd.f32 %v14862_v1, %v14915_v53 }
 0x296   :  { %20365 = vst [vmem:[#allocation20_spill] sm:$0xff] %v14992_v2  ;;  %vm2653_vm4 = vcmp.le.f32.partialorder %v20366_v5, 0.7853982  ;;  %v4264_v41 = vadd.f32 %v14862_v1, %v14925_v3  ;;  %vm2757_vm8 = vcmp.lt.s32.totalorder %v14708_v61, 0  ;;  %vm2744_vm9 = vweird.f32 %v14637_v51 }
 0x297   :  { %v2735_v46 = vmul.f32 %v2734_v0, %v2732_v57  ;;  %v15000_v19 = vsub.s32 %v2815_v50, %v2818_v52  ;;  %v2741_v27 = vsel %vm2653_vm4, 0, %v2739_v26  ;;  %v15033_v38 = vadd.f32 %v15030_v15, %v135_v16  ;;  %v20373_v0 = vld [vmem:[#allocation12_spill] sm:$0xff] }
 0x298   :  { %4890 = vrot.lane.b32.xlu1 %v14954_v13, %s12249_s7  ;;  %4984 = vrot.lane.b32.xlu0 %v14963_v37, %s12251_s27  ;;  %v15020_v48 = vand.u32 3, %v2741_v27  ;;  %v2811_v14 = vadd.s32 %v14898_v23, %v14895_v33  ;;  %v15049_v25 = vmul.f32 %v14875_v18, %v4263_v47  ;;  %v4265_v40 = vadd.f32 %v14862_v1, %v14921_v43 }
 0x299   :  { %v2736_v56 = vxor.u32 2147483648, %v2735_v46  ;;  %v2821_v49 = vsub.s32 0, %v15000_v19  ;;  %v2861_v3 = vand.u32 2139095040, %v15033_v38  ;;  %v2858_v50 = vand.u32 2147483647, %v15033_v38 }
 0x29a   :  { %vm2746_vm7 = vcmp.lt.s32.totalorder %v15020_v48, 2  ;;  %20371 = vst [vmem:[#allocation9_spill] sm:$0xff] %v15049_v25  ;;  %v15055_v28 = vmul.f32 %v14875_v18, %v4264_v41  ;;  %v20374_v33 = vand.u32 2147483647, %v14708_v61  ;;  %v4266_v43 = vadd.f32 %v14862_v1, %v4133_v30 }
 0x29b   :  { %v2737_v55 = vsel %vm2654_vm6, %v2736_v56, %v2735_v46  ;;  %v11462_v20 = vmin.u32 %v2821_v49, %v15000_v19  ;;  %v2862_v17 = vshrl.u32 %v2861_v3, 23  ;;  %v20377_v46 = vld [vmem:[#allocation13_spill] sm:$0xff]  ;;  %v136_v52 = vmul.f32 %v20370_v58, %v97_v4 }
 0x29c   :  { %v2740_v32 = vsel %vm2653_vm4, %v14637_v51, %v2737_v55  ;;  %4986 = vrot.lane.b32.xlu1 %v14954_v13, %s12251_s27  ;;  %4796 = vrot.lane.b32.xlu0 %v14992_v2, %s12250_s11  ;;  %20372 = vst [vmem:[#allocation15_spill] sm:$0xff] %v15055_v28  ;;  %vm15062_vm11 = vcmp.le.f32.partialorder %v20374_v33, 0.7853982  ;;  %vm2747_vm12 = vcmp.eq.s32.totalorder %v15020_v48, 0  ;;  %vm2750_vm13 = vcmp.eq.s32.totalorder %v15020_v48, 2 }
 0x29d   :  { %12106 = vcosq.f32 %v2740_v32  ;;  %v2823_v9 = vclz %v11462_v20  ;;  %v2841_v27 = vsub.s32 4, %v14978_v12  ;;  %v11465_v8 = vadd.s32 4294967169, %v2862_v17 }
 0x29e   :  { %12108 = vsinq.f32 %v2740_v32  ;;  %v2865_v55 = vand.u32 8388607, %v2858_v50  ;;  %v15082_v54 = vmul.f32 %v14875_v18, %v4265_v40  ;;  %v15086_v32 = vadd.f32 %v14862_v1, %v14931_v24 }
 0x29f   :  { %v11463_v53 = vadd.s32 4294967294, %v2823_v9  ;;  %v11700_v59 = vpop.f32.mrb[14].mxu1  ;;  %v15093_v20 = vmul.f32 %v14875_v18, %v4266_v43  ;;  %v2868_v47 = vadd.s32 1, %v11465_v8  ;;  %v15096_v9 = vadd.f32 %v15030_v15, %v136_v52 }
 0x2a0   :  { %4792 = vrot.lane.b32.xlu1 %v14963_v37, %s12250_s11  ;;  %4892 = vrot.lane.b32.xlu0 %v14992_v2, %s12249_s7  ;;  %v15058_v63 = vadd.f32 %v20373_v0, %v11700_v59  ;;  %v3840_v45 = vpop.f32.mrb[15].mxu1  ;;  %20378 = vst [vmem:[#allocation10_spill] sm:$0xff] %v15082_v54  ;;  %v15100_v24 = vadd.f32 %v14862_v1, %v14987_v29  ;;  %v2866_v40 = vor.u32 8388608, %v2865_v55  ;;  %vm2847_vm6 = vweird.f32 %v14708_v61 }
 0x2a1   :  { %vm11464_vm10 = vcmp.lt.s32.totalorder %v11463_v53, 0  ;;  %v15072_v26 = vadd.f32 %v20377_v46, %v3840_v45  ;;  %20379 = vst [vmem:[#allocation7_spill] sm:$0xff] %v15093_v20  ;;  %vm2869_vm14 = vcmp.gt.s32.totalorder %v2868_v47, 0  ;;  %v20038_v52 = vand.u32 2147483647, %v15096_v9 }
 0x2a2   :  { %v2826_v57 = vsel %vm11464_vm10, 0, %v11463_v53  ;;  %v2870_v17 = vsel %vm2869_vm14, %v2868_v47, 0 }
 0x2a3   :  { %v2827_v5 = vsub.s32 32, %v2826_v57  ;;  %v2828_v56 = vshll.u32 %v15000_v19, %v2826_v57  ;;  %v2831_v11 = vsub.s32 4294967266, %v2826_v57  ;;  %v15117_v33 = vshrl.u32 %v2870_v17, 5 }
 0x2a4   :  { %4798 = vrot.lane.b32.xlu1 %v15049_v25, %s12250_s11  ;;  %4988 = vrot.lane.b32.xlu0 %v14992_v2, %s12251_s27  ;;  %v2964_v57 = vand.u32 2139095040, %v15096_v9 }
 0x2a5   :  { %v2829_v49 = vshrl.u32 %v2811_v14, %v2827_v5  ;;  %v2832_v6 = vadd.s32 127, %v2831_v11  ;;  %v15107_v14 = vsel %vm2757_vm8, %v2841_v27, %v14978_v12  ;;  %v2872_v12 = vand.u32 31, %v2870_v17  ;;  %v98_v17 = vld [vmem:[%s20290_s29 + $0xe0] sm:$0xff] }
 0x2a6   :  { %v2844_v48 = vsel %vm15062_vm11, 0, %v15107_v14  ;;  %v15129_v27 = vshll.u32 %v2866_v40, 8  ;;  %vm2890_vm15 = vcmp.lt.s32.totalorder %v15117_v33, 1  ;;  %vm2893_vm2 = vcmp.lt.s32.totalorder %v15117_v33, 4 }
 0x2a7   :  { %v12107_v30 = vpop.eup %12106  ;;  %v2830_v53 = vor.u32 %v2829_v49, %v2828_v56  ;;  %v2833_v3 = vshll.u32 %v2832_v6, 23  ;;  %v2873_v5 = vsub.s32 32, %v2872_v12  ;;  %v2875_v56 = vshll.u32 %v20350_v21, %v2872_v12 }
 0x2a8   :  { %v12109_v19 = vpop.eup %12108  ;;  %v2751_v16 = vxor.u32 2147483648, %v12107_v30  ;;  %4894 = vrot.lane.b32.xlu1 %v15049_v25, %s12249_s7  ;;  %4800 = vrot.lane.b32.xlu0 %v15055_v28, %s12250_s11  ;;  %v2878_v11 = vshll.u32 %v20351_v60, %v2872_v12  ;;  %v2881_v51 = vshll.u32 %v20352_v22, %v2872_v12  ;;  %v2884_v55 = vshll.u32 %v20353_v44, %v2872_v12 }
 0x2a9   :  { %v2748_v41 = vxor.u32 2147483648, %v12109_v19  ;;  %v2834_v0 = vor.u32 4788187, %v2833_v3  ;;  %v2837_v45 = vcvt.s32.f32 %v2830_v53  ;;  %v2876_v49 = vshrl.u32 %v20351_v60, %v2873_v5 }
 0x2aa   :  { %v2752_v4 = vsel %vm2750_vm13, %v2751_v16, %v12109_v19  ;;  %v2879_v6 = vshrl.u32 %v20352_v22, %v2873_v5  ;;  %v2965_v19 = vshrl.u32 %v2964_v57, 23  ;;  %v2882_v47 = vshrl.u32 %v20353_v44, %v2873_v5 }
 0x2ab   :  { %v2749_v59 = vsel %vm2747_vm12, %v12107_v30, %v2748_v41  ;;  %v2835_v46 = vand.u32 2147483647, %v2834_v0  ;;  %v2887_v30 = vshll.u32 %v20354_v10, %v2872_v12  ;;  %v2885_v41 = vshrl.u32 %v20354_v10, %v2873_v5 }
 0x2ac   :  { %v2753_v29 = vsel %vm2746_vm7, %v2749_v59, %v2752_v4  ;;  %4990 = vrot.lane.b32.xlu1 %v15049_v25, %s12251_s27  ;;  %4896 = vrot.lane.b32.xlu0 %v15055_v28, %s12249_s7  ;;  %v2888_v53 = vshrl.u32 %v20355_v7, %v2873_v5  ;;  %v2874_v3 = vshrl.u32 %v20350_v21, %v2873_v5  ;;  %vm2891_vm3 = vcmp.lt.s32.totalorder %v15117_v33, 2 }
 0x2ad   :  { %v2754_v43 = vsel %vm2744_vm9, nan, %v2753_v29  ;;  %v2838_v8 = vmul.f32 %v2837_v45, %v2835_v46  ;;  %v2877_v4 = vor.u32 %v2876_v49, %v2875_v56  ;;  %v2880_v14 = vor.u32 %v2879_v6, %v2878_v11 }
 0x2ae   :  { %11713 = vmatprep.mubr.msk.f32.mxu1 %vm20282_vm0, %v2754_v43  ;;  %v2883_v59 = vor.u32 %v2882_v47, %v2881_v51  ;;  %v2886_v0 = vor.u32 %v2885_v41, %v2884_v55  ;;  %v2889_v45 = vor.u32 %v2888_v53, %v2887_v30  ;;  %vm2892_vm5 = vcmp.lt.s32.totalorder %v15117_v33, 3 }
 0x2af   :  { %v2839_v16 = vxor.u32 2147483648, %v2838_v8  ;;  %v11469_v12 = vadd.s32 4294967169, %v2965_v19  ;;  %v2898_v43 = vsel %vm2890_vm15, %v2877_v4, %v2880_v14  ;;  %v2894_v46 = vsel %vm2890_vm15, %v2874_v3, %v2877_v4 }
 0x2b0   :  { %4802 = vrot.lane.b32.xlu1 %v15082_v54, %s12250_s11  ;;  %4992 = vrot.lane.b32.xlu0 %v15055_v28, %s12251_s27  ;;  %v2895_v57 = vsel %vm2893_vm2, %v2883_v59, 2102212464  ;;  %v2899_v23 = vsel %vm2893_vm2, %v2886_v0, 920167782  ;;  %v2902_v5 = vsel %vm2890_vm15, %v2880_v14, %v2883_v59  ;;  %v137_v56 = vmul.f32 %v20370_v58, %v98_v17 }
 0x2b1   :  { %v2840_v40 = vsel %vm2757_vm8, %v2839_v16, %v2838_v8  ;;  %v2896_v11 = vsel %vm2892_vm5, %v2880_v14, %v2895_v57  ;;  %v2900_v8 = vsel %vm2892_vm5, %v2883_v59, %v2899_v23  ;;  %v2903_v51 = vsel %vm2893_vm2, %v2889_v45, 1326507024 }
 0x2b2   :  { %v2843_v29 = vsel %vm15062_vm11, %v14708_v61, %v2840_v40  ;;  %v2971_v55 = vadd.s32 1, %v11469_v12  ;;  %v2848_v30 = vand.u32 3, %v2844_v48  ;;  %v15179_v49 = vmul.f32 %v14875_v18, %v15086_v32 }
 0x2b3   :  { %12110 = vcosq.f32 %v2843_v29  ;;  %v4269_v6 = vadd.f32 %v14862_v1, %v14983_v34  ;;  %v2901_v58 = vsel %vm2891_vm3, %v2898_v43, %v2900_v8  ;;  %v2904_v19 = vsel %vm2892_vm5, %v2886_v0, %v2903_v51 }
 0x2b4   :  { %4898 = vrot.lane.b32.xlu1 %v15082_v54, %s12249_s7  ;;  %4804 = vrot.lane.b32.xlu0 %v15093_v20, %s12250_s11  ;;  %12112 = vsinq.f32 %v2843_v29  ;;  %20380 = vst [vmem:[#allocation12_spill] sm:$0xff] %v15179_v49  ;;  %v15192_v48 = vmul.u32.u64.low %v15129_v27, %v2901_v58  ;;  %v15193_v16 = vmul.u32.u64.high %v15129_v27, %v2901_v58, %v15192_v48  ;;  %v15198_v34 = vand.u32 8388607, %v20038_v52 }
 0x2b5   :  { %v2897_v32 = vsel %vm2891_vm3, %v2894_v46, %v2896_v11  ;;  %v2905_v47 = vsel %vm2891_vm3, %v2902_v5, %v2904_v19  ;;  %vm2972_vm4 = vcmp.gt.s32.totalorder %v2971_v55, 0  ;;  %v15206_v41 = vadd.f32 %v15030_v15, %v137_v56 }
 0x2b6   :  { %v15210_v53 = vmul.f32 %v14875_v18, %v15100_v24  ;;  %v15213_v3 = vmul.u32.u64.low %v15129_v27, %v2905_v47  ;;  %v15214_v4 = vmul.u32.u64.high %v15129_v27, %v2905_v47, %v15213_v3  ;;  %v2973_v14 = vsel %vm2972_vm4, %v2971_v55, 0 }
 0x2b7   :  { %vm2849_vm7 = vcmp.lt.s32.totalorder %v2848_v30, 2  ;;  %vm2850_vm8 = vcmp.eq.s32.totalorder %v2848_v30, 0  ;;  %vm2853_vm9 = vcmp.eq.s32.totalorder %v2848_v30, 2  ;;  %v2975_v33 = vand.u32 31, %v2973_v14 }
 0x2b8   :  { %4994 = vrot.lane.b32.xlu1 %v15082_v54, %s12251_s27  ;;  %4900 = vrot.lane.b32.xlu0 %v15093_v20, %s12249_s7  ;;  %20381 = vst [vmem:[#allocation13_spill] sm:$0xff] %v15210_v53  ;;  %v4270_v40 = vadd.f32 %v14862_v1, %v15012_v35  ;;  %v2913_v24 = vmul.u32 %v15129_v27, %v2897_v32  ;;  %v2916_v59 = vadd.s32 1, %v15193_v16  ;;  %v2969_v0 = vor.u32 8388608, %v15198_v34 }
 0x2b9   :  { %v15225_v45 = vshrl.u32 %v2973_v14, 5  ;;  %v2976_v17 = vsub.s32 32, %v2975_v33  ;;  %v2978_v29 = vshll.u32 %v20350_v21, %v2975_v33  ;;  %v3067_v12 = vand.u32 2139095040, %v15206_v41 }
 0x2ba   :  { %vm2915_vm10 = vc.u32 %v15214_v4, %v15192_v48  ;;  %v2981_v43 = vshll.u32 %v20351_v60, %v2975_v33  ;;  %v2984_v35 = vshll.u32 %v20352_v22, %v2975_v33  ;;  %v2987_v27 = vshll.u32 %v20353_v44, %v2975_v33 }
 0x2bb   :  { %v2917_v5 = vsel %vm2915_vm10, %v2916_v59, %v15193_v16  ;;  %v2979_v56 = vshrl.u32 %v20351_v60, %v2976_v17  ;;  %v2990_v11 = vshll.u32 %v20354_v10, %v2975_v33  ;;  %v2982_v55 = vshrl.u32 %v20352_v22, %v2976_v17 }
 0x2bc   :  { %4806 = vrot.lane.b32.xlu1 %v15179_v49, %s12250_s11  ;;  %4996 = vrot.lane.b32.xlu0 %v15093_v20, %s12251_s27  ;;  %v2918_v51 = vadd.s32 %v2917_v5, %v2913_v24  ;;  %v2985_v58 = vshrl.u32 %v20353_v44, %v2976_v17  ;;  %v2988_v32 = vshrl.u32 %v20354_v10, %v2976_v17  ;;  %vm2993_vm11 = vcmp.lt.s32.totalorder %v15225_v45, 1 }
 0x2bd   :  { %v12111_v57 = vpop.eup %12110  ;;  %v2980_v34 = vor.u32 %v2979_v56, %v2978_v29  ;;  %v2991_v47 = vshrl.u32 %v20355_v7, %v2976_v17  ;;  %v2983_v14 = vor.u32 %v2982_v55, %v2981_v43  ;;  %vm2995_vm12 = vcmp.lt.s32.totalorder %v15225_v45, 3 }
 0x2be   :  { %v12113_v23 = vpop.eup %12112  ;;  %v2854_v46 = vxor.u32 2147483648, %v12111_v57  ;;  %v2919_v16 = vadd.s32 536870912, %v2918_v51  ;;  %v2986_v59 = vor.u32 %v2985_v58, %v2984_v35  ;;  %v2989_v24 = vor.u32 %v2988_v32, %v2987_v27 }
 0x2bf   :  { %v2851_v8 = vxor.u32 2147483648, %v12113_v23  ;;  %vm2994_vm13 = vcmp.lt.s32.totalorder %v15225_v45, 2  ;;  %vm2996_vm14 = vcmp.lt.s32.totalorder %v15225_v45, 4  ;;  %v3001_v30 = vsel %vm2993_vm11, %v2980_v34, %v2983_v14 }
 0x2c0   :  { %4902 = vrot.lane.b32.xlu1 %v15179_v49, %s12249_s7  ;;  %4808 = vrot.lane.b32.xlu0 %v15210_v53, %s12250_s11  ;;  %v2855_v19 = vsel %vm2853_vm9, %v2854_v46, %v12113_v23  ;;  %v2992_v23 = vor.u32 %v2991_v47, %v2990_v11  ;;  %v15258_v43 = vshrl.u32 %v2919_v16, 30  ;;  %v3009_v35 = vshll.u32 %v2969_v0, 8 }
 0x2c1   :  { %v2852_v3 = vsel %vm2850_vm8, %v12111_v57, %v2851_v8  ;;  %v15256_v57 = vmul.f32 %v14875_v18, %v4269_v6  ;;  %v15267_v61 = vmul.f32 %v14875_v18, %v4270_v40  ;;  %v3002_v27 = vsel %vm2996_vm14, %v2989_v24, 920167782 }
 0x2c2   :  { %v2856_v33 = vsel %vm2849_vm7, %v2852_v3, %v2855_v19  ;;  %v2921_v6 = vshll.u32 %v15258_v43, 30  ;;  %v2977_v46 = vshrl.u32 %v20350_v21, %v2976_v17  ;;  %v3003_v5 = vsel %vm2995_vm12, %v2986_v59, %v3002_v27 }
 0x2c3   :  { %v2857_v29 = vsel %vm2847_vm6, nan, %v2856_v33  ;;  %20382 = vst [vmem:[#allocation21_spill] sm:$0xff] %v15256_v57  ;;  %20383 = vst [vmem:[#allocation22_spill] sm:$0xff] %v15267_v61  ;;  %v3006_v56 = vsel %vm2996_vm14, %v2992_v23, 1326507024  ;;  %v3068_v11 = vshrl.u32 %v3067_v12, 23  ;;  %v3004_v8 = vsel %vm2994_vm13, %v3001_v30, %v3003_v5 }
 0x2c4   :  { %4998 = vrot.lane.b32.xlu1 %v15179_v49, %s12251_s27  ;;  %4904 = vrot.lane.b32.xlu0 %v15210_v53, %s12249_s7  ;;  %v15277_v0 = vsub.s32 %v2918_v51, %v2921_v6  ;;  %v2998_v40 = vsel %vm2996_vm14, %v2986_v59, 2102212464  ;;  %v3005_v55 = vsel %vm2993_vm11, %v2983_v14, %v2986_v59  ;;  %v3007_v58 = vsel %vm2995_vm12, %v2989_v24, %v3006_v56 }
 0x2c5   :  { %11714 = vmatmul.mubr.msk.f32.gmra.mrb[24].mxu1 %vm20282_vm0, %v2857_v29  ;;  %v15285_v19 = vmul.u32.u64.low %v3009_v35, %v3004_v8  ;;  %v15286_v32 = vmul.u32.u64.high %v3009_v35, %v3004_v8, %v15285_v19  ;;  %v2997_v12 = vsel %vm2993_vm11, %v2977_v46, %v2980_v34  ;;  %v2999_v51 = vsel %vm2995_vm12, %v2983_v14, %v2998_v40 }
 0x2c6   :  { %v2924_v17 = vsub.s32 0, %v15277_v0  ;;  %v3008_v47 = vsel %vm2994_vm13, %v3005_v55, %v3007_v58  ;;  %v11473_v3 = vadd.s32 4294967169, %v3068_v11  ;;  %v4271_v59 = vadd.f32 %v14862_v1, %v15007_v36 }
 0x2c7   :  { %v15303_v33 = vmul.u32.u64.low %v3009_v35, %v3008_v47  ;;  %v15304_v24 = vmul.u32.u64.high %v3009_v35, %v3008_v47, %v15303_v33  ;;  %v3000_v29 = vsel %vm2994_vm13, %v2997_v12, %v2999_v51  ;;  %v4272_v34 = vadd.f32 %v14862_v1, %v15072_v26  ;;  %v15341_v51 = vld [vmem:[%s20291_s30] ss:$0 sm:$0xff] }
 0x2c8   :  { %4810 = vrot.lane.b32.xlu1 %v15256_v57, %s12250_s11  ;;  %5000 = vrot.lane.b32.xlu0 %v15210_v53, %s12251_s27  ;;  %v11466_v16 = vmin.u32 %v2924_v17, %v15277_v0  ;;  %v3019_v14 = vadd.s32 1, %v15286_v32  ;;  %v3074_v30 = vadd.s32 1, %v11473_v3  ;;  %v20037_v6 = vand.u32 2147483647, %v15206_v41 }
 0x2c9   :  { %v15317_v27 = vmul.f32 %v14875_v18, %v4271_v59  ;;  %v3016_v45 = vmul.u32 %v3009_v35, %v3000_v29  ;;  %vm3018_vm15 = vc.u32 %v15304_v24, %v15285_v19  ;;  %v15322_v46 = vmul.f32 %v14875_v18, %v4272_v34  ;;  %v99_v35 = vld [vmem:[%s20290_s29 + $0xe8] sm:$0xff] }
 0x2ca   :  { %v2926_v23 = vclz %v11466_v16  ;;  %vm3075_vm2 = vcmp.gt.s32.totalorder %v3074_v30, 0  ;;  %v3020_v26 = vsel %vm3018_vm15, %v3019_v14, %v15286_v32  ;;  %v2914_v56 = vadd.s32 %v15192_v48, %v15214_v4 }
 0x2cb   :  { %20384 = vst [vmem:[#allocation23_spill] sm:$0xff] %v15317_v27  ;;  %20385 = vst [vmem:[#allocation24_spill] sm:$0xff] %v15322_v46  ;;  %v3076_v5 = vsel %vm3075_vm2, %v3074_v30, 0  ;;  %v3071_v11 = vand.u32 8388607, %v20037_v6  ;;  %v2944_v8 = vsub.s32 4, %v15258_v43  ;;  %v3021_v55 = vadd.s32 %v3020_v26, %v3016_v45 }
 0x2cc   :  { %4906 = vrot.lane.b32.xlu1 %v15256_v57, %s12249_s7  ;;  %4812 = vrot.lane.b32.xlu0 %v15267_v61, %s12250_s11  ;;  %v11467_v36 = vadd.s32 4294967294, %v2926_v23  ;;  %v3078_v32 = vand.u32 31, %v3076_v5  ;;  %v138_v47 = vmul.f32 %v15341_v51, %v99_v35  ;;  %vm2860_vm5 = vcmp.lt.s32.totalorder %v15033_v38, 0 }
 0x2cd   :  { %v4273_v16 = vadd.f32 %v14862_v1, %v15058_v63  ;;  %v3072_v23 = vor.u32 8388608, %v3071_v11  ;;  %v15356_v34 = vsel %vm2860_vm5, %v2944_v8, %v15258_v43  ;;  %vm15365_vm6 = vcmp.le.f32.partialorder %v2858_v50, 0.7853982 }
 0x2ce   :  { %vm11468_vm3 = vcmp.lt.s32.totalorder %v11467_v36, 0  ;;  %v2947_v50 = vsel %vm15365_vm6, 0, %v15356_v34  ;;  %v15383_v35 = vadd.s32 %v15285_v19, %v15304_v24  ;;  %v3093_v6 = vshll.u32 %v20354_v10, %v3078_v32 }
 0x2cf   :  { %v2929_v40 = vsel %vm11468_vm3, 0, %v11467_v36  ;;  %v3079_v36 = vsub.s32 32, %v3078_v32  ;;  %v15376_v26 = vmul.f32 %v14875_v18, %v4273_v16  ;;  %vm2963_vm11 = vcmp.lt.s32.totalorder %v15096_v9, 0 }
 0x2d0   :  { %5002 = vrot.lane.b32.xlu1 %v15256_v57, %s12251_s27  ;;  %4908 = vrot.lane.b32.xlu0 %v15267_v61, %s12249_s7  ;;  %v2930_v17 = vsub.s32 32, %v2929_v40  ;;  %v2931_v12 = vshll.u32 %v15277_v0, %v2929_v40  ;;  %v2934_v48 = vsub.s32 4294967266, %v2929_v40  ;;  %v3022_v0 = vadd.s32 536870912, %v3021_v55 }
 0x2d1   :  { %20388 = vst [vmem:[#allocation25_spill] sm:$0xff] %v15376_v26  ;;  %v3088_v16 = vshrl.u32 %v20353_v44, %v3079_v36 }
 0x2d2   :  { %v2932_v59 = vshrl.u32 %v2914_v56, %v2930_v17  ;;  %v2935_v29 = vadd.s32 127, %v2934_v48  ;;  %v15358_v14 = vshrl.u32 %v3022_v0, 30  ;;  %v15385_v56 = vshll.u32 %v3072_v23, 8 }
 0x2d3   :  { %v11703_v58 = vpop.f32.mrb[16].mxu1  ;;  %v15390_v17 = vshrl.u32 %v3076_v5, 5  ;;  %v3085_v48 = vshrl.u32 %v20352_v22, %v3079_v36  ;;  %v3087_v5 = vshll.u32 %v20352_v22, %v3078_v32 }
 0x2d4   :  { %4814 = vrot.lane.b32.xlu1 %v15317_v27, %s12250_s11  ;;  %5004 = vrot.lane.b32.xlu0 %v15267_v61, %s12251_s27  ;;  %v4178_v4 = vadd.f32 %v14832_v31, %v11703_v58  ;;  %v3850_v3 = vpop.f32.mrb[17].mxu1  ;;  %v2933_v30 = vor.u32 %v2932_v59, %v2931_v12  ;;  %v15361_v31 = vadd.f32 %v15030_v15, %v138_v47  ;;  %v3024_v45 = vshll.u32 %v15358_v14, 30 }
 0x2d5   :  { %v4173_v33 = vadd.f32 %v14933_v62, %v3850_v3  ;;  %v2936_v62 = vshll.u32 %v2935_v29, 23  ;;  %v3081_v58 = vshll.u32 %v20350_v21, %v3078_v32  ;;  %v3082_v12 = vshrl.u32 %v20351_v60, %v3079_v36 }
 0x2d6   :  { %v2940_v40 = vcvt.s32.f32 %v2933_v30  ;;  %v15387_v8 = vsub.s32 %v3021_v55, %v3024_v45  ;;  %v3084_v47 = vshll.u32 %v20351_v60, %v3078_v32  ;;  %v15404_v55 = vpop.permute.xlu1 %4309  ;;  %v4275_v3 = vadd.f32 %v14862_v1, %v4178_v4 }
 0x2d7   :  { %v4274_v43 = vadd.f32 %v14862_v1, %v4173_v33  ;;  %v2937_v11 = vor.u32 4788187, %v2936_v62  ;;  %v3090_v59 = vshll.u32 %v20353_v44, %v3078_v32  ;;  %v3170_v33 = vand.u32 2139095040, %v15361_v31 }
 0x2d8   :  { %4910 = vrot.lane.b32.xlu1 %v15317_v27, %s12249_s7  ;;  %4816 = vrot.lane.b32.xlu0 %v15322_v46, %s12250_s11  ;;  %v3027_v19 = vsub.s32 0, %v15387_v8  ;;  %v3080_v30 = vshrl.u32 %v20350_v21, %v3079_v36  ;;  %v3083_v62 = vor.u32 %v3082_v12, %v3081_v58  ;;  %v3086_v45 = vor.u32 %v3085_v48, %v3084_v47 }
 0x2d9   :  { %v2938_v0 = vand.u32 2147483647, %v2937_v11  ;;  %v15397_v24 = vmul.f32 %v14875_v18, %v4274_v43  ;;  %v3089_v43 = vor.u32 %v3088_v16, %v3087_v5  ;;  %v3091_v11 = vshrl.u32 %v20354_v10, %v3079_v36 }
 0x2da   :  { %v11470_v29 = vmin.u32 %v3027_v19, %v15387_v8  ;;  %v3094_v4 = vshrl.u32 %v20355_v7, %v3079_v36  ;;  %vm3096_vm4 = vcmp.lt.s32.totalorder %v15390_v17, 1  ;;  %vm3098_vm7 = vcmp.lt.s32.totalorder %v15390_v17, 3  ;;  %v15428_v47 = vpop.permute.xlu1 %4315 }
 0x2db   :  { %20389 = vst [vmem:[#allocation26_spill] sm:$0xff] %v15397_v24  ;;  %v2941_v23 = vmul.f32 %v2940_v40, %v2938_v0  ;;  %v15421_v40 = vmul.f32 %v14875_v18, %v4275_v3  ;;  %v3092_v58 = vor.u32 %v3091_v11, %v3090_v59  ;;  %vm3099_vm8 = vcmp.lt.s32.totalorder %v15390_v17, 4 }
 0x2dc   :  { %5006 = vrot.lane.b32.xlu1 %v15317_v27, %s12251_s27  ;;  %4912 = vrot.lane.b32.xlu0 %v15322_v46, %s12249_s7  ;;  %v3029_v1 = vclz %v11470_v29  ;;  %v3095_v12 = vor.u32 %v3094_v4, %v3093_v6  ;;  %vm3097_vm9 = vcmp.lt.s32.totalorder %v15390_v17, 2  ;;  %v3101_v18 = vsel %vm3099_vm8, %v3089_v43, 2102212464 }
 0x2dd   :  { %v2942_v52 = vxor.u32 2147483648, %v2941_v23  ;;  %20390 = vst [vmem:[#allocation27_spill] sm:$0xff] %v15421_v40  ;;  %v3104_v0 = vsel %vm3096_vm4, %v3083_v62, %v3086_v45  ;;  %v3105_v19 = vsel %vm3099_vm8, %v3092_v58, 920167782  ;;  %v3102_v3 = vsel %vm3098_vm7, %v3086_v45, %v3101_v18 }
 0x2de   :  { %v11471_v36 = vadd.s32 4294967294, %v3029_v1  ;;  %v3106_v6 = vsel %vm3098_vm7, %v3089_v43, %v3105_v19  ;;  %v3109_v11 = vsel %vm3099_vm8, %v3095_v12, 1326507024  ;;  %v20391_v17 = vand.u32 2147483647, %v15096_v9 }
 0x2df   :  { %v2943_v32 = vsel %vm2860_vm5, %v2942_v52, %v2941_v23  ;;  %v3100_v52 = vsel %vm3096_vm4, %v3080_v30, %v3083_v62  ;;  %v3107_v16 = vsel %vm3097_vm9, %v3104_v0, %v3106_v6  ;;  %v3108_v30 = vsel %vm3096_vm4, %v3086_v45, %v3089_v43  ;;  %v100_v45 = vld [vmem:[%s20290_s29 + $0xf0] sm:$0xff]  ;;  %v15472_v43 = vpop.permute.xlu1 %4523 }
 0x2e0   :  { %4818 = vrot.lane.b32.xlu1 %v15376_v26, %s12250_s11  ;;  %5008 = vrot.lane.b32.xlu0 %v15322_v46, %s12251_s27  ;;  %v2946_v48 = vsel %vm15365_vm6, %v15033_v38, %v2943_v32  ;;  %vm11472_vm10 = vcmp.lt.s32.totalorder %v11471_v36, 0  ;;  %v3047_v62 = vsub.s32 4, %v15358_v14  ;;  %v139_v6 = vmul.f32 %v15341_v51, %v100_v45 }
 0x2e1   :  { %12114 = vcosq.f32 %v2946_v48  ;;  %v3032_v5 = vsel %vm11472_vm10, 0, %v11471_v36  ;;  %v15458_v1 = vmul.u32.u64.low %v15385_v56, %v3107_v16  ;;  %v15459_v4 = vmul.u32.u64.high %v15385_v56, %v3107_v16, %v15458_v1 }
 0x2e2   :  { %12116 = vsinq.f32 %v2946_v48  ;;  %v3033_v59 = vsub.s32 32, %v3032_v5  ;;  %v3034_v23 = vshll.u32 %v15387_v8, %v3032_v5  ;;  %v3037_v29 = vsub.s32 4294967266, %v3032_v5  ;;  %v15492_v5 = vpop.permute.xlu0 %4303 }
 0x2e3   :  { %v3110_v8 = vsel %vm3098_vm7, %v3092_v58, %v3109_v11  ;;  %v3171_v48 = vshrl.u32 %v3170_v33, 23  ;;  %v3103_v33 = vsel %vm3097_vm9, %v3100_v52, %v3102_v3  ;;  %v3048_v63 = vsel %vm2963_vm11, %v3047_v62, %v15358_v14 }
 0x2e4   :  { %4914 = vrot.lane.b32.xlu1 %v15376_v26, %s12249_s7  ;;  %4820 = vrot.lane.b32.xlu0 %v15397_v24, %s12250_s11  ;;  %v3035_v32 = vshrl.u32 %v15383_v35, %v3033_v59  ;;  %v3038_v36 = vadd.s32 127, %v3037_v29  ;;  %v2951_v35 = vand.u32 3, %v2947_v50  ;;  %v3111_v58 = vsel %vm3097_vm9, %v3108_v30, %v3110_v8 }
 0x2e5   :  { %v15484_v0 = vmul.u32.u64.low %v15385_v56, %v3111_v58  ;;  %v15485_v19 = vmul.u32.u64.high %v15385_v56, %v3111_v58, %v15484_v0  ;;  %v3122_v34 = vadd.s32 1, %v15459_v4  ;;  %v11477_v50 = vadd.s32 4294967169, %v3171_v48  ;;  %v15514_v48 = vpop.f32.mrb[20].mxu0 }
 0x2e6   :  { %v3036_v12 = vor.u32 %v3035_v32, %v3034_v23  ;;  %v3039_v18 = vshll.u32 %v3038_v36, 23  ;;  %vm15496_vm12 = vcmp.le.f32.partialorder %v20391_v17, 0.7853982  ;;  %v3119_v59 = vmul.u32 %v15385_v56, %v3103_v33  ;;  %v15508_v32 = vpop.permute.xlu1 %4529 }
 0x2e7   :  { %vm2952_vm13 = vcmp.lt.s32.totalorder %v2951_v35, 2  ;;  %vm2953_vm14 = vcmp.eq.s32.totalorder %v2951_v35, 0  ;;  %vm2956_vm15 = vcmp.eq.s32.totalorder %v2951_v35, 2  ;;  %v3177_v14 = vadd.s32 1, %v11477_v50 }
 0x2e8   :  { %5010 = vrot.lane.b32.xlu1 %v15376_v26, %s12251_s27  ;;  %4916 = vrot.lane.b32.xlu0 %v15397_v24, %s12249_s7  ;;  %v3040_v3 = vor.u32 4788187, %v3039_v18  ;;  %v3043_v16 = vcvt.s32.f32 %v3036_v12  ;;  %v3050_v30 = vsel %vm15496_vm12, 0, %v3048_v63  ;;  %vm3121_vm2 = vc.u32 %v15485_v19, %v15458_v1  ;;  %v15516_v18 = vpop.f32.mrb[21].mxu0 }
 0x2e9   :  { %v20039_v62 = vand.u32 2147483647, %v15361_v31  ;;  %v3123_v36 = vsel %vm3121_vm2, %v3122_v34, %v15459_v4  ;;  %vm3178_vm3 = vcmp.gt.s32.totalorder %v3177_v14, 0  ;;  %v15512_v8 = vadd.f32 %v15030_v15, %v139_v6  ;;  %v15524_v15 = vpop.permute.xlu0 %4517 }
 0x2ea   :  { %v3041_v29 = vand.u32 2147483647, %v3040_v3  ;;  %v3124_v58 = vadd.s32 %v3123_v36, %v3119_v59  ;;  %v3179_v12 = vsel %vm3178_vm3, %v3177_v14, 0  ;;  %vm2950_vm5 = vweird.f32 %v15033_v38 }
 0x2eb   :  { %v12115_v23 = vpop.eup %12114  ;;  %v15522_v4 = vand.u32 3, %v3050_v30  ;;  %v3181_v63 = vand.u32 31, %v3179_v12  ;;  %v3174_v17 = vand.u32 8388607, %v20039_v62  ;;  %v3273_v38 = vand.u32 2139095040, %v15512_v8 }
 0x2ec   :  { %4822 = vrot.lane.b32.xlu1 %v15421_v40, %s12250_s11  ;;  %5012 = vrot.lane.b32.xlu0 %v15397_v24, %s12251_s27  ;;  %v12117_v11 = vpop.eup %12116  ;;  %v2957_v56 = vxor.u32 2147483648, %v12115_v23  ;;  %v3044_v33 = vmul.f32 %v3043_v16, %v3041_v29  ;;  %v3125_v6 = vadd.s32 536870912, %v3124_v58  ;;  %vm3053_vm9 = vweird.f32 %v15096_v9 }
 0x2ed   :  { %v2954_v45 = vxor.u32 2147483648, %v12117_v11  ;;  %v3182_v16 = vsub.s32 32, %v3181_v63  ;;  %v3184_v59 = vshll.u32 %v20350_v21, %v3181_v63  ;;  %v15551_v52 = vpop.permute.xlu0 %4301  ;;  %vm3059_vm6 = vcmp.eq.s32.totalorder %v15522_v4, 2 }
 0x2ee   :  { %v2958_v0 = vsel %vm2956_vm15, %v2957_v56, %v12117_v11  ;;  %v3045_v50 = vxor.u32 2147483648, %v3044_v33  ;;  %v15534_v30 = vshrl.u32 %v3125_v6, 30  ;;  %v15537_v11 = vpop.permute.xlu1 %4307  ;;  %v3193_v6 = vshll.u32 %v20353_v44, %v3181_v63 }
 0x2ef   :  { %v2955_v34 = vsel %vm2953_vm14, %v12115_v23, %v2954_v45  ;;  %v3187_v23 = vshll.u32 %v20351_v60, %v3181_v63  ;;  %v3185_v56 = vshrl.u32 %v20351_v60, %v3182_v16  ;;  %v3188_v36 = vshrl.u32 %v20352_v22, %v3182_v16 }
 0x2f0   :  { %4918 = vrot.lane.b32.xlu1 %v15421_v40, %s12249_s7  ;;  %v2959_v3 = vsel %vm2952_vm13, %v2955_v34, %v2958_v0  ;;  %v3046_v29 = vsel %vm2963_vm11, %v3045_v50, %v3044_v33  ;;  %v3190_v45 = vshll.u32 %v20352_v22, %v3181_v63  ;;  %v3127_v33 = vshll.u32 %v15534_v30, 30 }
 0x2f1   :  { %v2960_v14 = vsel %vm2950_vm5, nan, %v2959_v3  ;;  %v3049_v35 = vsel %vm15496_vm12, %v15096_v9, %v3046_v29  ;;  %v3180_v0 = vshrl.u32 %v3179_v12, 5  ;;  %v3191_v34 = vshrl.u32 %v20353_v44, %v3182_v16  ;;  %v15577_v54 = vpop.permute.xlu0 %4313 }
 0x2f2   :  { %11716 = vmatprep.mubr.msk.f32.mxu1 %vm20282_vm0, %v2960_v14  ;;  %12118 = vcosq.f32 %v3049_v35  ;;  %v3175_v50 = vor.u32 8388608, %v3174_v17  ;;  %v3274_v3 = vshrl.u32 %v3273_v38, 23  ;;  %v15549_v14 = vpop.f32.mrb[22].mxu0  ;;  %v15554_v29 = vsub.s32 %v3124_v58, %v3127_v33  ;;  %v15570_v49 = vpop.permute.xlu1 %4515 }
 0x2f3   :  { %12120 = vsinq.f32 %v3049_v35  ;;  %v3183_v62 = vshrl.u32 %v20350_v21, %v3182_v16  ;;  %v3186_v26 = vor.u32 %v3185_v56, %v3184_v59  ;;  %v3194_v12 = vshrl.u32 %v20354_v10, %v3182_v16  ;;  %v15558_v27 = vpop.f32.mrb[23].mxu0 }
 0x2f4   :  { %5014 = vrot.lane.b32.xlu1 %v15421_v40, %s12251_s27  ;;  %vm3056_vm4 = vcmp.eq.s32.totalorder %v15522_v4, 0  ;;  %v3189_v17 = vor.u32 %v3188_v36, %v3187_v23  ;;  %v3192_v35 = vor.u32 %v3191_v34, %v3190_v45  ;;  %v3196_v38 = vshll.u32 %v20354_v10, %v3181_v63  ;;  %v15563_v61 = vpop.f32.mrb[24].mxu0 }
 0x2f5   :  { %v3197_v57 = vshrl.u32 %v20355_v7, %v3182_v16  ;;  %vm3055_vm7 = vcmp.lt.s32.totalorder %v15522_v4, 2  ;;  %v3130_v58 = vsub.s32 0, %v15554_v29  ;;  %v3195_v33 = vor.u32 %v3194_v12, %v3193_v6  ;;  %v15568_v56 = vpop.f32.mrb[25].mxu0 }
 0x2f6   :  { %vm3199_vm8 = vcmp.lt.s32.totalorder %v3180_v0, 1  ;;  %vm3201_vm10 = vcmp.lt.s32.totalorder %v3180_v0, 3  ;;  %vm3202_vm11 = vcmp.lt.s32.totalorder %v3180_v0, 4  ;;  %v11481_v63 = vadd.s32 4294967169, %v3274_v3 }
 0x2f7   :  { %v3198_v23 = vor.u32 %v3197_v57, %v3196_v38  ;;  %v11474_v16 = vmin.u32 %v3130_v58, %v15554_v29  ;;  %vm3200_vm12 = vcmp.lt.s32.totalorder %v3180_v0, 2  ;;  %v3203_v36 = vsel %vm3199_vm8, %v3183_v62, %v3186_v26 }
 0x2f8   :  { %v3215_v45 = vshll.u32 %v3175_v50, 8  ;;  %v3204_v34 = vsel %vm3202_vm11, %v3192_v35, 2102212464  ;;  %v3207_v6 = vsel %vm3199_vm8, %v3186_v26, %v3189_v17  ;;  %v3208_v12 = vsel %vm3202_vm11, %v3195_v33, 920167782 }
 0x2f9   :  { %v3211_v59 = vsel %vm3199_vm8, %v3189_v17, %v3192_v35  ;;  %v3132_v20 = vclz %v11474_v16  ;;  %v3205_v57 = vsel %vm3201_vm10, %v3189_v17, %v3204_v34  ;;  %v3209_v38 = vsel %vm3201_vm10, %v3192_v35, %v3208_v12  ;;  %v15589_v17 = vpop.permute.xlu1 %4521 }
 0x2fa   :  { %v3212_v3 = vsel %vm3202_vm11, %v3198_v23, 1326507024  ;;  %v3206_v58 = vsel %vm3200_vm12, %v3203_v36, %v3205_v57  ;;  %v3210_v28 = vsel %vm3200_vm12, %v3207_v6, %v3209_v38  ;;  %v3280_v50 = vadd.s32 1, %v11481_v63  ;;  %v15598_v63 = vpop.permute.xlu0 %4527 }
 0x2fb   :  { %v3213_v62 = vsel %vm3201_vm10, %v3195_v33, %v3212_v3  ;;  %v11475_v26 = vadd.s32 4294967294, %v3132_v20  ;;  %v15585_v53 = vmul.u32.u64.low %v3215_v45, %v3210_v28  ;;  %v15586_v40 = vmul.u32.u64.high %v3215_v45, %v3210_v28, %v15585_v53 }
 0x2fc   :  { %v12119_v37 = vpop.eup %12118  ;;  %v3214_v42 = vsel %vm3200_vm12, %v3211_v59, %v3213_v62  ;;  %v20394_v36 = vand.u32 2147483647, %v15512_v8  ;;  %v3120_v28 = vadd.s32 %v15458_v1, %v15485_v19  ;;  %vm3281_vm14 = vcmp.gt.s32.totalorder %v3280_v50, 0 }
 0x2fd   :  { %v12121_v16 = vpop.eup %12120  ;;  %v3060_v35 = vxor.u32 2147483648, %v12119_v37  ;;  %v15591_v23 = vmul.u32.u64.low %v3215_v45, %v3214_v42  ;;  %v15592_v34 = vmul.u32.u64.high %v3215_v45, %v3214_v42, %v15591_v23  ;;  %vm11476_vm13 = vcmp.lt.s32.totalorder %v11475_v26, 0 }
 0x2fe   :  { %v15596_v6 = vand.u32 8388607, %v20394_v36  ;;  %v3057_v20 = vxor.u32 2147483648, %v12121_v16  ;;  %v3135_v42 = vsel %vm11476_vm13, 0, %v11475_v26  ;;  %v3222_v12 = vmul.u32 %v3215_v45, %v3206_v58  ;;  %v15614_v36 = vpop.permute.xlu1 %4886 }
 0x2ff   :  { %v3061_v59 = vsel %vm3059_vm6, %v3060_v35, %v12121_v16  ;;  %v3282_v57 = vsel %vm3281_vm14, %v3280_v50, 0  ;;  %v3136_v3 = vsub.s32 32, %v3135_v42  ;;  %v3137_v62 = vshll.u32 %v15554_v29, %v3135_v42  ;;  %20395 = vst [vmem:[#allocation28_spill] sm:$0xff] %v15614_v36  ;;  %v15619_v50 = vpop.permute.xlu0 %4790 }
 0x300   :  { %v3058_v38 = vsel %vm3056_vm4, %v12119_v37, %v3057_v20  ;;  %v3140_v23 = vsub.s32 4294967266, %v3135_v42  ;;  %vm3224_vm15 = vc.u32 %v15592_v34, %v15585_v53  ;;  %v3225_v19 = vadd.s32 1, %v15586_v40  ;;  %20396 = vst [vmem:[#allocation29_spill] sm:$0xff] %v15619_v50 }
 0x301   :  { %v11706_v33 = vpop.f32.mrb[18].mxu1  ;;  %v3062_v1 = vsel %vm3055_vm7, %v3058_v38, %v3061_v59  ;;  %vm3066_vm2 = vcmp.lt.s32.totalorder %v15206_v41, 0  ;;  %v3138_v37 = vshrl.u32 %v3120_v28, %v3136_v3  ;;  %v3278_v29 = vor.u32 8388608, %v15596_v6 }
 0x302   :  { %v15602_v0 = vpop.f32.mrb[19].mxu1  ;;  %v3063_v45 = vsel %vm3053_vm9, nan, %v3062_v1  ;;  %v3141_v58 = vadd.s32 127, %v3140_v23  ;;  %v3226_v4 = vsel %vm3224_vm15, %v3225_v19, %v15586_v40  ;;  %v3284_v26 = vand.u32 31, %v3282_v57 }
 0x303   :  { %11717 = vmatmul.mubr.msk.f32.gmra.mrb[26].mxu1 %vm20282_vm0, %v3063_v45  ;;  %v15625_v16 = vadd.f32 %v15514_v48, %v11706_v33  ;;  %v20397_v35 = vand.u32 2147483647, %v15206_v41  ;;  %v3139_v20 = vor.u32 %v3138_v37, %v3137_v62  ;;  %v3150_v59 = vsub.s32 4, %v15534_v30  ;;  %v101_v62 = vld [vmem:[%s20290_s29 + $0xf8] sm:$0xff]  ;;  %v15646_v37 = vpop.permute.xlu1 %4982 }
 0x304   :  { %v3142_v28 = vshll.u32 %v3141_v58, 23  ;;  %v3227_v42 = vadd.s32 %v3226_v4, %v3222_v12  ;;  %v15634_v38 = vshrl.u32 %v3282_v57, 5  ;;  %v3285_v40 = vsub.s32 32, %v3284_v26  ;;  %20400 = vst [vmem:[#allocation30_spill] sm:$0xff] %v15646_v37 }
 0x305   :  { %vm15629_vm3 = vcmp.le.f32.partialorder %v20397_v35, 0.7853982  ;;  %v3287_v6 = vshll.u32 %v20350_v21, %v3284_v26  ;;  %v3290_v3 = vshll.u32 %v20351_v60, %v3284_v26  ;;  %v3146_v33 = vcvt.s32.f32 %v3139_v20 }
 0x306   :  { %v3143_v48 = vor.u32 4788187, %v3142_v28  ;;  %v3228_v23 = vadd.s32 536870912, %v3227_v42  ;;  %v3296_v1 = vshll.u32 %v20353_v44, %v3284_v26  ;;  %v3288_v19 = vshrl.u32 %v20351_v60, %v3285_v40  ;;  %v15654_v28 = vpop.permute.xlu0 %4884 }
 0x307   :  { %v3291_v12 = vshrl.u32 %v20352_v22, %v3285_v40  ;;  %v3293_v57 = vshll.u32 %v20352_v22, %v3284_v26  ;;  %v3294_v45 = vshrl.u32 %v20353_v44, %v3285_v40  ;;  %v3151_v4 = vsel %vm3066_vm2, %v3150_v59, %v15534_v30  ;;  %20401 = vst [vmem:[#allocation31_spill] sm:$0xff] %v15654_v28 }
 0x308   :  { %v3144_v58 = vand.u32 2147483647, %v3143_v48  ;;  %v15651_v35 = vshrl.u32 %v3228_v23, 30  ;;  %v3297_v20 = vshrl.u32 %v20354_v10, %v3285_v40  ;;  %v3289_v46 = vor.u32 %v3288_v19, %v3287_v6 }
 0x309   :  { %v3299_v25 = vshll.u32 %v20354_v10, %v3284_v26  ;;  %v3300_v13 = vshrl.u32 %v20355_v7, %v3285_v40  ;;  %v140_v39 = vmul.f32 %v15341_v51, %v101_v62  ;;  %v3292_v50 = vor.u32 %v3291_v12, %v3290_v3 }
 0x30a   :  { %v3147_v36 = vmul.f32 %v3146_v33, %v3144_v58  ;;  %v3230_v48 = vshll.u32 %v15651_v35, 30  ;;  %v3298_v37 = vor.u32 %v3297_v20, %v3296_v1  ;;  %v3286_v30 = vshrl.u32 %v20350_v21, %v3285_v40  ;;  %v15674_v1 = vpop.permute.xlu1 %4788  ;;  %v15682_v19 = vpop.permute.xlu0 %4980 }
 0x30b   :  { %v3295_v59 = vor.u32 %v3294_v45, %v3293_v57  ;;  %vm3302_vm5 = vcmp.lt.s32.totalorder %v15634_v38, 1  ;;  %vm3305_vm6 = vcmp.lt.s32.totalorder %v15634_v38, 4  ;;  %vm3304_vm4 = vcmp.lt.s32.totalorder %v15634_v38, 3  ;;  %20402 = vst [vmem:[#allocation32_spill] sm:$0xff] %v15674_v1  ;;  %20403 = vst [vmem:[#allocation33_spill] sm:$0xff] %v15682_v19 }
 0x30c   :  { %v3148_v23 = vxor.u32 2147483648, %v3147_v36  ;;  %v15663_v6 = vsub.s32 %v3227_v42, %v3230_v48  ;;  %v15666_v26 = vshll.u32 %v3278_v29, 8  ;;  %v3153_v51 = vsel %vm15629_vm3, 0, %v3151_v4 }
 0x30d   :  { %v3301_v33 = vor.u32 %v3300_v13, %v3299_v25  ;;  %v3307_v3 = vsel %vm3305_vm6, %v3295_v59, 2102212464  ;;  %v3311_v40 = vsel %vm3305_vm6, %v3298_v37, 920167782  ;;  %vm3303_vm7 = vcmp.lt.s32.totalorder %v15634_v38, 2 }
 0x30e   :  { %v3149_v42 = vsel %vm3066_vm2, %v3148_v23, %v3147_v36  ;;  %v3233_v62 = vsub.s32 0, %v15663_v6  ;;  %v3310_v29 = vsel %vm3302_vm5, %v3289_v46, %v3292_v50  ;;  %v3306_v25 = vsel %vm3302_vm5, %v3286_v30, %v3289_v46  ;;  %v12212_v36 = vld [vmem:[%s20292_s23] ss:$0 sm:$0xff] }
 0x30f   :  { %v3152_v13 = vsel %vm15629_vm3, %v15206_v41, %v3149_v42  ;;  %v3312_v12 = vsel %vm3304_vm4, %v3295_v59, %v3311_v40  ;;  %v15694_v57 = vadd.f32 %v12212_v36, %v140_v39  ;;  %v3308_v58 = vsel %vm3304_vm4, %v3292_v50, %v3307_v3  ;;  %v15716_v3 = vpop.permute.xlu1 %4794  ;;  %v15731_v38 = vld [vmem:[%s19996_s10] ss:$0 sm:$0xff] }
 0x310   :  { %12122 = vcosq.f32 %v3152_v13  ;;  %v11478_v45 = vmin.u32 %v3233_v62, %v15663_v6  ;;  %v3314_v9 = vsel %vm3302_vm5, %v3292_v50, %v3295_v59  ;;  %v3313_v46 = vsel %vm3303_vm7, %v3310_v29, %v3312_v12  ;;  %v15723_v62 = vpop.permute.xlu0 %4888 }
 0x311   :  { %12124 = vsinq.f32 %v3152_v13  ;;  %v3315_v4 = vsel %vm3305_vm6, %v3301_v33, 1326507024  ;;  %v15708_v48 = vmul.u32.u64.low %v15666_v26, %v3313_v46  ;;  %v15709_v30 = vmul.u32.u64.high %v15666_v26, %v3313_v46, %v15708_v48  ;;  %20404 = vst [vmem:[#allocation34_spill] sm:$0xff] %v15723_v62 }
 0x312   :  { %v3235_v20 = vclz %v11478_v45  ;;  %v3316_v39 = vsel %vm3304_vm4, %v3298_v37, %v3315_v4  ;;  %v3157_v23 = vand.u32 3, %v3153_v51  ;;  %v3309_v50 = vsel %vm3303_vm7, %v3306_v25, %v3308_v58 }
 0x313   :  { %v3317_v59 = vsel %vm3303_vm7, %v3314_v9, %v3316_v39  ;;  %v3376_v37 = vand.u32 2139095040, %v15694_v57  ;;  %vm3156_vm8 = vweird.f32 %v15206_v41  ;;  %v3223_v51 = vadd.s32 %v15585_v53, %v15592_v34  ;;  %v15743_v34 = vld [vmem:[%s19999_s13] ss:$0 sm:$0xff]  ;;  %v15757_v46 = vpop.permute.xlu1 %4890 }
 0x314   :  { %v11479_v40 = vadd.s32 4294967294, %v3235_v20  ;;  %v15719_v33 = vmul.u32.u64.low %v15666_v26, %v3317_v59  ;;  %v15720_v42 = vmul.u32.u64.high %v15666_v26, %v3317_v59, %v15719_v33  ;;  %v4277_v29 = vadd.f32 %v15731_v38, %v15625_v16  ;;  %20406 = vst [vmem:[#allocation36_spill] sm:$0xff] %v15757_v46  ;;  %v15761_v59 = vpop.permute.xlu0 %4984 }
 0x315   :  { %vm3169_vm9 = vcmp.lt.s32.totalorder %v15361_v31, 0  ;;  %v3328_v13 = vadd.s32 1, %v15709_v30  ;;  %v3377_v25 = vshrl.u32 %v3376_v37, 23  ;;  %v4183_v12 = vadd.f32 %v15516_v18, %v15602_v0  ;;  %20407 = vst [vmem:[#allocation37_spill] sm:$0xff] %v15761_v59 }
 0x316   :  { %vm11480_vm10 = vcmp.lt.s32.totalorder %v11479_v40, 0  ;;  %vm3159_vm11 = vcmp.eq.s32.totalorder %v3157_v23, 0  ;;  %v3325_v53 = vmul.u32 %v15666_v26, %v3309_v50  ;;  %v15746_v16 = vmul.f32 %v15743_v34, %v4277_v29 }
 0x317   :  { %v3238_v36 = vsel %vm11480_vm10, 0, %v11479_v40  ;;  %vm3162_vm12 = vcmp.eq.s32.totalorder %v3157_v23, 2  ;;  %vm3327_vm13 = vc.u32 %v15720_v42, %v15708_v48  ;;  %v11485_v0 = vadd.s32 4294967169, %v3377_v25 }
 0x318   :  { %20405 = vst [vmem:[#allocation35_spill] sm:$0xff] %v15746_v16  ;;  %v3239_v45 = vsub.s32 32, %v3238_v36  ;;  %v3240_v58 = vshll.u32 %v15663_v6, %v3238_v36  ;;  %v3243_v9 = vsub.s32 4294967266, %v3238_v36  ;;  %v4276_v26 = vadd.f32 %v15731_v38, %v4183_v12  ;;  %5018 = vrot.lane.b32.xlu0 %v15746_v16, %s12251_s27  ;;  %4826 = vrot.lane.b32.xlu1 %v15746_v16, %s12250_s11 }
 0x319   :  { %v3253_v39 = vsub.s32 4, %v15651_v35  ;;  %v3329_v50 = vsel %vm3327_vm13, %v3328_v13, %v15709_v30  ;;  %v3383_v29 = vadd.s32 1, %v11485_v0  ;;  %vm3158_vm14 = vcmp.lt.s32.totalorder %v3157_v23, 2 }
 0x31a   :  { %v12123_v4 = vpop.eup %12122  ;;  %v3241_v20 = vshrl.u32 %v3223_v51, %v3239_v45  ;;  %v3244_v6 = vadd.s32 127, %v3243_v9  ;;  %v3330_v37 = vadd.s32 %v3329_v50, %v3325_v53  ;;  %v15764_v25 = vmul.f32 %v15743_v34, %v4276_v26  ;;  %v15779_v50 = vpop.permute.xlu1 %4986 }
 0x31b   :  { %v12125_v40 = vpop.eup %12124  ;;  %v3163_v33 = vxor.u32 2147483648, %v12123_v4  ;;  %v20409_v9 = vand.u32 2147483647, %v15694_v57  ;;  %vm3384_vm15 = vcmp.gt.s32.totalorder %v3383_v29, 0  ;;  %v3254_v26 = vsel %vm3169_vm9, %v3253_v39, %v15651_v35 }
 0x31c   :  { %20408 = vst [vmem:[#allocation38_spill] sm:$0xff] %v15764_v25  ;;  %v3160_v12 = vxor.u32 2147483648, %v12125_v40  ;;  %v3242_v36 = vor.u32 %v3241_v20, %v3240_v58  ;;  %v3245_v18 = vshll.u32 %v3244_v6, 23  ;;  %v3331_v45 = vadd.s32 536870912, %v3330_v37  ;;  %4824 = vrot.lane.b32.xlu0 %v15764_v25, %s12250_s11  ;;  %4922 = vrot.lane.b32.xlu1 %v15746_v16, %s12249_s7 }
 0x31d   :  { %v3164_v51 = vsel %vm3162_vm12, %v3163_v33, %v12125_v40  ;;  %v3380_v62 = vand.u32 8388607, %v20409_v9  ;;  %v3385_v0 = vsel %vm3384_vm15, %v3383_v29, 0  ;;  %v15783_v9 = vpop.permute.xlu0 %4796  ;;  %v20411_v23 = vand.u32 2147483647, %v15361_v31 }
 0x31e   :  { %v3161_v30 = vsel %vm3159_vm11, %v12123_v4, %v3160_v12  ;;  %v3246_v13 = vor.u32 4788187, %v3245_v18  ;;  %v3249_v53 = vcvt.s32.f32 %v3242_v36  ;;  %v15777_v20 = vshrl.u32 %v3331_v45, 30  ;;  %20410 = vst [vmem:[#allocation39_spill] sm:$0xff] %v15783_v9 }
 0x31f   :  { %v3165_v58 = vsel %vm3158_vm14, %v3161_v30, %v3164_v51  ;;  %v3387_v6 = vand.u32 31, %v3385_v0  ;;  %vm15788_vm2 = vcmp.le.f32.partialorder %v20411_v23, 0.7853982  ;;  %v3381_v29 = vor.u32 8388608, %v3380_v62 }
 0x320   :  { %v3166_v40 = vsel %vm3156_vm8, nan, %v3165_v58  ;;  %v3247_v33 = vand.u32 2147483647, %v3246_v13  ;;  %v3333_v35 = vshll.u32 %v15777_v20, 30  ;;  %4920 = vrot.lane.b32.xlu0 %v15764_v25, %s12249_s7  ;;  %v3256_v41 = vsel %vm15788_vm2, 0, %v3254_v26 }
 0x321   :  { %11719 = vmatprep.mubr.msk.f32.mxu1 %vm20282_vm0, %v3166_v40  ;;  %v3388_v4 = vsub.s32 32, %v3387_v6  ;;  %v3390_v12 = vshll.u32 %v20350_v21, %v3387_v6  ;;  %v3393_v45 = vshll.u32 %v20351_v60, %v3387_v6  ;;  %v3396_v30 = vshll.u32 %v20352_v22, %v3387_v6  ;;  %v15824_v28 = vpop.permute.xlu0 %4892 }
 0x322   :  { %v3250_v39 = vmul.f32 %v3249_v53, %v3247_v33  ;;  %v15798_v36 = vsub.s32 %v3330_v37, %v3333_v35  ;;  %v3399_v53 = vshll.u32 %v20353_v44, %v3387_v6  ;;  %v15806_v33 = vpop.f32.mrb[26].mxu0  ;;  %v15808_v62 = vand.u32 3, %v3256_v41  ;;  %20415 = vst [vmem:[#allocation41_spill] sm:$0xff] %v15824_v28 }
 0x323   :  { %v3391_v51 = vshrl.u32 %v20351_v60, %v3388_v4  ;;  %v3394_v58 = vshrl.u32 %v20352_v22, %v3388_v4  ;;  %v3397_v40 = vshrl.u32 %v20353_v44, %v3388_v4  ;;  %v3386_v26 = vshrl.u32 %v3385_v0, 5  ;;  %v15814_v60 = vpop.permute.xlu1 %4792  ;;  %v15816_v35 = vpop.f32.mrb[27].mxu0 }
 0x324   :  { %v3251_v13 = vxor.u32 2147483648, %v3250_v39  ;;  %v3336_v37 = vsub.s32 0, %v15798_v36  ;;  %v3400_v23 = vshrl.u32 %v20354_v10, %v3388_v4  ;;  %5016 = vrot.lane.b32.xlu0 %v15764_v25, %s12251_s27  ;;  %20414 = vst [vmem:[#allocation40_spill] sm:$0xff] %v15814_v60  ;;  %v3389_v44 = vshrl.u32 %v20350_v21, %v3388_v4 }
 0x325   :  { %v3402_v41 = vshll.u32 %v20354_v10, %v3387_v6  ;;  %v15822_v59 = vshll.u32 %v3381_v29, 8  ;;  %v3392_v60 = vor.u32 %v3391_v51, %v3390_v12  ;;  %v3395_v19 = vor.u32 %v3394_v58, %v3393_v45 }
 0x326   :  { %v3252_v22 = vsel %vm3169_vm9, %v3251_v13, %v3250_v39  ;;  %v11482_v1 = vmin.u32 %v3336_v37, %v15798_v36  ;;  %v3398_v16 = vor.u32 %v3397_v40, %v3396_v30  ;;  %v3401_v46 = vor.u32 %v3400_v23, %v3399_v53 }
 0x327   :  { %v3255_v0 = vsel %vm15788_vm2, %v15361_v31, %v3252_v22  ;;  %v3403_v39 = vshrl.u32 %v20355_v7, %v3388_v4  ;;  %vm3405_vm3 = vcmp.lt.s32.totalorder %v3386_v26, 1  ;;  %vm3406_vm5 = vcmp.lt.s32.totalorder %v3386_v26, 2  ;;  %v15831_v37 = vpop.permute.xlu1 %4798  ;;  %v15835_v4 = vpop.permute.xlu0 %4988 }
 0x328   :  { %12126 = vcosq.f32 %v3255_v0  ;;  %v3338_v21 = vclz %v11482_v1  ;;  %vm3407_vm6 = vcmp.lt.s32.totalorder %v3386_v26, 3  ;;  %vm3408_vm4 = vcmp.lt.s32.totalorder %v3386_v26, 4  ;;  %20416 = vst [vmem:[#allocation42_spill] sm:$0xff] %v15831_v37  ;;  %20417 = vst [vmem:[#allocation43_spill] sm:$0xff] %v15835_v4 }
 0x329   :  { %12128 = vsinq.f32 %v3255_v0  ;;  %v3404_v10 = vor.u32 %v3403_v39, %v3402_v41  ;;  %v3409_v6 = vsel %vm3405_vm3, %v3389_v44, %v3392_v60  ;;  %v3410_v18 = vsel %vm3408_vm4, %v3398_v16, 2102212464 }
 0x32a   :  { %v11483_v29 = vadd.s32 4294967294, %v3338_v21  ;;  %v3413_v13 = vsel %vm3405_vm3, %v3392_v60, %v3395_v19  ;;  %v3414_v22 = vsel %vm3408_vm4, %v3401_v46, 920167782  ;;  %v3411_v12 = vsel %vm3407_vm6, %v3395_v19, %v3410_v18 }
 0x32b   :  { %v3415_v51 = vsel %vm3407_vm6, %v3398_v16, %v3414_v22  ;;  %v3417_v45 = vsel %vm3405_vm3, %v3395_v19, %v3398_v16  ;;  %v3418_v7 = vsel %vm3408_vm4, %v3404_v10, 1326507024  ;;  %v3326_v1 = vadd.s32 %v15708_v48, %v15720_v42  ;;  %v15857_v18 = vpop.permute.xlu1 %4894 }
 0x32c   :  { %vm11484_vm7 = vcmp.lt.s32.totalorder %v11483_v29, 0  ;;  %v3416_v30 = vsel %vm3406_vm5, %v3413_v13, %v3415_v51  ;;  %v3419_v58 = vsel %vm3407_vm6, %v3401_v46, %v3418_v7  ;;  %v3412_v48 = vsel %vm3406_vm5, %v3409_v6, %v3411_v12  ;;  %20418 = vst [vmem:[#allocation44_spill] sm:$0xff] %v15857_v18 }
 0x32d   :  { %v3341_v40 = vsel %vm11484_vm7, 0, %v11483_v29  ;;  %v3420_v53 = vsel %vm3406_vm5, %v3417_v45, %v3419_v58  ;;  %v15843_v23 = vmul.u32.u64.low %v15822_v59, %v3416_v30  ;;  %v15844_v60 = vmul.u32.u64.high %v15822_v59, %v3416_v30, %v15843_v23 }
 0x32e   :  { %v3342_v16 = vsub.s32 32, %v3341_v40  ;;  %v3343_v44 = vshll.u32 %v15798_v36, %v3341_v40  ;;  %v3346_v41 = vsub.s32 4294967266, %v3341_v40  ;;  %vm3259_vm8 = vweird.f32 %v15361_v31 }
 0x32f   :  { %v15850_v0 = vmul.u32.u64.low %v15822_v59, %v3420_v53  ;;  %v15851_v39 = vmul.u32.u64.high %v15822_v59, %v3420_v53, %v15850_v0  ;;  %vm3261_vm9 = vcmp.lt.s32.totalorder %v15808_v62, 2  ;;  %vm3265_vm10 = vcmp.eq.s32.totalorder %v15808_v62, 2 }
 0x330   :  { %v3344_v10 = vshrl.u32 %v3326_v1, %v3342_v16  ;;  %v3347_v29 = vadd.s32 127, %v3346_v41  ;;  %v3428_v26 = vmul.u32 %v15822_v59, %v3412_v48  ;;  %v3431_v6 = vadd.s32 1, %v15844_v60  ;;  %v15879_v41 = vpop.permute.xlu1 %4990 }
 0x331   :  { %vm3262_vm11 = vcmp.eq.s32.totalorder %v15808_v62, 0  ;;  %vm3430_vm12 = vc.u32 %v15851_v39, %v15843_v23  ;;  %20420 = vst [vmem:[#allocation46_spill] sm:$0xff] %v15879_v41  ;;  %vm3272_vm13 = vcmp.lt.s32.totalorder %v15512_v8, 0  ;;  %vm3362_vm6 = vweird.f32 %v15512_v8 }
 0x332   :  { %v11709_v19 = vpop.f32.mrb[20].mxu1  ;;  %v12127_v36 = vpop.eup %12126  ;;  %v3345_v12 = vor.u32 %v3344_v10, %v3343_v44  ;;  %v3348_v51 = vshll.u32 %v3347_v29, 23  ;;  %v3432_v40 = vsel %vm3430_vm12, %v3431_v6, %v15844_v60  ;;  %v3356_v29 = vsub.s32 4, %v15777_v20 }
 0x333   :  { %v3870_v42 = vpop.f32.mrb[21].mxu1  ;;  %v4198_v46 = vadd.f32 %v15549_v14, %v11709_v19  ;;  %v15863_v14 = vpop.permute.xlu0 %4800  ;;  %v3266_v22 = vxor.u32 2147483648, %v12127_v36  ;;  %v3433_v19 = vadd.s32 %v3432_v40, %v3428_v26  ;;  %vm3375_vm4 = vcmp.lt.s32.totalorder %v15694_v57, 0 }
 0x334   :  { %v4193_v21 = vadd.f32 %v15558_v27, %v3870_v42  ;;  %20419 = vst [vmem:[#allocation45_spill] sm:$0xff] %v15863_v14  ;;  %v12129_v27 = vpop.eup %12128  ;;  %v3349_v30 = vor.u32 4788187, %v3348_v51  ;;  %v3352_v58 = vcvt.s32.f32 %v3345_v12  ;;  %v15904_v6 = vpop.permute.xlu1 %4802  ;;  %v3357_v12 = vsel %vm3272_vm13, %v3356_v29, %v15777_v20 }
 0x335   :  { %v4279_v13 = vadd.f32 %v15731_v38, %v4198_v46  ;;  %v3263_v45 = vxor.u32 2147483648, %v12129_v27  ;;  %v3267_v1 = vsel %vm3265_vm10, %v3266_v22, %v12129_v27  ;;  %v3434_v42 = vadd.s32 536870912, %v3433_v19  ;;  %20426 = vst [vmem:[#allocation49_spill] sm:$0xff] %v15904_v6 }
 0x336   :  { %v4278_v59 = vadd.f32 %v15731_v38, %v4193_v21  ;;  %v3350_v44 = vand.u32 2147483647, %v3349_v30  ;;  %v20423_v21 = vand.u32 2147483647, %v15512_v8  ;;  %v3429_v20 = vadd.s32 %v15843_v23, %v15851_v39 }
 0x337   :  { %v15869_v7 = vmul.f32 %v15743_v34, %v4279_v13  ;;  %v3264_v53 = vsel %vm3262_vm11, %v12127_v36, %v3263_v45  ;;  %v15886_v0 = vpop.permute.xlu0 %4896  ;;  %v15890_v62 = vshrl.u32 %v3434_v42, 30  ;;  %vm3465_vm11 = vweird.f32 %v15694_v57 }
 0x338   :  { %v3268_v16 = vsel %vm3261_vm9, %v3264_v53, %v3267_v1  ;;  %v15884_v60 = vmul.f32 %v15743_v34, %v4278_v59  ;;  %20422 = vst [vmem:[#allocation48_spill] sm:$0xff] %v15886_v0  ;;  %v3353_v46 = vmul.f32 %v3352_v58, %v3350_v44  ;;  %vm15896_vm14 = vcmp.le.f32.partialorder %v20423_v21, 0.7853982  ;;  %v15918_v1 = vpop.permute.xlu1 %4898 }
 0x339   :  { %5022 = vrot.lane.b32.xlu0 %v15869_v7, %s12251_s27  ;;  %4830 = vrot.lane.b32.xlu1 %v15869_v7, %s12250_s11  ;;  %v3269_v48 = vsel %vm3259_vm8, nan, %v3268_v16  ;;  %v3436_v36 = vshll.u32 %v15890_v62, 30  ;;  %v3359_v45 = vsel %vm15896_vm14, 0, %v3357_v12  ;;  %20428 = vst [vmem:[#allocation51_spill] sm:$0xff] %v15918_v1  ;;  %vm9558_vm12 = vcmask 1041409  }
 0x33a   :  { %20421 = vst [vmem:[#allocation47_spill] sm:$0xff] %v15884_v60  ;;  %11720 = vmatmul.mubr.msk.f32.gmra.mrb[28].mxu1 %vm20282_vm0, %v3269_v48  ;;  %v3354_v10 = vxor.u32 2147483648, %v3353_v46  ;;  %v3363_v40 = vand.u32 3, %v3359_v45 }
 0x33b   :  { %v3437_v27 = vsub.s32 %v3433_v19, %v3436_v36  ;;  %v15911_v22 = vpop.permute.xlu0 %4992 }
 0x33c   :  { %v3355_v26 = vsel %vm3272_vm13, %v3354_v10, %v3353_v46  ;;  %20427 = vst [vmem:[#allocation50_spill] sm:$0xff] %v15911_v22  ;;  %vm3365_vm2 = vcmp.eq.s32.totalorder %v3363_v40, 0  ;;  %vm3368_vm3 = vcmp.eq.s32.totalorder %v3363_v40, 2  ;;  %v15924_v44 = vpop.permute.xlu1 %4994  ;;  %vm3364_vm5 = vcmp.lt.s32.totalorder %v3363_v40, 2 }
 0x33d   :  { %4828 = vrot.lane.b32.xlu0 %v15884_v60, %s12250_s11  ;;  %4926 = vrot.lane.b32.xlu1 %v15869_v7, %s12249_s7  ;;  %v3358_v13 = vsel %vm15896_vm14, %v15512_v8, %v3355_v26  ;;  %v3439_v51 = vsub.s32 0, %v3437_v27  ;;  %20430 = vst [vmem:[#allocation53_spill] sm:$0xff] %v15924_v44  ;;  %v20435_v40 = vand.u32 2147483647, %v15694_v57  ;;  %v4404_v44 = vcombine.high %v15492_v5, %v15428_v47 }
 0x33e   :  { %12130 = vcosq.f32 %v3358_v13  ;;  %vm9560_vm13 = vcmask 1042434   ;;  %vm9562_vm14 = vcmask 1043459  }
 0x33f   :  { %12132 = vsinq.f32 %v3358_v13  ;;  %v11486_v59 = vmin.u32 %v3439_v51, %v3437_v27  ;;  %v15920_v58 = vpop.permute.xlu0 %4804  ;;  %vm15940_vm7 = vcmp.le.f32.partialorder %v20435_v40, 0.7853982 }
 0x340   :  { %20429 = vst [vmem:[#allocation52_spill] sm:$0xff] %v15920_v58 }
 0x341   :  { %4924 = vrot.lane.b32.xlu0 %v15884_v60, %s12249_s7  ;;  %5020 = vrot.lane.b32.xlu1 %v15884_v60, %s12251_s27  ;;  %v3441_v30 = vclz %v11486_v59  ;;  %v15930_v59 = vpop.permute.xlu1 %4806 }
 0x342   :  { %20432 = vst [vmem:[#allocation55_spill] sm:$0xff] %v15930_v59 }
 0x343   :  { %v11487_v53 = vadd.s32 4294967294, %v3441_v30  ;;  %v15926_v10 = vpop.permute.xlu0 %4900 }
 0x344   :  { %20431 = vst [vmem:[#allocation54_spill] sm:$0xff] %v15926_v10 }
 0x345   :  { %vm11488_vm15 = vcmp.lt.s32.totalorder %v11487_v53, 0  ;;  %v15936_v8 = vpop.permute.xlu1 %4902 }
 0x346   :  { %v3444_v16 = vsel %vm11488_vm15, 0, %v11487_v53  ;;  %20434 = vst [vmem:[#allocation57_spill] sm:$0xff] %v15936_v8  ;;  %vm9564_vm15 = vcmask 1044484  }
 0x347   :  { %v3445_v46 = vsub.s32 32, %v3444_v16  ;;  %v3446_v21 = vshll.u32 %v3437_v27, %v3444_v16  ;;  %v3449_v31 = vsub.s32 4294967266, %v3444_v16  ;;  %v15933_v53 = vpop.permute.xlu0 %4996 }
 0x348   :  { %v12131_v19 = vpop.eup %12130  ;;  %20433 = vst [vmem:[#allocation56_spill] sm:$0xff] %v15933_v53 }
 0x349   :  { %v12133_v48 = vpop.eup %12132  ;;  %v3369_v42 = vxor.u32 2147483648, %v12131_v19  ;;  %v3447_v23 = vshrl.u32 %v3429_v20, %v3445_v46  ;;  %v3450_v39 = vadd.s32 127, %v3449_v31 }
 0x34a   :  { %v3366_v29 = vxor.u32 2147483648, %v12133_v48 }
 0x34b   :  { %v3370_v36 = vsel %vm3368_vm3, %v3369_v42, %v12133_v48  ;;  %v3448_v12 = vor.u32 %v3447_v23, %v3446_v21  ;;  %v3451_v51 = vshll.u32 %v3450_v39, 23  ;;  %v3459_v48 = vsub.s32 4, %v15890_v62  ;;  %v15945_v42 = vpop.permute.xlu0 %4808 }
 0x34c   :  { %v3367_v26 = vsel %vm3365_vm2, %v12131_v19, %v3366_v29  ;;  %v15951_v29 = vpop.permute.xlu1 %4998  ;;  %vm9566_vm2 = vcmask 1045509   ;;  %vm9568_vm3 = vcmask 1046534  }
 0x34d   :  { %v3371_v13 = vsel %vm3364_vm5, %v3367_v26, %v3370_v36  ;;  %v3452_v27 = vor.u32 4788187, %v3451_v51  ;;  %v3455_v30 = vcvt.s32.f32 %v3448_v12  ;;  %v3460_v31 = vsel %vm3375_vm4, %v3459_v48, %v15890_v62  ;;  %20438 = vst [vmem:[#allocation58_spill] sm:$0xff] %v15951_v29 }
 0x34e   :  { %v3372_v45 = vsel %vm3362_vm6, nan, %v3371_v13  ;;  %v3462_v23 = vsel %vm15940_vm7, 0, %v3460_v31  ;;  %vm9570_vm5 = vcmask 1047559  }
 0x34f   :  { %11722 = vmatprep.mubr.msk.f32.mxu1 %vm20282_vm0, %v3372_v45  ;;  %v3453_v16 = vand.u32 2147483647, %v3452_v27  ;;  %v15953_v36 = vpop.permute.xlu0 %4904  ;;  %v3466_v12 = vand.u32 3, %v3462_v23  ;;  %v3599_v23 = vld [vmem:[%s20293_s28 + $0xe0] sm:$0xff] }
 0x350   :  { %v15960_v45 = vpop.permute.xlu1 %4810 }
 0x351   :  { %v3456_v1 = vmul.f32 %v3455_v30, %v3453_v16  ;;  %20439 = vst [vmem:[#allocation59_spill] sm:$0xff] %v15960_v45  ;;  %vm3471_vm8 = vcmp.eq.s32.totalorder %v3466_v12, 2  ;;  %vm3468_vm9 = vcmp.eq.s32.totalorder %v3466_v12, 0  ;;  %vm3467_vm10 = vcmp.lt.s32.totalorder %v3466_v12, 2  ;;  %v3602_v12 = vld [vmem:[%s20293_s28 + $0xf8] sm:$0xff] }
 0x353   :  { %v3457_v19 = vxor.u32 2147483648, %v3456_v1  ;;  %v15966_v30 = vpop.permute.xlu0 %5000 }
 0x354   :  { %v15976_v48 = vpop.permute.xlu1 %4906 }
 0x355   :  { %v3458_v46 = vsel %vm3375_vm4, %v3457_v19, %v3456_v1  ;;  %20440 = vst [vmem:[#allocation60_spill] sm:$0xff] %v15976_v48 }
 0x356   :  { %v3461_v21 = vsel %vm15940_vm7, %v15694_v57, %v3458_v46  ;;  %v3600_v57 = vld [vmem:[%s20293_s28 + $0xe8] sm:$0xff] }
 0x357   :  { %12134 = vcosq.f32 %v3461_v21 }
 0x358   :  { %12136 = vsinq.f32 %v3461_v21  ;;  %v15982_v21 = vpop.permute.xlu0 %4812 }
 0x359   :  { %20441 = vst [vmem:[#allocation61_spill] sm:$0xff] %v15982_v21 }
 0x361   :  { %v12135_v16 = vpop.eup %12134 }
 0x365   :  { %v11712_v39 = vpop.f32.mrb[22].mxu1 }
 0x366   :  { %v4208_v26 = vadd.f32 %v15563_v61, %v11712_v39  ;;  %v3880_v13 = vpop.f32.mrb[23].mxu1  ;;  %v12137_v61 = vpop.eup %12136 }
 0x367   :  { %v4203_v1 = vadd.f32 %v15568_v56, %v3880_v13  ;;  %v3472_v56 = vxor.u32 2147483648, %v12135_v16  ;;  %v3469_v40 = vxor.u32 2147483648, %v12137_v61  ;;  %v15999_v13 = vpop.permute.xlu1 %5002 }
 0x368   :  { %v4281_v51 = vadd.f32 %v15731_v38, %v4208_v26  ;;  %v3601_v26 = vld [vmem:[%s20293_s28 + $0xf0] sm:$0xff]  ;;  %20442 = vst [vmem:[#allocation62_spill] sm:$0xff] %v15999_v13 }
 0x369   :  { %v4280_v27 = vadd.f32 %v15731_v38, %v4203_v1  ;;  %v3473_v19 = vsel %vm3471_vm8, %v3472_v56, %v12137_v61  ;;  %v3470_v46 = vsel %vm3468_vm9, %v12135_v16, %v3469_v40  ;;  %v16001_v1 = vpop.permute.xlu0 %4908  ;;  %v12252_v16 = vmov 1983009808   ;;  %v20450_v13 = vld [vmem:[#allocation6_spill] sm:$0xff] }
 0x36a   :  { %v15963_v62 = vmul.f32 %v15743_v34, %v4281_v51  ;;  %v3474_v31 = vsel %vm3467_vm10, %v3470_v46, %v3473_v19  ;;  %20443 = vst [vmem:[#allocation63_spill] sm:$0xff] %v16001_v1  ;;  %v4322_v61 = vunpack.c.l.s4 %v12252_v16  ;;  %v20085_v56 = vlaneseq }
 0x36b   :  { %v15973_v20 = vmul.f32 %v15743_v34, %v4280_v27  ;;  %v3475_v39 = vsel %vm3465_vm11, nan, %v3474_v31  ;;  %v16009_v51 = vpop.permute.xlu1 %4814  ;;  %v4387_v48 = vcombine.low %v20450_v13, %v15404_v55 }
 0x36c   :  { %5026 = vrot.lane.b32.xlu0 %v15963_v62, %s12251_s27  ;;  %4834 = vrot.lane.b32.xlu1 %v15963_v62, %s12250_s11  ;;  %20444 = vst [vmem:[#allocation64_spill] sm:$0xff] %v16009_v51  ;;  %v4323_v40 = vunpack.c.0.s8 %v4322_v61  ;;  %v16014_v19 = vshrl.u32 %v20085_v56, 7  ;;  %v4403_v61 = vcombine.low %v15492_v5, %v15428_v47 }
 0x36d   :  { %11723 = vmatmul.mubr.msk.f32.gmra.mrb[30].mxu1 %vm20282_vm0, %v3475_v39  ;;  %v16011_v27 = vpop.permute.xlu0 %5004 }
 0x36e   :  { %11769 = vmatprep.mubr.msk.f32.mxu1 %vm3929_vm1, %v3599_v23  ;;  %20445 = vst [vmem:[#allocation65_spill] sm:$0xff] %v16011_v27  ;;  %20446 = vst [vmem:[#allocation66_spill] sm:$0xff] %v16014_v19  ;;  %v20448_v23 = vld [vmem:[#allocation11_spill] sm:$0xff] }
 0x36f   :  { %v16016_v46 = vpop.permute.xlu1 %4910  ;;  %v4319_v39 = vcombine.low %v20448_v23, %v15537_v11 }
 0x370   :  { %4930 = vrot.lane.b32.xlu1 %v15963_v62, %s12249_s7  ;;  %4832 = vrot.lane.b32.xlu0 %v15973_v20, %s12250_s11  ;;  %20447 = vst [vmem:[#allocation67_spill] sm:$0xff] %v16016_v46 }
 0x371   :  { %11770 = vmatmul.mubr.msk.f32.vlgmr.msra.gmra.mrb[28].mxu1 %vm3929_vm1, %v3600_v57  ;;  %v16018_v31 = vpop.permute.xlu0 %4816  ;;  %v4335_v57 = vcombine.low %v15551_v52, %v15577_v54 }
 0x372   :  { %11772 = vmatprep.mubr.msk.f32.mxu1 %vm3929_vm1, %v3601_v26  ;;  %v16025_v26 = vsub.s32 %v4323_v40, %v16014_v19  ;;  %v20451_v40 = vld [vmem:[#allocation14_spill] sm:$0xff] }
 0x373   :  { %v16031_v46 = vpop.permute.xlu1 %5006  ;;  %v4533_v21 = vcombine.low %v20451_v40, %v15589_v17 }
 0x374   :  { %5024 = vrot.lane.b32.xlu1 %v15973_v20, %s12251_s27  ;;  %4928 = vrot.lane.b32.xlu0 %v15973_v20, %s12249_s7  ;;  %v4327_v56 = vrot.slane %v4319_v39, %v16025_v26  ;;  %v4343_v51 = vrot.slane %v4335_v57, %v16025_v26  ;;  %20449 = vst [vmem:[#allocation11_spill] sm:$0xff] %v16031_v46  ;;  %v16042_v39 = vpop.f32.mrb[28].mxu0 }
 0x375   :  { %11773 = vmatmul.mubr.msk.f32.gmra.mrb[30].mxu1 %vm3929_vm1, %v3602_v12  ;;  %v12253_v12 = vmov 1934713408   ;;  %v16033_v45 = vpop.permute.xlu0 %4912  ;;  %v4411_v27 = vrot.slane %v4403_v61, %v16025_v26  ;;  %v4395_v57 = vrot.slane %v4387_v48, %v16025_v26  ;;  %v4388_v48 = vcombine.high %v20450_v13, %v15404_v55 }
 0x376   :  { %v4354_v16 = vunpack.c.l.s4 %v12253_v12  ;;  %v4549_v12 = vcombine.low %v15570_v49, %v15598_v63  ;;  %v4351_v8 = vcombine.low %v4327_v56, %v4343_v51  ;;  %v4352_v10 = vcombine.high %v4327_v56, %v4343_v51 }
 0x377   :  { %v16048_v59 = vpop.permute.xlu1 %4818  ;;  %v4419_v58 = vcombine.low %v4395_v57, %v4411_v27  ;;  %vm4455_vm1 = vcmask 257024   ;;  %v4402_v55 = vrot.slane %v4388_v48, %v16025_v26  ;;  %v4617_v13 = vcombine.low %v15524_v15, %v15508_v32  ;;  %v20456_v48 = vld [vmem:[#allocation8_spill] sm:$0xff] }
 0x378   :  { %v4355_v1 = vunpack.c.0.s8 %v4354_v16  ;;  %20453 = vst [vmem:[#allocation14_spill] sm:$0xff] %v16048_v59  ;;  %v4541_v16 = vrot.slane %v4533_v21, %v16025_v26  ;;  %v4557_v29 = vrot.slane %v4549_v12, %v16025_v26  ;;  %v4420_v59 = vcombine.high %v4395_v57, %v4411_v27 }
 0x379   :  { %v16052_v6 = vpop.permute.xlu0 %5008  ;;  %v4418_v21 = vrot.slane %v4404_v44, %v16025_v26 }
 0x37a   :  { %v16046_v46 = vsub.s32 %v4355_v1, %v16014_v19  ;;  %v4565_v1 = vcombine.low %v4541_v16, %v4557_v29  ;;  %v4566_v56 = vcombine.high %v4541_v16, %v4557_v29 }
 0x37b   :  { %v16070_v5 = vpop.permute.xlu1 %4914  ;;  %v4435_v57 = vcombine.low %v4402_v55, %v4418_v21 }
 0x37c   :  { %20452 = vst [vmem:[#allocation6_spill] sm:$0xff] %v16046_v46  ;;  %v16057_v61 = vrot.slane %v4351_v8, %v16046_v46  ;;  %v16065_v19 = vrot.slane %v4352_v10, %v16046_v46  ;;  %v16068_v47 = vrot.slane %v4419_v58, %v16046_v46  ;;  %20454 = vst [vmem:[#allocation68_spill] sm:$0xff] %v16070_v5  ;;  %v16083_v10 = vpop.f32.mrb[29].mxu0 }
 0x37d   :  { %v16072_v8 = vpop.permute.xlu0 %4820  ;;  %v16078_v44 = vrot.slane %v4565_v1, %v16046_v46  ;;  %v16081_v51 = vrot.slane %v4420_v59, %v16046_v46  ;;  %v4625_v59 = vrot.slane %v4617_v13, %v16025_v26 }
 0x37e   :  { %v4456_v12 = vsel %vm4455_vm1, %v16057_v61, 0.0  ;;  %20455 = vst [vmem:[#allocation69_spill] sm:$0xff] %v16072_v8  ;;  %v4462_v58 = vsel %vm4455_vm1, %v16065_v19, 0.0  ;;  %v4480_v27 = vsel %vm4455_vm1, %v16068_v47, 0.0 }
 0x37f   :  { %v16091_v5 = vpop.permute.xlu1 %5010  ;;  %v4669_v53 = vsel %vm4455_vm1, %v16078_v44, 0.0  ;;  %v4486_v0 = vsel %vm4455_vm1, %v16081_v51, 0.0 }
 0x380   :  { %20457 = vst [vmem:[#allocation8_spill] sm:$0xff] %v16091_v5  ;;  %v4436_v5 = vcombine.high %v4402_v55, %v4418_v21 }
 0x381   :  { %v16099_v16 = vpop.permute.xlu0 %4916 }
 0x382   :  { %20458 = vst [vmem:[#allocation70_spill] sm:$0xff] %v16099_v16 }
 0x393   :  { %4457 = vadd.xlane.f32.xlu0 %v4456_v12  ;;  %v4601_v12 = vcombine.low %v20456_v48, %v15472_v43 }
 0x395   :  { %v4609_v22 = vrot.slane %v4601_v12, %v16025_v26 }
 0x397   :  { %4463 = vadd.xlane.f32.xlu0 %v4462_v58  ;;  %v16102_v58 = vrot.slane %v4566_v56, %v16046_v46  ;;  %v4633_v21 = vcombine.low %v4609_v22, %v4625_v59 }
 0x398   :  { %4481 = vadd.xlane.f32.xlu1 %v4480_v27  ;;  %v11715_v1 = vpop.f32.mrb[24].mxu1  ;;  %v16105_v27 = vrot.slane %v4435_v57, %v16046_v46  ;;  %v16118_v57 = vrot.slane %v4436_v5, %v16046_v46  ;;  %v4634_v5 = vcombine.high %v4609_v22, %v4625_v59 }
 0x399   :  { %v4218_v14 = vadd.f32 %v15806_v33, %v11715_v1  ;;  %v3890_v29 = vpop.f32.mrb[25].mxu1  ;;  %v4618_v33 = vcombine.high %v15524_v15, %v15508_v32  ;;  %v4675_v1 = vsel %vm4455_vm1, %v16102_v58, 0.0  ;;  %v16130_v55 = vrot.slane %v4633_v21, %v16046_v46 }
 0x39a   :  { %v16108_v13 = vadd.f32 %v15816_v35, %v3890_v29  ;;  %v4492_v56 = vsel %vm4455_vm1, %v16105_v27, 0.0  ;;  %v16120_v35 = vpop.permute.xlu1 %4822  ;;  %v4498_v15 = vsel %vm4455_vm1, %v16118_v57, 0.0  ;;  %v4320_v29 = vcombine.high %v20448_v23, %v15537_v11 }
 0x39b   :  { %4670 = vadd.xlane.f32.xlu0 %v4669_v53  ;;  %v4602_v53 = vcombine.high %v20456_v48, %v15472_v43  ;;  %v4632_v32 = vrot.slane %v4618_v33, %v16025_v26  ;;  %v4336_v48 = vcombine.high %v15551_v52, %v15577_v54  ;;  %v4693_v33 = vsel %vm4455_vm1, %v16130_v55, 0.0 }
 0x39c   :  { %4487 = vadd.xlane.f32.xlu1 %v4486_v0  ;;  %v16122_v0 = vpop.permute.xlu0 %5012  ;;  %v16146_v22 = vrot.slane %v4634_v5, %v16046_v46  ;;  %v5349_v11 = vcombine.high %v14992_v2, %v15824_v28  ;;  %v4334_v23 = vrot.slane %v4320_v29, %v16025_v26  ;;  %v4550_v29 = vcombine.high %v15570_v49, %v15598_v63 }
 0x39d   :  { %20459 = vst [vmem:[#allocation71_spill] sm:$0xff] %v16122_v0  ;;  %v4616_v12 = vrot.slane %v4602_v53, %v16025_v26  ;;  %v4350_v53 = vrot.slane %v4336_v48, %v16025_v26 }
 0x39e   :  { %v4699_v54 = vsel %vm4455_vm1, %v16146_v22, 0.0  ;;  %v16161_v5 = vrot.slane %v5349_v11, %v16025_v26 }
 0x39f   :  { %4676 = vadd.xlane.f32.xlu0 %v4675_v1  ;;  %v5365_v1 = vcombine.high %v15783_v9, %v15835_v4  ;;  %v4649_v59 = vcombine.low %v4616_v12, %v4632_v32  ;;  %v4367_v11 = vcombine.low %v4334_v23, %v4350_v53 }
 0x3a0   :  { %4493 = vadd.xlane.f32.xlu1 %v4492_v56  ;;  %v16137_v56 = vpop.permute.xlu1 %4918  ;;  %v16139_v43 = vpop.permute.xlu0 %5018  ;;  %20461 = vst [vmem:[#allocation73_spill] sm:$0xff] %v16161_v5 }
 0x3a1   :  { %v16152_v21 = vrot.slane %v5365_v1, %v16025_v26  ;;  %v16158_v52 = vrot.slane %v4649_v59, %v16046_v46  ;;  %v4283_v1 = vadd.f32 %v15731_v38, %v4218_v14  ;;  %v4534_v59 = vcombine.high %v20451_v40, %v15589_v17 }
 0x3a2   :  { %v16191_v40 = vrot.slane %v4367_v11, %v16046_v46 }
 0x3a3   :  { %20460 = vst [vmem:[#allocation72_spill] sm:$0xff] %v16152_v21  ;;  %v16181_v49 = vmul.f32 %v15743_v34, %v4283_v1  ;;  %v4548_v48 = vrot.slane %v4534_v59, %v16025_v26 }
 0x3a4   :  { %4499 = vadd.xlane.f32.xlu1 %v4498_v15  ;;  %v4650_v15 = vcombine.high %v4616_v12, %v4632_v32  ;;  %v16163_v2 = vpop.permute.xlu1 %5014  ;;  %v4705_v32 = vsel %vm4455_vm1, %v16158_v52, 0.0 }
 0x3a6   :  { %v16177_v12 = vrot.slane %v4650_v15, %v16046_v46  ;;  %v4368_v15 = vcombine.high %v4334_v23, %v4350_v53 }
 0x3a8   :  { %4694 = vadd.xlane.f32.xlu1 %v4693_v33  ;;  %v16165_v33 = vpop.permute.xlu0 %4824  ;;  %v16183_v63 = vpop.permute.xlu1 %4826  ;;  %v4711_v17 = vsel %vm4455_vm1, %v16177_v12, 0.0  ;;  %v16198_v1 = vrot.slane %v4368_v15, %v16046_v46 }
 0x3a9   :  { %20462 = vst [vmem:[#allocation74_spill] sm:$0xff] %v16165_v33 }
 0x3aa   :  { %v4474_v11 = vsel %vm4455_vm1, %v16198_v1, 0.0 }
 0x3ac   :  { %4700 = vadd.xlane.f32.xlu1 %v4699_v54  ;;  %v4564_v54 = vrot.slane %v4550_v29, %v16025_v26  ;;  %v16185_v14 = vpop.permute.xlu0 %4920  ;;  %v4468_v29 = vsel %vm4455_vm1, %v16191_v40, 0.0  ;;  %v16200_v59 = vpop.permute.xlu1 %4922 }
 0x3ad   :  { %20463 = vst [vmem:[#allocation75_spill] sm:$0xff] %v16185_v14 }
 0x3ae   :  { %v4582_v53 = vcombine.high %v4548_v48, %v4564_v54 }
 0x3b0   :  { %4706 = vadd.xlane.f32.xlu1 %v4705_v32  ;;  %v4581_v32 = vcombine.low %v4548_v48, %v4564_v54  ;;  %v16202_v5 = vpop.permute.xlu0 %5016  ;;  %v16217_v28 = vpop.permute.xlu1 %4830  ;;  %v6301_v48 = vcombine.high %v15764_v25, %v16185_v14  ;;  %v20162_v14 = vmov 0.0  }
 0x3b1   :  { %20464 = vst [vmem:[#allocation76_spill] sm:$0xff] %v16202_v5  ;;  %v6317_v15 = vcombine.high %v16165_v33, %v16202_v5  ;;  %v20467_v33 = vld [vmem:[#allocation29_spill] sm:$0xff] }
 0x3b2   :  { %v16207_v23 = vrot.slane %v4581_v32, %v16046_v46  ;;  %v16222_v32 = vrot.slane %v4582_v53, %v16046_v46  ;;  %v16242_v25 = vrot.slane %v6301_v48, %v16025_v26  ;;  %v4451_v48 = vcombine.high %v16068_v47, %v20162_v14 }
 0x3b4   :  { %4712 = vadd.xlane.f32.xlu1 %v4711_v17  ;;  %v6181_v17 = vcombine.high %v16072_v8, %v16122_v0  ;;  %v16215_v21 = vpop.permute.xlu0 %5022  ;;  %v4681_v9 = vsel %vm4455_vm1, %v16207_v23, 0.0  ;;  %v20470_v8 = vld [vmem:[#allocation28_spill] sm:$0xff]  ;;  %v4687_v4 = vsel %vm4455_vm1, %v16222_v32, 0.0  ;;  %20472 = vst [vmem:[#allocation78_spill] sm:$0xff] %v16242_v25  ;;  %v4483_v47 = vsel %vm4455_vm1, %v4451_v48, 0.0 }
 0x3b5   :  { %5030 = vrot.lane.b32.xlu0 %v16181_v49, %s12251_s27  ;;  %v20471_v0 = vld [vmem:[#allocation16_spill] sm:$0xff] }
 0x3b6   :  { %v16227_v54 = vrot.slane %v6181_v17, %v16025_v26  ;;  %v5145_v53 = vcombine.high %v20471_v0, %v20470_v8  ;;  %v20478_v25 = vld [vmem:[#allocation36_spill] sm:$0xff] }
 0x3b7   :  { %v20487_v48 = vld [vmem:[#allocation24_spill] sm:$0xff] }
 0x3b8   :  { %4469 = vadd.xlane.f32.xlu1 %v4468_v29  ;;  %v6165_v29 = vcombine.high %v15397_v24, %v16099_v16  ;;  %20465 = vst [vmem:[#allocation77_spill] sm:$0xff] %v16227_v54  ;;  %v16232_v24 = vrot.slane %v6317_v15, %v16025_v26  ;;  %v16246_v17 = vpop.permute.xlu0 %4828  ;;  %v16256_v46 = vrot.slane %v5145_v53, %v16025_v26 }
 0x3b9   :  { %20473 = vst [vmem:[#allocation79_spill] sm:$0xff] %v16246_v17  ;;  %v5297_v15 = vcombine.high %v15716_v3, %v15779_v50  ;;  %v5433_v53 = vcombine.high %v15831_v37, %v15879_v41  ;;  %v4452_v41 = vcombine.high %v16081_v51, %v20162_v14  ;;  %v4282_v51 = vadd.f32 %v15731_v38, %v16108_v13 }
 0x3ba   :  { %v16235_v16 = vrot.slane %v6165_v29, %v16025_v26  ;;  %20475 = vst [vmem:[#allocation81_spill] sm:$0xff] %v16256_v46 }
 0x3bb   :  { %v16288_v37 = vrot.slane %v5433_v53, %v16025_v26  ;;  %v16325_v13 = vmul.f32 %v15743_v34, %v4282_v51 }
 0x3bc   :  { %4475 = vadd.xlane.f32.xlu1 %v4474_v11  ;;  %v20466_v11 = vld [vmem:[#allocation30_spill] sm:$0xff]  ;;  %20469 = vst [vmem:[#allocation29_spill] sm:$0xff] %v16235_v16  ;;  %v16262_v0 = vpop.permute.xlu0 %4924 }
 0x3bd   :  { %v5161_v5 = vcombine.high %v20467_v33, %v20466_v11  ;;  %20468 = vst [vmem:[#allocation30_spill] sm:$0xff] %v16232_v24  ;;  %20477 = vst [vmem:[#allocation83_spill] sm:$0xff] %v16262_v0  ;;  %v20479_v24 = vld [vmem:[#allocation18_spill] sm:$0xff] }
 0x3be   :  { %v5281_v16 = vcombine.high %v20479_v24, %v20478_v25  ;;  %20484 = vst [vmem:[#allocation85_spill] sm:$0xff] %v16288_v37 }
 0x3bf   :  { %v16251_v29 = vrot.slane %v5161_v5, %v16025_v26  ;;  %v6437_v5 = vcombine.high %v15884_v60, %v16262_v0  ;;  %v20482_v60 = vld [vmem:[#allocation9_spill] sm:$0xff] }
 0x3c0   :  { %4682 = vadd.xlane.f32.xlu1 %v4681_v9  ;;  %v16244_v9 = vpop.permute.xlu1 %4926  ;;  %v5417_v0 = vcombine.high %v20482_v60, %v15857_v18  ;;  %v6028_v60 = vcombine.low %v20487_v48, %v16033_v45  ;;  %v4453_v18 = vcombine.high %v16105_v27, %v20162_v14 }
 0x3c1   :  { %20474 = vst [vmem:[#allocation80_spill] sm:$0xff] %v16251_v29 }
 0x3c2   :  { %v16303_v53 = vrot.slane %v5417_v0, %v16025_v26  ;;  %v16322_v38 = vrot.slane %v6028_v60, %v16025_v26  ;;  %v4495_v27 = vsel %vm4455_vm1, %v4453_v18, 0.0  ;;  %v20490_v60 = vld [vmem:[#allocation27_spill] sm:$0xff] }
 0x3c4   :  { %4688 = vadd.xlane.f32.xlu1 %v4687_v4  ;;  %v16260_v4 = vpop.permute.xlu1 %5020  ;;  %20486 = vst [vmem:[#allocation87_spill] sm:$0xff] %v16303_v53  ;;  %20489 = vst [vmem:[#allocation88_spill] sm:$0xff] %v16322_v38 }
 0x3c5   :  { %20476 = vst [vmem:[#allocation82_spill] sm:$0xff] %v16260_v4  ;;  %v6453_v8 = vcombine.high %v16246_v17, %v16260_v4  ;;  %v16280_v17 = vrot.slane %v6437_v5, %v16025_v26  ;;  %v16285_v4 = vrot.slane %v5297_v15, %v16025_v26  ;;  %v6044_v5 = vcombine.low %v16018_v31, %v16052_v6 }
 0x3c6   :  { %v4454_v15 = vcombine.high %v16118_v57, %v20162_v14  ;;  %v4665_v57 = vcombine.high %v16130_v55, %v20162_v14 }
 0x3c7   :  { %v16277_v54 = vrot.slane %v6453_v8, %v16025_v26  ;;  %20481 = vst [vmem:[#allocation18_spill] sm:$0xff] %v16280_v17  ;;  %20483 = vst [vmem:[#allocation84_spill] sm:$0xff] %v16285_v4  ;;  %v16294_v8 = vrot.slane %v5281_v16, %v16025_v26  ;;  %v16317_v0 = vrot.slane %v6044_v5, %v16025_v26 }
 0x3c8   :  { %v4501_v18 = vsel %vm4455_vm1, %v4454_v15, 0.0 }
 0x3c9   :  { %20480 = vst [vmem:[#allocation36_spill] sm:$0xff] %v16277_v54  ;;  %20485 = vst [vmem:[#allocation86_spill] sm:$0xff] %v16294_v8 }
 0x3ca   :  { %20488 = vst [vmem:[#allocation24_spill] sm:$0xff] %v16317_v0 }
 0x3d4   :  { %4484 = vadd.xlane.f32.xlu0 %v4483_v47  ;;  %v4489_v47 = vsel %vm4455_vm1, %v4452_v41, 0.0  ;;  %v6249_v41 = vcombine.high %v16120_v35, %v16163_v2 }
 0x3d5   :  { %4838 = vrot.lane.b32.xlu1 %v16181_v49, %s12250_s11 }
 0x3d6   :  { %v11718_v16 = vpop.f32.mrb[26].mxu1  ;;  %v16339_v53 = vrot.slane %v6249_v41, %v16025_v26 }
 0x3d7   :  { %v3900_v37 = vpop.f32.mrb[27].mxu1 }
 0x3d8   :  { %4490 = vadd.xlane.f32.xlu0 %v4489_v47  ;;  %v6233_v47 = vcombine.high %v20490_v60, %v16137_v56  ;;  %20491 = vst [vmem:[#allocation27_spill] sm:$0xff] %v16339_v53  ;;  %v16348_v5 = vadd.f32 %v16083_v10, %v3900_v37  ;;  %v20499_v37 = vld [vmem:[#allocation13_spill] sm:$0xff] }
 0x3d9   :  { %4934 = vrot.lane.b32.xlu1 %v16181_v49, %s12249_s7 }
 0x3da   :  { %v16351_v38 = vrot.slane %v6233_v47, %v16025_v26 }
 0x3dc   :  { %4496 = vadd.xlane.f32.xlu0 %v4495_v27  ;;  %v16345_v27 = vadd.f32 %v16042_v39, %v11718_v16  ;;  %20492 = vst [vmem:[#allocation89_spill] sm:$0xff] %v16351_v38  ;;  %v4696_v39 = vsel %vm4455_vm1, %v4665_v57, 0.0  ;;  %v4666_v16 = vcombine.high %v16146_v22, %v20162_v14 }
 0x3dd   :  { %5028 = vrot.lane.b32.xlu1 %v16325_v13, %s12251_s27 }
 0x3de   :  { %v5027_v34 = vpop.permute.xlu0 %5026  ;;  %v4835_v51 = vpop.permute.xlu1 %4834 }
 0x3df   :  { %v6657_v17 = vcombine.high %v4835_v51, %v5027_v34  ;;  %v6656_v0 = vcombine.low %v4835_v51, %v5027_v34 }
 0x3e0   :  { %4502 = vadd.xlane.f32.xlu0 %v4501_v18 }
 0x3e1   :  { %v16363_v10 = vrot.slane %v6657_v17, %v16025_v26 }
 0x3e2   :  { %v4931_v41 = vpop.permute.xlu1 %4930  ;;  %v16353_v54 = vpop.permute.xlu0 %4832 }
 0x3e3   :  { %v6640_v15 = vcombine.low %v15963_v62, %v4931_v41  ;;  %v6641_v55 = vcombine.high %v15963_v62, %v4931_v41  ;;  %20493 = vst [vmem:[#allocation90_spill] sm:$0xff] %v16363_v10  ;;  %v16372_v62 = vrot.slane %v6656_v0, %v16025_v26  ;;  %v4702_v41 = vsel %vm4455_vm1, %v4666_v16, 0.0  ;;  %v20502_v10 = vld [vmem:[#allocation35_spill] sm:$0xff] }
 0x3e4   :  { %4697 = vadd.xlane.f32.xlu0 %v4696_v39  ;;  %v5773_v39 = vcombine.high %v15945_v42, %v15966_v30  ;;  %v6505_v0 = vcombine.high %v15869_v7, %v16244_v9  ;;  %v6369_v38 = vcombine.high %v20502_v10, %v16200_v59 }
 0x3e5   :  { %v16366_v47 = vrot.slane %v6640_v15, %v16025_v26  ;;  %v16369_v34 = vrot.slane %v6641_v55, %v16025_v26  ;;  %20496 = vst [vmem:[#allocation93_spill] sm:$0xff] %v16372_v62  ;;  %v4667_v15 = vcombine.high %v16158_v52, %v20162_v14  ;;  %v4668_v52 = vcombine.high %v16177_v12, %v20162_v14 }
 0x3e6   :  { %v16374_v51 = vpop.permute.xlu1 %5024  ;;  %v16380_v17 = vpop.permute.xlu0 %4928 }
 0x3e7   :  { %20494 = vst [vmem:[#allocation91_spill] sm:$0xff] %v16366_v47  ;;  %20495 = vst [vmem:[#allocation92_spill] sm:$0xff] %v16369_v34  ;;  %v6589_v18 = vcombine.high %v16353_v54, %v16374_v51  ;;  %v6573_v57 = vcombine.high %v15973_v20, %v16380_v17  ;;  %v5757_v34 = vcombine.high %v20499_v37, %v15953_v36  ;;  %v4708_v16 = vsel %vm4455_vm1, %v4667_v15, 0.0 }
 0x3e8   :  { %4703 = vadd.xlane.f32.xlu0 %v4702_v41  ;;  %v16405_v41 = vrot.slane %v5773_v39, %v16025_v26  ;;  %v6521_v15 = vcombine.high %v16217_v28, %v16215_v21  ;;  %v4714_v12 = vsel %vm4455_vm1, %v4668_v52, 0.0  ;;  %v16420_v39 = vrot.slane %v6505_v0, %v16025_v26 }
 0x3e9   :  { %v16390_v55 = vrot.slane %v6589_v18, %v16025_v26  ;;  %v16395_v22 = vrot.slane %v6573_v57, %v16025_v26  ;;  %v16410_v57 = vrot.slane %v5757_v34, %v16025_v26  ;;  %v16425_v34 = vrot.slane %v6369_v38, %v16025_v26 }
 0x3ea   :  { %20500 = vst [vmem:[#allocation13_spill] sm:$0xff] %v16405_v41  ;;  %20503 = vst [vmem:[#allocation35_spill] sm:$0xff] %v16420_v39  ;;  %v16428_v14 = vrot.slane %v6521_v15, %v16025_v26  ;;  %v6045_v0 = vcombine.high %v16018_v31, %v16052_v6  ;;  %v6029_v18 = vcombine.high %v20487_v48, %v16033_v45  ;;  %v20507_v38 = vmov 0.0   ;;  %v16462_v31 = vld [vmem:[%s19996_s10] ss:$0 sm:$0xff] }
 0x3eb   :  { %20497 = vst [vmem:[#allocation94_spill] sm:$0xff] %v16390_v55  ;;  %20498 = vst [vmem:[#allocation95_spill] sm:$0xff] %v16395_v22 }
 0x3ec   :  { %4709 = vadd.xlane.f32.xlu0 %v4708_v16  ;;  %20501 = vst [vmem:[#allocation96_spill] sm:$0xff] %v16410_v57  ;;  %v6385_v16 = vcombine.high %v16183_v63, %v16139_v43  ;;  %20504 = vst [vmem:[#allocation97_spill] sm:$0xff] %v16425_v34  ;;  %v4383_v57 = vcombine.high %v16057_v61, %v20507_v38  ;;  %v16444_v15 = vrot.slane %v6045_v0, %v16025_v26 }
 0x3ed   :  { %20505 = vst [vmem:[#allocation98_spill] sm:$0xff] %v16428_v14  ;;  %v4285_v61 = vadd.f32 %v16462_v31, %v16345_v27 }
 0x3ee   :  { %v16431_v53 = vrot.slane %v6385_v16, %v16025_v26  ;;  %20508 = vst [vmem:[#allocation100_spill] sm:$0xff] %v16444_v15  ;;  %v16447_v16 = vrot.slane %v6029_v18, %v16025_v26  ;;  %v4459_v52 = vsel %vm4455_vm1, %v4383_v57, 0.0  ;;  %v4284_v18 = vadd.f32 %v16462_v31, %v16348_v5 }
 0x3ef   :  { %v4385_v5 = vcombine.high %v16191_v40, %v20507_v38 }
 0x3f0   :  { %4715 = vadd.xlane.f32.xlu0 %v4714_v12  ;;  %20506 = vst [vmem:[#allocation99_spill] sm:$0xff] %v16431_v53  ;;  %20509 = vst [vmem:[#allocation101_spill] sm:$0xff] %v16447_v16  ;;  %v4597_v12 = vcombine.high %v16078_v44, %v20507_v38  ;;  %v16469_v44 = vld [vmem:[%s19999_s13] ss:$0 sm:$0xff]  ;;  %v4598_v16 = vcombine.high %v16102_v58, %v20507_v38  ;;  %v20548_v53 = vld [vmem:[#allocation17_spill] sm:$0xff] }
 0x3f1   :  { %v16472_v48 = vmul.f32 %v16469_v44, %v4285_v61  ;;  %v16479_v57 = vmul.f32 %v16469_v44, %v4284_v18  ;;  %v4471_v61 = vsel %vm4455_vm1, %v4385_v5, 0.0  ;;  %v4386_v18 = vcombine.high %v16198_v1, %v20507_v38 }
 0x3f2   :  { %v4672_v45 = vsel %vm4455_vm1, %v4597_v12, 0.0  ;;  %v4678_v40 = vsel %vm4455_vm1, %v4598_v16, 0.0 }
 0x3f3   :  { %20510 = vst [vmem:[#allocation102_spill] sm:$0xff] %v16472_v48 }
 0x401   :  { %4460 = vadd.xlane.f32.xlu1 %v4459_v52  ;;  %v4384_v52 = vcombine.high %v16065_v19, %v20507_v38  ;;  %v4477_v19 = vsel %vm4455_vm1, %v4386_v18, 0.0 }
 0x403   :  { %v4465_v0 = vsel %vm4455_vm1, %v4384_v52, 0.0 }
 0x405   :  { %4673 = vadd.xlane.f32.xlu1 %v4672_v45 }
 0x406   :  { %4836 = vrot.lane.b32.xlu0 %v16325_v13, %s12250_s11 }
 0x40a   :  { %4932 = vrot.lane.b32.xlu0 %v16325_v13, %s12249_s7 }
 0x416   :  { %4842 = vrot.lane.b32.xlu1 %v16472_v48, %s12250_s11 }
 0x41a   :  { %4938 = vrot.lane.b32.xlu1 %v16472_v48, %s12249_s7 }
 0x41e   :  { %5032 = vrot.lane.b32.xlu1 %v16479_v57, %s12251_s27 }
 0x425   :  { %v16485_v27 = vpop.xlane.xlu1 %4481 }
 0x426   :  { %20511 = vst [vmem:[#allocation103_spill] sm:$0xff] %v16485_v27 }
 0x429   :  { %v16489_v12 = vpop.xlane.xlu1 %4487  ;;  %4466 = vadd.xlane.f32.xlu0 %v4465_v0  ;;  %v4599_v0 = vcombine.high %v16207_v23, %v20507_v38 }
 0x42a   :  { %20512 = vst [vmem:[#allocation104_spill] sm:$0xff] %v16489_v12 }
 0x42b   :  { %v4684_v1 = vsel %vm4455_vm1, %v4599_v0, 0.0 }
 0x42d   :  { %v16494_v45 = vpop.xlane.xlu1 %4493  ;;  %4472 = vadd.xlane.f32.xlu0 %v4471_v61  ;;  %v4600_v61 = vcombine.high %v16222_v32, %v20507_v38 }
 0x42e   :  { %20513 = vst [vmem:[#allocation105_spill] sm:$0xff] %v16494_v45 }
 0x42f   :  { %v4690_v58 = vsel %vm4455_vm1, %v4600_v61, 0.0 }
 0x431   :  { %v16499_v6 = vpop.xlane.xlu1 %4499  ;;  %4478 = vadd.xlane.f32.xlu0 %v4477_v19  ;;  %v16517_v19 = vpop.xlane.xlu0 %4457 }
 0x432   :  { %20514 = vst [vmem:[#allocation106_spill] sm:$0xff] %v16499_v6  ;;  %20518 = vst [vmem:[#allocation110_spill] sm:$0xff] %v16517_v19 }
 0x435   :  { %v16504_v52 = vpop.xlane.xlu1 %4694  ;;  %4679 = vadd.xlane.f32.xlu0 %v4678_v40 }
 0x436   :  { %20515 = vst [vmem:[#allocation107_spill] sm:$0xff] %v16504_v52  ;;  %v16521_v52 = vpop.xlane.xlu0 %4463 }
 0x437   :  { %20520 = vst [vmem:[#allocation112_spill] sm:$0xff] %v16521_v52 }
 0x439   :  { %v16509_v5 = vpop.xlane.xlu1 %4700  ;;  %4685 = vadd.xlane.f32.xlu0 %v4684_v1 }
 0x43a   :  { %20516 = vst [vmem:[#allocation108_spill] sm:$0xff] %v16509_v5  ;;  %v16528_v1 = vpop.xlane.xlu0 %4670 }
 0x43b   :  { %20523 = vst [vmem:[#allocation115_spill] sm:$0xff] %v16528_v1 }
 0x43d   :  { %v16514_v18 = vpop.xlane.xlu1 %4706  ;;  %4691 = vadd.xlane.f32.xlu0 %v4690_v58 }
 0x43e   :  { %20517 = vst [vmem:[#allocation109_spill] sm:$0xff] %v16514_v18  ;;  %v16538_v15 = vpop.xlane.xlu0 %4676 }
 0x43f   :  { %20526 = vst [vmem:[#allocation118_spill] sm:$0xff] %v16538_v15 }
 0x441   :  { %v16519_v16 = vpop.xlane.xlu1 %4712 }
 0x442   :  { %20519 = vst [vmem:[#allocation111_spill] sm:$0xff] %v16519_v16 }
 0x444   :  { %v11771_v0 = vpop.f32.mrb[28].mxu1 }
 0x445   :  { %v16523_v23 = vpop.xlane.xlu1 %4469  ;;  %v4287_v5 = vadd.f32 %v16462_v31, %v11771_v0  ;;  %v4232_v32 = vpop.f32.mrb[29].mxu1 }
 0x446   :  { %20521 = vst [vmem:[#allocation113_spill] sm:$0xff] %v16523_v23  ;;  %v4286_v16 = vadd.f32 %v16462_v31, %v4232_v32  ;;  %v5031_v32 = vpop.permute.xlu0 %5030 }
 0x447   :  { %v16531_v18 = vmul.f32 %v16469_v44, %v4287_v5 }
 0x448   :  { %v11774_v58 = vpop.f32.mrb[30].mxu1  ;;  %v16543_v0 = vmul.f32 %v16469_v44, %v4286_v16 }
 0x449   :  { %v16525_v40 = vpop.xlane.xlu1 %4475  ;;  %20524 = vst [vmem:[#allocation116_spill] sm:$0xff] %v16531_v18  ;;  %4846 = vrot.lane.b32.xlu1 %v16531_v18, %s12250_s11  ;;  %v4242_v6 = vpop.f32.mrb[31].mxu1  ;;  %v4289_v5 = vadd.f32 %v16462_v31, %v11774_v58 }
 0x44a   :  { %20522 = vst [vmem:[#allocation114_spill] sm:$0xff] %v16525_v40  ;;  %20528 = vst [vmem:[#allocation120_spill] sm:$0xff] %v16543_v0 }
 0x44b   :  { %v16551_v1 = vmul.f32 %v16469_v44, %v4289_v5 }
 0x44d   :  { %v16533_v61 = vpop.xlane.xlu1 %4682  ;;  %4942 = vrot.lane.b32.xlu1 %v16531_v18, %s12249_s7  ;;  %20529 = vst [vmem:[#allocation121_spill] sm:$0xff] %v16551_v1 }
 0x44e   :  { %20525 = vst [vmem:[#allocation117_spill] sm:$0xff] %v16533_v61 }
 0x451   :  { %v16540_v39 = vpop.xlane.xlu1 %4688  ;;  %5036 = vrot.lane.b32.xlu1 %v16543_v0, %s12251_s27 }
 0x452   :  { %20527 = vst [vmem:[#allocation119_spill] sm:$0xff] %v16540_v39 }
 0x453   :  { %5034 = vrot.lane.b32.xlu0 %v16472_v48, %s12251_s27 }
 0x455   :  { %v4839_v61 = vpop.permute.xlu1 %4838  ;;  %4850 = vrot.lane.b32.xlu1 %v16551_v1, %s12250_s11 }
 0x456   :  { %v6792_v39 = vcombine.low %v4839_v61, %v5031_v32  ;;  %v6793_v15 = vcombine.high %v4839_v61, %v5031_v32  ;;  %v20542_v32 = vld [vmem:[#allocation28_spill] sm:$0xff] }
 0x457   :  { %4840 = vrot.lane.b32.xlu0 %v16479_v57, %s12250_s11 }
 0x458   :  { %v16562_v5 = vrot.slane %v6792_v39, %v16025_v26  ;;  %v16565_v41 = vrot.slane %v6793_v15, %v16025_v26  ;;  %v4288_v39 = vadd.f32 %v16462_v31, %v4242_v6 }
 0x459   :  { %v4935_v16 = vpop.permute.xlu1 %4934  ;;  %4946 = vrot.lane.b32.xlu1 %v16551_v1, %s12249_s7 }
 0x45a   :  { %v6776_v14 = vcombine.low %v16181_v49, %v4935_v16  ;;  %v6777_v58 = vcombine.high %v16181_v49, %v4935_v16  ;;  %20530 = vst [vmem:[#allocation122_spill] sm:$0xff] %v16562_v5  ;;  %20531 = vst [vmem:[#allocation123_spill] sm:$0xff] %v16565_v41  ;;  %v16587_v15 = vmul.f32 %v16469_v44, %v4288_v39 }
 0x45b   :  { %4936 = vrot.lane.b32.xlu0 %v16479_v57, %s12249_s7  ;;  %v5160_v39 = vcombine.low %v20467_v33, %v20466_v11 }
 0x45c   :  { %v16568_v34 = vrot.slane %v6776_v14, %v16025_v26  ;;  %v16571_v61 = vrot.slane %v6777_v58, %v16025_v26  ;;  %20535 = vst [vmem:[#allocation127_spill] sm:$0xff] %v16587_v15 }
 0x45d   :  { %5042 = vrot.lane.b32.xlu1 %v16551_v1, %s12251_s27  ;;  %v20543_v1 = vld [vmem:[#allocation16_spill] sm:$0xff]  ;;  %v5168_v41 = vrot.slane %v5160_v39, %v16025_v26 }
 0x45e   :  { %20532 = vst [vmem:[#allocation124_spill] sm:$0xff] %v16568_v34  ;;  %20533 = vst [vmem:[#allocation125_spill] sm:$0xff] %v16571_v61  ;;  %v5144_v61 = vcombine.low %v20543_v1, %v20542_v32  ;;  %v16629_v1 = vpop.permute.xlu1 %5028 }
 0x45f   :  { %5038 = vrot.lane.b32.xlu0 %v16531_v18, %s12251_s27  ;;  %v20545_v18 = vld [vmem:[#allocation32_spill] sm:$0xff] }
 0x460   :  { %v5152_v5 = vrot.slane %v5144_v61, %v16025_v26  ;;  %v20549_v61 = vld [vmem:[#allocation6_spill] sm:$0xff] }
 0x461   :  { %v16584_v14 = vpop.xlane.xlu0 %4484  ;;  %5040 = vrot.lane.b32.xlu1 %v16587_v15, %s12251_s27 }
 0x462   :  { %20534 = vst [vmem:[#allocation126_spill] sm:$0xff] %v16584_v14  ;;  %v5176_v33 = vcombine.low %v5152_v5, %v5168_v41  ;;  %v5177_v40 = vcombine.high %v5152_v5, %v5168_v41 }
 0x463   :  { %4844 = vrot.lane.b32.xlu0 %v16543_v0, %s12250_s11 }
 0x464   :  { %v5184_v55 = vrot.slane %v5176_v33, %v20549_v61  ;;  %v5191_v5 = vrot.slane %v5177_v40, %v20549_v61 }
 0x465   :  { %v16593_v16 = vpop.xlane.xlu0 %4490 }
 0x466   :  { %20536 = vst [vmem:[#allocation128_spill] sm:$0xff] %v16593_v16  ;;  %v7276_v41 = vsel %vm4455_vm1, %v5184_v55, 0.0  ;;  %v5208_v19 = vcombine.high %v5184_v55, %v20507_v38  ;;  %v20557_v55 = vld [vmem:[#allocation43_spill] sm:$0xff] }
 0x467   :  { %4940 = vrot.lane.b32.xlu0 %v16543_v0, %s12249_s7 }
 0x469   :  { %v16599_v6 = vpop.xlane.xlu0 %4496 }
 0x46a   :  { %20537 = vst [vmem:[#allocation129_spill] sm:$0xff] %v16599_v6  ;;  %v20544_v6 = vld [vmem:[#allocation33_spill] sm:$0xff] }
 0x46b   :  { %4848 = vrot.lane.b32.xlu0 %v16587_v15, %s12250_s11  ;;  %v5093_v32 = vcombine.high %v20545_v18, %v20544_v6 }
 0x46d   :  { %v16603_v31 = vpop.xlane.xlu0 %4502  ;;  %v5107_v47 = vrot.slane %v5093_v32, %v16025_v26 }
 0x46e   :  { %20538 = vst [vmem:[#allocation130_spill] sm:$0xff] %v16603_v31  ;;  %v5092_v31 = vcombine.low %v20545_v18, %v20544_v6  ;;  %v5192_v18 = vcombine.low %v16256_v46, %v16251_v29  ;;  %v20552_v29 = vld [vmem:[#allocation37_spill] sm:$0xff]  ;;  %v20553_v46 = vld [vmem:[#allocation40_spill] sm:$0xff] }
 0x46f   :  { %4944 = vrot.lane.b32.xlu0 %v16587_v15, %s12249_s7  ;;  %s20967_s7 = sld [smem:[#allocation142_spill]] }
 0x470   :  { %v5100_v22 = vrot.slane %v5092_v31, %v16025_v26  ;;  %v16661_v16 = vrot.slane %v5192_v18, %v20549_v61 }
 0x471   :  { %v16607_v44 = vpop.xlane.xlu0 %4697 }
 0x472   :  { %20539 = vst [vmem:[#allocation131_spill] sm:$0xff] %v16607_v44  ;;  %v20547_v44 = vld [vmem:[#allocation31_spill] sm:$0xff]  ;;  %20554 = vst [vmem:[#allocation32_spill] sm:$0xff] %v16661_v16 }
 0x473   :  { %v5077_v31 = vcombine.high %v20548_v53, %v20547_v44 }
 0x475   :  { %v16609_v58 = vpop.xlane.xlu0 %4703  ;;  %v5091_v33 = vrot.slane %v5077_v31, %v16025_v26 }
 0x476   :  { %20540 = vst [vmem:[#allocation132_spill] sm:$0xff] %v16609_v58  ;;  %v5076_v58 = vcombine.low %v20548_v53, %v20547_v44 }
 0x477   :  { %v5124_v52 = vcombine.low %v5091_v33, %v5107_v47 }
 0x479   :  { %v16613_v49 = vpop.xlane.xlu0 %4709  ;;  %v5132_v32 = vrot.slane %v5124_v52, %v20549_v61  ;;  %v5209_v52 = vcombine.high %v5191_v5, %v20507_v38 }
 0x47a   :  { %20541 = vst [vmem:[#allocation133_spill] sm:$0xff] %v16613_v49  ;;  %v5084_v49 = vrot.slane %v5076_v58, %v16025_v26 }
 0x47c   :  { %v5109_v44 = vcombine.high %v5084_v49, %v5100_v22 }
 0x47d   :  { %v16620_v34 = vpop.xlane.xlu0 %4715 }
 0x47e   :  { %20546 = vst [vmem:[#allocation28_spill] sm:$0xff] %v16620_v34  ;;  %v5108_v34 = vcombine.low %v5084_v49, %v5100_v22  ;;  %v20555_v22 = vld [vmem:[#allocation34_spill] sm:$0xff]  ;;  %v20556_v49 = vld [vmem:[#allocation19_spill] sm:$0xff] }
 0x47f   :  { %v5212_v31 = vcombine.low %v20556_v49, %v20555_v22 }
 0x480   :  { %v5116_v53 = vrot.slane %v5108_v34, %v20549_v61  ;;  %v5123_v34 = vrot.slane %v5109_v44, %v20549_v61 }
 0x481   :  { %v16626_v11 = vpop.permute.xlu0 %4836  ;;  %v5220_v45 = vrot.slane %v5212_v31, %v16025_v26 }
 0x482   :  { %v6725_v39 = vcombine.high %v16626_v11, %v16629_v1  ;;  %v7252_v40 = vsel %vm4455_vm1, %v5116_v53, 0.0  ;;  %v7258_v18 = vsel %vm4455_vm1, %v5123_v34, 0.0  ;;  %v5140_v14 = vcombine.high %v5116_v53, %v20507_v38 }
 0x484   :  { %v16646_v6 = vrot.slane %v6725_v39, %v16025_v26  ;;  %v5228_v39 = vcombine.low %v20553_v46, %v20552_v29  ;;  %v7255_v53 = vsel %vm4455_vm1, %v5140_v14, 0.0 }
 0x485   :  { %v16636_v23 = vpop.permute.xlu0 %4932  ;;  %7277 = vadd.xlane.f32.xlu1 %v7276_v41 }
 0x486   :  { %v6709_v58 = vcombine.high %v16325_v13, %v16636_v23  ;;  %20550 = vst [vmem:[#allocation16_spill] sm:$0xff] %v16646_v6  ;;  %v5236_v41 = vrot.slane %v5228_v39, %v16025_v26  ;;  %v5125_v6 = vcombine.high %v5091_v33, %v5107_v47  ;;  %v7279_v39 = vsel %vm4455_vm1, %v5208_v19, 0.0 }
 0x487   :  { %v5296_v47 = vcombine.low %v15716_v3, %v15779_v50  ;;  %v5141_v19 = vcombine.high %v5123_v34, %v20507_v38  ;;  %v20559_v3 = vld [vmem:[#allocation41_spill] sm:$0xff]  ;;  %v20560_v50 = vld [vmem:[#allocation20_spill] sm:$0xff] }
 0x488   :  { %v16649_v62 = vrot.slane %v6709_v58, %v16025_v26  ;;  %v7282_v58 = vsel %vm4455_vm1, %v5191_v5, 0.0  ;;  %v5244_v44 = vcombine.low %v5220_v45, %v5236_v41  ;;  %v5245_v33 = vcombine.high %v5220_v45, %v5236_v41 }
 0x489   :  { %7283 = vadd.xlane.f32.xlu1 %v7282_v58  ;;  %v7264_v58 = vsel %vm4455_vm1, %v5132_v32, 0.0  ;;  %v5280_v5 = vcombine.low %v20479_v24, %v20478_v25  ;;  %v5348_v45 = vcombine.low %v20560_v50, %v20559_v3  ;;  %v7261_v34 = vsel %vm4455_vm1, %v5141_v19, 0.0  ;;  %v20563_v19 = vld [vmem:[#allocation48_spill] sm:$0xff] }
 0x48a   :  { %20551 = vst [vmem:[#allocation33_spill] sm:$0xff] %v16649_v62  ;;  %v7288_v62 = vsel %vm4455_vm1, %v16661_v16, 0.0  ;;  %v20558_v16 = vld [vmem:[#allocation39_spill] sm:$0xff]  ;;  %v5142_v24 = vcombine.high %v5132_v32, %v20507_v38  ;;  %v5229_v50 = vcombine.high %v20553_v46, %v20552_v29 }
 0x48b   :  { %v5364_v31 = vcombine.low %v20558_v16, %v20557_v55  ;;  %v16692_v16 = vrot.slane %v5296_v47, %v16025_v26  ;;  %v16701_v25 = vrot.slane %v5280_v5, %v16025_v26  ;;  %v20561_v47 = vld [vmem:[#allocation50_spill] sm:$0xff]  ;;  %v20564_v5 = vld [vmem:[#allocation15_spill] sm:$0xff] }
 0x48c   :  { %v7267_v32 = vsel %vm4455_vm1, %v5142_v24, 0.0  ;;  %v5484_v3 = vcombine.low %v20564_v5, %v20563_v19  ;;  %v16729_v46 = vrot.slane %v5229_v50, %v16025_v26 }
 0x48d   :  { %7289 = vadd.xlane.f32.xlu1 %v7288_v62  ;;  %v5252_v62 = vrot.slane %v5244_v44, %v20549_v61  ;;  %v5372_v41 = vrot.slane %v5364_v31, %v16025_v26  ;;  %v5259_v44 = vrot.slane %v5245_v33, %v20549_v61  ;;  %v20562_v33 = vld [vmem:[#allocation45_spill] sm:$0xff] }
 0x48e   :  { %7253 = vadd.xlane.f32.xlu0 %v7252_v40  ;;  %v5139_v40 = vrot.slane %v5125_v6, %v20549_v61  ;;  %v7285_v6 = vsel %vm4455_vm1, %v5209_v52, 0.0  ;;  %v5312_v52 = vcombine.low %v16701_v25, %v16692_v16  ;;  %v5500_v55 = vcombine.low %v20562_v33, %v20561_v47  ;;  %v16731_v29 = vpop.xlane.xlu1 %4460  ;;  %v20584_v47 = vld [vmem:[#allocation83_spill] sm:$0xff] }
 0x48f   :  { %v5277_v14 = vcombine.high %v5259_v44, %v20507_v38  ;;  %20565 = vst [vmem:[#allocation31_spill] sm:$0xff] %v16731_v29  ;;  %v7300_v29 = vsel %vm4455_vm1, %v5252_v62, 0.0 }
 0x491   :  { %7265 = vadd.xlane.f32.xlu1 %v7264_v58  ;;  %v5276_v58 = vcombine.high %v5252_v62, %v20507_v38 }
 0x492   :  { %7259 = vadd.xlane.f32.xlu0 %v7258_v18  ;;  %v7270_v18 = vsel %vm4455_vm1, %v5139_v40, 0.0 }
 0x493   :  { %v7303_v31 = vsel %vm4455_vm1, %v5276_v58, 0.0 }
 0x495   :  { %7271 = vadd.xlane.f32.xlu1 %v7270_v18 }
 0x496   :  { %7280 = vadd.xlane.f32.xlu0 %v7279_v39  ;;  %v5356_v39 = vrot.slane %v5348_v45, %v16025_v26  ;;  %v16717_v45 = vrot.slane %v5500_v55, %v16025_v26 }
 0x498   :  { %v5380_v18 = vcombine.low %v5356_v39, %v5372_v41 }
 0x499   :  { %7256 = vadd.xlane.f32.xlu1 %v7255_v53  ;;  %v7309_v53 = vsel %vm4455_vm1, %v5277_v14, 0.0 }
 0x49a   :  { %7286 = vadd.xlane.f32.xlu0 %v7285_v6  ;;  %v5143_v6 = vcombine.high %v5139_v40, %v20507_v38  ;;  %v5388_v58 = vrot.slane %v5380_v18, %v20549_v61  ;;  %v5213_v40 = vcombine.high %v20556_v49, %v20555_v22  ;;  %v5381_v49 = vcombine.high %v5356_v39, %v5372_v41 }
 0x49c   :  { %v7273_v24 = vsel %vm4455_vm1, %v5143_v6, 0.0  ;;  %v7348_v55 = vsel %vm4455_vm1, %v5388_v58, 0.0  ;;  %v16739_v22 = vrot.slane %v5213_v40, %v16025_v26  ;;  %v20568_v6 = vld [vmem:[#allocation69_spill] sm:$0xff]  ;;  %v20571_v40 = vld [vmem:[#allocation26_spill] sm:$0xff]  ;;  %v5395_v39 = vrot.slane %v5381_v49, %v20549_v61  ;;  %v20575_v49 = vld [vmem:[#allocation76_spill] sm:$0xff] }
 0x49d   :  { %7304 = vadd.xlane.f32.xlu1 %v7303_v31  ;;  %v16726_v31 = vrot.slane %v5484_v3, %v16025_v26  ;;  %v5412_v62 = vcombine.high %v5388_v58, %v20507_v38 }
 0x49e   :  { %7262 = vadd.xlane.f32.xlu0 %v7261_v34  ;;  %v5320_v34 = vrot.slane %v5312_v52, %v20549_v61  ;;  %20566 = vst [vmem:[#allocation17_spill] sm:$0xff] %v16739_v22 }
 0x49f   :  { %v5516_v52 = vcombine.low %v16726_v31, %v16717_v45  ;;  %v7351_v58 = vsel %vm4455_vm1, %v5412_v62, 0.0  ;;  %v7354_v62 = vsel %vm4455_vm1, %v5395_v39, 0.0 }
 0x4a0   :  { %v5344_v14 = vcombine.high %v5320_v34, %v20507_v38  ;;  %v7324_v18 = vsel %vm4455_vm1, %v5320_v34, 0.0  ;;  %v16748_v34 = vpop.xlane.xlu1 %4673 }
 0x4a1   :  { %7310 = vadd.xlane.f32.xlu1 %v7309_v53  ;;  %v5524_v53 = vrot.slane %v5516_v52, %v20549_v61  ;;  %20569 = vst [vmem:[#allocation6_spill] sm:$0xff] %v16748_v34  ;;  %v20576_v34 = vld [vmem:[#allocation74_spill] sm:$0xff] }
 0x4a2   :  { %7268 = vadd.xlane.f32.xlu0 %v7267_v32  ;;  %v20567_v32 = vld [vmem:[#allocation71_spill] sm:$0xff]  ;;  %v7327_v50 = vsel %vm4455_vm1, %v5344_v14, 0.0  ;;  %v6316_v12 = vcombine.low %v20576_v34, %v20575_v49  ;;  %v20581_v49 = vld [vmem:[#allocation38_spill] sm:$0xff] }
 0x4a3   :  { %v6180_v3 = vcombine.low %v20568_v6, %v20567_v32  ;;  %v7396_v14 = vsel %vm4455_vm1, %v5524_v53, 0.0  ;;  %v7306_v32 = vsel %vm4455_vm1, %v5259_v44, 0.0  ;;  %v20572_v6 = vld [vmem:[#allocation46_spill] sm:$0xff]  ;;  %v20580_v34 = vld [vmem:[#allocation75_spill] sm:$0xff] }
 0x4a4   :  { %v6300_v5 = vcombine.low %v20581_v49, %v20580_v34  ;;  %v20589_v49 = vld [vmem:[#allocation56_spill] sm:$0xff] }
 0x4a5   :  { %7349 = vadd.xlane.f32.xlu1 %v7348_v55  ;;  %v20570_v55 = vld [vmem:[#allocation70_spill] sm:$0xff]  ;;  %v6188_v41 = vrot.slane %v6180_v3, %v16025_v26  ;;  %v5413_v3 = vcombine.high %v5395_v39, %v20507_v38 }
 0x4a6   :  { %7274 = vadd.xlane.f32.xlu0 %v7273_v24  ;;  %v5260_v24 = vcombine.low %v16739_v22, %v16729_v46 }
 0x4a7   :  { %v7357_v19 = vsel %vm4455_vm1, %v5413_v3, 0.0 }
 0x4a8   :  { %v16756_v52 = vrot.slane %v5260_v24, %v20549_v61 }
 0x4a9   :  { %7328 = vadd.xlane.f32.xlu1 %v7327_v50 }
 0x4aa   :  { %7325 = vadd.xlane.f32.xlu0 %v7324_v18  ;;  %v6164_v18 = vcombine.low %v20571_v40, %v20570_v55  ;;  %v16764_v40 = vpop.permute.xlu1 %4842  ;;  %v7312_v24 = vsel %vm4455_vm1, %v16756_v52, 0.0 }
 0x4ab   :  { %20574 = vst [vmem:[#allocation37_spill] sm:$0xff] %v16764_v40 }
 0x4ac   :  { %v6172_v55 = vrot.slane %v6164_v18, %v16025_v26  ;;  %v5313_v18 = vcombine.high %v16701_v25, %v16692_v16  ;;  %v20585_v16 = vld [vmem:[#allocation47_spill] sm:$0xff] }
 0x4ad   :  { %7397 = vadd.xlane.f32.xlu1 %v7396_v14  ;;  %v20577_v14 = vld [vmem:[#allocation44_spill] sm:$0xff]  ;;  %v6436_v25 = vcombine.low %v20585_v16, %v20584_v47 }
 0x4ae   :  { %7301 = vadd.xlane.f32.xlu0 %v7300_v29  ;;  %v20573_v29 = vld [vmem:[#allocation42_spill] sm:$0xff]  ;;  %v6196_v44 = vcombine.low %v6172_v55, %v6188_v41  ;;  %v6197_v33 = vcombine.high %v6172_v55, %v6188_v41  ;;  %v16794_v3 = vpop.permute.xlu1 %4938  ;;  %v16803_v47 = vrot.slane %v5313_v18, %v20549_v61 }
 0x4af   :  { %v5432_v50 = vcombine.low %v20573_v29, %v20572_v6  ;;  %20586 = vst [vmem:[#allocation34_spill] sm:$0xff] %v16794_v3  ;;  %v20591_v18 = vld [vmem:[#allocation54_spill] sm:$0xff] }
 0x4b0   :  { %v6211_v39 = vrot.slane %v6197_v33, %v20549_v61  ;;  %v20590_v33 = vld [vmem:[#allocation52_spill] sm:$0xff] }
 0x4b1   :  { %7313 = vadd.xlane.f32.xlu1 %v7312_v24  ;;  %v16778_v29 = vrot.slane %v5432_v50, %v16025_v26  ;;  %v6324_v24 = vrot.slane %v6316_v12, %v16025_v26  ;;  %v6204_v50 = vrot.slane %v6196_v44, %v20549_v61 }
 0x4b2   :  { %7307 = vadd.xlane.f32.xlu0 %v7306_v32  ;;  %v20578_v32 = vld [vmem:[#allocation9_spill] sm:$0xff]  ;;  %v7642_v16 = vsel %vm4455_vm1, %v6211_v39, 0.0 }
 0x4b3   :  { %v5416_v27 = vcombine.low %v20578_v32, %v20577_v14  ;;  %v5548_v14 = vcombine.high %v5524_v53, %v20507_v38  ;;  %v20582_v32 = vld [vmem:[#allocation82_spill] sm:$0xff]  ;;  %v6308_v53 = vrot.slane %v6300_v5, %v16025_v26  ;;  %v7636_v44 = vsel %vm4455_vm1, %v6204_v50, 0.0 }
 0x4b5   :  { %v16792_v22 = vrot.slane %v5416_v27, %v16025_v26  ;;  %7358 = vadd.xlane.f32.xlu1 %v7357_v19  ;;  %v7399_v55 = vsel %vm4455_vm1, %v5548_v14, 0.0  ;;  %v16810_v19 = vrot.slane %v6436_v25, %v16025_v26  ;;  %v6332_v34 = vcombine.low %v6308_v53, %v6324_v24  ;;  %v16819_v14 = vpop.permute.xlu1 %5032 }
 0x4b6   :  { %v16773_v6 = vpop.xlane.xlu0 %4466  ;;  %7352 = vadd.xlane.f32.xlu0 %v7351_v58  ;;  %v20583_v58 = vld [vmem:[#allocation79_spill] sm:$0xff] }
 0x4b7   :  { %20579 = vst [vmem:[#allocation40_spill] sm:$0xff] %v16773_v6  ;;  %v6452_v6 = vcombine.low %v20583_v58, %v20582_v32  ;;  %v5448_v12 = vcombine.low %v16792_v22, %v16778_v29  ;;  %v20592_v32 = vld [vmem:[#allocation7_spill] sm:$0xff]  ;;  %v6340_v25 = vrot.slane %v6332_v34, %v20549_v61 }
 0x4b8   :  { %v5620_v58 = vcombine.low %v20592_v32, %v20591_v18 }
 0x4b9   :  { %v16807_v27 = vrot.slane %v6452_v6, %v16025_v26  ;;  %7637 = vadd.xlane.f32.xlu1 %v7636_v44  ;;  %v5456_v6 = vrot.slane %v5448_v12, %v20549_v61  ;;  %v6248_v12 = vcombine.low %v16120_v35, %v16163_v2  ;;  %v7684_v32 = vsel %vm4455_vm1, %v6340_v25, 0.0 }
 0x4ba   :  { %v16796_v41 = vpop.xlane.xlu0 %4472  ;;  %7355 = vadd.xlane.f32.xlu0 %v7354_v62  ;;  %v5636_v62 = vcombine.low %v20590_v33, %v20589_v49  ;;  %v16834_v49 = vrot.slane %v5620_v58, %v16025_v26 }
 0x4bb   :  { %20587 = vst [vmem:[#allocation19_spill] sm:$0xff] %v16796_v41  ;;  %v6468_v44 = vcombine.low %v16810_v19, %v16807_v27  ;;  %v7372_v34 = vsel %vm4455_vm1, %v5456_v6, 0.0  ;;  %v6333_v41 = vcombine.high %v6308_v53, %v6324_v24  ;;  %v16851_v35 = vrot.slane %v6248_v12, %v16025_v26 }
 0x4bc   :  { %v16831_v33 = vrot.slane %v5636_v62, %v16025_v26  ;;  %v16844_v62 = vpop.permute.xlu1 %4846 }
 0x4bd   :  { %7643 = vadd.xlane.f32.xlu1 %v7642_v16  ;;  %v6476_v18 = vrot.slane %v6468_v44, %v20549_v61  ;;  %v6228_v16 = vcombine.high %v6204_v50, %v20507_v38  ;;  %20594 = vst [vmem:[#allocation41_spill] sm:$0xff] %v16844_v62  ;;  %v5480_v50 = vcombine.high %v5456_v6, %v20507_v38  ;;  %v20639_v62 = vld [vmem:[#allocation22_spill] sm:$0xff] }
 0x4be   :  { %v16813_v5 = vpop.xlane.xlu0 %4478  ;;  %7400 = vadd.xlane.f32.xlu0 %v7399_v55  ;;  %v7330_v55 = vsel %vm4455_vm1, %v16803_v47, 0.0  ;;  %v5652_v2 = vcombine.low %v16834_v49, %v16831_v33 }
 0x4bf   :  { %20588 = vst [vmem:[#allocation43_spill] sm:$0xff] %v16813_v5  ;;  %v7732_v44 = vsel %vm4455_vm1, %v6476_v18, 0.0  ;;  %v7639_v24 = vsel %vm4455_vm1, %v6228_v16, 0.0  ;;  %v6912_v16 = vcombine.low %v16472_v48, %v16794_v3 }
 0x4c0   :  { %v5660_v12 = vrot.slane %v5652_v2, %v20549_v61 }
 0x4c1   :  { %7685 = vadd.xlane.f32.xlu1 %v7684_v32  ;;  %v6368_v32 = vcombine.low %v20502_v10, %v16200_v59  ;;  %v6384_v59 = vcombine.low %v16183_v63, %v16139_v43  ;;  %v6500_v63 = vcombine.high %v6476_v18, %v20507_v38 }
 0x4c2   :  { %v16828_v5 = vpop.xlane.xlu0 %4679  ;;  %7331 = vadd.xlane.f32.xlu0 %v7330_v55  ;;  %v6232_v55 = vcombine.low %v20490_v60, %v16137_v56  ;;  %v16857_v56 = vrot.slane %v6333_v41, %v20549_v61  ;;  %v6364_v41 = vcombine.high %v6340_v25, %v20507_v38  ;;  %v7444_v25 = vsel %vm4455_vm1, %v5660_v12, 0.0 }
 0x4c3   :  { %20593 = vst [vmem:[#allocation39_spill] sm:$0xff] %v16828_v5  ;;  %v16882_v2 = vrot.slane %v6368_v32, %v16025_v26  ;;  %v6588_v32 = vcombine.low %v16353_v54, %v16374_v51 }
 0x4c4   :  { %v16860_v60 = vrot.slane %v6232_v55, %v16025_v26  ;;  %v7375_v55 = vsel %vm4455_vm1, %v5480_v50, 0.0  ;;  %v5517_v50 = vcombine.high %v16726_v31, %v16717_v45  ;;  %v7687_v43 = vsel %vm4455_vm1, %v6364_v41, 0.0 }
 0x4c5   :  { %7733 = vadd.xlane.f32.xlu1 %v7732_v44  ;;  %v7690_v44 = vsel %vm4455_vm1, %v16857_v56, 0.0  ;;  %v16904_v45 = vrot.slane %v6384_v59, %v16025_v26  ;;  %v7735_v59 = vsel %vm4455_vm1, %v6500_v63, 0.0  ;;  %v6469_v63 = vcombine.high %v16810_v19, %v16807_v27 }
 0x4c6   :  { %v16846_v58 = vpop.xlane.xlu0 %4685  ;;  %7373 = vadd.xlane.f32.xlu0 %v7372_v34  ;;  %v6264_v6 = vcombine.low %v16860_v60, %v16851_v35  ;;  %v16869_v34 = vpop.permute.xlu1 %4942  ;;  %v16915_v18 = vrot.slane %v5517_v50, %v20549_v61 }
 0x4c7   :  { %20595 = vst [vmem:[#allocation20_spill] sm:$0xff] %v16846_v58  ;;  %20597 = vst [vmem:[#allocation69_spill] sm:$0xff] %v16869_v34 }
 0x4c8   :  { %v6272_v58 = vrot.slane %v6264_v6, %v20549_v61  ;;  %v16918_v6 = vrot.slane %v6588_v32, %v16025_v26 }
 0x4c9   :  { %7376 = vadd.xlane.f32.xlu1 %v7375_v55  ;;  %v6572_v55 = vcombine.low %v15973_v20, %v16380_v17  ;;  %v6400_v17 = vcombine.low %v16882_v2, %v16904_v45 }
 0x4ca   :  { %v16862_v53 = vpop.xlane.xlu0 %4691  ;;  %7640 = vadd.xlane.f32.xlu0 %v7639_v24  ;;  %v16906_v31 = vpop.permute.xlu1 %5036  ;;  %v6296_v20 = vcombine.high %v6272_v58, %v20507_v38 }
 0x4cb   :  { %20596 = vst [vmem:[#allocation71_spill] sm:$0xff] %v16862_v53  ;;  %v6229_v53 = vcombine.high %v6211_v39, %v20507_v38  ;;  %20601 = vst [vmem:[#allocation42_spill] sm:$0xff] %v16906_v31  ;;  %v16921_v41 = vrot.slane %v6572_v55, %v16025_v26  ;;  %v6408_v55 = vrot.slane %v6400_v17, %v20549_v61  ;;  %v7660_v17 = vsel %vm4455_vm1, %v6272_v58, 0.0 }
 0x4cc   :  { %v7663_v32 = vsel %vm4455_vm1, %v6296_v20, 0.0 }
 0x4cd   :  { %7445 = vadd.xlane.f32.xlu1 %v7444_v25  ;;  %v7645_v51 = vsel %vm4455_vm1, %v6229_v53, 0.0 }
 0x4ce   :  { %v16879_v10 = vpop.permute.xlu0 %5034  ;;  %7691 = vadd.xlane.f32.xlu0 %v7690_v44  ;;  %v16898_v44 = vrot.slane %v6912_v16, %v16025_v26  ;;  %v16930_v54 = vpop.permute.xlu1 %4850 }
 0x4cf   :  { %20598 = vst [vmem:[#allocation70_spill] sm:$0xff] %v16879_v10  ;;  %v6928_v24 = vcombine.low %v16764_v40, %v16879_v10  ;;  %20602 = vst [vmem:[#allocation76_spill] sm:$0xff] %v16930_v54  ;;  %v5772_v10 = vcombine.low %v15945_v42, %v15966_v30 }
 0x4d0   :  { %20599 = vst [vmem:[#allocation26_spill] sm:$0xff] %v16898_v44 }
 0x4d1   :  { %v16901_v5 = vrot.slane %v6928_v24, %v16025_v26  ;;  %7646 = vadd.xlane.f32.xlu1 %v7645_v51 }
 0x4d2   :  { %7688 = vadd.xlane.f32.xlu0 %v7687_v43  ;;  %v4841_v39 = vpop.permute.xlu0 %4840  ;;  %v5684_v43 = vcombine.high %v5660_v12, %v20507_v38 }
 0x4d3   :  { %20600 = vst [vmem:[#allocation46_spill] sm:$0xff] %v16901_v5  ;;  %v6860_v16 = vcombine.low %v4841_v39, %v16819_v14  ;;  %v6861_v53 = vcombine.high %v4841_v39, %v16819_v14  ;;  %v7402_v14 = vsel %vm4455_vm1, %v16915_v18, 0.0  ;;  %v6604_v39 = vcombine.low %v16921_v41, %v16918_v6 }
 0x4d5   :  { %v16940_v51 = vrot.slane %v6860_v16, %v16025_v26  ;;  %7664 = vadd.xlane.f32.xlu1 %v7663_v32  ;;  %v16949_v20 = vrot.slane %v6861_v53, %v16025_v26  ;;  %v7708_v16 = vsel %vm4455_vm1, %v6408_v55, 0.0  ;;  %v16963_v53 = vpop.permute.xlu1 %4946  ;;  %v20608_v32 = vld [vmem:[#allocation53_spill] sm:$0xff] }
 0x4d6   :  { %7736 = vadd.xlane.f32.xlu0 %v7735_v59  ;;  %v4937_v25 = vpop.permute.xlu0 %4936  ;;  %v16959_v59 = vrot.slane %v6469_v63, %v20549_v61  ;;  %20606 = vst [vmem:[#allocation75_spill] sm:$0xff] %v16963_v53 }
 0x4d7   :  { %v6844_v24 = vcombine.low %v16479_v57, %v4937_v25  ;;  %v6845_v50 = vcombine.high %v16479_v57, %v4937_v25  ;;  %20604 = vst [vmem:[#allocation44_spill] sm:$0xff] %v16949_v20  ;;  %v6612_v25 = vrot.slane %v6604_v39, %v20549_v61  ;;  %v20634_v20 = vld [vmem:[#allocation65_spill] sm:$0xff] }
 0x4d8   :  { %v7738_v48 = vsel %vm4455_vm1, %v16959_v59, 0.0 }
 0x4d9   :  { %v16943_v57 = vrot.slane %v6844_v24, %v16025_v26  ;;  %v16946_v12 = vrot.slane %v6845_v50, %v16025_v26  ;;  %v7447_v24 = vsel %vm4455_vm1, %v5684_v43, 0.0  ;;  %7709 = vadd.xlane.f32.xlu1 %v7708_v16  ;;  %v6636_v63 = vcombine.high %v6612_v25, %v20507_v38  ;;  %v20610_v16 = vld [vmem:[#allocation51_spill] sm:$0xff] }
 0x4da   :  { %7403 = vadd.xlane.f32.xlu0 %v7402_v14  ;;  %v16951_v27 = vpop.permute.xlu0 %5038  ;;  %v20609_v14 = vld [vmem:[#allocation49_spill] sm:$0xff]  ;;  %v6365_v43 = vcombine.high %v16857_v56, %v20507_v38  ;;  %v16990_v56 = vpop.permute.xlu1 %5042 }
 0x4db   :  { %20603 = vst [vmem:[#allocation74_spill] sm:$0xff] %v16946_v12  ;;  %20605 = vst [vmem:[#allocation9_spill] sm:$0xff] %v16951_v27  ;;  %v5568_v19 = vcombine.low %v20609_v14, %v20608_v32  ;;  %v20656_v32 = vld [vmem:[#allocation36_spill] sm:$0xff] }
 0x4dc   :  { %20613 = vst [vmem:[#allocation79_spill] sm:$0xff] %v16990_v56  ;;  %v20633_v56 = vld [vmem:[#allocation45_spill] sm:$0xff] }
 0x4dd   :  { %7739 = vadd.xlane.f32.xlu1 %v7738_v48  ;;  %v16982_v58 = vrot.slane %v5568_v19, %v16025_v26  ;;  %v5345_v48 = vcombine.high %v16803_v47, %v20507_v38  ;;  %v6432_v19 = vcombine.high %v6408_v55, %v20507_v38 }
 0x4de   :  { %7448 = vadd.xlane.f32.xlu0 %v7447_v24  ;;  %v16965_v50 = vpop.permute.xlu0 %4844  ;;  %v20611_v24 = vld [vmem:[#allocation10_spill] sm:$0xff] }
 0x4df   :  { %20607 = vst [vmem:[#allocation38_spill] sm:$0xff] %v16965_v50  ;;  %v6996_v39 = vcombine.low %v16965_v50, %v16906_v31  ;;  %v5552_v3 = vcombine.low %v20611_v24, %v20610_v16  ;;  %v5756_v50 = vcombine.low %v20499_v37, %v15953_v36  ;;  %v7783_v31 = vsel %vm4455_vm1, %v6636_v63, 0.0 }
 0x4e0   :  { %v7693_v36 = vsel %vm4455_vm1, %v6365_v43, 0.0 }
 0x4e1   :  { %v16999_v42 = vrot.slane %v6996_v39, %v16025_v26  ;;  %v17006_v37 = vrot.slane %v5552_v3, %v16025_v26  ;;  %7784 = vadd.xlane.f32.xlu1 %v7783_v31  ;;  %v17023_v3 = vrot.slane %v5756_v50, %v16025_v26  ;;  %v7333_v31 = vsel %vm4455_vm1, %v5345_v48, 0.0 }
 0x4e2   :  { %7661 = vadd.xlane.f32.xlu0 %v7660_v17  ;;  %v16979_v40 = vpop.permute.xlu0 %4940  ;;  %v5449_v17 = vcombine.high %v16792_v22, %v16778_v29  ;;  %v17011_v22 = vrot.slane %v5772_v10, %v16025_v26  ;;  %v7711_v39 = vsel %vm4455_vm1, %v6432_v19, 0.0  ;;  %v5653_v29 = vcombine.high %v16834_v49, %v16831_v33 }
 0x4e3   :  { %20612 = vst [vmem:[#allocation82_spill] sm:$0xff] %v16979_v40  ;;  %v6980_v53 = vcombine.low %v16543_v0, %v16979_v40  ;;  %20614 = vst [vmem:[#allocation83_spill] sm:$0xff] %v16999_v42  ;;  %v5584_v63 = vcombine.low %v17006_v37, %v16982_v58  ;;  %v5278_v19 = vcombine.high %v16756_v52, %v20507_v38  ;;  %v20629_v0 = vld [vmem:[#allocation57_spill] sm:$0xff]  ;;  %v20630_v40 = vld [vmem:[#allocation12_spill] sm:$0xff] }
 0x4e4   :  { %v17016_v55 = vrot.slane %v5449_v17, %v20549_v61  ;;  %v5788_v17 = vcombine.low %v17023_v3, %v17011_v22  ;;  %v17056_v33 = vrot.slane %v5653_v29, %v20549_v61  ;;  %v6265_v29 = vcombine.high %v16860_v60, %v16851_v35 }
 0x4e5   :  { %v17002_v30 = vrot.slane %v6980_v53, %v16025_v26  ;;  %v17018_v53 = vpop.permute.xlu1 %5040  ;;  %7334 = vadd.xlane.f32.xlu1 %v7333_v31  ;;  %v5592_v48 = vrot.slane %v5584_v63, %v20549_v61  ;;  %v6708_v35 = vcombine.low %v16325_v13, %v16636_v23  ;;  %v5688_v54 = vcombine.low %v20630_v40, %v20629_v0 }
 0x4e6   :  { %7694 = vadd.xlane.f32.xlu0 %v7693_v36  ;;  %v17008_v47 = vpop.permute.xlu0 %4848  ;;  %20617 = vst [vmem:[#allocation135_spill] sm:$0xff] %v17018_v53  ;;  %v7378_v50 = vsel %vm4455_vm1, %v17016_v55, 0.0  ;;  %v5796_v49 = vrot.slane %v5788_v17, %v20549_v61  ;;  %v6504_v17 = vcombine.low %v15869_v7, %v16244_v9  ;;  %v17084_v60 = vrot.slane %v6265_v29, %v20549_v61  ;;  %v20625_v29 = vld [vmem:[#allocation30_spill] sm:$0xff] }
 0x4e7   :  { %20615 = vst [vmem:[#allocation47_spill] sm:$0xff] %v17002_v30  ;;  %20616 = vst [vmem:[#allocation134_spill] sm:$0xff] %v17008_v47  ;;  %v7132_v10 = vcombine.low %v17008_v47, %v17018_v53  ;;  %v7780_v47 = vsel %vm4455_vm1, %v6612_v25, 0.0  ;;  %v20621_v53 = vld [vmem:[#allocation72_spill] sm:$0xff]  ;;  %v7420_v52 = vsel %vm4455_vm1, %v5592_v48, 0.0  ;;  %v5616_v7 = vcombine.high %v5592_v48, %v20507_v38 }
 0x4e8   :  { %v5820_v25 = vcombine.high %v5796_v49, %v20507_v38  ;;  %v17079_v9 = vrot.slane %v6504_v17, %v16025_v26  ;;  %v17097_v13 = vrot.slane %v6708_v35, %v16025_v26  ;;  %v7666_v23 = vsel %vm4455_vm1, %v17084_v60, 0.0 }
 0x4e9   :  { %v17043_v31 = vrot.slane %v7132_v10, %v16025_v26  ;;  %7379 = vadd.xlane.f32.xlu1 %v7378_v50  ;;  %v7315_v10 = vsel %vm4455_vm1, %v5278_v19, 0.0  ;;  %v7450_v50 = vsel %vm4455_vm1, %v17056_v33, 0.0  ;;  %v6520_v19 = vcombine.low %v16217_v28, %v16215_v21 }
 0x4ea   :  { %7712 = vadd.xlane.f32.xlu0 %v7711_v39  ;;  %v17029_v43 = vpop.permute.xlu0 %4944  ;;  %v6724_v21 = vcombine.low %v16626_v11, %v16629_v1  ;;  %v7423_v48 = vsel %vm4455_vm1, %v5616_v7, 0.0  ;;  %v7492_v1 = vsel %vm4455_vm1, %v5796_v49, 0.0  ;;  %v6605_v35 = vcombine.high %v16921_v41, %v16918_v6 }
 0x4eb   :  { %20618 = vst [vmem:[#allocation136_spill] sm:$0xff] %v17029_v43  ;;  %v7116_v36 = vcombine.low %v16587_v15, %v17029_v43  ;;  %20619 = vst [vmem:[#allocation137_spill] sm:$0xff] %v17043_v31  ;;  %v20622_v15 = vld [vmem:[#allocation73_spill] sm:$0xff]  ;;  %v17089_v28 = vrot.slane %v6520_v19, %v16025_v26  ;;  %v5328_v6 = vcombine.low %v16294_v8, %v16285_v4  ;;  %v20645_v31 = vld [vmem:[#allocation126_spill] sm:$0xff] }
 0x4ec   :  { %v5396_v43 = vcombine.low %v20622_v15, %v20621_v53  ;;  %v17107_v11 = vrot.slane %v6724_v21, %v16025_v26  ;;  %v17126_v21 = vrot.slane %v6605_v35, %v20549_v61  ;;  %v20648_v4 = vld [vmem:[#allocation128_spill] sm:$0xff] }
 0x4ed   :  { %v17046_v39 = vrot.slane %v7116_v36, %v16025_v26  ;;  %7421 = vadd.xlane.f32.xlu1 %v7420_v52  ;;  %v7495_v52 = vsel %vm4455_vm1, %v5820_v25, 0.0  ;;  %v20623_v25 = vld [vmem:[#allocation77_spill] sm:$0xff]  ;;  %v20649_v8 = vld [vmem:[#allocation112_spill] sm:$0xff] }
 0x4ee   :  { %7781 = vadd.xlane.f32.xlu0 %v7780_v47  ;;  %v17060_v36 = vrot.slane %v5396_v43, %v20549_v61  ;;  %v5549_v47 = vcombine.high %v16915_v18, %v20507_v38  ;;  %v7786_v41 = vsel %vm4455_vm1, %v17126_v21, 0.0 }
 0x4ef   :  { %20620 = vst [vmem:[#allocation138_spill] sm:$0xff] %v17046_v39 }
 0x4f0   :  { %v7360_v43 = vsel %vm4455_vm1, %v17060_v36, 0.0  ;;  %v7405_v18 = vsel %vm4455_vm1, %v5549_v47, 0.0  ;;  %v20624_v47 = vld [vmem:[#allocation29_spill] sm:$0xff] }
 0x4f1   :  { %7451 = vadd.xlane.f32.xlu1 %v7450_v50  ;;  %v6212_v17 = vcombine.low %v20624_v47, %v20623_v25 }
 0x4f2   :  { %7316 = vadd.xlane.f32.xlu0 %v7315_v10  ;;  %v6401_v10 = vcombine.high %v16882_v2, %v16904_v45  ;;  %v6536_v45 = vcombine.low %v17079_v9, %v17089_v28 }
 0x4f3   :  { %v17111_v50 = vrot.slane %v6212_v17, %v20549_v61 }
 0x4f4   :  { %v17102_v2 = vrot.slane %v6401_v10, %v20549_v61  ;;  %v6544_v7 = vrot.slane %v6536_v45, %v20549_v61 }
 0x4f5   :  { %7496 = vadd.xlane.f32.xlu1 %v7495_v52  ;;  %v6740_v52 = vcombine.low %v17097_v13, %v17107_v11  ;;  %v7648_v49 = vsel %vm4455_vm1, %v17111_v50, 0.0 }
 0x4f6   :  { %7361 = vadd.xlane.f32.xlu0 %v7360_v43  ;;  %v20626_v43 = vld [vmem:[#allocation78_spill] sm:$0xff]  ;;  %v7756_v10 = vsel %vm4455_vm1, %v6544_v7, 0.0  ;;  %v6568_v63 = vcombine.high %v6544_v7, %v20507_v38 }
 0x4f7   :  { %v6348_v19 = vcombine.low %v20626_v43, %v20625_v29 }
 0x4f9   :  { %7667 = vadd.xlane.f32.xlu1 %v7666_v23  ;;  %v17130_v17 = vrot.slane %v6348_v19, %v20549_v61  ;;  %v20627_v19 = vld [vmem:[#allocation58_spill] sm:$0xff] }
 0x4fa   :  { %7406 = vadd.xlane.f32.xlu0 %v7405_v18  ;;  %v7714_v18 = vsel %vm4455_vm1, %v17102_v2, 0.0 }
 0x4fb   :  { %v7696_v45 = vsel %vm4455_vm1, %v17130_v17, 0.0 }
 0x4fd   :  { %7715 = vadd.xlane.f32.xlu1 %v7714_v18 }
 0x4fe   :  { %7424 = vadd.xlane.f32.xlu0 %v7423_v48  ;;  %v6748_v48 = vrot.slane %v6740_v52, %v20549_v61  ;;  %v20628_v52 = vld [vmem:[#allocation55_spill] sm:$0xff] }
 0x4ff   :  { %v5704_v18 = vcombine.low %v20628_v52, %v20627_v19  ;;  %v20644_v19 = vld [vmem:[#allocation104_spill] sm:$0xff] }
 0x500   :  { %v6772_v23 = vcombine.high %v6748_v48, %v20507_v38 }
 0x501   :  { %7757 = vadd.xlane.f32.xlu1 %v7756_v10 }
 0x502   :  { %7493 = vadd.xlane.f32.xlu0 %v7492_v1  ;;  %v6501_v1 = vcombine.high %v16959_v59, %v20507_v38  ;;  %v7831_v35 = vsel %vm4455_vm1, %v6772_v23, 0.0  ;;  %v20631_v59 = vld [vmem:[#allocation17_spill] sm:$0xff] }
 0x503   :  { %v20635_v23 = vld [vmem:[#allocation61_spill] sm:$0xff] }
 0x504   :  { %v7741_v10 = vsel %vm4455_vm1, %v6501_v1, 0.0  ;;  %v5908_v34 = vcombine.low %v20635_v23, %v20634_v20  ;;  %v17160_v1 = vrot.slane %v5704_v18, %v16025_v26 }
 0x505   :  { %7787 = vadd.xlane.f32.xlu1 %v7786_v41  ;;  %v5261_v41 = vcombine.high %v20631_v59, %v16729_v46  ;;  %v7759_v46 = vsel %vm4455_vm1, %v6568_v63, 0.0  ;;  %v20637_v59 = vld [vmem:[#allocation15_spill] sm:$0xff] }
 0x506   :  { %7649 = vadd.xlane.f32.xlu0 %v7648_v49  ;;  %v17145_v49 = vrot.slane %v5328_v6, %v20549_v61  ;;  %v5481_v6 = vcombine.high %v17016_v55, %v20507_v38  ;;  %v17172_v55 = vrot.slane %v5688_v54, %v16025_v26  ;;  %v17178_v23 = vrot.slane %v5908_v34, %v16025_v26 }
 0x508   :  { %v7336_v7 = vsel %vm4455_vm1, %v17145_v49, 0.0  ;;  %v5720_v63 = vcombine.low %v17172_v55, %v17160_v1 }
 0x509   :  { %7832 = vadd.xlane.f32.xlu1 %v7831_v35  ;;  %v5585_v35 = vcombine.high %v17006_v37, %v16982_v58  ;;  %v7381_v58 = vsel %vm4455_vm1, %v5481_v6, 0.0 }
 0x50a   :  { %7697 = vadd.xlane.f32.xlu0 %v7696_v45  ;;  %v20632_v45 = vld [vmem:[#allocation50_spill] sm:$0xff] }
 0x50b   :  { %v5501_v12 = vcombine.high %v20633_v56, %v20632_v45  ;;  %v20638_v45 = vld [vmem:[#allocation63_spill] sm:$0xff]  ;;  %v17182_v37 = vrot.slane %v5585_v35, %v20549_v61 }
 0x50c   :  { %v5892_v27 = vcombine.low %v20639_v62, %v20638_v45  ;;  %v20641_v45 = vlaneseq }
 0x50d   :  { %7337 = vadd.xlane.f32.xlu1 %v7336_v7  ;;  %v17175_v18 = vrot.slane %v5501_v12, %v16025_v26  ;;  %v7828_v7 = vsel %vm4455_vm1, %v6748_v48, 0.0  ;;  %v5789_v48 = vcombine.high %v17023_v3, %v17011_v22 }
 0x50e   :  { %7742 = vadd.xlane.f32.xlu0 %v7741_v10  ;;  %v20636_v10 = vld [vmem:[#allocation48_spill] sm:$0xff]  ;;  %v17194_v12 = vrot.slane %v5892_v27, %v16025_v26  ;;  %v8533_v20 = vand.u32 127, %v20641_v45  ;;  %v20643_v45 = vld [vmem:[#allocation103_spill] sm:$0xff] }
 0x50f   :  { %v5485_v56 = vcombine.high %v20637_v59, %v20636_v10  ;;  %v5728_v10 = vrot.slane %v5720_v63, %v20549_v61  ;;  %v5414_v59 = vcombine.high %v17060_v36, %v20507_v38  ;;  %v17214_v3 = vrot.slane %v5789_v48, %v20549_v61 }
 0x510   :  { %v5924_v35 = vcombine.low %v17194_v12, %v17178_v23 }
 0x511   :  { %v17191_v54 = vrot.slane %v5485_v56, %v16025_v26  ;;  %7382 = vadd.xlane.f32.xlu1 %v7381_v58  ;;  %v7468_v22 = vsel %vm4455_vm1, %v5728_v10, 0.0  ;;  %v7363_v63 = vsel %vm4455_vm1, %v5414_v59, 0.0  ;;  %v5685_v59 = vcombine.high %v17056_v33, %v20507_v38 }
 0x512   :  { %7760 = vadd.xlane.f32.xlu0 %v7759_v46  ;;  %v17188_v46 = vrot.slane %v5261_v41, %v20549_v61  ;;  %v7278_v34 = vpop.xlane.xlu1 %7277  ;;  %v7426_v41 = vsel %vm4455_vm1, %v17182_v37, 0.0 }
 0x513   :  { %20640 = vst [vmem:[#allocation72_spill] sm:$0xff] %v17191_v54  ;;  %v5532_v6 = vcombine.low %v17191_v54, %v17175_v18  ;;  %v7453_v33 = vsel %vm4455_vm1, %v5685_v59, 0.0  ;;  %v6537_v59 = vcombine.high %v17079_v9, %v17089_v28 }
 0x514   :  { %v7318_v27 = vsel %vm4455_vm1, %v17188_v46, 0.0 }
 0x515   :  { %7427 = vadd.xlane.f32.xlu1 %v7426_v41  ;;  %v17218_v62 = vrot.slane %v5532_v6, %v20549_v61  ;;  %v20642_v6 = vld [vmem:[#allocation66_spill] sm:$0xff] }
 0x516   :  { %7829 = vadd.xlane.f32.xlu0 %v7828_v7  ;;  %v7284_v56 = vpop.xlane.xlu1 %7283  ;;  %v17210_v7 = vrot.slane %v5924_v35, %v20549_v61  ;;  %v7498_v35 = vsel %vm4455_vm1, %v17214_v3, 0.0  ;;  %v17230_v52 = vsub.s32 %v8533_v20, %v20642_v6  ;;  %v5752_v20 = vcombine.high %v5728_v10, %v20507_v38 }
 0x517   :  { %v7408_v48 = vsel %vm4455_vm1, %v17218_v62, 0.0  ;;  %v8030_v40 = vadd.f32 %v7284_v56, %v20644_v19 }
 0x518   :  { %v7540_v16 = vsel %vm4455_vm1, %v17210_v7, 0.0 }
 0x519   :  { %7469 = vadd.xlane.f32.xlu1 %v7468_v22  ;;  %v8028_v22 = vadd.f32 %v7278_v34, %v20643_v45 }
 0x51a   :  { %7319 = vadd.xlane.f32.xlu0 %v7318_v27  ;;  %v7290_v36 = vpop.xlane.xlu1 %7289  ;;  %v5956_v27 = vcombine.high %v17210_v7, %v20507_v38 }
 0x51b   :  { %v7254_v58 = vpop.xlane.xlu0 %7253  ;;  %v8569_v6 = vrot.slane %v8028_v22, %v17230_v52  ;;  %v20647_v22 = vld [vmem:[#allocation110_spill] sm:$0xff] }
 0x51c   :  { %v7543_v5 = vsel %vm4455_vm1, %v5956_v27, 0.0 }
 0x51d   :  { %7499 = vadd.xlane.f32.xlu1 %v7498_v35  ;;  %v8577_v35 = vrot.slane %v8030_v40, %v17230_v52 }
 0x51e   :  { %7364 = vadd.xlane.f32.xlu0 %v7363_v63  ;;  %v6297_v63 = vcombine.high %v17084_v60, %v20507_v38  ;;  %v7266_v0 = vpop.xlane.xlu1 %7265  ;;  %v6433_v60 = vcombine.high %v17102_v2, %v20507_v38 }
 0x51f   :  { %v7260_v41 = vpop.xlane.xlu0 %7259 }
 0x520   :  { %v7669_v34 = vsel %vm4455_vm1, %v6297_v63, 0.0 }
 0x521   :  { %7544 = vadd.xlane.f32.xlu1 %v7543_v5  ;;  %v8020_v5 = vadd.f32 %v7254_v58, %v20647_v22 }
 0x522   :  { %7409 = vadd.xlane.f32.xlu0 %v7408_v48  ;;  %v7272_v27 = vpop.xlane.xlu1 %7271 }
 0x523   :  { %v7281_v39 = vpop.xlane.xlu0 %7280 }
 0x524   :  { %v8029_v44 = vadd.f32 %v7281_v39, %v20645_v31  ;;  %v20646_v39 = vld [vmem:[#allocation105_spill] sm:$0xff] }
 0x525   :  { %v8032_v48 = vadd.f32 %v7290_v36, %v20646_v39  ;;  %v7471_v36 = vsel %vm4455_vm1, %v5752_v20, 0.0  ;;  %7670 = vadd.xlane.f32.xlu1 %v7669_v34  ;;  %v6230_v20 = vcombine.high %v17111_v50, %v20507_v38  ;;  %v20652_v34 = vld [vmem:[#allocation31_spill] sm:$0xff]  ;;  %v20657_v50 = vld [vmem:[#allocation18_spill] sm:$0xff] }
 0x526   :  { %v8573_v56 = vrot.slane %v8029_v44, %v17230_v52  ;;  %7454 = vadd.xlane.f32.xlu0 %v7453_v33  ;;  %v8022_v44 = vadd.f32 %v7260_v41, %v20649_v8  ;;  %v7717_v33 = vsel %vm4455_vm1, %v6433_v60, 0.0  ;;  %v7257_v58 = vpop.xlane.xlu1 %7256  ;;  %v20651_v41 = vld [vmem:[#allocation91_spill] sm:$0xff]  ;;  %v8537_v60 = vrot.slane %v8020_v5, %v17230_v52 }
 0x527   :  { %v7287_v10 = vpop.xlane.xlu0 %7286  ;;  %v8585_v28 = vrot.slane %v8032_v48, %v17230_v52  ;;  %v20654_v48 = vld [vmem:[#allocation113_spill] sm:$0xff]  ;;  %v6484_v54 = vcombine.low %v20657_v50, %v20656_v32  ;;  %v7651_v7 = vsel %vm4455_vm1, %v6230_v20, 0.0 }
 0x528   :  { %v9572_v63 = vsel %vm9558_vm12, %v8573_v56, %v8569_v6  ;;  %v8031_v2 = vadd.f32 %v7287_v10, %v20648_v4  ;;  %v17259_v6 = vrot.slane %v6537_v59, %v20549_v61  ;;  %v20650_v56 = vld [vmem:[#allocation93_spill] sm:$0xff]  ;;  %v8024_v24 = vadd.f32 %v7266_v0, %v20654_v48 }
 0x529   :  { %v9573_v40 = vsel %vm9560_vm13, %v8577_v35, %v9572_v63  ;;  %v6672_v10 = vcombine.low %v20651_v41, %v20650_v56  ;;  %v8021_v35 = vadd.f32 %v7257_v58, %v20652_v34  ;;  %v8545_v59 = vrot.slane %v8022_v44, %v17230_v52  ;;  %7718 = vadd.xlane.f32.xlu1 %v7717_v33 }
 0x52a   :  { %v8581_v9 = vrot.slane %v8031_v2, %v17230_v52  ;;  %7472 = vadd.xlane.f32.xlu0 %v7471_v36  ;;  %v20653_v2 = vld [vmem:[#allocation40_spill] sm:$0xff]  ;;  %v7305_v0 = vpop.xlane.xlu1 %7304  ;;  %v7762_v44 = vsel %vm4455_vm1, %v17259_v6, 0.0  ;;  %v6741_v33 = vcombine.high %v17097_v13, %v17107_v11 }
 0x52b   :  { %v7263_v39 = vpop.xlane.xlu0 %7262  ;;  %v8541_v58 = vrot.slane %v8021_v35, %v17230_v52 }
 0x52c   :  { %v9574_v63 = vsel %vm9562_vm14, %v8581_v9, %v9573_v40  ;;  %v8023_v36 = vadd.f32 %v7263_v39, %v20653_v2  ;;  %v20658_v39 = vld [vmem:[#allocation114_spill] sm:$0xff] }
 0x52d   :  { %v17274_v14 = vsel %vm9564_vm15, %v8585_v28, %v9574_v63  ;;  %v8026_v40 = vadd.f32 %v7272_v27, %v20658_v39  ;;  %v6366_v28 = vcombine.high %v17130_v17, %v20507_v38  ;;  %v6680_v63 = vrot.slane %v6672_v10, %v20549_v61  ;;  %7763 = vadd.xlane.f32.xlu1 %v7762_v44 }
 0x52e   :  { %20655 = vst [vmem:[#allocation73_spill] sm:$0xff] %v17274_v14  ;;  %v8549_v5 = vrot.slane %v8023_v36, %v17230_v52  ;;  %7541 = vadd.xlane.f32.xlu0 %v7540_v16  ;;  %v9559_v35 = vsel %vm9558_vm12, %v8541_v58, %v8537_v60  ;;  %v20659_v16 = vld [vmem:[#allocation19_spill] sm:$0xff]  ;;  %v6876_v27 = vcombine.low %v16943_v57, %v16940_v51  ;;  %v7311_v11 = vpop.xlane.xlu1 %7310 }
 0x52f   :  { %v7269_v9 = vpop.xlane.xlu0 %7268  ;;  %v8553_v14 = vrot.slane %v8024_v24, %v17230_v52  ;;  %v9561_v39 = vsel %vm9560_vm13, %v8545_v59, %v9559_v35  ;;  %v8561_v13 = vrot.slane %v8026_v40, %v17230_v52  ;;  %v7699_v60 = vsel %vm4455_vm1, %v6366_v28, 0.0 }
 0x530   :  { %v8025_v36 = vadd.f32 %v7269_v9, %v20659_v16  ;;  %v9563_v17 = vsel %vm9562_vm14, %v8549_v5, %v9561_v39  ;;  %v7804_v24 = vsel %vm4455_vm1, %v6680_v63, 0.0  ;;  %v20660_v9 = vld [vmem:[#allocation43_spill] sm:$0xff]  ;;  %v17303_v44 = vrot.slane %v6484_v54, %v20549_v61 }
 0x531   :  { %v9565_v58 = vsel %vm9564_vm15, %v8553_v14, %v9563_v17  ;;  %v17307_v39 = vrot.slane %v6741_v33, %v20549_v61  ;;  %v17310_v40 = vrot.slane %v6876_v27, %v20549_v61  ;;  %7805 = vadd.xlane.f32.xlu1 %v7804_v24 }
 0x532   :  { %v8557_v10 = vrot.slane %v8025_v36, %v17230_v52  ;;  %7652 = vadd.xlane.f32.xlu0 %v7651_v7  ;;  %v7350_v28 = vpop.xlane.xlu1 %7349  ;;  %v7744_v17 = vsel %vm4455_vm1, %v17303_v44, 0.0 }
 0x533   :  { %v7275_v20 = vpop.xlane.xlu0 %7274  ;;  %v7834_v33 = vsel %vm4455_vm1, %v17307_v39, 0.0  ;;  %v6908_v27 = vcombine.high %v17310_v40, %v20507_v38 }
 0x534   :  { %v8027_v59 = vadd.f32 %v7275_v20, %v20660_v9  ;;  %v9567_v5 = vsel %vm9566_vm2, %v8557_v10, %v9565_v58  ;;  %v6637_v10 = vcombine.high %v17126_v21, %v20507_v38  ;;  %v20662_v20 = vld [vmem:[#allocation54_spill] sm:$0xff] }
 0x535   :  { %v9569_v7 = vsel %vm9568_vm3, %v8561_v13, %v9567_v5  ;;  %v8037_v13 = vadd.f32 %v7305_v0, %v20652_v34  ;;  %7835 = vadd.xlane.f32.xlu1 %v7834_v33  ;;  %v20664_v5 = vld [vmem:[#allocation56_spill] sm:$0xff]  ;;  %v7879_v21 = vsel %vm4455_vm1, %v6908_v27, 0.0  ;;  %v5279_v0 = vcombine.high %v17188_v46, %v20507_v38  ;;  %v20669_v27 = vld [vmem:[#allocation59_spill] sm:$0xff] }
 0x536   :  { %v8565_v14 = vrot.slane %v8027_v59, %v17230_v52  ;;  %7700 = vadd.xlane.f32.xlu0 %v7699_v60  ;;  %v20663_v60 = vld [vmem:[#allocation7_spill] sm:$0xff]  ;;  %v7329_v24 = vpop.xlane.xlu1 %7328  ;;  %v7789_v33 = vsel %vm4455_vm1, %v6637_v10, 0.0  ;;  %v8039_v46 = vadd.f32 %v7311_v11, %v20653_v2 }
 0x537   :  { %v7326_v35 = vpop.xlane.xlu0 %7325  ;;  %v5621_v58 = vcombine.high %v20663_v60, %v20662_v20  ;;  %v8605_v20 = vrot.slane %v8037_v13, %v17230_v52  ;;  %v7321_v11 = vsel %vm4455_vm1, %v5279_v0, 0.0 }
 0x538   :  { %v8044_v54 = vadd.f32 %v7326_v35, %v20643_v45  ;;  %v17316_v36 = vsel %vm9570_vm5, %v8565_v14, %v9569_v7  ;;  %v20665_v7 = vld [vmem:[#allocation52_spill] sm:$0xff]  ;;  %v8045_v35 = vadd.f32 %v7329_v24, %v20645_v31 }
 0x539   :  { %20661 = vst [vmem:[#allocation77_spill] sm:$0xff] %v17316_v36  ;;  %v5637_v14 = vcombine.high %v20665_v7, %v20664_v5  ;;  %7880 = vadd.xlane.f32.xlu1 %v7879_v21  ;;  %v20667_v5 = vld [vmem:[#allocation21_spill] sm:$0xff]  ;;  %v20668_v7 = vld [vmem:[#allocation62_spill] sm:$0xff] }
 0x53a   :  { %7745 = vadd.xlane.f32.xlu0 %v7744_v17  ;;  %v8633_v36 = vrot.slane %v8044_v54, %v17230_v52  ;;  %v6704_v17 = vcombine.high %v6680_v63, %v20507_v38  ;;  %v8637_v60 = vrot.slane %v8045_v35, %v17230_v52  ;;  %v20666_v54 = vld [vmem:[#allocation60_spill] sm:$0xff]  ;;  %v5840_v32 = vcombine.low %v20669_v27, %v20668_v7  ;;  %v7398_v50 = vpop.xlane.xlu1 %7397 }
 0x53b   :  { %v7302_v59 = vpop.xlane.xlu0 %7301  ;;  %v20670_v63 = vcombine.high %v20622_v15, %v20621_v53  ;;  %v8052_v15 = vadd.f32 %v7350_v28, %v20647_v22  ;;  %v20676_v27 = vld [vmem:[#allocation24_spill] sm:$0xff] }
 0x53c   :  { %v8036_v9 = vadd.f32 %v7302_v59, %v20647_v22  ;;  %v5824_v59 = vcombine.low %v20667_v5, %v20666_v54  ;;  %v17354_v35 = vsel %vm9558_vm12, %v8637_v60, %v8633_v36  ;;  %v7807_v5 = vsel %vm4455_vm1, %v6704_v17, 0.0 }
 0x53d   :  { %v17351_v13 = vrot.slane %v20670_v63, %v20549_v61  ;;  %v17364_v54 = vrot.slane %v5621_v58, %v16025_v26  ;;  %7322 = vadd.xlane.f32.xlu1 %v7321_v11  ;;  %v5550_v17 = vcombine.high %v17218_v62, %v20507_v38  ;;  %v20673_v62 = vld [vmem:[#allocation32_spill] sm:$0xff]  ;;  %v8665_v63 = vrot.slane %v8052_v15, %v17230_v52 }
 0x53e   :  { %v8601_v24 = vrot.slane %v8036_v9, %v17230_v52  ;;  %7790 = vadd.xlane.f32.xlu0 %v7789_v33  ;;  %v17359_v33 = vrot.slane %v5637_v14, %v16025_v26  ;;  %v17369_v36 = vrot.slane %v5824_v59, %v16025_v26  ;;  %v8613_v14 = vrot.slane %v8039_v46, %v17230_v52  ;;  %v7314_v0 = vpop.xlane.xlu1 %7313 }
 0x53f   :  { %v7308_v10 = vpop.xlane.xlu0 %7307  ;;  %20672 = vst [vmem:[#allocation30_spill] sm:$0xff] %v17364_v54  ;;  %v8040_v60 = vadd.f32 %v7314_v0, %v20654_v48  ;;  %v7366_v28 = vsel %vm4455_vm1, %v17351_v13, 0.0  ;;  %v7876_v46 = vsel %vm4455_vm1, %v17310_v40, 0.0 }
 0x540   :  { %v9579_v9 = vsel %vm9558_vm12, %v8605_v20, %v8601_v24  ;;  %v8038_v21 = vadd.f32 %v7308_v10, %v20649_v8  ;;  %20671 = vst [vmem:[#allocation29_spill] sm:$0xff] %v17359_v33  ;;  %v17372_v20 = vrot.slane %v5840_v32, %v16025_v26  ;;  %v5668_v32 = vcombine.low %v17364_v54, %v17359_v33 }
 0x541   :  { %v5210_v10 = vcombine.high %v20673_v62, %v20507_v38  ;;  %7367 = vadd.xlane.f32.xlu1 %v7366_v28 }
 0x542   :  { %v8609_v53 = vrot.slane %v8038_v21, %v17230_v52  ;;  %7808 = vadd.xlane.f32.xlu0 %v7807_v5  ;;  %v8617_v21 = vrot.slane %v8040_v60, %v17230_v52  ;;  %v5856_v11 = vcombine.low %v17369_v36, %v17372_v20  ;;  %v17402_v60 = vrot.slane %v5668_v32, %v20549_v61 }
 0x543   :  { %v7353_v58 = vpop.xlane.xlu0 %7352  ;;  %v7291_v28 = vsel %vm4455_vm1, %v5210_v10, 0.0  ;;  %v5821_v32 = vcombine.high %v17214_v3, %v20507_v38 }
 0x544   :  { %v9580_v24 = vsel %vm9560_vm13, %v8609_v53, %v9579_v9  ;;  %v8053_v5 = vadd.f32 %v7353_v58, %v20652_v34  ;;  %v7359_v53 = vpop.xlane.xlu1 %7358  ;;  %v5864_v10 = vrot.slane %v5856_v11, %v20549_v61 }
 0x545   :  { %v9581_v59 = vsel %vm9562_vm14, %v8613_v14, %v9580_v24  ;;  %v7411_v14 = vsel %vm4455_vm1, %v5550_v17, 0.0  ;;  %v8055_v40 = vadd.f32 %v7359_v53, %v20653_v2  ;;  %v20675_v17 = vld [vmem:[#allocation87_spill] sm:$0xff]  ;;  %v8068_v53 = vadd.f32 %v7398_v50, %v20647_v22 }
 0x546   :  { %v8669_v9 = vrot.slane %v8053_v5, %v17230_v52  ;;  %7877 = vadd.xlane.f32.xlu0 %v7876_v46  ;;  %v17399_v15 = vsel %vm9564_vm15, %v8617_v21, %v9581_v59  ;;  %v5346_v5 = vcombine.high %v17145_v49, %v20507_v38  ;;  %v20674_v46 = vld [vmem:[#allocation85_spill] sm:$0xff]  ;;  %7412 = vadd.xlane.f32.xlu1 %v7411_v14  ;;  %v7456_v50 = vsel %vm4455_vm1, %v17402_v60, 0.0 }
 0x547   :  { %v7356_v0 = vpop.xlane.xlu0 %7355  ;;  %v5464_v62 = vcombine.low %v20675_v17, %v20674_v46  ;;  %v8677_v59 = vrot.slane %v8055_v40, %v17230_v52  ;;  %v20686_v46 = vld [vmem:[#allocation122_spill] sm:$0xff] }
 0x548   :  { %v9593_v58 = vsel %vm9558_vm12, %v8669_v9, %v8665_v63  ;;  %v8054_v24 = vadd.f32 %v7356_v0, %v20649_v8  ;;  %v7638_v21 = vpop.xlane.xlu1 %7637  ;;  %v7339_v14 = vsel %vm4455_vm1, %v5346_v5, 0.0 }
 0x54a   :  { %v8673_v63 = vrot.slane %v8054_v24, %v17230_v52  ;;  %7292 = vadd.xlane.f32.xlu0 %v7291_v28  ;;  %v17421_v24 = vrot.slane %v5464_v62, %v20549_v61  ;;  %v8729_v28 = vrot.slane %v8068_v53, %v17230_v52  ;;  %7457 = vadd.xlane.f32.xlu1 %v7456_v50 }
 0x54b   :  { %v7401_v9 = vpop.xlane.xlu0 %7400  ;;  %v5721_v50 = vcombine.high %v17172_v55, %v17160_v1  ;;  %v8148_v1 = vadd.f32 %v7638_v21, %v20647_v22 }
 0x54c   :  { %v9594_v49 = vsel %vm9560_vm13, %v8673_v63, %v9593_v58  ;;  %v8069_v0 = vadd.f32 %v7401_v9, %v20652_v34  ;;  %v7644_v11 = vpop.xlane.xlu1 %7643  ;;  %v7501_v63 = vsel %vm4455_vm1, %v5821_v32, 0.0  ;;  %v5888_v9 = vcombine.high %v5864_v10, %v20507_v38 }
 0x54d   :  { %v17424_v40 = vsel %vm9562_vm14, %v8677_v59, %v9594_v49  ;;  %v20677_v59 = vld [vmem:[#allocation88_spill] sm:$0xff]  ;;  %v7384_v53 = vsel %vm4455_vm1, %v17421_v24, 0.0  ;;  %v8150_v55 = vadd.f32 %v7644_v11, %v20649_v8  ;;  %v9049_v11 = vrot.slane %v8148_v1, %v17230_v52 }
 0x54e   :  { %v8733_v3 = vrot.slane %v8069_v0, %v17230_v52  ;;  %7340 = vadd.xlane.f32.xlu0 %v7339_v14  ;;  %v6060_v49 = vcombine.low %v20677_v59, %v20676_v27  ;;  %v5617_v0 = vcombine.high %v17182_v37, %v20507_v38  ;;  %7502 = vadd.xlane.f32.xlu1 %v7501_v63 }
 0x54f   :  { %v7332_v58 = vpop.xlane.xlu0 %7331  ;;  %v17451_v37 = vrot.slane %v5721_v50, %v20549_v61  ;;  %v20679_v1 = vcombine.high %v20626_v43, %v20625_v29 }
 0x550   :  { %v17431_v5 = vsel %vm9558_vm12, %v8733_v3, %v8729_v28  ;;  %v8046_v62 = vadd.f32 %v7332_v58, %v20644_v19  ;;  %v7686_v14 = vpop.xlane.xlu1 %7685  ;;  %v7519_v58 = vsel %vm4455_vm1, %v5888_v9, 0.0  ;;  %v6068_v7 = vrot.slane %v6060_v49, %v20549_v61 }
 0x551   :  { %v7429_v54 = vsel %vm4455_vm1, %v5617_v0, 0.0  ;;  %v5925_v0 = vcombine.high %v17194_v12, %v17178_v23 }
 0x552   :  { %v8641_v32 = vrot.slane %v8046_v62, %v17230_v52  ;;  %7385 = vadd.xlane.f32.xlu0 %v7384_v53  ;;  %7520 = vadd.xlane.f32.xlu1 %v7519_v58  ;;  %v7588_v21 = vsel %vm4455_vm1, %v6068_v7, 0.0 }
 0x553   :  { %v7374_v28 = vpop.xlane.xlu0 %7373 }
 0x554   :  { %v17445_v3 = vsel %vm9560_vm13, %v8641_v32, %v17354_v35  ;;  %v7734_v63 = vpop.xlane.xlu1 %7733  ;;  %v20678_v35 = vcombine.high %v20624_v47, %v20623_v25  ;;  %v8060_v49 = vadd.f32 %v7374_v28, %v20643_v45  ;;  %v9057_v25 = vrot.slane %v8150_v55, %v17230_v52 }
 0x555   :  { %v7516_v55 = vsel %vm4455_vm1, %v5864_v10, 0.0 }
 0x556   :  { %7430 = vadd.xlane.f32.xlu0 %v7429_v54  ;;  %v17459_v9 = vrot.slane %v20678_v35, %v20549_v61  ;;  %v7474_v54 = vsel %vm4455_vm1, %v17451_v37, 0.0  ;;  %7589 = vadd.xlane.f32.xlu1 %v7588_v21  ;;  %v8697_v12 = vrot.slane %v8060_v49, %v17230_v52  ;;  %v8164_v21 = vadd.f32 %v7686_v14, %v20647_v22 }
 0x557   :  { %v7641_v62 = vpop.xlane.xlu0 %7640 }
 0x558   :  { %v8149_v53 = vadd.f32 %v7641_v62, %v20652_v34  ;;  %v7377_v47 = vpop.xlane.xlu1 %7376  ;;  %v7654_v23 = vsel %vm4455_vm1, %v17459_v9, 0.0  ;;  %v17480_v62 = vrot.slane %v20679_v1, %v20549_v61  ;;  %v9113_v1 = vrot.slane %v8164_v21, %v17230_v52 }
 0x559   :  { %v8061_v28 = vadd.f32 %v7377_v47, %v20645_v31  ;;  %v20681_v47 = vld [vmem:[#allocation95_spill] sm:$0xff] }
 0x55a   :  { %v9053_v50 = vrot.slane %v8149_v53, %v17230_v52  ;;  %7475 = vadd.xlane.f32.xlu0 %v7474_v54  ;;  %v17485_v53 = vrot.slane %v5925_v0, %v20549_v61  ;;  %7655 = vadd.xlane.f32.xlu1 %v7654_v23  ;;  %v7702_v14 = vsel %vm4455_vm1, %v17480_v62, 0.0 }
 0x55b   :  { %v7692_v32 = vpop.xlane.xlu0 %7691  ;;  %v8701_v54 = vrot.slane %v8061_v28, %v17230_v52 }
 0x55c   :  { %v9677_v58 = vsel %vm9558_vm12, %v9053_v50, %v9049_v11  ;;  %v7446_v49 = vpop.xlane.xlu1 %7445  ;;  %v6502_v11 = vcombine.high %v17303_v44, %v20507_v38  ;;  %v8166_v29 = vadd.f32 %v7692_v32, %v20649_v8  ;;  %v6092_v50 = vcombine.high %v6068_v7, %v20507_v38  ;;  %v20682_v44 = vld [vmem:[#allocation27_spill] sm:$0xff] }
 0x55d   :  { %v9678_v35 = vsel %vm9560_vm13, %v9057_v25, %v9677_v58  ;;  %v17494_v10 = vsel %vm9558_vm12, %v8701_v54, %v8697_v12  ;;  %v20680_v25 = vld [vmem:[#allocation94_spill] sm:$0xff]  ;;  %v7546_v23 = vsel %vm4455_vm1, %v17485_v53, 0.0  ;;  %v20683_v58 = vld [vmem:[#allocation89_spill] sm:$0xff]  ;;  %v8180_v7 = vadd.f32 %v7734_v63, %v20647_v22 }
 0x55e   :  { %7517 = vadd.xlane.f32.xlu0 %v7516_v55  ;;  %v6620_v28 = vcombine.low %v20681_v47, %v20680_v25  ;;  %v6280_v32 = vcombine.low %v20683_v58, %v20682_v44  ;;  %7703 = vadd.xlane.f32.xlu1 %v7702_v14  ;;  %v7747_v54 = vsel %vm4455_vm1, %v6502_v11, 0.0  ;;  %v7591_v47 = vsel %vm4455_vm1, %v6092_v50, 0.0  ;;  %v20684_v58 = vld [vmem:[#allocation99_spill] sm:$0xff]  ;;  %v20685_v63 = vld [vmem:[#allocation97_spill] sm:$0xff] }
 0x55f   :  { %v7689_v43 = vpop.xlane.xlu0 %7688  ;;  %v6416_v14 = vcombine.low %v20685_v63, %v20684_v58  ;;  %v9177_v50 = vrot.slane %v8180_v7, %v17230_v52 }
 0x560   :  { %v8165_v0 = vadd.f32 %v7689_v43, %v20652_v34  ;;  %v7647_v55 = vpop.xlane.xlu1 %7646  ;;  %v9121_v43 = vrot.slane %v8166_v29, %v17230_v52  ;;  %v17519_v17 = vrot.slane %v6620_v28, %v20549_v61  ;;  %v17522_v11 = vrot.slane %v6280_v32, %v20549_v61 }
 0x561   :  { %v8151_v33 = vadd.f32 %v7647_v55, %v20653_v2  ;;  %v17533_v32 = vrot.slane %v6416_v14, %v20549_v61 }
 0x562   :  { %v9117_v12 = vrot.slane %v8165_v0, %v17230_v52  ;;  %7547 = vadd.xlane.f32.xlu0 %v7546_v23  ;;  %v20687_v0 = vld [vmem:[#allocation124_spill] sm:$0xff]  ;;  %7748 = vadd.xlane.f32.xlu1 %v7747_v54  ;;  %v7792_v7 = vsel %vm4455_vm1, %v17519_v17, 0.0  ;;  %v7672_v54 = vsel %vm4455_vm1, %v17522_v11, 0.0 }
 0x563   :  { %v7737_v25 = vpop.xlane.xlu0 %7736  ;;  %v6808_v23 = vcombine.low %v20687_v0, %v20686_v46 }
 0x564   :  { %v9691_v44 = vsel %vm9558_vm12, %v9117_v12, %v9113_v1  ;;  %v8181_v21 = vadd.f32 %v7737_v25, %v20652_v34  ;;  %v9061_v1 = vrot.slane %v8151_v33, %v17230_v52  ;;  %v7665_v12 = vpop.xlane.xlu1 %7664  ;;  %v6773_v33 = vcombine.high %v17307_v39, %v20507_v38 }
 0x565   :  { %v17525_v29 = vsel %vm9560_vm13, %v9121_v43, %v9691_v44  ;;  %v8084_v43 = vadd.f32 %v7446_v49, %v20647_v22  ;;  %v6569_v39 = vcombine.high %v17259_v6, %v20507_v38  ;;  %v7012_v49 = vcombine.low %v17002_v30, %v16999_v42  ;;  %v20699_v30 = vld [vmem:[#allocation11_spill] sm:$0xff] }
 0x566   :  { %v9181_v25 = vrot.slane %v8181_v21, %v17230_v52  ;;  %7592 = vadd.xlane.f32.xlu0 %v7591_v47  ;;  %v17536_v44 = vsel %vm9562_vm14, %v9061_v1, %v9678_v35  ;;  %v6816_v47 = vrot.slane %v6808_v23, %v20549_v61  ;;  %7793 = vadd.xlane.f32.xlu1 %v7792_v7  ;;  %v7837_v23 = vsel %vm4455_vm1, %v6773_v33, 0.0 }
 0x567   :  { %v7404_v55 = vpop.xlane.xlu0 %7403  ;;  %v7020_v42 = vrot.slane %v7012_v49, %v20549_v61  ;;  %v20689_v49 = vld [vmem:[#allocation81_spill] sm:$0xff] }
 0x568   :  { %v9705_v58 = vsel %vm9558_vm12, %v9181_v25, %v9177_v50  ;;  %v8070_v28 = vadd.f32 %v7404_v55, %v20649_v8  ;;  %v7710_v14 = vpop.xlane.xlu1 %7709  ;;  %v6840_v25 = vcombine.high %v6816_v47, %v20507_v38  ;;  %v7720_v55 = vsel %vm4455_vm1, %v17533_v32, 0.0 }
 0x56a   :  { %v8737_v21 = vrot.slane %v8070_v28, %v17230_v52  ;;  %7673 = vadd.xlane.f32.xlu0 %v7672_v54  ;;  %v8793_v28 = vrot.slane %v8084_v43, %v17230_v52  ;;  %7838 = vadd.xlane.f32.xlu1 %v7837_v23  ;;  %v7855_v63 = vsel %vm4455_vm1, %v6840_v25, 0.0  ;;  %v7765_v43 = vsel %vm4455_vm1, %v6569_v39, 0.0 }
 0x56b   :  { %v7449_v35 = vpop.xlane.xlu0 %7448 }
 0x56c   :  { %v17549_v50 = vsel %vm9560_vm13, %v8737_v21, %v17431_v5  ;;  %v8085_v1 = vadd.f32 %v7449_v35, %v20652_v34  ;;  %v8157_v5 = vadd.f32 %v7665_v12, %v20645_v31  ;;  %v7740_v54 = vpop.xlane.xlu1 %7739  ;;  %v20688_v12 = vcombine.high %v20651_v41, %v20650_v56 }
 0x56d   :  { %v8182_v33 = vadd.f32 %v7740_v54, %v20649_v8  ;;  %v20690_v54 = vld [vmem:[#allocation80_spill] sm:$0xff] }
 0x56e   :  { %v8797_v7 = vrot.slane %v8085_v1, %v17230_v52  ;;  %7721 = vadd.xlane.f32.xlu0 %v7720_v55  ;;  %v17575_v1 = vrot.slane %v20688_v12, %v20549_v61  ;;  %v9085_v23 = vrot.slane %v8157_v5, %v17230_v52  ;;  %7856 = vadd.xlane.f32.xlu1 %v7855_v63 }
 0x56f   :  { %v7662_v6 = vpop.xlane.xlu0 %7661  ;;  %v9185_v55 = vrot.slane %v8182_v33, %v17230_v52  ;;  %v20691_v39 = vcombine.high %v20689_v49, %v20690_v54  ;;  %v8172_v63 = vadd.f32 %v7710_v14, %v20643_v45  ;;  %v7924_v33 = vsel %vm4455_vm1, %v7020_v42, 0.0  ;;  %v20693_v54 = vld [vmem:[#allocation72_spill] sm:$0xff] }
 0x570   :  { %v17565_v21 = vsel %vm9558_vm12, %v8797_v7, %v8793_v28  ;;  %v8156_v35 = vadd.f32 %v7662_v6, %v20643_v45  ;;  %v7785_v7 = vpop.xlane.xlu1 %7784 }
 0x571   :  { %v17584_v6 = vrot.slane %v20691_v39, %v20549_v61  ;;  %v17591_v5 = vsel %vm9560_vm13, %v9185_v55, %v9705_v58  ;;  %v9145_v49 = vrot.slane %v8172_v63, %v17230_v52  ;;  %v5533_v39 = vcombine.high %v20693_v54, %v17175_v18  ;;  %v20695_v63 = vld [vmem:[#allocation53_spill] sm:$0xff]  ;;  %v20697_v18 = vld [vmem:[#allocation67_spill] sm:$0xff] }
 0x572   :  { %v9081_v28 = vrot.slane %v8156_v35, %v17230_v52  ;;  %7766 = vadd.xlane.f32.xlu0 %v7765_v43  ;;  %v7810_v35 = vsel %vm4455_vm1, %v17575_v1, 0.0  ;;  %7925 = vadd.xlane.f32.xlu1 %v7924_v33  ;;  %v20698_v54 = vld [vmem:[#allocation23_spill] sm:$0xff] }
 0x573   :  { %v7695_v25 = vpop.xlane.xlu0 %7694  ;;  %20692 = vst [vmem:[#allocation78_spill] sm:$0xff] %v17584_v6  ;;  %v7294_v58 = vsel %vm4455_vm1, %v17584_v6, 0.0  ;;  %v20700_v6 = vld [vmem:[#allocation64_spill] sm:$0xff] }
 0x574   :  { %v17587_v56 = vsel %vm9558_vm12, %v9085_v23, %v9081_v28  ;;  %v8167_v41 = vadd.f32 %v7695_v25, %v20653_v2  ;;  %v7335_v12 = vpop.xlane.xlu1 %7334  ;;  %v5415_v23 = vcombine.high %v17351_v13, %v20507_v38  ;;  %v20694_v13 = vcombine.high %v16943_v57, %v16940_v51 }
 0x575   :  { %v8047_v25 = vadd.f32 %v7335_v12, %v20648_v4  ;;  %v20696_v12 = vld [vmem:[#allocation49_spill] sm:$0xff]  ;;  %v5976_v46 = vcombine.low %v20700_v6, %v20699_v30 }
 0x576   :  { %v9125_v43 = vrot.slane %v8167_v41, %v17230_v52  ;;  %7811 = vadd.xlane.f32.xlu0 %v7810_v35  ;;  %v7852_v41 = vsel %vm4455_vm1, %v6816_v47, 0.0  ;;  %v17616_v33 = vrot.slane %v20694_v13, %v20549_v61  ;;  %v8197_v35 = vadd.f32 %v7785_v7, %v20652_v34  ;;  %7295 = vadd.xlane.f32.xlu1 %v7294_v58 }
 0x577   :  { %v7713_v28 = vpop.xlane.xlu0 %7712  ;;  %v5960_v47 = vcombine.low %v20698_v54, %v20697_v18  ;;  %v17655_v54 = vrot.slane %v5976_v46, %v16025_v26  ;;  %v20705_v46 = vld [vmem:[#allocation96_spill] sm:$0xff]  ;;  %v20706_v18 = vld [vmem:[#allocation86_spill] sm:$0xff] }
 0x578   :  { %v17605_v14 = vsel %vm9562_vm14, %v9125_v43, %v17525_v29  ;;  %v8173_v55 = vadd.f32 %v7713_v28, %v20645_v31  ;;  %v8645_v29 = vrot.slane %v8047_v25, %v17230_v52  ;;  %v5569_v28 = vcombine.high %v20696_v12, %v20695_v63  ;;  %v7380_v51 = vpop.xlane.xlu1 %7379 }
 0x579   :  { %v8062_v13 = vadd.f32 %v7380_v51, %v20644_v19  ;;  %v7882_v63 = vsel %vm4455_vm1, %v17616_v33, 0.0  ;;  %v7044_v12 = vcombine.high %v7020_v42, %v20507_v38  ;;  %v9245_v51 = vrot.slane %v8197_v35, %v17230_v52 }
 0x57a   :  { %v9149_v43 = vrot.slane %v8173_v55, %v17230_v52  ;;  %7853 = vadd.xlane.f32.xlu0 %v7852_v41  ;;  %v17630_v7 = vsel %vm9562_vm14, %v8645_v29, %v17445_v3  ;;  %v7369_v55 = vsel %vm4455_vm1, %v5415_v23, 0.0  ;;  %v17638_v41 = vrot.slane %v5533_v39, %v20549_v61  ;;  %v20701_v29 = vld [vmem:[#allocation51_spill] sm:$0xff] }
 0x57b   :  { %v7782_v57 = vpop.xlane.xlu0 %7781  ;;  %v8705_v3 = vrot.slane %v8062_v13, %v17230_v52  ;;  %7370 = vadd.xlane.f32.xlu1 %v7369_v55  ;;  %v17649_v23 = vrot.slane %v5569_v28, %v16025_v26  ;;  %v17652_v39 = vrot.slane %v5960_v47, %v16025_v26  ;;  %v5686_v13 = vcombine.high %v17402_v60, %v20507_v38  ;;  %v20707_v60 = vld [vmem:[#allocation84_spill] sm:$0xff] }
 0x57c   :  { %v17633_v25 = vsel %vm9558_vm12, %v9149_v43, %v9145_v49  ;;  %v8196_v58 = vadd.f32 %v7782_v57, %v20647_v22  ;;  %v20702_v43 = vld [vmem:[#allocation10_spill] sm:$0xff]  ;;  %v7422_v42 = vpop.xlane.xlu1 %7421  ;;  %v7414_v47 = vsel %vm4455_vm1, %v17638_v41, 0.0  ;;  %v20708_v6 = vcombine.high %v20706_v18, %v20707_v60 }
 0x57d   :  { %v5553_v57 = vcombine.high %v20702_v43, %v20701_v29  ;;  %20703 = vst [vmem:[#allocation17_spill] sm:$0xff] %v17649_v23  ;;  %v7927_v43 = vsel %vm4455_vm1, %v7044_v12, 0.0 }
 0x57e   :  { %v9241_v49 = vrot.slane %v8196_v58, %v17230_v52  ;;  %7883 = vadd.xlane.f32.xlu0 %v7882_v63  ;;  %v17661_v58 = vsel %vm9560_vm13, %v8705_v3, %v17494_v10  ;;  %v20704_v63 = vld [vmem:[#allocation13_spill] sm:$0xff]  ;;  %v17676_v30 = vrot.slane %v20708_v6, %v20549_v61  ;;  %v5992_v3 = vcombine.low %v17652_v39, %v17655_v54 }
 0x57f   :  { %v7317_v35 = vpop.xlane.xlu0 %7316  ;;  %v5804_v29 = vcombine.low %v20705_v46, %v20704_v63  ;;  %7415 = vadd.xlane.f32.xlu1 %v7414_v47  ;;  %v7459_v63 = vsel %vm4455_vm1, %v5686_v13, 0.0  ;;  %v5482_v47 = vcombine.high %v17421_v24, %v20507_v38 }
 0x580   :  { %v17664_v55 = vsel %vm9558_vm12, %v9245_v51, %v9241_v49  ;;  %v8041_v28 = vadd.f32 %v7317_v35, %v20659_v16  ;;  %v17680_v51 = vrot.slane %v5553_v57, %v16025_v26  ;;  %v7452_v49 = vpop.xlane.xlu1 %7451  ;;  %v7342_v57 = vsel %vm4455_vm1, %v17676_v30, 0.0 }
 0x581   :  { %v8086_v12 = vadd.f32 %v7452_v49, %v20649_v8  ;;  %v6000_v49 = vrot.slane %v5992_v3, %v20549_v61 }
 0x582   :  { %v8621_v10 = vrot.slane %v8041_v28, %v17230_v52  ;;  %7928 = vadd.xlane.f32.xlu0 %v7927_v43  ;;  %20709 = vst [vmem:[#allocation50_spill] sm:$0xff] %v17680_v51  ;;  %v17692_v28 = vrot.slane %v5804_v29, %v20549_v61  ;;  %v5600_v43 = vcombine.low %v17680_v51, %v17649_v23 }
 0x583   :  { %v7362_v35 = vpop.xlane.xlu0 %7361  ;;  %v8801_v13 = vrot.slane %v8086_v12, %v17230_v52  ;;  %7460 = vadd.xlane.f32.xlu1 %v7459_v63  ;;  %v5957_v29 = vcombine.high %v17485_v53, %v20507_v38  ;;  %v8076_v63 = vadd.f32 %v7422_v42, %v20643_v45  ;;  %v7387_v53 = vsel %vm4455_vm1, %v5482_v47, 0.0 }
 0x584   :  { %v8056_v18 = vadd.f32 %v7362_v35, %v20654_v48  ;;  %v17689_v6 = vsel %vm9566_vm2, %v8621_v10, %v17399_v15  ;;  %v7497_v15 = vpop.xlane.xlu1 %7496  ;;  %v6024_v42 = vcombine.high %v6000_v49, %v20507_v38  ;;  %v6705_v23 = vcombine.high %v17575_v1, %v20507_v38 }
 0x585   :  { %v17712_v12 = vsel %vm9560_vm13, %v8801_v13, %v17565_v21 }
 0x586   :  { %v8681_v60 = vrot.slane %v8056_v18, %v17230_v52  ;;  %7343 = vadd.xlane.f32.xlu0 %v7342_v57  ;;  %v7504_v18 = vsel %vm4455_vm1, %v17692_v28, 0.0  ;;  %v17719_v57 = vrot.slane %v5600_v43, %v20549_v61  ;;  %v8761_v43 = vrot.slane %v8076_v63, %v17230_v52 }
 0x587   :  { %v7407_v10 = vpop.xlane.xlu0 %7406  ;;  %7505 = vadd.xlane.f32.xlu1 %v7504_v18  ;;  %v5753_v18 = vcombine.high %v17451_v37, %v20507_v38 }
 0x588   :  { %v17707_v35 = vsel %vm9564_vm15, %v8681_v60, %v17424_v40  ;;  %v8071_v24 = vadd.f32 %v7407_v10, %v20653_v2  ;;  %v7668_v3 = vpop.xlane.xlu1 %7667  ;;  %v7549_v60 = vsel %vm4455_vm1, %v5957_v29, 0.0  ;;  %v5857_v29 = vcombine.high %v17369_v36, %v17372_v20 }
 0x589   :  { %v8158_v21 = vadd.f32 %v7668_v3, %v20644_v19  ;;  %v7567_v20 = vsel %vm4455_vm1, %v6024_v42, 0.0 }
 0x58a   :  { %v8741_v40 = vrot.slane %v8071_v24, %v17230_v52  ;;  %7388 = vadd.xlane.f32.xlu0 %v7387_v53  ;;  %v7432_v24 = vsel %vm4455_vm1, %v17719_v57, 0.0  ;;  %v8101_v53 = vadd.f32 %v7497_v15, %v20652_v34  ;;  %v6231_v15 = vcombine.high %v17459_v9, %v20507_v38 }
 0x58b   :  { %v7425_v10 = vpop.xlane.xlu0 %7424  ;;  %v9089_v3 = vrot.slane %v8158_v21, %v17230_v52  ;;  %7550 = vadd.xlane.f32.xlu1 %v7549_v60  ;;  %v7477_v60 = vsel %vm4455_vm1, %v5753_v18, 0.0  ;;  %v17754_v21 = vrot.slane %v5857_v29, %v20549_v61 }
 0x58c   :  { %v17727_v13 = vsel %vm9562_vm14, %v8741_v40, %v17549_v50  ;;  %v8077_v47 = vadd.f32 %v7425_v10, %v20645_v31  ;;  %v7716_v40 = vpop.xlane.xlu1 %7715  ;;  %v7657_v29 = vsel %vm4455_vm1, %v6231_v15, 0.0 }
 0x58d   :  { %v8174_v63 = vadd.f32 %v7716_v40, %v20644_v19  ;;  %v17743_v46 = vsel %vm9560_vm13, %v9089_v3, %v17587_v56 }
 0x58e   :  { %v8765_v50 = vrot.slane %v8077_v47, %v17230_v52  ;;  %7433 = vadd.xlane.f32.xlu0 %v7432_v24  ;;  %v8861_v47 = vrot.slane %v8101_v53, %v17230_v52  ;;  %v6367_v53 = vcombine.high %v17480_v62, %v20507_v38 }
 0x58f   :  { %v7494_v10 = vpop.xlane.xlu0 %7493  ;;  %v9153_v56 = vrot.slane %v8174_v63, %v17230_v52  ;;  %7568 = vadd.xlane.f32.xlu1 %v7567_v20  ;;  %v20711_v20 = vld [vmem:[#allocation36_spill] sm:$0xff] }
 0x590   :  { %v17746_v37 = vsel %vm9558_vm12, %v8765_v50, %v8761_v43  ;;  %v8100_v36 = vadd.f32 %v7494_v10, %v20647_v22  ;;  %v7758_v24 = vpop.xlane.xlu1 %7757  ;;  %v7522_v50 = vsel %vm4455_vm1, %v17754_v21, 0.0 }
 0x591   :  { %v17761_v42 = vsel %vm9560_vm13, %v9153_v56, %v17633_v25  ;;  %v7705_v56 = vsel %vm4455_vm1, %v6367_v53, 0.0 }
 0x592   :  { %v8857_v43 = vrot.slane %v8100_v36, %v17230_v52  ;;  %7478 = vadd.xlane.f32.xlu0 %v7477_v60  ;;  %v20710_v36 = vld [vmem:[#allocation18_spill] sm:$0xff] }
 0x593   :  { %v7650_v3 = vpop.xlane.xlu0 %7649  ;;  %7658 = vadd.xlane.f32.xlu1 %v7657_v29  ;;  %v20712_v60 = vcombine.high %v20710_v36, %v20711_v20  ;;  %v20714_v36 = vld [vmem:[#allocation16_spill] sm:$0xff] }
 0x594   :  { %v17764_v9 = vsel %vm9558_vm12, %v8861_v47, %v8857_v43  ;;  %v8152_v18 = vadd.f32 %v7650_v3, %v20654_v48  ;;  %v7788_v10 = vpop.xlane.xlu1 %7787  ;;  %v7564_v43 = vsel %vm4455_vm1, %v6000_v49, 0.0  ;;  %v20713_v3 = vcombine.high %v20677_v59, %v20676_v27 }
 0x595   :  { %v8198_v63 = vadd.f32 %v7788_v10, %v20649_v8  ;;  %v17778_v47 = vrot.slane %v20712_v60, %v20549_v61  ;;  %v6298_v10 = vcombine.high %v17522_v11, %v20507_v38  ;;  %v20715_v11 = vld [vmem:[#allocation33_spill] sm:$0xff] }
 0x596   :  { %v9065_v40 = vrot.slane %v8152_v18, %v17230_v52  ;;  %7523 = vadd.xlane.f32.xlu0 %v7522_v50  ;;  %v17791_v18 = vrot.slane %v20713_v3, %v20549_v61  ;;  %v6756_v20 = vcombine.low %v20715_v11, %v20714_v36  ;;  %v20717_v3 = vld [vmem:[#allocation35_spill] sm:$0xff] }
 0x597   :  { %v7698_v25 = vpop.xlane.xlu0 %7697  ;;  %v9249_v29 = vrot.slane %v8198_v63, %v17230_v52  ;;  %7706 = vadd.xlane.f32.xlu1 %v7705_v56  ;;  %v7750_v49 = vsel %vm4455_vm1, %v17778_v47, 0.0  ;;  %v6638_v63 = vcombine.high %v17519_v17, %v20507_v38 }
 0x598   :  { %v17782_v62 = vsel %vm9564_vm15, %v9065_v40, %v17536_v44  ;;  %v8168_v15 = vadd.f32 %v7698_v25, %v20654_v48  ;;  %v7833_v44 = vpop.xlane.xlu1 %7832  ;;  %v8188_v25 = vadd.f32 %v7758_v24, %v20643_v45  ;;  %v7594_v60 = vsel %vm4455_vm1, %v17791_v18, 0.0 }
 0x599   :  { %v17806_v59 = vsel %vm9560_vm13, %v9249_v29, %v17664_v55  ;;  %v7675_v55 = vsel %vm4455_vm1, %v6298_v10, 0.0  ;;  %v20718_v29 = vld [vmem:[#allocation105_spill] sm:$0xff]  ;;  %v7795_v10 = vsel %vm4455_vm1, %v6638_v63, 0.0 }
 0x59a   :  { %v9129_v50 = vrot.slane %v8168_v15, %v17230_v52  ;;  %7565 = vadd.xlane.f32.xlu0 %v7564_v43  ;;  %v20716_v43 = vld [vmem:[#allocation98_spill] sm:$0xff]  ;;  %v9209_v11 = vrot.slane %v8188_v25, %v17230_v52 }
 0x59b   :  { %v7743_v40 = vpop.xlane.xlu0 %7742  ;;  %7751 = vadd.xlane.f32.xlu1 %v7750_v49  ;;  %v6552_v24 = vcombine.low %v20717_v3, %v20716_v43  ;;  %v6434_v49 = vcombine.high %v17533_v32, %v20507_v38  ;;  %v17832_v43 = vrot.slane %v6756_v20, %v20549_v61 }
 0x59c   :  { %v17801_v53 = vsel %vm9564_vm15, %v9129_v50, %v17605_v14  ;;  %v8183_v27 = vadd.f32 %v7743_v40, %v20653_v2  ;;  %v7338_v15 = vpop.xlane.xlu1 %7337 }
 0x59d   :  { %v8048_v50 = vadd.f32 %v7338_v15, %v20718_v29  ;;  %v8213_v15 = vadd.f32 %v7833_v44, %v20652_v34  ;;  %v17838_v3 = vrot.slane %v6552_v24, %v20549_v61 }
 0x59e   :  { %v9189_v14 = vrot.slane %v8183_v27, %v17230_v52  ;;  %7595 = vadd.xlane.f32.xlu0 %v7594_v60  ;;  %v20719_v27 = vld [vmem:[#allocation46_spill] sm:$0xff] }
 0x59f   :  { %v7761_v56 = vpop.xlane.xlu0 %7760  ;;  %v20720_v60 = vld [vmem:[#allocation26_spill] sm:$0xff]  ;;  %7796 = vadd.xlane.f32.xlu1 %v7795_v10 }
 0x5a0   :  { %v17822_v17 = vsel %vm9562_vm14, %v9189_v14, %v17591_v5  ;;  %v8189_v40 = vadd.f32 %v7761_v56, %v20645_v31  ;;  %v6944_v36 = vcombine.low %v20720_v60, %v20719_v27  ;;  %v8649_v5 = vrot.slane %v8048_v50, %v17230_v52  ;;  %v7383_v56 = vpop.xlane.xlu1 %7382 }
 0x5a1   :  { %v8063_v63 = vadd.f32 %v7383_v56, %v20648_v4  ;;  %v7840_v50 = vsel %vm4455_vm1, %v17832_v43, 0.0  ;;  %v7768_v56 = vsel %vm4455_vm1, %v17838_v3, 0.0 }
 0x5a2   :  { %v9213_v14 = vrot.slane %v8189_v40, %v17230_v52  ;;  %7676 = vadd.xlane.f32.xlu0 %v7675_v55  ;;  %v17842_v25 = vsel %vm9564_vm15, %v8649_v5, %v17630_v7  ;;  %v6909_v55 = vcombine.high %v17616_v33, %v20507_v38  ;;  %v6952_v24 = vrot.slane %v6944_v36, %v20549_v61 }
 0x5a3   :  { %v7830_v32 = vpop.xlane.xlu0 %7829  ;;  %v7723_v40 = vsel %vm4455_vm1, %v6434_v49, 0.0  ;;  %v9309_v7 = vrot.slane %v8213_v15, %v17230_v52  ;;  %v8709_v10 = vrot.slane %v8063_v63, %v17230_v52  ;;  %7841 = vadd.xlane.f32.xlu1 %v7840_v50  ;;  %v20721_v15 = vld [vmem:[#allocation114_spill] sm:$0xff]  ;;  %v20722_v50 = vld [vmem:[#allocation137_spill] sm:$0xff] }
 0x5a4   :  { %v17846_v20 = vsel %vm9558_vm12, %v9213_v14, %v9209_v11  ;;  %v8212_v44 = vadd.f32 %v7830_v32, %v20647_v22  ;;  %v7428_v5 = vpop.xlane.xlu1 %7427  ;;  %v7885_v63 = vsel %vm4455_vm1, %v6909_v55, 0.0 }
 0x5a5   :  { %v17862_v33 = vsel %vm9562_vm14, %v8709_v10, %v17661_v58  ;;  %v8078_v36 = vadd.f32 %v7428_v5, %v20644_v19 }
 0x5a6   :  { %v9305_v11 = vrot.slane %v8212_v44, %v17230_v52  ;;  %7724 = vadd.xlane.f32.xlu0 %v7723_v40  ;;  %v6976_v44 = vcombine.high %v6952_v24, %v20507_v38  ;;  %v20723_v40 = vld [vmem:[#allocation138_spill] sm:$0xff] }
 0x5a7   :  { %v7320_v14 = vpop.xlane.xlu0 %7319  ;;  %v7148_v51 = vcombine.low %v20723_v40, %v20722_v50  ;;  %v8769_v58 = vrot.slane %v8078_v36, %v17230_v52  ;;  %7886 = vadd.xlane.f32.xlu1 %v7885_v63  ;;  %v7813_v63 = vsel %vm4455_vm1, %v6705_v23, 0.0  ;;  %v20731_v40 = vld [vmem:[#allocation55_spill] sm:$0xff] }
 0x5a8   :  { %v17866_v49 = vsel %vm9558_vm12, %v9309_v7, %v9305_v11  ;;  %v8042_v32 = vadd.f32 %v7320_v14, %v20721_v15  ;;  %v7470_v7 = vpop.xlane.xlu1 %7469  ;;  %v7903_v1 = vsel %vm4455_vm1, %v6976_v44, 0.0 }
 0x5a9   :  { %v17880_v55 = vsel %vm9560_vm13, %v8769_v58, %v17746_v37  ;;  %v7156_v36 = vrot.slane %v7148_v51, %v20549_v61  ;;  %v20728_v58 = vld [vmem:[#allocation57_spill] sm:$0xff] }
 0x5aa   :  { %v8625_v10 = vrot.slane %v8042_v32, %v17230_v52  ;;  %7769 = vadd.xlane.f32.xlu0 %v7768_v56  ;;  %20724 = vst [vmem:[#allocation45_spill] sm:$0xff] %v17880_v55  ;;  %v20725_v56 = vld [vmem:[#allocation122_spill] sm:$0xff] }
 0x5ab   :  { %v7365_v11 = vpop.xlane.xlu0 %7364  ;;  %v20726_v32 = vcombine.high %v20687_v0, %v20725_v56  ;;  %7904 = vadd.xlane.f32.xlu1 %v7903_v1  ;;  %v7972_v1 = vsel %vm4455_vm1, %v7156_v36, 0.0 }
 0x5ac   :  { %v8057_v5 = vadd.f32 %v7365_v11, %v20659_v16  ;;  %v17884_v14 = vsel %vm9568_vm3, %v8625_v10, %v17689_v6  ;;  %v20729_v11 = vld [vmem:[#allocation12_spill] sm:$0xff]  ;;  %v20730_v10 = vld [vmem:[#allocation58_spill] sm:$0xff]  ;;  %v7500_v27 = vpop.xlane.xlu1 %7499 }
 0x5ad   :  { %v17893_v50 = vrot.slane %v20726_v32, %v20549_v61  ;;  %v5689_v6 = vcombine.high %v20729_v11, %v20728_v58  ;;  %v5705_v44 = vcombine.high %v20731_v40, %v20730_v10  ;;  %v8102_v23 = vadd.f32 %v7500_v27, %v20649_v8  ;;  %v20735_v11 = vld [vmem:[#allocation87_spill] sm:$0xff]  ;;  %v20736_v10 = vld [vmem:[#allocation85_spill] sm:$0xff] }
 0x5ae   :  { %v8685_v37 = vrot.slane %v8057_v5, %v17230_v52  ;;  %7814 = vadd.xlane.f32.xlu0 %v7813_v63  ;;  %v20732_v5 = vld [vmem:[#allocation78_spill] sm:$0xff] }
 0x5af   :  { %20727 = vst [vmem:[#allocation48_spill] sm:$0xff] %v17893_v50  ;;  %v7410_v51 = vpop.xlane.xlu0 %7409  ;;  %v5211_v63 = vcombine.high %v20732_v5, %v20507_v38  ;;  %v7858_v56 = vsel %vm4455_vm1, %v17893_v50, 0.0  ;;  %v8865_v40 = vrot.slane %v8102_v23, %v17230_v52  ;;  %7973 = vadd.xlane.f32.xlu1 %v7972_v1  ;;  %v17914_v27 = vrot.slane %v5689_v6, %v16025_v26 }
 0x5b0   :  { %v8072_v60 = vadd.f32 %v7410_v51, %v20654_v48  ;;  %v17904_v0 = vsel %vm9566_vm2, %v8685_v37, %v17707_v35  ;;  %v17917_v35 = vrot.slane %v5705_v44, %v16025_v26  ;;  %v7545_v37 = vpop.xlane.xlu1 %7544  ;;  %v20737_v51 = vcombine.high %v20735_v11, %v20736_v10  ;;  %v20739_v11 = vld [vmem:[#allocation47_spill] sm:$0xff] }
 0x5b1   :  { %20733 = vst [vmem:[#allocation15_spill] sm:$0xff] %v17914_v27  ;;  %v8092_v44 = vadd.f32 %v7470_v7, %v20643_v45  ;;  %v7297_v1 = vsel %vm4455_vm1, %v5211_v63, 0.0  ;;  %v20740_v10 = vld [vmem:[#allocation83_spill] sm:$0xff] }
 0x5b2   :  { %v8745_v32 = vrot.slane %v8072_v60, %v17230_v52  ;;  %7859 = vadd.xlane.f32.xlu0 %v7858_v56  ;;  %20734 = vst [vmem:[#allocation110_spill] sm:$0xff] %v17917_v35  ;;  %v17923_v5 = vrot.slane %v20737_v51, %v20549_v61  ;;  %v17931_v60 = vsel %vm9560_vm13, %v8865_v40, %v17764_v9  ;;  %v7900_v56 = vsel %vm4455_vm1, %v6952_v24, 0.0 }
 0x5b3   :  { %v7455_v58 = vpop.xlane.xlu0 %7454  ;;  %v20741_v51 = vcombine.high %v20739_v11, %v20740_v10  ;;  %7298 = vadd.xlane.f32.xlu1 %v7297_v1  ;;  %v5736_v40 = vcombine.low %v17914_v27, %v17917_v35  ;;  %v8825_v1 = vrot.slane %v8092_v44, %v17230_v52  ;;  %v7180_v11 = vcombine.high %v7156_v36, %v20507_v38  ;;  %v20744_v44 = vld [vmem:[#allocation8_spill] sm:$0xff]  ;;  %v20745_v27 = vld [vmem:[#allocation14_spill] sm:$0xff] }
 0x5b4   :  { %20738 = vst [vmem:[#allocation128_spill] sm:$0xff] %v17923_v5  ;;  %v17927_v23 = vsel %vm9564_vm15, %v8745_v32, %v17727_v13  ;;  %v8087_v6 = vadd.f32 %v7455_v58, %v20653_v2  ;;  %v7671_v9 = vpop.xlane.xlu1 %7670  ;;  %v7390_v24 = vsel %vm4455_vm1, %v17923_v5, 0.0  ;;  %v8117_v10 = vadd.f32 %v7545_v37, %v20652_v34 }
 0x5b5   :  { %v17941_v55 = vrot.slane %v20741_v51, %v20549_v61  ;;  %v8159_v7 = vadd.f32 %v7671_v9, %v20648_v4  ;;  %v20743_v9 = vld [vmem:[#allocation25_spill] sm:$0xff]  ;;  %v6112_v35 = vcombine.low %v20745_v27, %v20744_v44 }
 0x5b6   :  { %v8805_v13 = vrot.slane %v8087_v6, %v17230_v52  ;;  %7901 = vadd.xlane.f32.xlu0 %v7900_v56  ;;  %v5618_v6 = vcombine.high %v17719_v57, %v20507_v38 }
 0x5b7   :  { %v7473_v32 = vpop.xlane.xlu0 %7472  ;;  %v7930_v56 = vsel %vm4455_vm1, %v17941_v55, 0.0  ;;  %v9093_v51 = vrot.slane %v8159_v7, %v17230_v52  ;;  %7391 = vadd.xlane.f32.xlu1 %v7390_v24  ;;  %v17991_v27 = vrot.slane %v6112_v35, %v16025_v26 }
 0x5b8   :  { %v17951_v63 = vsel %vm9562_vm14, %v8805_v13, %v17712_v12  ;;  %v8093_v58 = vadd.f32 %v7473_v32, %v20645_v31  ;;  %v20742_v13 = vld [vmem:[#allocation68_spill] sm:$0xff]  ;;  %v7719_v57 = vpop.xlane.xlu1 %7718  ;;  %v7435_v24 = vsel %vm4455_vm1, %v5618_v6, 0.0  ;;  %v20748_v6 = vld [vmem:[#allocation65_spill] sm:$0xff] }
 0x5b9   :  { %v6096_v32 = vcombine.low %v20743_v9, %v20742_v13  ;;  %v17969_v50 = vsel %vm9562_vm14, %v9093_v51, %v17743_v46  ;;  %v8175_v36 = vadd.f32 %v7719_v57, %v20648_v4  ;;  %v5347_v9 = vcombine.high %v17676_v30, %v20507_v38  ;;  %v20749_v13 = vld [vmem:[#allocation61_spill] sm:$0xff] }
 0x5ba   :  { %v8829_v12 = vrot.slane %v8093_v58, %v17230_v52  ;;  %7931 = vadd.xlane.f32.xlu0 %v7930_v56  ;;  %v17978_v58 = vrot.slane %v5736_v40, %v20549_v61  ;;  %v7975_v56 = vsel %vm4455_vm1, %v7180_v11, 0.0  ;;  %v8925_v46 = vrot.slane %v8117_v10, %v17230_v52 }
 0x5bb   :  { %v7542_v5 = vpop.xlane.xlu0 %7541  ;;  %v9157_v51 = vrot.slane %v8175_v36, %v17230_v52  ;;  %7436 = vadd.xlane.f32.xlu1 %v7435_v24  ;;  %v5909_v40 = vcombine.high %v20749_v13, %v20748_v6  ;;  %v5993_v30 = vcombine.high %v17652_v39, %v17655_v54  ;;  %v5889_v13 = vcombine.high %v17754_v21, %v20507_v38 }
 0x5bc   :  { %v17973_v37 = vsel %vm9558_vm12, %v8829_v12, %v8825_v1  ;;  %v8116_v7 = vadd.f32 %v7542_v5, %v20647_v22  ;;  %v20746_v12 = vld [vmem:[#allocation29_spill] sm:$0xff]  ;;  %v20747_v5 = vld [vmem:[#allocation30_spill] sm:$0xff]  ;;  %v7764_v11 = vpop.xlane.xlu1 %7763  ;;  %v7480_v35 = vsel %vm4455_vm1, %v17978_v58, 0.0  ;;  %v7345_v54 = vsel %vm4455_vm1, %v5347_v9, 0.0 }
 0x5bd   :  { %v5669_v57 = vcombine.high %v20747_v5, %v20746_v12  ;;  %v17997_v36 = vsel %vm9562_vm14, %v9157_v51, %v17761_v42  ;;  %v5551_v39 = vcombine.high %v17638_v41, %v20507_v38  ;;  %v18012_v42 = vrot.slane %v6096_v32, %v16025_v26  ;;  %v20751_v12 = vld [vmem:[#allocation22_spill] sm:$0xff] }
 0x5be   :  { %v8921_v1 = vrot.slane %v8116_v7, %v17230_v52  ;;  %7976 = vadd.xlane.f32.xlu0 %v7975_v56  ;;  %v8190_v7 = vadd.f32 %v7764_v11, %v20644_v19  ;;  %v18019_v6 = vrot.slane %v5909_v40, %v16025_v26  ;;  %v18034_v40 = vrot.slane %v5993_v30, %v20549_v61 }
 0x5bf   :  { %v7653_v10 = vpop.xlane.xlu0 %7652  ;;  %7481 = vadd.xlane.f32.xlu1 %v7480_v35  ;;  %v6128_v41 = vcombine.low %v18012_v42, %v17991_v27  ;;  %v7417_v35 = vsel %vm4455_vm1, %v5551_v39, 0.0 }
 0x5c0   :  { %v18001_v24 = vsel %vm9558_vm12, %v8925_v46, %v8921_v1  ;;  %v8153_v56 = vadd.f32 %v7653_v10, %v20659_v16  ;;  %v9217_v51 = vrot.slane %v8190_v7, %v17230_v52  ;;  %v20750_v1 = vld [vmem:[#allocation63_spill] sm:$0xff]  ;;  %20752 = vst [vmem:[#allocation93_spill] sm:$0xff] %v18019_v6  ;;  %v7806_v21 = vpop.xlane.xlu1 %7805  ;;  %v7525_v7 = vsel %vm4455_vm1, %v5889_v13, 0.0 }
 0x5c1   :  { %v5893_v5 = vcombine.high %v20751_v12, %v20750_v1  ;;  %v6136_v13 = vrot.slane %v6128_v41, %v20549_v61  ;;  %v7570_v1 = vsel %vm4455_vm1, %v18034_v40, 0.0 }
 0x5c2   :  { %v9069_v46 = vrot.slane %v8153_v56, %v17230_v52  ;;  %7346 = vadd.xlane.f32.xlu0 %v7345_v54  ;;  %v18026_v11 = vsel %vm9560_vm13, %v9217_v51, %v17846_v20  ;;  %v18037_v56 = vrot.slane %v5669_v57, %v20549_v61 }
 0x5c3   :  { %v7701_v9 = vpop.xlane.xlu0 %7700  ;;  %7526 = vadd.xlane.f32.xlu1 %v7525_v7  ;;  %v18042_v20 = vrot.slane %v5893_v5, %v16025_v26  ;;  %v5822_v5 = vcombine.high %v17692_v28, %v20507_v38  ;;  %v7612_v7 = vsel %vm4455_vm1, %v6136_v13, 0.0  ;;  %v8204_v28 = vadd.f32 %v7806_v21, %v20643_v45 }
 0x5c4   :  { %v8169_v32 = vadd.f32 %v7701_v9, %v20659_v16  ;;  %v18030_v10 = vsel %vm9566_vm2, %v9069_v46, %v17782_v62  ;;  %v7836_v51 = vpop.xlane.xlu1 %7835  ;;  %v7462_v12 = vsel %vm4455_vm1, %v18037_v56, 0.0  ;;  %v6503_v21 = vcombine.high %v17778_v47, %v20507_v38 }
 0x5c5   :  { %20753 = vst [vmem:[#allocation91_spill] sm:$0xff] %v18042_v20  ;;  %v8214_v46 = vadd.f32 %v7836_v51, %v20649_v8  ;;  %v5940_v39 = vcombine.low %v18042_v20, %v18019_v6  ;;  %v6160_v6 = vcombine.high %v6136_v13, %v20507_v38 }
 0x5c6   :  { %v9133_v54 = vrot.slane %v8169_v32, %v17230_v52  ;;  %7418 = vadd.xlane.f32.xlu0 %v7417_v35 }
 0x5c7   :  { %v7746_v62 = vpop.xlane.xlu0 %7745  ;;  %v9313_v9 = vrot.slane %v8214_v46, %v17230_v52  ;;  %7571 = vadd.xlane.f32.xlu1 %v7570_v1  ;;  %v20755_v46 = vld [vmem:[#allocation27_spill] sm:$0xff] }
 0x5c8   :  { %v8184_v30 = vadd.f32 %v7746_v62, %v20654_v48  ;;  %v18049_v57 = vsel %vm9566_vm2, %v9133_v54, %v17801_v53  ;;  %v7881_v53 = vpop.xlane.xlu1 %7880  ;;  %v20754_v62 = vld [vmem:[#allocation89_spill] sm:$0xff] }
 0x5c9   :  { %v18069_v51 = vsel %vm9560_vm13, %v9313_v9, %v17866_v49  ;;  %v20757_v9 = vld [vmem:[#allocation43_spill] sm:$0xff] }
 0x5ca   :  { %v9193_v41 = vrot.slane %v8184_v30, %v17230_v52  ;;  %7463 = vadd.xlane.f32.xlu0 %v7462_v12  ;;  %v20756_v30 = vcombine.high %v20754_v62, %v20755_v46  ;;  %v18079_v12 = vrot.slane %v5940_v39, %v20549_v61  ;;  %v9273_v46 = vrot.slane %v8204_v28, %v17230_v52  ;;  %v20758_v28 = vld [vmem:[#allocation95_spill] sm:$0xff] }
 0x5cb   :  { %v7791_v32 = vpop.xlane.xlu0 %7790  ;;  %7613 = vadd.xlane.f32.xlu1 %v7612_v7 }
 0x5cc   :  { %v18064_v35 = vsel %vm9564_vm15, %v9193_v41, %v17822_v17  ;;  %v8199_v54 = vadd.f32 %v7791_v32, %v20653_v2  ;;  %v18076_v1 = vrot.slane %v20756_v30, %v20549_v61  ;;  %v7507_v17 = vsel %vm4455_vm1, %v5822_v5, 0.0  ;;  %v7323_v32 = vpop.xlane.xlu1 %7322 }
 0x5cd   :  { %v8043_v44 = vadd.f32 %v7323_v32, %v20757_v9  ;;  %v7552_v7 = vsel %vm4455_vm1, %v18079_v12, 0.0  ;;  %v8229_v30 = vadd.f32 %v7881_v53, %v20652_v34 }
 0x5ce   :  { %v9253_v41 = vrot.slane %v8199_v54, %v17230_v52  ;;  %7508 = vadd.xlane.f32.xlu0 %v7507_v17  ;;  %v7678_v5 = vsel %vm4455_vm1, %v18076_v1, 0.0  ;;  %v6093_v54 = vcombine.high %v17791_v18, %v20507_v38 }
 0x5cf   :  { %v7809_v49 = vpop.xlane.xlu0 %7808  ;;  %v8629_v47 = vrot.slane %v8043_v44, %v17230_v52  ;;  %7679 = vadd.xlane.f32.xlu1 %v7678_v5  ;;  %v20762_v5 = vld [vmem:[#allocation9_spill] sm:$0xff]  ;;  %v9373_v13 = vrot.slane %v8229_v30, %v17230_v52 }
 0x5d0   :  { %v18088_v62 = vsel %vm9562_vm14, %v9253_v41, %v17806_v59  ;;  %v8205_v39 = vadd.f32 %v7809_v49, %v20645_v31  ;;  %v7368_v17 = vpop.xlane.xlu1 %7367  ;;  %v20759_v41 = vld [vmem:[#allocation94_spill] sm:$0xff] }
 0x5d1   :  { %v20760_v32 = vcombine.high %v20758_v28, %v20759_v41  ;;  %v8058_v18 = vadd.f32 %v7368_v17, %v20721_v15  ;;  %v7753_v28 = vsel %vm4455_vm1, %v6503_v21, 0.0  ;;  %v7597_v41 = vsel %vm4455_vm1, %v6093_v54, 0.0 }
 0x5d2   :  { %v9277_v59 = vrot.slane %v8205_v39, %v17230_v52  ;;  %7553 = vadd.xlane.f32.xlu0 %v7552_v7  ;;  %v18115_v39 = vsel %vm9570_vm5, %v8629_v47, %v17884_v14  ;;  %v20763_v7 = vld [vmem:[#allocation41_spill] sm:$0xff]  ;;  %v7615_v21 = vsel %vm4455_vm1, %v6160_v6, 0.0 }
 0x5d3   :  { %v18105_v49 = vrot.slane %v20760_v32, %v20549_v61  ;;  %v7878_v20 = vpop.xlane.xlu0 %7877  ;;  %20761 = vst [vmem:[#allocation31_spill] sm:$0xff] %v18115_v39  ;;  %v7064_v9 = vcombine.low %v20763_v7, %v20762_v5  ;;  %v8689_v17 = vrot.slane %v8058_v18, %v17230_v52  ;;  %7754 = vadd.xlane.f32.xlu1 %v7753_v28  ;;  %v20767_v18 = vld [vmem:[#allocation129_spill] sm:$0xff]  ;;  %v20770_v7 = vld [vmem:[#allocation74_spill] sm:$0xff]  ;;  %v20772_v5 = vld [vmem:[#allocation99_spill] sm:$0xff] }
 0x5d4   :  { %v18110_v53 = vsel %vm9558_vm12, %v9277_v59, %v9273_v46  ;;  %v8228_v44 = vadd.f32 %v7878_v20, %v20647_v22  ;;  %v20764_v20 = vld [vmem:[#allocation69_spill] sm:$0xff]  ;;  %v20765_v59 = vld [vmem:[#allocation116_spill] sm:$0xff]  ;;  %v7413_v14 = vpop.xlane.xlu1 %7412 }
 0x5d5   :  { %v7048_v32 = vcombine.low %v20765_v59, %v20764_v20  ;;  %v7798_v47 = vsel %vm4455_vm1, %v18105_v49, 0.0  ;;  %v8073_v54 = vadd.f32 %v7413_v14, %v20659_v16  ;;  %v6774_v59 = vcombine.high %v17832_v43, %v20507_v38  ;;  %v20769_v20 = vld [vmem:[#allocation44_spill] sm:$0xff]  ;;  %v20771_v14 = vld [vmem:[#allocation97_spill] sm:$0xff] }
 0x5d6   :  { %v9369_v46 = vrot.slane %v8228_v44, %v17230_v52  ;;  %7598 = vadd.xlane.f32.xlu0 %v7597_v41  ;;  %v18136_v44 = vsel %vm9568_vm3, %v8689_v17, %v17904_v0  ;;  %v18139_v41 = vrot.slane %v7064_v9, %v16025_v26  ;;  %v6892_v6 = vcombine.low %v20770_v7, %v20769_v20  ;;  %v20774_v9 = vld [vmem:[#allocation90_spill] sm:$0xff]  ;;  %v20775_v17 = vld [vmem:[#allocation92_spill] sm:$0xff] }
 0x5d7   :  { %v7293_v39 = vpop.xlane.xlu0 %7292  ;;  %20768 = vst [vmem:[#allocation54_spill] sm:$0xff] %v18136_v44  ;;  %7799 = vadd.xlane.f32.xlu1 %v7798_v47  ;;  %v6688_v44 = vcombine.low %v20775_v17, %v20774_v9  ;;  %v18156_v43 = vrot.slane %v7048_v32, %v16025_v26  ;;  %v6570_v7 = vcombine.high %v17838_v3, %v20507_v38  ;;  %v20783_v9 = vld [vmem:[#allocation128_spill] sm:$0xff] }
 0x5d8   :  { %v18131_v30 = vsel %vm9558_vm12, %v9373_v13, %v9369_v46  ;;  %v8033_v28 = vadd.f32 %v7293_v39, %v20767_v18  ;;  %v20773_v13 = vcombine.high %v20771_v14, %v20772_v5  ;;  %v8749_v39 = vrot.slane %v8073_v54, %v17230_v52  ;;  %v20776_v54 = vld [vmem:[#allocation73_spill] sm:$0xff] }
 0x5d9   :  { %20766 = vst [vmem:[#allocation19_spill] sm:$0xff] %v18131_v30  ;;  %v7458_v30 = vpop.xlane.xlu1 %7457  ;;  %v7080_v32 = vcombine.low %v18156_v43, %v18139_v41  ;;  %v5483_v17 = vcombine.high %v20783_v9, %v20507_v38 }
 0x5da   :  { %v18149_v46 = vrot.slane %v20773_v13, %v20549_v61  ;;  %v8589_v0 = vrot.slane %v8033_v28, %v17230_v52  ;;  %7616 = vadd.xlane.f32.xlu0 %v7615_v21  ;;  %v8088_v5 = vadd.f32 %v7458_v30, %v20654_v48  ;;  %v18168_v21 = vsel %vm9566_vm2, %v8749_v39, %v17927_v23 }
 0x5db   :  { %v7341_v20 = vpop.xlane.xlu0 %7340  ;;  %v7843_v28 = vsel %vm4455_vm1, %v6774_v59, 0.0  ;;  %v18174_v13 = vrot.slane %v6892_v6, %v20549_v61  ;;  %v18181_v23 = vrot.slane %v6688_v44, %v20549_v61  ;;  %v7045_v44 = vcombine.high %v17941_v55, %v20507_v38 }
 0x5dc   :  { %v8049_v14 = vadd.f32 %v7341_v20, %v20767_v18  ;;  %v18164_v47 = vsel %vm9566_vm2, %v8589_v0, %v20776_v54  ;;  %v7726_v3 = vsel %vm4455_vm1, %v18149_v46, 0.0  ;;  %v8809_v20 = vrot.slane %v8088_v5, %v17230_v52  ;;  %7844 = vadd.xlane.f32.xlu1 %v7843_v28 }
 0x5dd   :  { %v7503_v0 = vpop.xlane.xlu1 %7502  ;;  %v7088_v28 = vrot.slane %v7080_v32, %v20549_v61 }
 0x5de   :  { %v8653_v30 = vrot.slane %v8049_v14, %v17230_v52  ;;  %7727 = vadd.xlane.f32.xlu0 %v7726_v3  ;;  %v8103_v54 = vadd.f32 %v7503_v0, %v20653_v2  ;;  %v18187_v6 = vsel %vm9564_vm15, %v8809_v20, %v17951_v63  ;;  %v7888_v14 = vsel %vm4455_vm1, %v18174_v13, 0.0 }
 0x5df   :  { %v7386_v39 = vpop.xlane.xlu0 %7385  ;;  %v7771_v3 = vsel %vm4455_vm1, %v6570_v7, 0.0  ;;  %v7933_v7 = vsel %vm4455_vm1, %v7045_v44, 0.0  ;;  %v7112_v32 = vcombine.high %v7088_v28, %v20507_v38 }
 0x5e0   :  { %v8064_v59 = vadd.f32 %v7386_v39, %v20718_v29  ;;  %v18191_v5 = vsel %vm9566_vm2, %v8653_v30, %v17842_v25  ;;  %v8869_v0 = vrot.slane %v8103_v54, %v17230_v52  ;;  %7889 = vadd.xlane.f32.xlu1 %v7888_v14  ;;  %v7816_v54 = vsel %vm4455_vm1, %v18181_v23, 0.0 }
 0x5e1   :  { %20777 = vst [vmem:[#allocation7_spill] sm:$0xff] %v18191_v5  ;;  %v7521_v20 = vpop.xlane.xlu1 %7520 }
 0x5e2   :  { %v8713_v63 = vrot.slane %v8064_v59, %v17230_v52  ;;  %7772 = vadd.xlane.f32.xlu0 %v7771_v3  ;;  %v18203_v25 = vsel %vm9562_vm14, %v8869_v0, %v17931_v60  ;;  %v20780_v59 = vld [vmem:[#allocation48_spill] sm:$0xff] }
 0x5e3   :  { %v7431_v39 = vpop.xlane.xlu0 %7430  ;;  %20778 = vst [vmem:[#allocation56_spill] sm:$0xff] %v18203_v25  ;;  %v6841_v14 = vcombine.high %v20780_v59, %v20507_v38  ;;  %v20785_v59 = vld [vmem:[#allocation46_spill] sm:$0xff] }
 0x5e4   :  { %v18207_v30 = vsel %vm9564_vm15, %v8713_v63, %v17862_v33  ;;  %v8079_v55 = vadd.f32 %v7431_v39, %v20648_v4  ;;  %7934 = vadd.xlane.f32.xlu1 %v7933_v7  ;;  %v20781_v33 = vld [vmem:[#allocation45_spill] sm:$0xff]  ;;  %v7951_v39 = vsel %vm4455_vm1, %v7112_v32, 0.0 }
 0x5e5   :  { %20779 = vst [vmem:[#allocation52_spill] sm:$0xff] %v18207_v30  ;;  %v7590_v3 = vpop.xlane.xlu1 %7589  ;;  %v20784_v30 = vld [vmem:[#allocation26_spill] sm:$0xff] }
 0x5e6   :  { %v8773_v60 = vrot.slane %v8079_v55, %v17230_v52  ;;  %7817 = vadd.xlane.f32.xlu0 %v7816_v54  ;;  %v20786_v7 = vcombine.high %v20784_v30, %v20785_v59  ;;  %v7861_v55 = vsel %vm4455_vm1, %v6841_v14, 0.0  ;;  %v8109_v54 = vadd.f32 %v7521_v20, %v20645_v31 }
 0x5e7   :  { %v7476_v0 = vpop.xlane.xlu0 %7475  ;;  %v7393_v59 = vsel %vm4455_vm1, %v5483_v17, 0.0  ;;  %v5687_v14 = vcombine.high %v18037_v56, %v20507_v38 }
 0x5e8   :  { %v18219_v63 = vsel %vm9562_vm14, %v8773_v60, %v20781_v33  ;;  %v8094_v44 = vadd.f32 %v7476_v0, %v20644_v19  ;;  %v18229_v25 = vrot.slane %v20786_v7, %v20549_v61  ;;  %7952 = vadd.xlane.f32.xlu1 %v7951_v39 }
 0x5e9   :  { %20782 = vst [vmem:[#allocation32_spill] sm:$0xff] %v18219_v63  ;;  %v7656_v0 = vpop.xlane.xlu1 %7655 }
 0x5ea   :  { %v8833_v60 = vrot.slane %v8094_v44, %v17230_v52  ;;  %7862 = vadd.xlane.f32.xlu0 %v7861_v55  ;;  %v8154_v32 = vadd.f32 %v7656_v0, %v20721_v15  ;;  %v7906_v20 = vsel %vm4455_vm1, %v18229_v25, 0.0  ;;  %v8893_v44 = vrot.slane %v8109_v54, %v17230_v52  ;;  %v20789_v55 = vld [vmem:[#allocation50_spill] sm:$0xff] }
 0x5eb   :  { %v7518_v33 = vpop.xlane.xlu0 %7517  ;;  %v20790_v0 = vld [vmem:[#allocation62_spill] sm:$0xff] }
 0x5ec   :  { %v18237_v9 = vsel %vm9560_vm13, %v8833_v60, %v17973_v37  ;;  %v8108_v30 = vadd.f32 %v7518_v33, %v20643_v45  ;;  %v9073_v39 = vrot.slane %v8154_v32, %v17230_v52  ;;  %7394 = vadd.xlane.f32.xlu1 %v7393_v59  ;;  %v20788_v37 = vld [vmem:[#allocation17_spill] sm:$0xff]  ;;  %v20791_v33 = vld [vmem:[#allocation59_spill] sm:$0xff]  ;;  %v20792_v59 = vld [vmem:[#allocation96_spill] sm:$0xff] }
 0x5ed   :  { %20787 = vst [vmem:[#allocation24_spill] sm:$0xff] %v18237_v9  ;;  %v5601_v60 = vcombine.high %v20789_v55, %v20788_v37  ;;  %v5841_v17 = vcombine.high %v20791_v33, %v20790_v0  ;;  %v7704_v9 = vpop.xlane.xlu1 %7703  ;;  %v7948_v0 = vsel %vm4455_vm1, %v7088_v28, 0.0 }
 0x5ee   :  { %v8889_v7 = vrot.slane %v8108_v30, %v17230_v52  ;;  %7907 = vadd.xlane.f32.xlu0 %v7906_v20  ;;  %v8170_v56 = vadd.f32 %v7704_v9, %v20721_v15  ;;  %v18259_v32 = vsel %vm9568_vm3, %v9073_v39, %v18030_v10  ;;  %v7465_v30 = vsel %vm4455_vm1, %v5687_v14, 0.0  ;;  %v20793_v20 = vld [vmem:[#allocation13_spill] sm:$0xff]  ;;  %v20795_v9 = vld [vmem:[#allocation138_spill] sm:$0xff]  ;;  %v20798_v39 = vld [vmem:[#allocation60_spill] sm:$0xff] }
 0x5ef   :  { %v7548_v63 = vpop.xlane.xlu0 %7547  ;;  %v20794_v37 = vcombine.high %v20792_v59, %v20793_v20  ;;  %v20799_v59 = vld [vmem:[#allocation21_spill] sm:$0xff] }
 0x5f0   :  { %v18254_v5 = vsel %vm9558_vm12, %v8893_v44, %v8889_v7  ;;  %v8118_v54 = vadd.f32 %v7548_v63, %v20649_v8  ;;  %v20796_v44 = vld [vmem:[#allocation137_spill] sm:$0xff]  ;;  %v8132_v63 = vadd.f32 %v7590_v3, %v20647_v22  ;;  %v9137_v10 = vrot.slane %v8170_v56, %v17230_v52  ;;  %7466 = vadd.xlane.f32.xlu1 %v7465_v30  ;;  %v20801_v30 = vld [vmem:[#allocation100_spill] sm:$0xff] }
 0x5f1   :  { %v18266_v55 = vrot.slane %v20794_v37, %v20549_v61  ;;  %v20797_v7 = vcombine.high %v20795_v9, %v20796_v44  ;;  %v5825_v20 = vcombine.high %v20799_v59, %v20798_v39  ;;  %v18281_v37 = vrot.slane %v5841_v17, %v16025_v26  ;;  %v7749_v28 = vpop.xlane.xlu1 %7748 }
 0x5f2   :  { %v8929_v14 = vrot.slane %v8118_v54, %v17230_v52  ;;  %7949 = vadd.xlane.f32.xlu0 %v7948_v0  ;;  %v5958_v9 = vcombine.high %v18079_v12, %v20507_v38  ;;  %v18293_v54 = vsel %vm9568_vm3, %v9137_v10, %v18049_v57  ;;  %v20802_v0 = vld [vmem:[#allocation101_spill] sm:$0xff]  ;;  %v18300_v12 = vrot.slane %v5601_v60, %v20549_v61 }
 0x5f3   :  { %v18273_v33 = vrot.slane %v20797_v7, %v20549_v61  ;;  %20800 = vst [vmem:[#allocation88_spill] sm:$0xff] %v18281_v37  ;;  %v7593_v44 = vpop.xlane.xlu0 %7592  ;;  %v8185_v7 = vadd.f32 %v7749_v28, %v20659_v16  ;;  %v7510_v17 = vsel %vm4455_vm1, %v18266_v55, 0.0  ;;  %v6076_v39 = vcombine.low %v20802_v0, %v20801_v30 }
 0x5f4   :  { %v18288_v3 = vsel %vm9560_vm13, %v8929_v14, %v18001_v24  ;;  %v8133_v56 = vadd.f32 %v7593_v44, %v20652_v34  ;;  %v8985_v24 = vrot.slane %v8132_v63, %v17230_v52  ;;  %7511 = vadd.xlane.f32.xlu1 %v7510_v17  ;;  %v18308_v10 = vrot.slane %v5825_v20, %v16025_v26 }
 0x5f5   :  { %v7978_v59 = vsel %vm4455_vm1, %v18273_v33, 0.0  ;;  %v9197_v14 = vrot.slane %v8185_v7, %v17230_v52  ;;  %v7794_v28 = vpop.xlane.xlu1 %7793  ;;  %v7555_v44 = vsel %vm4455_vm1, %v5958_v9, 0.0  ;;  %v7438_v20 = vsel %vm4455_vm1, %v18300_v12, 0.0 }
 0x5f6   :  { %v8989_v57 = vrot.slane %v8133_v56, %v17230_v52  ;;  %7979 = vadd.xlane.f32.xlu0 %v7978_v59  ;;  %20803 = vst [vmem:[#allocation124_spill] sm:$0xff] %v18308_v10  ;;  %v8200_v60 = vadd.f32 %v7794_v28, %v20654_v48  ;;  %v18321_v56 = vrot.slane %v6076_v39, %v20549_v61 }
 0x5f7   :  { %v7674_v30 = vpop.xlane.xlu0 %7673  ;;  %v18318_v7 = vsel %vm9566_vm2, %v9197_v14, %v18064_v35  ;;  %v5754_v9 = vcombine.high %v17978_v58, %v20507_v38  ;;  %v5872_v17 = vcombine.low %v18308_v10, %v18281_v37  ;;  %v6299_v39 = vcombine.high %v18076_v1, %v20507_v38 }
 0x5f8   :  { %v18313_v0 = vsel %vm9558_vm12, %v8989_v57, %v8985_v24  ;;  %v8160_v63 = vadd.f32 %v7674_v30, %v20718_v29  ;;  %v9257_v59 = vrot.slane %v8200_v60, %v17230_v52  ;;  %7556 = vadd.xlane.f32.xlu1 %v7555_v44  ;;  %v7600_v44 = vsel %vm4455_vm1, %v18321_v56, 0.0 }
 0x5f9   :  { %v7839_v35 = vpop.xlane.xlu1 %7838  ;;  %v7483_v60 = vsel %vm4455_vm1, %v5754_v9, 0.0  ;;  %v18347_v1 = vrot.slane %v5872_v17, %v20549_v61 }
 0x5fa   :  { %v9097_v30 = vrot.slane %v8160_v63, %v17230_v52  ;;  %7439 = vadd.xlane.f32.xlu0 %v7438_v20  ;;  %v8215_v14 = vadd.f32 %v7839_v35, %v20653_v2  ;;  %v18341_v28 = vsel %vm9564_vm15, %v9257_v59, %v18088_v62  ;;  %v7681_v59 = vsel %vm4455_vm1, %v6299_v39, 0.0  ;;  %v20804_v35 = vld [vmem:[#allocation35_spill] sm:$0xff] }
 0x5fb   :  { %v7722_v24 = vpop.xlane.xlu0 %7721  ;;  %v6129_v39 = vcombine.high %v18012_v42, %v17991_v27  ;;  %v6706_v27 = vcombine.high %v18181_v23, %v20507_v38  ;;  %v20810_v23 = vld [vmem:[#allocation106_spill] sm:$0xff] }
 0x5fc   :  { %v18336_v57 = vsel %vm9564_vm15, %v9097_v30, %v17969_v50  ;;  %v8176_v58 = vadd.f32 %v7722_v24, %v20718_v29  ;;  %v9317_v63 = vrot.slane %v8215_v14, %v17230_v52  ;;  %7601 = vadd.xlane.f32.xlu1 %v7600_v44  ;;  %v20805_v24 = vld [vmem:[#allocation98_spill] sm:$0xff]  ;;  %v7528_v44 = vsel %vm4455_vm1, %v18347_v1, 0.0 }
 0x5fd   :  { %v7857_v20 = vpop.xlane.xlu1 %7856  ;;  %v20806_v14 = vcombine.high %v20804_v35, %v20805_v24 }
 0x5fe   :  { %v9161_v50 = vrot.slane %v8176_v58, %v17230_v52  ;;  %7484 = vadd.xlane.f32.xlu0 %v7483_v60  ;;  %v18353_v62 = vsel %vm9562_vm14, %v9317_v63, %v18069_v51  ;;  %v6025_v51 = vcombine.high %v18034_v40, %v20507_v38  ;;  %v20807_v63 = vld [vmem:[#allocation123_spill] sm:$0xff] }
 0x5ff   :  { %v7767_v30 = vpop.xlane.xlu0 %7766  ;;  %v18365_v58 = vrot.slane %v20806_v14, %v20549_v61 }
 0x600   :  { %v18358_v9 = vsel %vm9564_vm15, %v9161_v50, %v17997_v36  ;;  %v8191_v17 = vadd.f32 %v7767_v30, %v20648_v4  ;;  %7682 = vadd.xlane.f32.xlu1 %v7681_v59  ;;  %v20808_v50 = vld [vmem:[#allocation125_spill] sm:$0xff]  ;;  %v7573_v42 = vsel %vm4455_vm1, %v6025_v51, 0.0  ;;  %v18387_v59 = vrot.slane %v6129_v39, %v20549_v61  ;;  %v20812_v39 = vld [vmem:[#allocation79_spill] sm:$0xff] }
 0x601   :  { %v7926_v60 = vpop.xlane.xlu1 %7925  ;;  %v6824_v30 = vcombine.low %v20808_v50, %v20807_v63  ;;  %v7774_v40 = vsel %vm4455_vm1, %v18365_v58, 0.0  ;;  %v6435_v63 = vcombine.high %v18149_v46, %v20507_v38 }
 0x602   :  { %v9221_v36 = vrot.slane %v8191_v17, %v17230_v52  ;;  %7529 = vadd.xlane.f32.xlu0 %v7528_v44  ;;  %v8221_v17 = vadd.f32 %v7857_v20, %v20645_v31 }
 0x603   :  { %v7812_v35 = vpop.xlane.xlu0 %7811 }
 0x604   :  { %v18378_v24 = vsel %vm9562_vm14, %v9221_v36, %v18026_v11  ;;  %v8206_v14 = vadd.f32 %v7812_v35, %v20644_v19  ;;  %7775 = vadd.xlane.f32.xlu1 %v7774_v40  ;;  %v18392_v36 = vrot.slane %v6824_v30, %v20549_v61  ;;  %v20813_v40 = vld [vmem:[#allocation76_spill] sm:$0xff]  ;;  %v7618_v30 = vsel %vm4455_vm1, %v18387_v59, 0.0 }
 0x605   :  { %20809 = vst [vmem:[#allocation81_spill] sm:$0xff] %v18378_v24  ;;  %v7296_v11 = vpop.xlane.xlu1 %7295  ;;  %v9341_v10 = vrot.slane %v8221_v17, %v17230_v52  ;;  %v20816_v17 = vld [vmem:[#allocation43_spill] sm:$0xff] }
 0x606   :  { %v9281_v44 = vrot.slane %v8206_v14, %v17230_v52  ;;  %7574 = vadd.xlane.f32.xlu0 %v7573_v42  ;;  %v8034_v50 = vadd.f32 %v7296_v11, %v20810_v23  ;;  %v7200_v14 = vcombine.low %v20813_v40, %v20812_v39  ;;  %v7819_v42 = vsel %vm4455_vm1, %v6706_v27, 0.0 }
 0x607   :  { %v7854_v35 = vpop.xlane.xlu0 %7853  ;;  %v7864_v40 = vsel %vm4455_vm1, %v18392_v36, 0.0  ;;  %v7729_v27 = vsel %vm4455_vm1, %v6435_v63, 0.0 }
 0x608   :  { %v18399_v51 = vsel %vm9560_vm13, %v9281_v44, %v18110_v53  ;;  %v8220_v20 = vadd.f32 %v7854_v35, %v20643_v45  ;;  %v8593_v46 = vrot.slane %v8034_v50, %v17230_v52  ;;  %7820 = vadd.xlane.f32.xlu1 %v7819_v42  ;;  %v20814_v53 = vld [vmem:[#allocation75_spill] sm:$0xff]  ;;  %v20815_v44 = vld [vmem:[#allocation121_spill] sm:$0xff] }
 0x609   :  { %20811 = vst [vmem:[#allocation80_spill] sm:$0xff] %v18399_v51  ;;  %v7184_v37 = vcombine.low %v20815_v44, %v20814_v53  ;;  %v7371_v35 = vpop.xlane.xlu1 %7370  ;;  %v6639_v51 = vcombine.high %v18105_v49, %v20507_v38  ;;  %v20819_v44 = vld [vmem:[#allocation82_spill] sm:$0xff]  ;;  %v20820_v53 = vld [vmem:[#allocation120_spill] sm:$0xff]  ;;  %v6977_v49 = vcombine.high %v18229_v25, %v20507_v38  ;;  %v20823_v25 = vld [vmem:[#allocation33_spill] sm:$0xff] }
 0x60a   :  { %v9337_v11 = vrot.slane %v8220_v20, %v17230_v52  ;;  %7619 = vadd.xlane.f32.xlu0 %v7618_v30  ;;  %v8059_v24 = vadd.f32 %v7371_v35, %v20816_v17  ;;  %v18424_v42 = vsel %vm9568_vm3, %v8593_v46, %v18164_v47  ;;  %v18427_v30 = vrot.slane %v7200_v14, %v16025_v26  ;;  %v20821_v46 = vld [vmem:[#allocation42_spill] sm:$0xff] }
 0x60b   :  { %v7884_v39 = vpop.xlane.xlu0 %7883  ;;  %20818 = vst [vmem:[#allocation53_spill] sm:$0xff] %v18424_v42  ;;  %v6981_v63 = vcombine.high %v20820_v53, %v20819_v44  ;;  %v7081_v35 = vcombine.high %v18156_v43, %v18139_v41  ;;  %v18439_v14 = vrot.slane %v7184_v37, %v16025_v26  ;;  %v20824_v42 = vld [vmem:[#allocation16_spill] sm:$0xff] }
 0x60c   :  { %v18419_v50 = vsel %vm9558_vm12, %v9341_v10, %v9337_v11  ;;  %v8230_v20 = vadd.f32 %v7884_v39, %v20649_v8  ;;  %v8244_v10 = vadd.f32 %v7926_v60, %v20647_v22  ;;  %v8693_v39 = vrot.slane %v8059_v24, %v17230_v52  ;;  %7865 = vadd.xlane.f32.xlu1 %v7864_v40  ;;  %v20822_v11 = vld [vmem:[#allocation38_spill] sm:$0xff]  ;;  %v20826_v40 = vld [vmem:[#allocation19_spill] sm:$0xff] }
 0x60d   :  { %20817 = vst [vmem:[#allocation72_spill] sm:$0xff] %v18419_v50  ;;  %v6997_v53 = vcombine.high %v20822_v11, %v20821_v46  ;;  %v7416_v44 = vpop.xlane.xlu1 %7415  ;;  %v20825_v50 = vcombine.high %v20823_v25, %v20824_v42  ;;  %v7801_v60 = vsel %vm4455_vm1, %v6639_v51, 0.0  ;;  %v18461_v11 = vrot.slane %v6981_v63, %v16025_v26 }
 0x60e   :  { %v9377_v47 = vrot.slane %v8230_v20, %v17230_v52  ;;  %7730 = vadd.xlane.f32.xlu0 %v7729_v27  ;;  %v8074_v24 = vadd.f32 %v7416_v44, %v20721_v15  ;;  %v20827_v20 = vld [vmem:[#allocation54_spill] sm:$0xff]  ;;  %v18465_v42 = vrot.slane %v7081_v35, %v20549_v61  ;;  %v7216_v51 = vcombine.low %v18439_v14, %v18427_v30 }
 0x60f   :  { %v18447_v41 = vrot.slane %v20825_v50, %v20549_v61  ;;  %v7929_v43 = vpop.xlane.xlu0 %7928  ;;  %v18458_v46 = vsel %vm9570_vm5, %v8693_v39, %v20827_v20  ;;  %20829 = vst [vmem:[#allocation51_spill] sm:$0xff] %v18461_v11  ;;  %v7909_v50 = vsel %vm4455_vm1, %v6977_v49, 0.0  ;;  %v18473_v39 = vrot.slane %v6997_v53, %v16025_v26 }
 0x610   :  { %v18453_v27 = vsel %vm9560_vm13, %v9377_v47, %v20826_v40  ;;  %v8245_v37 = vadd.f32 %v7929_v43, %v20652_v34  ;;  %20828 = vst [vmem:[#allocation49_spill] sm:$0xff] %v18458_v46  ;;  %v9433_v47 = vrot.slane %v8244_v10, %v17230_v52  ;;  %v8753_v44 = vrot.slane %v8074_v24, %v17230_v52 }
 0x611   :  { %7910 = vadd.xlane.f32.xlu1 %v7909_v50  ;;  %20830 = vst [vmem:[#allocation10_spill] sm:$0xff] %v18473_v39  ;;  %v7461_v63 = vpop.xlane.xlu1 %7460  ;;  %v7846_v49 = vsel %vm4455_vm1, %v18447_v41, 0.0  ;;  %v7028_v53 = vcombine.low %v18461_v11, %v18473_v39  ;;  %v6910_v20 = vcombine.high %v18174_v13, %v20507_v38  ;;  %v20846_v11 = vld [vmem:[#allocation23_spill] sm:$0xff] }
 0x612   :  { %v9437_v25 = vrot.slane %v8245_v37, %v17230_v52  ;;  %7802 = vadd.xlane.f32.xlu0 %v7801_v60  ;;  %v8089_v35 = vadd.f32 %v7461_v63, %v20659_v16  ;;  %v18484_v24 = vsel %vm9568_vm3, %v8753_v44, %v18168_v21  ;;  %v7954_v60 = vsel %vm4455_vm1, %v18465_v42, 0.0 }
 0x613   :  { %v7344_v43 = vpop.xlane.xlu0 %7343  ;;  %20831 = vst [vmem:[#allocation86_spill] sm:$0xff] %v18484_v24  ;;  %v7224_v37 = vrot.slane %v7216_v51, %v20549_v61  ;;  %v20833_v51 = vld [vmem:[#allocation7_spill] sm:$0xff] }
 0x614   :  { %v18479_v40 = vsel %vm9558_vm12, %v9437_v25, %v9433_v47  ;;  %v8050_v10 = vadd.f32 %v7344_v43, %v20810_v23  ;;  %v8813_v50 = vrot.slane %v8089_v35, %v17230_v52  ;;  %v5619_v35 = vcombine.high %v18300_v12, %v20507_v38 }
 0x615   :  { %7955 = vadd.xlane.f32.xlu1 %v7954_v60  ;;  %v7506_v25 = vpop.xlane.xlu1 %7505  ;;  %v7996_v13 = vsel %vm4455_vm1, %v7224_v37, 0.0 }
 0x616   :  { %v8657_v47 = vrot.slane %v8050_v10, %v17230_v52  ;;  %7847 = vadd.xlane.f32.xlu0 %v7846_v49  ;;  %v8104_v44 = vadd.f32 %v7506_v25, %v20654_v48  ;;  %v18499_v43 = vsel %vm9566_vm2, %v8813_v50, %v18187_v6  ;;  %v18509_v49 = vrot.slane %v7028_v53, %v20549_v61 }
 0x617   :  { %v7389_v21 = vpop.xlane.xlu0 %7388  ;;  %20832 = vst [vmem:[#allocation84_spill] sm:$0xff] %v18499_v43  ;;  %v7891_v10 = vsel %vm4455_vm1, %v6910_v20, 0.0  ;;  %v20837_v20 = vld [vmem:[#allocation52_spill] sm:$0xff] }
 0x618   :  { %v8065_v63 = vadd.f32 %v7389_v21, %v20767_v18  ;;  %v18503_v46 = vsel %vm9568_vm3, %v8657_v47, %v20833_v51  ;;  %v8873_v60 = vrot.slane %v8104_v44, %v17230_v52  ;;  %v5823_v47 = vcombine.high %v18266_v55, %v20507_v38  ;;  %v20835_v21 = vld [vmem:[#allocation56_spill] sm:$0xff] }
 0x619   :  { %20834 = vst [vmem:[#allocation18_spill] sm:$0xff] %v18503_v46  ;;  %7997 = vadd.xlane.f32.xlu1 %v7996_v13  ;;  %v7551_v50 = vpop.xlane.xlu1 %7550  ;;  %v20839_v13 = vld [vmem:[#allocation93_spill] sm:$0xff]  ;;  %v7936_v55 = vsel %vm4455_vm1, %v18509_v49, 0.0 }
 0x61a   :  { %v8717_v6 = vrot.slane %v8065_v63, %v17230_v52  ;;  %7892 = vadd.xlane.f32.xlu0 %v7891_v10  ;;  %v18518_v51 = vsel %vm9564_vm15, %v8873_v60, %v20835_v21  ;;  %v8119_v12 = vadd.f32 %v7551_v50, %v20653_v2  ;;  %v7441_v63 = vsel %vm4455_vm1, %v5619_v35, 0.0  ;;  %v20840_v10 = vld [vmem:[#allocation91_spill] sm:$0xff]  ;;  %v20844_v35 = vld [vmem:[#allocation64_spill] sm:$0xff] }
 0x61b   :  { %v7434_v25 = vpop.xlane.xlu0 %7433  ;;  %20836 = vst [vmem:[#allocation36_spill] sm:$0xff] %v18518_v51  ;;  %v5941_v43 = vcombine.high %v20840_v10, %v20839_v13  ;;  %v7181_v60 = vcombine.high %v18273_v33, %v20507_v38  ;;  %v20843_v51 = vld [vmem:[#allocation11_spill] sm:$0xff] }
 0x61c   :  { %v8080_v53 = vadd.f32 %v7434_v25, %v20718_v29  ;;  %v18524_v44 = vsel %vm9566_vm2, %v8717_v6, %v20837_v20  ;;  %v8933_v21 = vrot.slane %v8119_v12, %v17230_v52  ;;  %v20841_v25 = vld [vmem:[#allocation110_spill] sm:$0xff]  ;;  %v20842_v6 = vld [vmem:[#allocation15_spill] sm:$0xff]  ;;  %v5977_v24 = vcombine.high %v20844_v35, %v20843_v51 }
 0x61d   :  { %20838 = vst [vmem:[#allocation105_spill] sm:$0xff] %v18524_v44  ;;  %7442 = vadd.xlane.f32.xlu1 %v7441_v63  ;;  %v5737_v20 = vcombine.high %v20842_v6, %v20841_v25  ;;  %v7569_v46 = vpop.xlane.xlu1 %7568  ;;  %v20845_v10 = vld [vmem:[#allocation67_spill] sm:$0xff]  ;;  %v20847_v44 = vld [vmem:[#allocation32_spill] sm:$0xff]  ;;  %v7513_v63 = vsel %vm4455_vm1, %v5823_v47, 0.0  ;;  %v7981_v51 = vsel %vm4455_vm1, %v7181_v60, 0.0  ;;  %v7248_v25 = vcombine.high %v7224_v37, %v20507_v38 }
 0x61e   :  { %v8777_v50 = vrot.slane %v8080_v53, %v17230_v52  ;;  %7937 = vadd.xlane.f32.xlu0 %v7936_v55  ;;  %v5961_v39 = vcombine.high %v20846_v11, %v20845_v10  ;;  %v18548_v53 = vsel %vm9562_vm14, %v8933_v21, %v18288_v3  ;;  %v18552_v55 = vrot.slane %v5941_v43, %v20549_v61  ;;  %v20849_v43 = vld [vmem:[#allocation24_spill] sm:$0xff] }
 0x61f   :  { %v7479_v13 = vpop.xlane.xlu0 %7478  ;;  %20848 = vst [vmem:[#allocation114_spill] sm:$0xff] %v18548_v53  ;;  %v18574_v35 = vrot.slane %v5737_v20, %v20549_v61  ;;  %v20874_v53 = vld [vmem:[#allocation68_spill] sm:$0xff] }
 0x620   :  { %v18543_v33 = vsel %vm9564_vm15, %v8777_v50, %v20847_v44  ;;  %v8095_v12 = vadd.f32 %v7479_v13, %v20648_v4  ;;  %v18558_v44 = vrot.slane %v5977_v24, %v16025_v26  ;;  %v18561_v3 = vrot.slane %v5961_v39, %v16025_v26 }
 0x621   :  { %7514 = vadd.xlane.f32.xlu1 %v7513_v63  ;;  %v7659_v50 = vpop.xlane.xlu1 %7658  ;;  %v7558_v60 = vsel %vm4455_vm1, %v18552_v55, 0.0  ;;  %v6094_v24 = vcombine.high %v18321_v56, %v20507_v38  ;;  %v7999_v39 = vsel %vm4455_vm1, %v7248_v25, 0.0  ;;  %v8125_v13 = vadd.f32 %v7569_v46, %v20645_v31 }
 0x622   :  { %v8837_v11 = vrot.slane %v8095_v12, %v17230_v52  ;;  %7982 = vadd.xlane.f32.xlu0 %v7981_v51  ;;  %v8155_v47 = vadd.f32 %v7659_v50, %v20816_v17 }
 0x623   :  { %v7524_v6 = vpop.xlane.xlu0 %7523  ;;  %v7603_v50 = vsel %vm4455_vm1, %v6094_v24, 0.0 }
 0x624   :  { %v18566_v21 = vsel %vm9562_vm14, %v8837_v11, %v20849_v43  ;;  %v8110_v37 = vadd.f32 %v7524_v6, %v20644_v19  ;;  %v9077_v10 = vrot.slane %v8155_v47, %v17230_v52  ;;  %v6008_v11 = vcombine.low %v18561_v3, %v18558_v44 }
 0x625   :  { %7559 = vadd.xlane.f32.xlu1 %v7558_v60  ;;  %v7707_v63 = vpop.xlane.xlu1 %7706  ;;  %v6571_v6 = vcombine.high %v18365_v58, %v20507_v38  ;;  %v7486_v47 = vsel %vm4455_vm1, %v18574_v35, 0.0  ;;  %v5890_v43 = vcombine.high %v18347_v1, %v20507_v38 }
 0x626   :  { %v8897_v12 = vrot.slane %v8110_v37, %v17230_v52  ;;  %8000 = vadd.xlane.f32.xlu0 %v7999_v39  ;;  %v8171_v56 = vadd.f32 %v7707_v63, %v20816_v17  ;;  %v18590_v46 = vsel %vm9570_vm5, %v9077_v10, %v18259_v32  ;;  %v18603_v24 = vrot.slane %v6008_v11, %v20549_v61  ;;  %v20853_v63 = vld [vmem:[#allocation127_spill] sm:$0xff] }
 0x627   :  { %v7566_v51 = vpop.xlane.xlu0 %7565  ;;  %v6775_v11 = vcombine.high %v18447_v41, %v20507_v38 }
 0x628   :  { %v18585_v20 = vsel %vm9560_vm13, %v8897_v12, %v18254_v5  ;;  %v8124_v25 = vadd.f32 %v7566_v51, %v20643_v45  ;;  %v8957_v5 = vrot.slane %v8125_v13, %v17230_v52  ;;  %v9141_v37 = vrot.slane %v8171_v56, %v17230_v52  ;;  %v20852_v12 = vld [vmem:[#allocation136_spill] sm:$0xff] }
 0x629   :  { %20850 = vst [vmem:[#allocation122_spill] sm:$0xff] %v18585_v20  ;;  %7604 = vadd.xlane.f32.xlu1 %v7603_v50  ;;  %v7752_v32 = vpop.xlane.xlu1 %7751  ;;  %v7117_v51 = vcombine.high %v20853_v63, %v20852_v12  ;;  %v7777_v56 = vsel %vm4455_vm1, %v6571_v6, 0.0  ;;  %v6161_v6 = vcombine.high %v18387_v59, %v20507_v38  ;;  %v20857_v12 = vld [vmem:[#allocation70_spill] sm:$0xff]  ;;  %v20858_v63 = vld [vmem:[#allocation37_spill] sm:$0xff]  ;;  %v7849_v59 = vsel %vm4455_vm1, %v6775_v11, 0.0  ;;  %v20864_v11 = vld [vmem:[#allocation92_spill] sm:$0xff] }
 0x62a   :  { %v8953_v60 = vrot.slane %v8124_v25, %v17230_v52  ;;  %7487 = vadd.xlane.f32.xlu0 %v7486_v47  ;;  %v8186_v58 = vadd.f32 %v7752_v32, %v20721_v15  ;;  %v18612_v13 = vsel %vm9570_vm5, %v9141_v37, %v18293_v54  ;;  %v7531_v25 = vsel %vm4455_vm1, %v5890_v43, 0.0  ;;  %v20875_v20 = vld [vmem:[#allocation25_spill] sm:$0xff] }
 0x62b   :  { %v7596_v39 = vpop.xlane.xlu0 %7595 }
 0x62c   :  { %v18607_v10 = vsel %vm9558_vm12, %v8957_v5, %v8953_v60  ;;  %v8134_v1 = vadd.f32 %v7596_v39, %v20649_v8  ;;  %v9201_v50 = vrot.slane %v8186_v58, %v17230_v52  ;;  %v20854_v5 = vld [vmem:[#allocation135_spill] sm:$0xff]  ;;  %v20855_v60 = vld [vmem:[#allocation134_spill] sm:$0xff]  ;;  %v7576_v39 = vsel %vm4455_vm1, %v18603_v24, 0.0 }
 0x62d   :  { %20851 = vst [vmem:[#allocation57_spill] sm:$0xff] %v18607_v10  ;;  %7778 = vadd.xlane.f32.xlu1 %v7777_v56  ;;  %v7133_v54 = vcombine.high %v20855_v60, %v20854_v5  ;;  %v7797_v37 = vpop.xlane.xlu1 %7796  ;;  %v6929_v56 = vcombine.high %v20858_v63, %v20857_v12  ;;  %v20859_v5 = vld [vmem:[#allocation74_spill] sm:$0xff]  ;;  %v20860_v60 = vld [vmem:[#allocation44_spill] sm:$0xff] }
 0x62e   :  { %v8993_v47 = vrot.slane %v8134_v1, %v17230_v52  ;;  %7532 = vadd.xlane.f32.xlu0 %v7531_v25  ;;  %v8201_v41 = vadd.f32 %v7797_v37, %v20659_v16  ;;  %v18636_v1 = vsel %vm9568_vm3, %v9201_v50, %v18318_v7  ;;  %v18641_v25 = vrot.slane %v7117_v51, %v16025_v26  ;;  %v20862_v50 = vld [vmem:[#allocation34_spill] sm:$0xff] }
 0x62f   :  { %v7677_v32 = vpop.xlane.xlu0 %7676  ;;  %v20861_v37 = vcombine.high %v20859_v5, %v20860_v60  ;;  %v18655_v51 = vrot.slane %v7133_v54, %v16025_v26 }
 0x630   :  { %v18631_v43 = vsel %vm9560_vm13, %v8993_v47, %v18313_v0  ;;  %v8161_v58 = vadd.f32 %v7677_v32, %v20767_v18  ;;  %v9261_v47 = vrot.slane %v8201_v41, %v17230_v52  ;;  %v20863_v32 = vld [vmem:[#allocation102_spill] sm:$0xff]  ;;  %v7621_v41 = vsel %vm4455_vm1, %v6161_v6, 0.0 }
 0x631   :  { %20856 = vst [vmem:[#allocation12_spill] sm:$0xff] %v18631_v43  ;;  %v18648_v0 = vrot.slane %v20861_v37, %v20549_v61  ;;  %7850 = vadd.xlane.f32.xlu1 %v7849_v59  ;;  %v6913_v12 = vcombine.high %v20863_v32, %v20862_v50  ;;  %v7842_v63 = vpop.xlane.xlu1 %7841  ;;  %v20865_v43 = vld [vmem:[#allocation90_spill] sm:$0xff]  ;;  %v18675_v37 = vrot.slane %v6929_v56, %v16025_v26 }
 0x632   :  { %v9101_v7 = vrot.slane %v8161_v58, %v17230_v52  ;;  %7577 = vadd.xlane.f32.xlu0 %v7576_v39  ;;  %v20866_v10 = vcombine.high %v20864_v11, %v20865_v43  ;;  %v8216_v59 = vadd.f32 %v7842_v63, %v20654_v48  ;;  %v18672_v54 = vsel %vm9566_vm2, %v9261_v47, %v18341_v28 }
 0x633   :  { %v7725_v60 = vpop.xlane.xlu0 %7724  ;;  %v7046_v6 = vcombine.high %v18509_v49, %v20507_v38  ;;  %v7164_v43 = vcombine.low %v18641_v25, %v18655_v51  ;;  %v18686_v28 = vrot.slane %v6913_v12, %v16025_v26 }
 0x634   :  { %v18661_v5 = vrot.slane %v20866_v10, %v20549_v61  ;;  %v8177_v39 = vadd.f32 %v7725_v60, %v20767_v18  ;;  %v18668_v58 = vsel %vm9566_vm2, %v9101_v7, %v18336_v57  ;;  %v7894_v10 = vsel %vm4455_vm1, %v18648_v0, 0.0 }
 0x635   :  { %v9321_v50 = vrot.slane %v8216_v59, %v17230_v52  ;;  %7895 = vadd.xlane.f32.xlu1 %v7894_v10  ;;  %v7887_v56 = vpop.xlane.xlu1 %7886  ;;  %v7939_v12 = vsel %vm4455_vm1, %v7046_v6, 0.0  ;;  %v18702_v60 = vrot.slane %v7164_v43, %v20549_v61 }
 0x636   :  { %v9165_v57 = vrot.slane %v8177_v39, %v17230_v52  ;;  %7622 = vadd.xlane.f32.xlu0 %v7621_v41  ;;  %v7822_v7 = vsel %vm4455_vm1, %v18661_v5, 0.0  ;;  %v8231_v32 = vadd.f32 %v7887_v56, %v20653_v2  ;;  %v6842_v41 = vcombine.high %v18392_v36, %v20507_v38 }
 0x637   :  { %v7770_v47 = vpop.xlane.xlu0 %7769  ;;  %v18692_v49 = vsel %vm9564_vm15, %v9321_v50, %v18353_v62  ;;  %v6960_v62 = vcombine.low %v18686_v28, %v18675_v37  ;;  %v20867_v50 = vld [vmem:[#allocation81_spill] sm:$0xff]  ;;  %v5755_v56 = vcombine.high %v18574_v35, %v20507_v38 }
 0x638   :  { %v8192_v63 = vadd.f32 %v7770_v47, %v20718_v29  ;;  %v18698_v11 = vsel %vm9566_vm2, %v9165_v57, %v18358_v9  ;;  %v9381_v59 = vrot.slane %v8231_v32, %v17230_v52  ;;  %v7984_v57 = vsel %vm4455_vm1, %v18702_v60, 0.0 }
 0x639   :  { %7940 = vadd.xlane.f32.xlu1 %v7939_v12  ;;  %v7905_v10 = vpop.xlane.xlu1 %7904  ;;  %v7867_v47 = vsel %vm4455_vm1, %v6842_v41, 0.0  ;;  %v7489_v41 = vsel %vm4455_vm1, %v5755_v56, 0.0  ;;  %v20873_v56 = vld [vmem:[#allocation14_spill] sm:$0xff] }
 0x63a   :  { %v9225_v39 = vrot.slane %v8192_v63, %v17230_v52  ;;  %7823 = vadd.xlane.f32.xlu0 %v7822_v7  ;;  %v18717_v36 = vsel %vm9562_vm14, %v9381_v59, %v18453_v27  ;;  %v18725_v7 = vrot.slane %v6960_v62, %v20549_v61  ;;  %v5959_v27 = vcombine.high %v18552_v55, %v20507_v38  ;;  %v20869_v59 = vld [vmem:[#allocation80_spill] sm:$0xff] }
 0x63b   :  { %v7815_v9 = vpop.xlane.xlu0 %7814  ;;  %20868 = vst [vmem:[#allocation58_spill] sm:$0xff] %v18717_v36 }
 0x63c   :  { %v18712_v6 = vsel %vm9564_vm15, %v9225_v39, %v20867_v50  ;;  %v8207_v43 = vadd.f32 %v7815_v9, %v20648_v4  ;;  %v7912_v62 = vsel %vm4455_vm1, %v18725_v7, 0.0  ;;  %v7113_v9 = vcombine.high %v18465_v42, %v20507_v38 }
 0x63d   :  { %7985 = vadd.xlane.f32.xlu1 %v7984_v57  ;;  %v7974_v63 = vpop.xlane.xlu1 %7973  ;;  %v7217_v50 = vcombine.high %v18439_v14, %v18427_v30  ;;  %v20870_v57 = vld [vmem:[#allocation88_spill] sm:$0xff]  ;;  %v6097_v42 = vcombine.high %v20875_v20, %v20874_v53 }
 0x63e   :  { %v9285_v32 = vrot.slane %v8207_v43, %v17230_v52  ;;  %7868 = vadd.xlane.f32.xlu0 %v7867_v47  ;;  %v8237_v43 = vadd.f32 %v7905_v10, %v20645_v31  ;;  %v20871_v47 = vld [vmem:[#allocation124_spill] sm:$0xff] }
 0x63f   :  { %v7860_v12 = vpop.xlane.xlu0 %7859  ;;  %v20877_v30 = vld [vmem:[#allocation72_spill] sm:$0xff]  ;;  %v18765_v53 = vrot.slane %v7217_v50, %v20549_v61 }
 0x640   :  { %v18732_v39 = vsel %vm9562_vm14, %v9285_v32, %v20869_v59  ;;  %v8222_v35 = vadd.f32 %v7860_v12, %v20644_v19  ;;  %v5873_v32 = vcombine.high %v20871_v47, %v20870_v57  ;;  %v20872_v12 = vld [vmem:[#allocation8_spill] sm:$0xff]  ;;  %v20876_v19 = vld [vmem:[#allocation130_spill] sm:$0xff]  ;;  %v9405_v20 = vrot.slane %v8237_v43, %v17230_v52 }
 0x641   :  { %7490 = vadd.xlane.f32.xlu1 %v7489_v41  ;;  %v6113_v59 = vcombine.high %v20873_v56, %v20872_v12  ;;  %v7299_v36 = vpop.xlane.xlu1 %7298  ;;  %v20879_v41 = vld [vmem:[#allocation101_spill] sm:$0xff]  ;;  %v7957_v12 = vsel %vm4455_vm1, %v7113_v9, 0.0  ;;  %v6707_v56 = vcombine.high %v18661_v5, %v20507_v38 }
 0x642   :  { %v9345_v55 = vrot.slane %v8222_v35, %v17230_v52  ;;  %7913 = vadd.xlane.f32.xlu0 %v7912_v62  ;;  %v8035_v48 = vadd.f32 %v7299_v36, %v20876_v19  ;;  %v7561_v35 = vsel %vm4455_vm1, %v5959_v27, 0.0  ;;  %v20880_v62 = vld [vmem:[#allocation100_spill] sm:$0xff]  ;;  %v5887_v5 = vrot.slane %v5873_v32, %v20549_v61 }
 0x643   :  { %v7902_v2 = vpop.xlane.xlu0 %7901  ;;  %v20881_v57 = vcombine.high %v20879_v41, %v20880_v62  ;;  %v18771_v27 = vrot.slane %v6113_v59, %v16025_v26  ;;  %v8002_v41 = vsel %vm4455_vm1, %v18765_v53, 0.0  ;;  %v8260_v62 = vadd.f32 %v7974_v63, %v20647_v22  ;;  %v20885_v63 = vld [vmem:[#allocation105_spill] sm:$0xff] }
 0x644   :  { %v18753_v14 = vsel %vm9560_vm13, %v9345_v55, %v20877_v30  ;;  %v8236_v10 = vadd.f32 %v7902_v2, %v20643_v45  ;;  %v8597_v36 = vrot.slane %v8035_v48, %v17230_v52  ;;  %v20883_v48 = vld [vmem:[#allocation53_spill] sm:$0xff] }
 0x645   :  { %20878 = vst [vmem:[#allocation55_spill] sm:$0xff] %v18753_v14  ;;  %v18761_v47 = vrot.slane %v20881_v57, %v20549_v61  ;;  %7562 = vadd.xlane.f32.xlu1 %v7561_v35  ;;  %v7392_v55 = vpop.xlane.xlu1 %7391 }
 0x646   :  { %v9401_v2 = vrot.slane %v8236_v10, %v17230_v52  ;;  %7958 = vadd.xlane.f32.xlu0 %v7957_v12  ;;  %v8066_v9 = vadd.f32 %v7392_v55, %v20810_v23  ;;  %v18782_v35 = vsel %vm9570_vm5, %v8597_v36, %v20883_v48  ;;  %v18785_v10 = vrot.slane %v6097_v42, %v16025_v26 }
 0x647   :  { %v7932_v30 = vpop.xlane.xlu0 %7931  ;;  %v7606_v59 = vsel %vm4455_vm1, %v18761_v47, 0.0  ;;  %v7825_v42 = vsel %vm4455_vm1, %v6707_v56, 0.0  ;;  %v20886_v56 = vld [vmem:[#allocation10_spill] sm:$0xff] }
 0x648   :  { %v18777_v50 = vsel %vm9558_vm12, %v9405_v20, %v9401_v2  ;;  %v8246_v43 = vadd.f32 %v7932_v30, %v20649_v8  ;;  %v8721_v57 = vrot.slane %v8066_v9, %v17230_v52  ;;  %v6144_v2 = vcombine.low %v18785_v10, %v18771_v27 }
 0x649   :  { %20882 = vst [vmem:[#allocation78_spill] sm:$0xff] %v18777_v50  ;;  %7607 = vadd.xlane.f32.xlu1 %v7606_v59  ;;  %v7437_v20 = vpop.xlane.xlu1 %7436  ;;  %v6911_v9 = vcombine.high %v18648_v0, %v20507_v38  ;;  %v7534_v59 = vsel %vm4455_vm1, %v5887_v5, 0.0 }
 0x64a   :  { %v9441_v12 = vrot.slane %v8246_v43, %v17230_v52  ;;  %8003 = vadd.xlane.f32.xlu0 %v8002_v41  ;;  %v8081_v32 = vadd.f32 %v7437_v20, %v20767_v18  ;;  %v18806_v30 = vsel %vm9568_vm3, %v8721_v57, %v20885_v63  ;;  %v20887_v43 = vld [vmem:[#allocation51_spill] sm:$0xff]  ;;  %v6026_v41 = vcombine.high %v18603_v24, %v20507_v38 }
 0x64b   :  { %v7977_v36 = vpop.xlane.xlu0 %7976  ;;  %v7029_v48 = vcombine.high %v20887_v43, %v20886_v56  ;;  %v18825_v63 = vrot.slane %v6144_v2, %v20549_v61  ;;  %v20892_v2 = vld [vmem:[#allocation116_spill] sm:$0xff] }
 0x64c   :  { %v18801_v55 = vsel %vm9560_vm13, %v9441_v12, %v18479_v40  ;;  %v8261_v22 = vadd.f32 %v7977_v36, %v20652_v34  ;;  %v9497_v40 = vrot.slane %v8260_v62, %v17230_v52  ;;  %v8781_v12 = vrot.slane %v8081_v32, %v17230_v52  ;;  %v20889_v62 = vld [vmem:[#allocation9_spill] sm:$0xff] }
 0x64d   :  { %20884 = vst [vmem:[#allocation87_spill] sm:$0xff] %v18801_v55  ;;  %7826 = vadd.xlane.f32.xlu1 %v7825_v42  ;;  %v18818_v57 = vpop.xlane.xlu1 %7481  ;;  %v20890_v42 = vld [vmem:[#allocation41_spill] sm:$0xff]  ;;  %v7043_v56 = vrot.slane %v7029_v48, %v20549_v61  ;;  %v7579_v43 = vsel %vm4455_vm1, %v6026_v41, 0.0 }
 0x64e   :  { %v9501_v34 = vrot.slane %v8261_v22, %v17230_v52  ;;  %7535 = vadd.xlane.f32.xlu0 %v7534_v59  ;;  %v18829_v24 = vsel %vm9566_vm2, %v8781_v12, %v18543_v33  ;;  %v7065_v32 = vcombine.high %v20890_v42, %v20889_v62  ;;  %v7897_v22 = vsel %vm4455_vm1, %v6911_v9, 0.0  ;;  %v20893_v9 = vld [vmem:[#allocation18_spill] sm:$0xff] }
 0x64f   :  { %v7347_v20 = vpop.xlane.xlu0 %7346  ;;  %v7624_v62 = vsel %vm4455_vm1, %v18825_v63, 0.0  ;;  %v7182_v42 = vcombine.high %v18702_v60, %v20507_v38  ;;  %v20897_v60 = vld [vmem:[#allocation86_spill] sm:$0xff] }
 0x650   :  { %v18821_v0 = vsel %vm9558_vm12, %v9501_v34, %v9497_v40  ;;  %v8051_v36 = vadd.f32 %v7347_v20, %v20876_v19  ;;  %v20891_v40 = vld [vmem:[#allocation69_spill] sm:$0xff]  ;;  %v18849_v41 = vrot.slane %v7065_v32, %v16025_v26 }
 0x651   :  { %20888 = vst [vmem:[#allocation85_spill] sm:$0xff] %v18821_v0  ;;  %7898 = vadd.xlane.f32.xlu1 %v7897_v22  ;;  %v7049_v34 = vcombine.high %v20892_v2, %v20891_v40  ;;  %v18839_v20 = vpop.xlane.xlu1 %7526  ;;  %v20894_v22 = vld [vmem:[#allocation125_spill] sm:$0xff]  ;;  %v5891_v0 = vcombine.high %v5887_v5, %v20507_v38 }
 0x652   :  { %v8661_v59 = vrot.slane %v8051_v36, %v17230_v52  ;;  %7580 = vadd.xlane.f32.xlu0 %v7579_v43  ;;  %v7942_v36 = vsel %vm4455_vm1, %v7043_v56, 0.0  ;;  %v20895_v43 = vld [vmem:[#allocation123_spill] sm:$0xff] }
 0x653   :  { %v7419_v33 = vpop.xlane.xlu0 %7418  ;;  %v20896_v40 = vcombine.high %v20894_v22, %v20895_v43  ;;  %v7987_v22 = vsel %vm4455_vm1, %v7182_v42, 0.0  ;;  %v7537_v42 = vsel %vm4455_vm1, %v5891_v0, 0.0 }
 0x654   :  { %v8075_v12 = vadd.f32 %v7419_v33, %v20816_v17  ;;  %v18846_v48 = vsel %vm9570_vm5, %v8661_v59, %v20893_v9  ;;  %v18860_v59 = vrot.slane %v7049_v34, %v16025_v26 }
 0x655   :  { %v6839_v2 = vrot.slane %v20896_v40, %v20549_v61  ;;  %7943 = vadd.xlane.f32.xlu1 %v7942_v36  ;;  %v18862_v9 = vpop.xlane.xlu1 %7571  ;;  %v20899_v40 = vld [vmem:[#allocation84_spill] sm:$0xff] }
 0x656   :  { %v8757_v33 = vrot.slane %v8075_v12, %v17230_v52  ;;  %7625 = vadd.xlane.f32.xlu0 %v7624_v62  ;;  %v6978_v12 = vcombine.high %v18725_v7, %v20507_v38  ;;  %v7096_v34 = vcombine.low %v18860_v59, %v18849_v41  ;;  %v6095_v7 = vcombine.high %v18761_v47, %v20507_v38 }
 0x657   :  { %v7464_v32 = vpop.xlane.xlu0 %7463  ;;  %v7870_v36 = vsel %vm4455_vm1, %v6839_v2, 0.0  ;;  %v6843_v0 = vcombine.high %v6839_v2, %v20507_v38  ;;  %v7249_v47 = vcombine.high %v18765_v53, %v20507_v38 }
 0x658   :  { %v8090_v8 = vadd.f32 %v7464_v32, %v20721_v15  ;;  %v18868_v50 = vsel %vm9570_vm5, %v8757_v33, %v20897_v60  ;;  %v7915_v32 = vsel %vm4455_vm1, %v6978_v12, 0.0  ;;  %v7104_v60 = vrot.slane %v7096_v34, %v20549_v61 }
 0x659   :  { %7988 = vadd.xlane.f32.xlu1 %v7987_v22  ;;  %v18877_v5 = vpop.xlane.xlu1 %7613  ;;  %v8005_v2 = vsel %vm4455_vm1, %v7249_v47, 0.0  ;;  %v20904_v47 = vld [vmem:[#allocation75_spill] sm:$0xff] }
 0x65a   :  { %v8817_v62 = vrot.slane %v8090_v8, %v17230_v52  ;;  %7871 = vadd.xlane.f32.xlu0 %v7870_v36  ;;  %20898 = vst [vmem:[#allocation47_spill] sm:$0xff] %v18877_v5  ;;  %v6009_v36 = vcombine.high %v18561_v3, %v18558_v44  ;;  %v7047_v44 = vcombine.high %v7043_v56, %v20507_v38 }
 0x65b   :  { %v18879_v43 = vpop.xlane.xlu0 %7508  ;;  %v7165_v3 = vcombine.high %v18641_v25, %v18655_v51  ;;  %v6961_v56 = vcombine.high %v18686_v28, %v18675_v37 }
 0x65c   :  { %v18883_v33 = vsel %vm9568_vm3, %v8817_v62, %v20899_v40  ;;  %v7609_v62 = vsel %vm4455_vm1, %v6095_v7, 0.0  ;;  %v7960_v40 = vsel %vm4455_vm1, %v7104_v60, 0.0  ;;  %v7945_v25 = vsel %vm4455_vm1, %v7047_v44, 0.0 }
 0x65d   :  { %7538 = vadd.xlane.f32.xlu1 %v7537_v42  ;;  %v18890_v8 = vpop.xlane.xlu1 %7679  ;;  %v6023_v42 = vrot.slane %v6009_v36, %v20549_v61  ;;  %v6162_v36 = vcombine.high %v18825_v63, %v20507_v38  ;;  %v7179_v51 = vrot.slane %v7165_v3, %v20549_v61  ;;  %v6975_v37 = vrot.slane %v6961_v56, %v20549_v61 }
 0x65e   :  { %7916 = vadd.xlane.f32.xlu0 %v7915_v32  ;;  %v7873_v32 = vsel %vm4455_vm1, %v6843_v0, 0.0  ;;  %v20903_v0 = vld [vmem:[#allocation76_spill] sm:$0xff]  ;;  %v7114_v56 = vcombine.high %v7104_v60, %v20507_v38 }
 0x65f   :  { %v18892_v22 = vpop.xlane.xlu0 %7553  ;;  %v6027_v63 = vcombine.high %v6023_v42, %v20507_v38  ;;  %v7627_v28 = vsel %vm4455_vm1, %v6162_v36, 0.0 }
 0x661   :  { %7610 = vadd.xlane.f32.xlu1 %v7609_v62  ;;  %v18901_v12 = vpop.xlane.xlu1 %7754  ;;  %v7582_v62 = vsel %vm4455_vm1, %v6023_v42, 0.0  ;;  %v7585_v42 = vsel %vm4455_vm1, %v6027_v63, 0.0 }
 0x662   :  { %7961 = vadd.xlane.f32.xlu0 %v7960_v40  ;;  %v20902_v40 = vld [vmem:[#allocation79_spill] sm:$0xff] }
 0x663   :  { %v18903_v34 = vpop.xlane.xlu0 %7598  ;;  %v7201_v55 = vcombine.high %v20903_v0, %v20902_v40  ;;  %v7990_v0 = vsel %vm4455_vm1, %v7179_v51, 0.0 }
 0x664   :  { %20900 = vst [vmem:[#allocation83_spill] sm:$0xff] %v18903_v34  ;;  %v20924_v34 = vld [vmem:[#allocation77_spill] sm:$0xff] }
 0x665   :  { %7874 = vadd.xlane.f32.xlu1 %v7873_v32  ;;  %v18911_v53 = vpop.xlane.xlu1 %7799  ;;  %v20905_v32 = vld [vmem:[#allocation121_spill] sm:$0xff]  ;;  %v7215_v40 = vrot.slane %v7201_v55, %v16025_v26  ;;  %v6979_v55 = vcombine.high %v6975_v37, %v20507_v38 }
 0x666   :  { %8006 = vadd.xlane.f32.xlu0 %v8005_v2  ;;  %v7185_v2 = vcombine.high %v20905_v32, %v20904_v47  ;;  %v7918_v47 = vsel %vm4455_vm1, %v6975_v37, 0.0 }
 0x667   :  { %v18913_v7 = vpop.xlane.xlu0 %7616 }
 0x668   :  { %20901 = vst [vmem:[#allocation29_spill] sm:$0xff] %v18913_v7  ;;  %v7199_v44 = vrot.slane %v7185_v2, %v16025_v26 }
 0x669   :  { %7946 = vadd.xlane.f32.xlu1 %v7945_v25  ;;  %v18926_v7 = vpop.xlane.xlu1 %7844  ;;  %v6145_v25 = vcombine.high %v18785_v10, %v18771_v27  ;;  %v7183_v27 = vcombine.high %v7179_v51, %v20507_v38  ;;  %v7963_v10 = vsel %vm4455_vm1, %v7114_v56, 0.0  ;;  %v7097_v51 = vcombine.high %v18860_v59, %v18849_v41 }
 0x66a   :  { %7583 = vadd.xlane.f32.xlu0 %v7582_v62  ;;  %v7232_v36 = vcombine.low %v7199_v44, %v7215_v40 }
 0x66b   :  { %v18928_v31 = vpop.xlane.xlu0 %7727  ;;  %v6159_v2 = vrot.slane %v6145_v25, %v20549_v61 }
 0x66c   :  { %v7240_v63 = vrot.slane %v7232_v36, %v20549_v61 }
 0x66d   :  { %7991 = vadd.xlane.f32.xlu1 %v7990_v0  ;;  %v18936_v3 = vpop.xlane.xlu1 %7889  ;;  %v7921_v0 = vsel %vm4455_vm1, %v6979_v55, 0.0 }
 0x66e   :  { %7628 = vadd.xlane.f32.xlu0 %v7627_v28  ;;  %20906 = vst [vmem:[#allocation30_spill] sm:$0xff] %v18936_v3  ;;  %v6163_v28 = vcombine.high %v6159_v2, %v20507_v38  ;;  %v8008_v25 = vsel %vm4455_vm1, %v7240_v63, 0.0 }
 0x66f   :  { %v18938_v62 = vpop.xlane.xlu0 %7772 }
 0x670   :  { %v7633_v36 = vsel %vm4455_vm1, %v6163_v28, 0.0 }
 0x671   :  { %7586 = vadd.xlane.f32.xlu1 %v7585_v42  ;;  %v18946_v32 = vpop.xlane.xlu1 %7934  ;;  %v7993_v42 = vsel %vm4455_vm1, %v7183_v27, 0.0  ;;  %v7250_v27 = vcombine.high %v7240_v63, %v20507_v38 }
 0x672   :  { %7919 = vadd.xlane.f32.xlu0 %v7918_v47  ;;  %20907 = vst [vmem:[#allocation65_spill] sm:$0xff] %v18946_v32  ;;  %v7233_v47 = vcombine.high %v7199_v44, %v7215_v40 }
 0x673   :  { %v18948_v26 = vpop.xlane.xlu0 %7817 }
 0x675   :  { %7922 = vadd.xlane.f32.xlu1 %v7921_v0  ;;  %v18955_v60 = vpop.xlane.xlu1 %7952  ;;  %v7247_v0 = vrot.slane %v7233_v47, %v20549_v61 }
 0x676   :  { %7964 = vadd.xlane.f32.xlu0 %v7963_v10  ;;  %20908 = vst [vmem:[#allocation61_spill] sm:$0xff] %v18955_v60  ;;  %v7630_v10 = vsel %vm4455_vm1, %v6159_v2, 0.0  ;;  %v7111_v60 = vrot.slane %v7097_v51, %v20549_v61  ;;  %v8011_v61 = vsel %vm4455_vm1, %v7250_v27, 0.0 }
 0x677   :  { %v18957_v37 = vpop.xlane.xlu0 %7862  ;;  %v8014_v41 = vsel %vm4455_vm1, %v7247_v0, 0.0 }
 0x678   :  { %v7966_v59 = vsel %vm4455_vm1, %v7111_v60, 0.0  ;;  %v7115_v2 = vcombine.high %v7111_v60, %v20507_v38 }
 0x679   :  { %7994 = vadd.xlane.f32.xlu1 %v7993_v42  ;;  %v7395_v55 = vpop.xlane.xlu1 %7394 }
 0x67a   :  { %8009 = vadd.xlane.f32.xlu0 %v8008_v25  ;;  %v7969_v51 = vsel %vm4455_vm1, %v7115_v2, 0.0 }
 0x67b   :  { %v18964_v56 = vpop.xlane.xlu0 %7907 }
 0x67c   :  { %20909 = vst [vmem:[#allocation63_spill] sm:$0xff] %v18964_v56 }
 0x67d   :  { %7634 = vadd.xlane.f32.xlu1 %v7633_v36  ;;  %v18970_v40 = vpop.xlane.xlu1 %7466  ;;  %v7251_v36 = vcombine.high %v7247_v0, %v20507_v38 }
 0x67e   :  { %7631 = vadd.xlane.f32.xlu0 %v7630_v10 }
 0x67f   :  { %v18972_v44 = vpop.xlane.xlu0 %7949 }
 0x680   :  { %20910 = vst [vmem:[#allocation22_spill] sm:$0xff] %v18972_v44 }
 0x681   :  { %8015 = vadd.xlane.f32.xlu1 %v8014_v41  ;;  %v18977_v28 = vpop.xlane.xlu1 %7511  ;;  %v8017_v41 = vsel %vm4455_vm1, %v7251_v36, 0.0 }
 0x682   :  { %7967 = vadd.xlane.f32.xlu0 %v7966_v59 }
 0x683   :  { %v18979_v42 = vpop.xlane.xlu0 %7979 }
 0x684   :  { %20911 = vst [vmem:[#allocation89_spill] sm:$0xff] %v18979_v42 }
 0x685   :  { %v18983_v47 = vpop.xlane.xlu1 %7556 }
 0x686   :  { %8012 = vadd.xlane.f32.xlu0 %v8011_v61 }
 0x687   :  { %v7440_v25 = vpop.xlane.xlu0 %7439 }
 0x689   :  { %v18987_v63 = vpop.xlane.xlu1 %7601 }
 0x68a   :  { %7970 = vadd.xlane.f32.xlu0 %v7969_v51  ;;  %20912 = vst [vmem:[#allocation27_spill] sm:$0xff] %v18987_v63 }
 0x68b   :  { %v7485_v10 = vpop.xlane.xlu0 %7484 }
 0x68d   :  { %v7683_v59 = vpop.xlane.xlu1 %7682 }
 0x68e   :  { %8018 = vadd.xlane.f32.xlu0 %v8017_v41 }
 0x68f   :  { %v18990_v44 = vpop.xlane.xlu0 %7529 }
 0x691   :  { %v18992_v27 = vpop.xlane.xlu1 %7775 }
 0x693   :  { %v18994_v60 = vpop.xlane.xlu0 %7574 }
 0x694   :  { %20913 = vst [vmem:[#allocation95_spill] sm:$0xff] %v18994_v60 }
 0x695   :  { %v18996_v61 = vpop.xlane.xlu1 %7820 }
 0x697   :  { %v18998_v42 = vpop.xlane.xlu0 %7619 }
 0x698   :  { %20914 = vst [vmem:[#allocation94_spill] sm:$0xff] %v18998_v42 }
 0x699   :  { %v19000_v2 = vpop.xlane.xlu1 %7865 }
 0x69a   :  { %20915 = vst [vmem:[#allocation129_spill] sm:$0xff] %v19000_v2 }
 0x69b   :  { %v7731_v38 = vpop.xlane.xlu0 %7730 }
 0x69e   :  { %v19002_v0 = vpop.xlane.xlu1 %7910 }
 0x69f   :  { %20916 = vst [vmem:[#allocation97_spill] sm:$0xff] %v19002_v0  ;;  %v19004_v51 = vpop.xlane.xlu0 %7802 }
 0x6a2   :  { %v19006_v36 = vpop.xlane.xlu1 %7955 }
 0x6a3   :  { %20917 = vst [vmem:[#allocation99_spill] sm:$0xff] %v19006_v36  ;;  %v19008_v41 = vpop.xlane.xlu0 %7847  ;;  %v8162_v36 = vadd.f32 %v18890_v8, %v20810_v23  ;;  %v8067_v8 = vadd.f32 %v7395_v55, %v20876_v19  ;;  %v20927_v55 = vld [vmem:[#allocation49_spill] sm:$0xff] }
 0x6a6   :  { %v19010_v63 = vpop.xlane.xlu1 %7997 }
 0x6a7   :  { %20918 = vst [vmem:[#allocation73_spill] sm:$0xff] %v19010_v63  ;;  %v19012_v56 = vpop.xlane.xlu0 %7892 }
 0x6a8   :  { %20919 = vst [vmem:[#allocation48_spill] sm:$0xff] %v19012_v56  ;;  %v8163_v56 = vadd.f32 %v7683_v59, %v20876_v19 }
 0x6aa   :  { %v7443_v60 = vpop.xlane.xlu1 %7442 }
 0x6ab   :  { %v19014_v32 = vpop.xlane.xlu0 %7937 }
 0x6ac   :  { %20920 = vst [vmem:[#allocation45_spill] sm:$0xff] %v19014_v32  ;;  %v9105_v32 = vrot.slane %v8162_v36, %v17230_v52 }
 0x6ae   :  { %v19016_v5 = vpop.xlane.xlu1 %7514 }
 0x6af   :  { %v19018_v42 = vpop.xlane.xlu0 %7982 }
 0x6b0   :  { %20921 = vst [vmem:[#allocation128_spill] sm:$0xff] %v19018_v42  ;;  %v20926_v42 = vld [vmem:[#allocation31_spill] sm:$0xff] }
 0x6b2   :  { %v19020_v45 = vpop.xlane.xlu1 %7559 }
 0x6b3   :  { %20922 = vst [vmem:[#allocation26_spill] sm:$0xff] %v19020_v45  ;;  %v19022_v0 = vpop.xlane.xlu0 %8000 }
 0x6b4   :  { %20923 = vst [vmem:[#allocation46_spill] sm:$0xff] %v19022_v0  ;;  %9821 = vxpose.xlu1.b32.start [1/2] (short) (narrow) %v20924_v34, 8  ;;  %v9109_v0 = vrot.slane %v8163_v56, %v17230_v52  ;;  %v8082_v34 = vadd.f32 %v7440_v25, %v20810_v23  ;;  %v8725_v56 = vrot.slane %v8067_v8, %v17230_v52 }
 0x6b5   :  { %v8096_v8 = vadd.f32 %v18818_v57, %v20718_v29  ;;  %v8193_v57 = vadd.f32 %v18938_v62, %v20767_v18 }
 0x6b6   :  { %v19027_v14 = vpop.xlane.xlu1 %7604  ;;  %v8785_v36 = vrot.slane %v8082_v34, %v17230_v52  ;;  %v9606_v34 = vsel %vm9570_vm5, %v8725_v56, %v18806_v30 }
 0x6b7   :  { %20925 = vst [vmem:[#allocation17_spill] sm:$0xff] %v19027_v14  ;;  %v7488_v63 = vpop.xlane.xlu0 %7487  ;;  %v8841_v56 = vrot.slane %v8096_v8, %v17230_v52 }
 0x6b8   :  { %9822 = vxpose.xlu1.b32.end [2/2] (short) (narrow) %v18782_v35, 8  ;;  %v9689_v35 = vsel %vm9568_vm3, %v9105_v32, %v18668_v58  ;;  %v8178_v58 = vadd.f32 %v18928_v31, %v20810_v23  ;;  %v8091_v32 = vadd.f32 %v18970_v40, %v20816_v17  ;;  %v8187_v40 = vadd.f32 %v18901_v12, %v20816_v17 }
 0x6ba   :  { %v7779_v3 = vpop.xlane.xlu1 %7778  ;;  %v8821_v30 = vrot.slane %v8091_v32, %v17230_v52  ;;  %v9205_v62 = vrot.slane %v8187_v40, %v17230_v52 }
 0x6bb   :  { %9853 = vxpose.xlu0.b32.start [1/2] (short) (narrow) %v20926_v42, 8  ;;  %v19033_v2 = vpop.xlane.xlu0 %7532  ;;  %v9690_v42 = vsel %vm9570_vm5, %v9109_v0, %v9689_v35  ;;  %v8195_v32 = vadd.f32 %v7779_v3, %v20876_v19  ;;  %v8107_v3 = vadd.f32 %v19016_v5, %v20816_v17  ;;  %v8203_v5 = vadd.f32 %v19004_v51, %v20816_v17 }
 0x6bc   :  { %10077 = vxpose.xlu1.b32.start [1/2] (short) (narrow) %v18590_v46, 8  ;;  %v8083_v46 = vadd.f32 %v7443_v60, %v20876_v19  ;;  %v8179_v60 = vadd.f32 %v7731_v38, %v20876_v19  ;;  %v8098_v38 = vadd.f32 %v7488_v63, %v20810_v23 }
 0x6be   :  { %v19039_v14 = vpop.xlane.xlu1 %7850  ;;  %v8789_v0 = vrot.slane %v8083_v46, %v17230_v52 }
 0x6bf   :  { %9854 = vxpose.xlu0.b32.end [2/2] (short) (narrow) %v18846_v48, 8  ;;  %v19044_v59 = vpop.xlane.xlu0 %7577  ;;  %v9619_v48 = vsel %vm9568_vm3, %v8785_v36, %v18829_v24  ;;  %v9173_v36 = vrot.slane %v8179_v60, %v17230_v52 }
 0x6c0   :  { %10078 = vxpose.xlu1.b32.end [2/2] (short) (narrow) %v9690_v42, 8  ;;  %v9620_v24 = vsel %vm9570_vm5, %v8789_v0, %v9619_v48  ;;  %v9169_v42 = vrot.slane %v8178_v58, %v17230_v52  ;;  %v8849_v58 = vrot.slane %v8098_v38, %v17230_v52  ;;  %v9631_v0 = vsel %vm9564_vm15, %v8841_v56, %v18566_v21 }
 0x6c1   :  { %v8106_v21 = vadd.f32 %v18977_v28, %v20721_v15 }
 0x6c2   :  { %v19050_v25 = vpop.xlane.xlu1 %7895  ;;  %v9703_v48 = vsel %vm9568_vm3, %v9169_v42, %v18698_v11  ;;  %v8202_v11 = vadd.f32 %v18911_v53, %v20721_v15  ;;  %v9711_v42 = vsel %vm9570_vm5, %v9205_v62, %v18636_v1  ;;  %v9237_v53 = vrot.slane %v8195_v32, %v17230_v52 }
 0x6c3   :  { %9885 = vxpose.xlu0.b32.start [1/2] (short) (narrow) %v20927_v55, 8  ;;  %v19053_v45 = vpop.xlane.xlu0 %7622  ;;  %v9627_v55 = vsel %vm9570_vm5, %v8821_v30, %v18883_v33  ;;  %v8194_v33 = vadd.f32 %v18992_v27, %v20810_v23  ;;  %v8208_v27 = vadd.f32 %v18948_v26, %v20718_v29  ;;  %v8885_v1 = vrot.slane %v8107_v3, %v17230_v52 }
 0x6c4   :  { %9917 = vxpose.xlu1.b32.start [1/2] (short) (narrow) %v18868_v50, 8  ;;  %v8097_v50 = vadd.f32 %v7485_v10, %v20767_v18  ;;  %v8105_v10 = vadd.f32 %v18879_v43, %v20659_v16  ;;  %v9229_v43 = vrot.slane %v8193_v57, %v17230_v52 }
 0x6c5   :  { %v9233_v28 = vrot.slane %v8194_v33, %v17230_v52 }
 0x6c6   :  { %v19068_v35 = vpop.xlane.xlu1 %7940  ;;  %v8845_v63 = vrot.slane %v8097_v50, %v17230_v52  ;;  %v8877_v60 = vrot.slane %v8105_v10, %v17230_v52  ;;  %v9716_v30 = vsel %vm9566_vm2, %v9229_v43, %v18712_v6  ;;  %v20928_v10 = vld [vmem:[#allocation36_spill] sm:$0xff]  ;;  %v9289_v6 = vrot.slane %v8208_v27, %v17230_v52 }
 0x6c7   :  { %9886 = vxpose.xlu0.b32.end [2/2] (short) (narrow) %v9606_v34, 8  ;;  %v7824_v31 = vpop.xlane.xlu0 %7823  ;;  %v9717_v62 = vsel %vm9568_vm3, %v9233_v28, %v9716_v30 }
 0x6c8   :  { %9918 = vxpose.xlu1.b32.end [2/2] (short) (narrow) %v9620_v24, 8  ;;  %v9632_v24 = vsel %vm9566_vm2, %v8845_v63, %v9631_v0  ;;  %v9639_v51 = vsel %vm9566_vm2, %v8877_v60, %v20928_v10  ;;  %v8881_v63 = vrot.slane %v8106_v21, %v17230_v52  ;;  %v9718_v43 = vsel %vm9570_vm5, %v9237_v53, %v9717_v62 }
 0x6c9   :  { %v9633_v40 = vsel %vm9568_vm3, %v8849_v58, %v9632_v24  ;;  %v8209_v58 = vadd.f32 %v18996_v61, %v20767_v18  ;;  %v8217_v60 = vadd.f32 %v18926_v7, %v20659_v16  ;;  %v9729_v33 = vsel %vm9564_vm15, %v9289_v6, %v18732_v39 }
 0x6ca   :  { %v19083_v46 = vpop.xlane.xlu1 %7985  ;;  %v8218_v61 = vadd.f32 %v19008_v41, %v20721_v15 }
 0x6cb   :  { %10109 = vxpose.xlu0.b32.start [1/2] (short) (narrow) %v18612_v13, 8  ;;  %v19086_v12 = vpop.xlane.xlu0 %7868  ;;  %v9704_v13 = vsel %vm9570_vm5, %v9173_v36, %v9703_v48  ;;  %v9265_v36 = vrot.slane %v8202_v11, %v17230_v52  ;;  %v9269_v48 = vrot.slane %v8203_v5, %v17230_v52  ;;  %v9293_v3 = vrot.slane %v8209_v58, %v17230_v52 }
 0x6cc   :  { %9949 = vxpose.xlu1.b32.start [1/2] (short) (narrow) %v9627_v55, 8  ;;  %v8210_v55 = vadd.f32 %v7824_v31, %v20810_v23  ;;  %v9325_v21 = vrot.slane %v8217_v60, %v17230_v52  ;;  %v9329_v41 = vrot.slane %v8218_v61, %v17230_v52 }
 0x6cd   :  { %v9724_v11 = vsel %vm9568_vm3, %v9265_v36, %v18672_v54  ;;  %v9730_v27 = vsel %vm9566_vm2, %v9293_v3, %v9729_v33  ;;  %v8219_v54 = vadd.f32 %v19039_v14, %v20816_v17  ;;  %v8111_v36 = vadd.f32 %v18839_v20, %v20648_v4  ;;  %v20929_v20 = vld [vmem:[#allocation113_spill] sm:$0xff] }
 0x6ce   :  { %v7491_v34 = vpop.xlane.xlu1 %7490  ;;  %v9737_v30 = vsel %vm9566_vm2, %v9325_v21, %v18692_v49  ;;  %v8112_v14 = vadd.f32 %v18990_v44, %v20718_v29  ;;  %v8223_v44 = vadd.f32 %v18957_v37, %v20648_v4  ;;  %v8121_v37 = vadd.f32 %v18983_v47, %v20659_v16 }
 0x6cf   :  { %10110 = vxpose.xlu0.b32.end [2/2] (short) (narrow) %v9704_v13, 8  ;;  %v19103_v8 = vpop.xlane.xlu0 %7913  ;;  %v8099_v50 = vadd.f32 %v7491_v34, %v20876_v19  ;;  %v9640_v13 = vsel %vm9568_vm3, %v8881_v63, %v9639_v51  ;;  %v9297_v34 = vrot.slane %v8210_v55, %v17230_v52  ;;  %v9738_v28 = vsel %vm9568_vm3, %v9329_v41, %v9737_v30  ;;  %v20935_v30 = vld [vmem:[#allocation114_spill] sm:$0xff] }
 0x6d0   :  { %v9641_v31 = vsel %vm9570_vm5, %v8885_v1, %v9640_v13  ;;  %v9333_v1 = vrot.slane %v8219_v54, %v17230_v52  ;;  %v8113_v51 = vadd.f32 %v19033_v2, %v20767_v18  ;;  %v8901_v6 = vrot.slane %v8111_v36, %v17230_v52 }
 0x6d1   :  { %v8853_v38 = vrot.slane %v8099_v50, %v17230_v52  ;;  %v9725_v50 = vsel %vm9570_vm5, %v9269_v48, %v9724_v11  ;;  %v8120_v55 = vadd.f32 %v18892_v22, %v20929_v20  ;;  %v8905_v62 = vrot.slane %v8112_v14, %v17230_v52  ;;  %v20937_v14 = vld [vmem:[#allocation48_spill] sm:$0xff] }
 0x6d2   :  { %v19125_v57 = vpop.xlane.xlu1 %7562  ;;  %v9739_v49 = vsel %vm9570_vm5, %v9333_v1, %v9738_v28  ;;  %v8909_v2 = vrot.slane %v8113_v51, %v17230_v52  ;;  %v9349_v61 = vrot.slane %v8223_v44, %v17230_v52  ;;  %v8225_v21 = vadd.f32 %v19086_v12, %v20767_v18  ;;  %v20936_v12 = vld [vmem:[#allocation55_spill] sm:$0xff] }
 0x6d3   :  { %10141 = vxpose.xlu0.b32.start [1/2] (short) (narrow) %v9711_v42, 8  ;;  %v19127_v26 = vpop.xlane.xlu0 %7958  ;;  %v9634_v56 = vsel %vm9570_vm5, %v8853_v38, %v9633_v40  ;;  %v9731_v40 = vsel %vm9568_vm3, %v9297_v34, %v9730_v27  ;;  %v8937_v22 = vrot.slane %v8120_v55, %v17230_v52  ;;  %v20932_v34 = vld [vmem:[#allocation26_spill] sm:$0xff]  ;;  %v20933_v27 = vld [vmem:[#allocation129_spill] sm:$0xff]  ;;  %v8233_v51 = vadd.f32 %v20937_v14, %v20659_v16 }
 0x6d4   :  { %9950 = vxpose.xlu1.b32.end [2/2] (short) (narrow) %v9634_v56, 8  ;;  %v8122_v11 = vadd.f32 %v20932_v34, %v20721_v15  ;;  %v8224_v41 = vadd.f32 %v20933_v27, %v20718_v29  ;;  %v9742_v36 = vsel %vm9562_vm14, %v9349_v61, %v20936_v12  ;;  %v9357_v44 = vrot.slane %v8225_v21, %v17230_v52  ;;  %v20941_v61 = vld [vmem:[#allocation103_spill] sm:$0xff]  ;;  %v20945_v21 = vld [vmem:[#allocation65_spill] sm:$0xff] }
 0x6d5   :  { %v9652_v28 = vsel %vm9564_vm15, %v8937_v22, %v20935_v30  ;;  %v20946_v12 = vld [vmem:[#allocation63_spill] sm:$0xff] }
 0x6d6   :  { %v19142_v32 = vpop.xlane.xlu1 %7607  ;;  %v8945_v1 = vrot.slane %v8122_v11, %v17230_v52 }
 0x6d7   :  { %10142 = vxpose.xlu0.b32.end [2/2] (short) (narrow) %v9718_v43, 8  ;;  %v19145_v0 = vpop.xlane.xlu0 %8003  ;;  %v20930_v43 = vld [vmem:[#allocation104_spill] sm:$0xff] }
 0x6d8   :  { %9981 = vxpose.xlu1.b32.start [1/2] (short) (narrow) %v9641_v31, 8  ;;  %v8126_v13 = vadd.f32 %v18862_v9, %v20930_v43  ;;  %v20931_v31 = vld [vmem:[#allocation122_spill] sm:$0xff]  ;;  %v8123_v9 = vadd.f32 %v19125_v57, %v20816_v17  ;;  %v8238_v14 = vadd.f32 %v20946_v12, %v20930_v43 }
 0x6d9   :  { %v9644_v33 = vsel %vm9562_vm14, %v8901_v6, %v20931_v31  ;;  %v8941_v6 = vrot.slane %v8121_v37, %v17230_v52  ;;  %v20942_v37 = vld [vmem:[#allocation47_spill] sm:$0xff] }
 0x6da   :  { %v7827_v24 = vpop.xlane.xlu1 %7826  ;;  %v9645_v3 = vsel %vm9564_vm15, %v8905_v62, %v9644_v33  ;;  %v8949_v55 = vrot.slane %v8123_v9, %v17230_v52  ;;  %v9353_v33 = vrot.slane %v8224_v41, %v17230_v52  ;;  %v8140_v34 = vadd.f32 %v20942_v37, %v20941_v61 }
 0x6db   :  { %10173 = vxpose.xlu0.b32.start [1/2] (short) (narrow) %v9725_v50, 8  ;;  %v7536_v7 = vpop.xlane.xlu0 %7535  ;;  %v8211_v39 = vadd.f32 %v7827_v24, %v20876_v19  ;;  %v9646_v47 = vsel %vm9566_vm2, %v8909_v2, %v9645_v3  ;;  %v20943_v3 = vld [vmem:[#allocation126_spill] sm:$0xff] }
 0x6dc   :  { %v8114_v63 = vadd.f32 %v7536_v7, %v20810_v23 }
 0x6dd   :  { %v9301_v42 = vrot.slane %v8211_v39, %v17230_v52  ;;  %v8961_v39 = vrot.slane %v8126_v13, %v17230_v52  ;;  %v20939_v13 = vld [vmem:[#allocation40_spill] sm:$0xff] }
 0x6de   :  { %v19167_v53 = vpop.xlane.xlu1 %7898  ;;  %v8913_v60 = vrot.slane %v8114_v63, %v17230_v52 }
 0x6df   :  { %v19169_v5 = vpop.xlane.xlu0 %7580  ;;  %v9732_v38 = vsel %vm9570_vm5, %v9301_v42, %v9731_v40  ;;  %v20934_v42 = vld [vmem:[#allocation30_spill] sm:$0xff] }
 0x6e0   :  { %10174 = vxpose.xlu0.b32.end [2/2] (short) (narrow) %v9732_v38, 8  ;;  %v9647_v40 = vsel %vm9568_vm3, %v8913_v60, %v9646_v47  ;;  %v8232_v38 = vadd.f32 %v20934_v42, %v20929_v20  ;;  %v20940_v60 = vld [vmem:[#allocation83_spill] sm:$0xff]  ;;  %v8247_v47 = vadd.f32 %v20945_v21, %v20939_v13  ;;  %v8235_v42 = vadd.f32 %v19167_v53, %v20816_v17 }
 0x6e1   :  { %v8135_v31 = vadd.f32 %v20940_v60, %v20939_v13 }
 0x6e2   :  { %v19180_v56 = vpop.xlane.xlu1 %7943  ;;  %v9385_v11 = vrot.slane %v8232_v38, %v17230_v52  ;;  %v9445_v60 = vrot.slane %v8247_v47, %v17230_v52  ;;  %v9409_v47 = vrot.slane %v8238_v14, %v17230_v52 }
 0x6e3   :  { %v19182_v10 = vpop.xlane.xlu0 %7625 }
 0x6e4   :  { %10205 = vxpose.xlu0.b32.start [1/2] (short) (narrow) %v9739_v49, 8 }
 0x6e6   :  { %v19194_v58 = vpop.xlane.xlu1 %7988 }
 0x6e7   :  { %v7872_v48 = vpop.xlane.xlu0 %7871 }
 0x6e8   :  { %v8226_v54 = vadd.f32 %v7872_v48, %v20810_v23  ;;  %v20938_v48 = vld [vmem:[#allocation57_spill] sm:$0xff] }
 0x6e9   :  { %v19242_v2 = vsel %vm9560_vm13, %v8961_v39, %v20938_v48  ;;  %v9389_v39 = vrot.slane %v8233_v51, %v17230_v52  ;;  %v9017_v51 = vrot.slane %v8140_v34, %v17230_v52  ;;  %v9397_v34 = vrot.slane %v8235_v42, %v17230_v52 }
 0x6ea   :  { %v7539_v50 = vpop.xlane.xlu1 %7538  ;;  %v9361_v22 = vrot.slane %v8226_v54, %v17230_v52 }
 0x6eb   :  { %v19209_v24 = vpop.xlane.xlu0 %7916  ;;  %v8115_v7 = vadd.f32 %v7539_v50, %v20876_v19  ;;  %v20944_v50 = vld [vmem:[#allocation29_spill] sm:$0xff] }
 0x6ec   :  { %v8141_v9 = vadd.f32 %v20944_v50, %v20943_v3  ;;  %v8129_v50 = vadd.f32 %v19169_v5, %v20767_v18  ;;  %v8241_v12 = vadd.f32 %v19209_v24, %v20767_v18  ;;  %v20957_v24 = vld [vmem:[#allocation45_spill] sm:$0xff] }
 0x6ed   :  { %v8917_v57 = vrot.slane %v8115_v7, %v17230_v52  ;;  %v9653_v7 = vsel %vm9566_vm2, %v8941_v6, %v9652_v28  ;;  %v8997_v28 = vrot.slane %v8135_v31, %v17230_v52  ;;  %v20947_v6 = vld [vmem:[#allocation95_spill] sm:$0xff]  ;;  %v20949_v31 = vld [vmem:[#allocation61_spill] sm:$0xff] }
 0x6ee   :  { %v19232_v49 = vpop.xlane.xlu1 %7610  ;;  %v9654_v41 = vsel %vm9568_vm3, %v8945_v1, %v9653_v7  ;;  %v8234_v1 = vadd.f32 %v19050_v25, %v20721_v15  ;;  %v9021_v53 = vrot.slane %v8141_v9, %v17230_v52  ;;  %v19282_v25 = vadd.f32 %v20949_v31, %v20943_v3  ;;  %v20950_v7 = vld [vmem:[#allocation12_spill] sm:$0xff] }
 0x6ef   :  { %v19234_v63 = vpop.xlane.xlu0 %7961  ;;  %v9648_v62 = vsel %vm9570_vm5, %v8917_v57, %v9647_v40  ;;  %v9743_v40 = vsel %vm9564_vm15, %v9353_v33, %v9742_v36  ;;  %v9655_v57 = vsel %vm9570_vm5, %v8949_v55, %v9654_v41  ;;  %v8127_v55 = vadd.f32 %v20947_v6, %v20648_v4  ;;  %v20951_v41 = vld [vmem:[#allocation27_spill] sm:$0xff] }
 0x6f0   :  { %9982 = vxpose.xlu1.b32.end [2/2] (short) (narrow) %v9648_v62, 8  ;;  %v9744_v30 = vsel %vm9566_vm2, %v9357_v44, %v9743_v40  ;;  %v20948_v62 = vld [vmem:[#allocation58_spill] sm:$0xff]  ;;  %v8128_v33 = vadd.f32 %v19044_v59, %v20718_v29  ;;  %v9665_v21 = vsel %vm9562_vm14, %v8997_v28, %v20950_v7  ;;  %v8136_v40 = vadd.f32 %v20951_v41, %v20929_v20 }
 0x6f1   :  { %v9745_v36 = vsel %vm9568_vm3, %v9361_v22, %v9744_v30  ;;  %v9750_v48 = vsel %vm9564_vm15, %v9385_v11, %v20948_v62  ;;  %v19299_v42 = vsel %vm9558_vm12, %v9021_v53, %v9017_v51  ;;  %v8965_v5 = vrot.slane %v8127_v55, %v17230_v52  ;;  %v20953_v51 = vld [vmem:[#allocation87_spill] sm:$0xff]  ;;  %v20954_v55 = vld [vmem:[#allocation78_spill] sm:$0xff]  ;;  %v20955_v62 = vld [vmem:[#allocation112_spill] sm:$0xff] }
 0x6f2   :  { %v7875_v27 = vpop.xlane.xlu1 %7874  ;;  %v9751_v11 = vsel %vm9566_vm2, %v9389_v39, %v9750_v48  ;;  %v8240_v39 = vadd.f32 %v19103_v8, %v20718_v29  ;;  %v8969_v30 = vrot.slane %v8128_v33, %v17230_v52  ;;  %v9763_v53 = vsel %vm9562_vm14, %v9445_v60, %v20953_v51  ;;  %v20956_v48 = vld [vmem:[#allocation89_spill] sm:$0xff] }
 0x6f3   :  { %v19259_v54 = vpop.xlane.xlu0 %8006  ;;  %v8227_v38 = vadd.f32 %v7875_v27, %v20876_v19  ;;  %v9393_v27 = vrot.slane %v8234_v1, %v17230_v52  ;;  %v8973_v8 = vrot.slane %v8129_v50, %v17230_v52  ;;  %v19322_v31 = vadd.f32 %v20956_v48, %v20955_v62  ;;  %v20958_v60 = vld [vmem:[#allocation17_spill] sm:$0xff] }
 0x6f4   :  { %10013 = vxpose.xlu1.b32.start [1/2] (short) (narrow) %v9655_v57, 8  ;;  %v8248_v33 = vadd.f32 %v20957_v24, %v20929_v20  ;;  %v8137_v50 = vadd.f32 %v20958_v60, %v20659_v16  ;;  %v8250_v48 = vadd.f32 %v19180_v56, %v20721_v15 }
 0x6f5   :  { %v9365_v44 = vrot.slane %v8227_v38, %v17230_v52  ;;  %v20952_v38 = vld [vmem:[#allocation97_spill] sm:$0xff]  ;;  %v9752_v14 = vsel %vm9568_vm3, %v9393_v27, %v9751_v11  ;;  %v9417_v11 = vrot.slane %v8240_v39, %v17230_v52  ;;  %v20959_v39 = vld [vmem:[#allocation94_spill] sm:$0xff] }
 0x6f6   :  { %v7947_v22 = vpop.xlane.xlu1 %7946  ;;  %v8239_v57 = vadd.f32 %v20952_v38, %v20648_v4  ;;  %v9753_v6 = vsel %vm9570_vm5, %v9397_v34, %v9752_v14  ;;  %v9658_v34 = vsel %vm9562_vm14, %v8965_v5, %v19242_v2 }
 0x6f7   :  { %v7584_v37 = vpop.xlane.xlu0 %7583  ;;  %v9746_v9 = vsel %vm9570_vm5, %v9365_v44, %v9745_v36  ;;  %v9469_v36 = vrot.slane %v19282_v25, %v17230_v52  ;;  %v9755_v44 = vsel %vm9560_vm13, %v9409_v47, %v20954_v55  ;;  %v8138_v47 = vadd.f32 %v19142_v32, %v20721_v15 }
 0x6f8   :  { %10206 = vxpose.xlu0.b32.end [2/2] (short) (narrow) %v9746_v9, 8  ;;  %v8130_v59 = vadd.f32 %v7584_v37, %v20810_v23  ;;  %v9001_v9 = vrot.slane %v8136_v40, %v17230_v52  ;;  %v9413_v7 = vrot.slane %v8239_v57, %v17230_v52  ;;  %v9659_v27 = vsel %vm9564_vm15, %v8969_v30, %v9658_v34 }
 0x6f9   :  { %v8139_v40 = vadd.f32 %v19232_v49, %v20816_v17  ;;  %v9660_v2 = vsel %vm9566_vm2, %v8973_v8, %v9659_v27  ;;  %v8142_v57 = vadd.f32 %v20959_v39, %v20930_v43  ;;  %v9449_v32 = vrot.slane %v8248_v33, %v17230_v52  ;;  %v20961_v39 = vld [vmem:[#allocation22_spill] sm:$0xff] }
 0x6fa   :  { %v19307_v28 = vpop.xlane.xlu1 %7991  ;;  %v8977_v37 = vrot.slane %v8130_v59, %v17230_v52  ;;  %v9421_v59 = vrot.slane %v8241_v12, %v17230_v52  ;;  %v9756_v30 = vsel %vm9562_vm14, %v9413_v7, %v9755_v44  ;;  %v9005_v12 = vrot.slane %v8137_v50, %v17230_v52 }
 0x6fb   :  { %v7629_v1 = vpop.xlane.xlu0 %7628  ;;  %v8249_v8 = vadd.f32 %v19068_v35, %v20659_v16  ;;  %v9009_v62 = vrot.slane %v8138_v47, %v17230_v52  ;;  %v8251_v60 = vadd.f32 %v7947_v22, %v20816_v17  ;;  %v9025_v35 = vrot.slane %v8142_v57, %v17230_v52  ;;  %v20960_v47 = vld [vmem:[#allocation128_spill] sm:$0xff] }
 0x6fc   :  { %10237 = vxpose.xlu0.b32.start [1/2] (short) (narrow) %v9753_v6, 8  ;;  %v9661_v51 = vsel %vm9568_vm3, %v8977_v37, %v9660_v2  ;;  %v9757_v6 = vsel %vm9564_vm15, %v9417_v11, %v9756_v30  ;;  %v9013_v37 = vrot.slane %v8139_v40, %v17230_v52  ;;  %v8143_v11 = vadd.f32 %v19053_v45, %v20648_v4 }
 0x6fd   :  { %v9758_v33 = vsel %vm9566_vm2, %v9421_v59, %v9757_v6  ;;  %v9666_v56 = vsel %vm9564_vm15, %v9001_v9, %v9665_v21  ;;  %v8263_v27 = vadd.f32 %v20960_v47, %v20939_v13  ;;  %v8144_v22 = vadd.f32 %v19182_v10, %v20718_v29 }
 0x6fe   :  { %v7587_v41 = vpop.xlane.xlu1 %7586  ;;  %v9667_v59 = vsel %vm9566_vm2, %v9005_v12, %v9666_v56  ;;  %v9457_v40 = vrot.slane %v8250_v48, %v17230_v52  ;;  %v9453_v2 = vrot.slane %v8249_v8, %v17230_v52  ;;  %v9461_v13 = vrot.slane %v8251_v60, %v17230_v52  ;;  %v20963_v60 = vld [vmem:[#allocation99_spill] sm:$0xff] }
 0x6ff   :  { %v7920_v38 = vpop.xlane.xlu0 %7919  ;;  %v8131_v14 = vadd.f32 %v7587_v41, %v20876_v19  ;;  %v9668_v21 = vsel %vm9568_vm3, %v9009_v62, %v9667_v59  ;;  %v8252_v57 = vadd.f32 %v20961_v39, %v20941_v61  ;;  %v9509_v30 = vrot.slane %v8263_v27, %v17230_v52 }
 0x700   :  { %v8242_v5 = vadd.f32 %v7920_v38, %v20810_v23  ;;  %v9764_v38 = vsel %vm9564_vm15, %v9449_v32, %v9763_v53  ;;  %v9505_v53 = vrot.slane %v19322_v31, %v17230_v52  ;;  %v9029_v32 = vrot.slane %v8143_v11, %v17230_v52 }
 0x701   :  { %v8981_v49 = vrot.slane %v8131_v14, %v17230_v52  ;;  %v8145_v14 = vadd.f32 %v7629_v1, %v20767_v18  ;;  %v9671_v1 = vsel %vm9560_vm13, %v9025_v35, %v19299_v42  ;;  %v9765_v12 = vsel %vm9566_vm2, %v9453_v2, %v9764_v38  ;;  %v20964_v35 = vld [vmem:[#allocation46_spill] sm:$0xff] }
 0x702   :  { %v9425_v55 = vrot.slane %v8242_v5, %v17230_v52  ;;  %v7923_v24 = vpop.xlane.xlu1 %7922  ;;  %v9669_v5 = vsel %vm9570_vm5, %v9013_v37, %v9668_v21  ;;  %v8264_v6 = vadd.f32 %v19083_v46, %v20929_v20  ;;  %v9766_v8 = vsel %vm9568_vm3, %v9457_v40, %v9765_v12  ;;  %v20962_v20 = vld [vmem:[#allocation85_spill] sm:$0xff] }
 0x703   :  { %v19357_v44 = vpop.xlane.xlu0 %7964  ;;  %v8243_v50 = vadd.f32 %v7923_v24, %v20876_v19  ;;  %v9662_v34 = vsel %vm9570_vm5, %v8981_v49, %v9661_v51  ;;  %v9033_v51 = vrot.slane %v8144_v22, %v17230_v52  ;;  %v8265_v49 = vadd.f32 %v19194_v58, %v20659_v16 }
 0x704   :  { %10014 = vxpose.xlu1.b32.end [2/2] (short) (narrow) %v9662_v34, 8  ;;  %v9759_v7 = vsel %vm9568_vm3, %v9425_v55, %v9758_v33  ;;  %v9037_v55 = vrot.slane %v8145_v14, %v17230_v52  ;;  %v8266_v42 = vadd.f32 %v19307_v28, %v20721_v15  ;;  %v9767_v24 = vsel %vm9570_vm5, %v9461_v13, %v9766_v8  ;;  %v20965_v14 = vld [vmem:[#allocation73_spill] sm:$0xff] }
 0x705   :  { %v9429_v41 = vrot.slane %v8243_v50, %v17230_v52  ;;  %v9465_v46 = vrot.slane %v8252_v57, %v17230_v52  ;;  %v9776_v16 = vsel %vm9560_vm13, %v9505_v53, %v20962_v20  ;;  %v9672_v58 = vsel %vm9562_vm14, %v9029_v32, %v9671_v1 }
 0x706   :  { %v7995_v45 = vpop.xlane.xlu1 %7994  ;;  %v8254_v50 = vadd.f32 %v20963_v60, %v20930_v43  ;;  %v9777_v15 = vsel %vm9562_vm14, %v9509_v30, %v9776_v16  ;;  %v9673_v28 = vsel %vm9564_vm15, %v9033_v51, %v9672_v58  ;;  %v8269_v11 = vadd.f32 %v20964_v35, %v20943_v3 }
 0x707   :  { %v8010_v9 = vpop.xlane.xlu0 %8009  ;;  %v9760_v10 = vsel %vm9570_vm5, %v9429_v41, %v9759_v7  ;;  %v8267_v37 = vadd.f32 %v7995_v45, %v20816_v17  ;;  %v9517_v56 = vrot.slane %v8265_v49, %v17230_v52  ;;  %v9674_v17 = vsel %vm9566_vm2, %v9037_v55, %v9673_v28 }
 0x708   :  { %10045 = vxpose.xlu1.b32.start [1/2] (short) (narrow) %v9669_v5, 8  ;;  %10238 = vxpose.xlu0.b32.end [2/2] (short) (narrow) %v9760_v10, 8  ;;  %v9513_v27 = vrot.slane %v8264_v6, %v17230_v52  ;;  %v9521_v41 = vrot.slane %v8266_v42, %v17230_v52  ;;  %v8255_v22 = vadd.f32 %v19127_v26, %v20648_v4  ;;  %v12255_v28 = vmov 1966171168  }
 0x709   :  { %v8270_v38 = vadd.f32 %v19145_v0, %v20930_v43  ;;  %v9525_v3 = vrot.slane %v8267_v37, %v17230_v52  ;;  %v8256_v40 = vadd.f32 %v19234_v63, %v20718_v29  ;;  %v8268_v21 = vadd.f32 %v20965_v14, %v20941_v61 }
 0x70a   :  { %v7635_v31 = vpop.xlane.xlu1 %7634  ;;  %v8271_v2 = vadd.f32 %v19259_v54, %v20648_v4  ;;  %v8257_v26 = vadd.f32 %v19357_v44, %v20767_v18  ;;  %v9778_v13 = vsel %vm9564_vm15, %v9513_v27, %v9777_v15  ;;  %v9768_v0 = vsel %vm9558_vm12, %v9469_v36, %v9465_v46 }
 0x70b   :  { %v7632_v62 = vpop.xlane.xlu0 %7631  ;;  %v8147_v48 = vadd.f32 %v7635_v31, %v20876_v19  ;;  %v8272_v43 = vadd.f32 %v8010_v9, %v20718_v29  ;;  %v9779_v61 = vsel %vm9566_vm2, %v9517_v56, %v9778_v13  ;;  %v9533_v4 = vrot.slane %v8269_v11, %v17230_v52  ;;  %v20966_v11 = vld [vmem:[#allocation66_spill] sm:$0xff] }
 0x70c   :  { %v8146_v33 = vadd.f32 %v7632_v62, %v20810_v23  ;;  %10269 = vxpose.xlu0.b32.start [1/2] (short) (narrow) %v9767_v24, 8  ;;  %v9477_v54 = vrot.slane %v8255_v22, %v17230_v52  ;;  %v9780_v10 = vsel %vm9568_vm3, %v9521_v41, %v9779_v61  ;;  %v9473_v39 = vrot.slane %v8254_v50, %v17230_v52 }
 0x70d   :  { %v9045_v7 = vrot.slane %v8147_v48, %v17230_v52  ;;  %v9537_v25 = vrot.slane %v8270_v38, %v17230_v52  ;;  %v9481_v36 = vrot.slane %v8256_v40, %v17230_v52  ;;  %v9781_v29 = vsel %vm9570_vm5, %v9525_v3, %v9780_v10 }
 0x70e   :  { %v9041_v34 = vrot.slane %v8146_v33, %v17230_v52  ;;  %v9529_v9 = vrot.slane %v8268_v21, %v17230_v52  ;;  %v8016_v57 = vpop.xlane.xlu1 %8015  ;;  %v9541_v53 = vrot.slane %v8271_v2, %v17230_v52  ;;  %v9485_v32 = vrot.slane %v8257_v26, %v17230_v52  ;;  %v20968_v21 = vld [vmem:[#allocation115_spill] sm:$0xff] }
 0x70f   :  { %v7968_v47 = vpop.xlane.xlu0 %7967  ;;  %v9545_v1 = vrot.slane %v8272_v43, %v17230_v52  ;;  %v8274_v8 = vadd.f32 %v8016_v57, %v20810_v23  ;;  %v12256_v40 = vmov 0   ;;  %v19515_v13 = vsub.s32 0, %v20966_v11 }
 0x710   :  { %v9675_v59 = vsel %vm9568_vm3, %v9041_v34, %v9674_v17  ;;  %v8258_v63 = vadd.f32 %v7968_v47, %v20810_v23  ;;  %v9782_v12 = vsel %vm9558_vm12, %v9533_v4, %v9529_v9  ;;  %v10403_v34 = vunpack.c.l.s4 %v12255_v28  ;;  %v19487_v47 = vld [vmem:[%s20967_s7 + $0x8] sm:$0xff] }
 0x711   :  { %v9676_v45 = vsel %vm9570_vm5, %v9045_v7, %v9675_v59  ;;  %v9783_v55 = vsel %vm9560_vm13, %v9537_v25, %v9782_v12  ;;  %v9553_v23 = vrot.slane %v8274_v8, %v17230_v52 }
 0x712   :  { %10046 = vxpose.xlu1.b32.end [2/2] (short) (narrow) %v9676_v45, 8  ;;  %v9489_v30 = vrot.slane %v8258_v63, %v17230_v52  ;;  %v9784_v42 = vsel %vm9562_vm14, %v9541_v53, %v9783_v55  ;;  %v10404_v35 = vunpack.c.0.s8 %v10403_v34 }
 0x713   :  { %v8013_v5 = vpop.xlane.xlu0 %8012  ;;  %v9785_v33 = vsel %vm9564_vm15, %v9545_v1, %v9784_v42 }
 0x714   :  { %v8273_v44 = vadd.f32 %v8013_v5, %v20767_v18  ;;  %v9769_v18 = vsel %vm9560_vm13, %v9473_v39, %v9768_v0  ;;  %v19478_v56 = vsub.s32 %v10404_v35, %v20966_v11  ;;  %v20969_v0 = vld [vmem:[#allocation6_spill] sm:$0xff] }
 0x715   :  { %v9770_v6 = vsel %vm9562_vm14, %v9477_v54, %v9769_v18 }
 0x716   :  { %10301 = vxpose.xlu1.b32.start [1/2] (short) (narrow) %v9781_v29, 8  ;;  %v9549_v49 = vrot.slane %v8273_v44, %v17230_v52  ;;  %v9771_v62 = vsel %vm9564_vm15, %v9481_v36, %v9770_v6  ;;  %v10457_v27 = vrot.slane %v19487_v47, %v19478_v56  ;;  %v20970_v29 = vld [vmem:[#allocation107_spill] sm:$0xff]  ;;  %v20971_v6 = vld [vmem:[#allocation118_spill] sm:$0xff] }
 0x717   :  { %v7971_v51 = vpop.xlane.xlu0 %7970  ;;  %v9772_v24 = vsel %vm9566_vm2, %v9485_v32, %v9771_v62 }
 0x718   :  { %v8259_v31 = vadd.f32 %v7971_v51, %v20876_v19  ;;  %v9773_v20 = vsel %vm9568_vm3, %v9489_v30, %v9772_v24  ;;  %v9786_v37 = vsel %vm9566_vm2, %v9549_v49, %v9785_v33  ;;  %v19498_v59 = vrot.slane %v10457_v27, %v19478_v56  ;;  %v20976_v33 = vld [vmem:[#allocation39_spill] sm:$0xff] }
 0x719   :  { %v9787_v50 = vsel %vm9568_vm3, %v9553_v23, %v9786_v37  ;;  %v10465_v14 = vcombine.high %v10457_v27, %v10457_v27  ;;  %v20977_v27 = vld [vmem:[#allocation131_spill] sm:$0xff] }
 0x71a   :  { %v9493_v48 = vrot.slane %v8259_v31, %v17230_v52  ;;  %vm10523_vm7 = vcmp.gt.f32.partialorder %v19498_v59, 0.0 }
 0x71b   :  { %v8019_v46 = vpop.xlane.xlu0 %8018  ;;  %v10539_v54 = vsel %vm10523_vm7, 1, %v12256_v40  ;;  %v19531_v25 = vrot.slane %v10465_v14, %v19478_v56 }
 0x71c   :  { %v8275_v16 = vadd.f32 %v8019_v46, %v20876_v19  ;;  %v9774_v58 = vsel %vm9570_vm5, %v9493_v48, %v9773_v20  ;;  %v10397_v19 = vld [vmem:[%s20967_s7] sm:$0xff]  ;;  %v10582_v53 = vrot.slane %v10539_v54, %v19515_v13 }
 0x71d   :  { %10270 = vxpose.xlu0.b32.end [2/2] (short) (narrow) %v9774_v58, 8  ;;  %v10408_v7 = vrot.slane %v10397_v19, %v19478_v56  ;;  %v10401_v5 = vcombine.high %v10397_v19, %v10397_v19 }
 0x71e   :  { %v9557_v60 = vrot.slane %v8275_v16, %v17230_v52  ;;  %vm19556_vm0 = vcmp.eq.s32.totalorder %v10582_v53, 1 }
 0x71f   :  { %v10416_v17 = vcombine.high %v10408_v7, %v10408_v7  ;;  %v19495_v22 = vrot.slane %v10408_v7, %v19478_v56  ;;  %v19538_v32 = vrot.slane %v10401_v5, %v19478_v56 }
 0x720   :  { %v9788_v15 = vsel %vm9570_vm5, %v9557_v60, %v9787_v50  ;;  %v19574_v60 = vcombine.high %v19498_v59, %v19498_v59 }
 0x721   :  { %10302 = vxpose.xlu1.b32.end [2/2] (short) (narrow) %v9788_v15, 8  ;;  %v19492_v41 = vrot.slane %v10416_v17, %v19478_v56  ;;  %v19503_v38 = vcombine.high %v19495_v22, %v19495_v22  ;;  %vm10515_vm4 = vcmp.gt.f32.partialorder %v19495_v22, 0.0  ;;  %v19563_v24 = vrot.slane %v19538_v32, %v19478_v56 }
 0x722   :  { %v10531_v63 = vsel %vm10515_vm4, 1, %v12256_v40  ;;  %vm10643_vm4 = vcmask 125952  }
 0x723   :  { %vm10516_vm6 = vcmp.gt.f32.partialorder %v19492_v41, 0.0  ;;  %vm10517_vm8 = vcmp.gt.f32.partialorder %v19503_v38, 0.0  ;;  %v19527_v44 = vcombine.high %v19492_v41, %v19492_v41  ;;  %v10550_v57 = vrot.slane %v10531_v63, %v19515_v13 }
 0x724   :  { %v10532_v45 = vsel %vm10516_vm6, 1, %v12256_v40  ;;  %v10533_v39 = vsel %vm10517_vm8, 1, %v12256_v40  ;;  %vm10524_vm6 = vcmp.gt.f32.partialorder %v19531_v25, 0.0 }
 0x725   :  { %v10554_v4 = vrot.slane %v10532_v45, %v19515_v13  ;;  %v10558_v1 = vrot.slane %v10533_v39, %v19515_v13  ;;  %vm10518_vm1 = vcmp.gt.f32.partialorder %v19527_v44, 0.0  ;;  %vm10611_vm7 = vcmp.eq.s32.totalorder %v10550_v57, 1 }
 0x726   :  { %v10534_v55 = vsel %vm10518_vm1, 1, %v12256_v40  ;;  %v10540_v48 = vsel %vm10524_vm6, 1, %v12256_v40  ;;  %vm10519_vm1 = vcmp.gt.f32.partialorder %v19563_v24, 0.0  ;;  %v19615_v57 = vcombine.high %v19531_v25, %v19531_v25 }
 0x727   :  { %vm10612_vm11 = vcmp.eq.s32.totalorder %v10554_v4, 1  ;;  %v10562_v23 = vrot.slane %v10534_v55, %v19515_v13  ;;  %v10586_v35 = vrot.slane %v10540_v48, %v19515_v13 }
 0x729   :  { %vm10614_vm6 = vcmp.eq.s32.totalorder %v10562_v23, 1  ;;  %v10417_v23 = vcombine.high %v19538_v32, %v19538_v32 }
 0x734   :  { %v19505_v3 = vpop.trf.xlu1 }
 0x735   :  { %v10333_v2 = vadd.f32 %v19505_v3, %v20968_v21  ;;  %v10535_v21 = vsel %vm10519_vm1, 1, %v12256_v40 }
 0x736   :  { %v10566_v5 = vrot.slane %v10535_v21, %v19515_v13 }
 0x737   :  { %v10365_v36 = vmul.f32 0.2, %v10333_v2  ;;  %vm10349_vm10 = vcmp.ge.f32.partialorder %v10333_v2, 0.0 }
 0x739   :  { %v10381_v12 = vsel %vm10349_vm10, %v10333_v2, %v10365_v36  ;;  %v20978_v36 = vld [vmem:[#allocation117_spill] sm:$0xff] }
 0x73a   :  { %v19567_v16 = vsel %vm10611_vm7, %v10381_v12, -1e+30  ;;  %vm10525_vm7 = vcmp.gt.f32.partialorder %v19574_v60, 0.0 }
 0x73b   :  { %v19512_v26 = vpop.trf.xlu0  ;;  %v10644_v28 = vsel %vm10643_vm4, %v19567_v16, -inf }
 0x73c   :  { %v10334_v43 = vadd.f32 %v19512_v26, %v20969_v0  ;;  %v19521_v61 = vpop.trf.xlu1 }
 0x73d   :  { %v10341_v9 = vadd.f32 %v19521_v61, %v20970_v29 }
 0x73e   :  { %v10366_v10 = vmul.f32 0.2, %v10334_v43  ;;  %vm10350_vm9 = vcmp.ge.f32.partialorder %v10334_v43, 0.0 }
 0x73f   :  { %v10373_v30 = vmul.f32 0.2, %v10341_v9  ;;  %vm10357_vm8 = vcmp.ge.f32.partialorder %v10341_v9, 0.0 }
 0x740   :  { %v10382_v18 = vsel %vm10350_vm9, %v10334_v43, %v10366_v10  ;;  %vm19552_vm9 = vcmp.eq.s32.totalorder %v10558_v1, 1  ;;  %v10541_v43 = vsel %vm10525_vm7, 1, %v12256_v40  ;;  %v20979_v1 = vld [vmem:[#allocation108_spill] sm:$0xff] }
 0x741   :  { %v19547_v31 = vsel %vm10612_vm11, %v10382_v18, -1e+30  ;;  %v10389_v37 = vsel %vm10357_vm8, %v10341_v9, %v10373_v30  ;;  %vm10620_vm8 = vcmp.eq.s32.totalorder %v10586_v35, 1  ;;  %v10590_v39 = vrot.slane %v10541_v43, %v19515_v13 }
 0x742   :  { %v10647_v58 = vsel %vm10643_vm4, %v19547_v31, -inf  ;;  %v19587_v19 = vsel %vm19556_vm0, %v10389_v37, -1e+30  ;;  %v10450_v35 = vcombine.high %v19487_v47, %v19487_v47  ;;  %v20981_v47 = vld [vmem:[#allocation20_spill] sm:$0xff] }
 0x743   :  { %v19543_v51 = vpop.trf.xlu0  ;;  %v10668_v14 = vsel %vm10643_vm4, %v19587_v19, -inf }
 0x744   :  { %v10335_v49 = vadd.f32 %v19543_v51, %v20971_v6  ;;  %v19550_v8 = vpop.trf.xlu1  ;;  %v10464_v32 = vrot.slane %v10450_v35, %v19478_v56 }
 0x745   :  { %v10336_v46 = vadd.f32 %v19550_v8, %v20976_v33 }
 0x746   :  { %v10367_v20 = vmul.f32 0.2, %v10335_v49  ;;  %vm10351_vm10 = vcmp.ge.f32.partialorder %v10335_v49, 0.0 }
 0x747   :  { %v10368_v50 = vmul.f32 0.2, %v10336_v46  ;;  %vm10352_vm11 = vcmp.ge.f32.partialorder %v10336_v46, 0.0 }
 0x748   :  { %10648 = vmax.xlane.f32.xlu1 %v10647_v58  ;;  %v10383_v15 = vsel %vm10351_vm10, %v10335_v49, %v10367_v20  ;;  %vm10615_vm10 = vcmp.eq.s32.totalorder %v10566_v5, 1  ;;  %v20980_v58 = vld [vmem:[#allocation132_spill] sm:$0xff] }
 0x749   :  { %v19580_v34 = vsel %vm19552_vm9, %v10383_v15, -1e+30  ;;  %v10384_v17 = vsel %vm10352_vm11, %v10336_v46, %v10368_v50  ;;  %vm10621_vm11 = vcmp.eq.s32.totalorder %v10590_v39, 1 }
 0x74a   :  { %10645 = vmax.xlane.f32.xlu0 %v10644_v28  ;;  %v10650_v11 = vsel %vm10643_vm4, %v19580_v34, -inf  ;;  %v19598_v0 = vsel %vm10614_vm6, %v10384_v17, -1e+30  ;;  %vm10526_vm6 = vcmp.gt.f32.partialorder %v19615_v57, 0.0  ;;  %v19639_v28 = vrot.slane %v10417_v23, %v19478_v56  ;;  %v20983_v23 = vld [vmem:[#allocation119_spill] sm:$0xff] }
 0x74b   :  { %v19590_v7 = vpop.trf.xlu0  ;;  %v10653_v54 = vsel %vm10643_vm4, %v19598_v0, -inf  ;;  %v10542_v48 = vsel %vm10526_vm6, 1, %v12256_v40 }
 0x74c   :  { %v10342_v45 = vadd.f32 %v19590_v7, %v20977_v27  ;;  %10651 = vmax.xlane.f32.xlu1 %v10650_v11  ;;  %v10594_v46 = vrot.slane %v10542_v48, %v19515_v13 }
 0x74e   :  { %v10374_v2 = vmul.f32 0.2, %v10342_v45  ;;  %10669 = vmax.xlane.f32.xlu0 %v10668_v14  ;;  %vm10358_vm0 = vcmp.ge.f32.partialorder %v10342_v45, 0.0 }
 0x750   :  { %v10390_v63 = vsel %vm10358_vm0, %v10342_v45, %v10374_v2  ;;  %v19602_v4 = vpop.trf.xlu1  ;;  %vm10520_vm0 = vcmp.gt.f32.partialorder %v19639_v28, 0.0  ;;  %v19651_v45 = vrot.slane %v10464_v32, %v19478_v56 }
 0x751   :  { %v19606_v10 = vsel %vm10620_vm8, %v10390_v63, -1e+30  ;;  %v10337_v29 = vadd.f32 %v19602_v4, %v20978_v36  ;;  %vm10622_vm8 = vcmp.eq.s32.totalorder %v10594_v46, 1  ;;  %v10536_v27 = vsel %vm10520_vm0, 1, %v12256_v40 }
 0x752   :  { %10654 = vmax.xlane.f32.xlu0 %v10653_v54  ;;  %v10671_v9 = vsel %vm10643_vm4, %v19606_v10, -inf  ;;  %v10570_v14 = vrot.slane %v10536_v27, %v19515_v13  ;;  %v20984_v27 = vld [vmem:[#allocation133_spill] sm:$0xff] }
 0x753   :  { %10672 = vmax.xlane.f32.xlu1 %v10671_v9  ;;  %v19617_v53 = vpop.trf.xlu0  ;;  %v10369_v18 = vmul.f32 0.2, %v10337_v29  ;;  %vm10353_vm9 = vcmp.ge.f32.partialorder %v10337_v29, 0.0  ;;  %v20982_v9 = vld [vmem:[#allocation109_spill] sm:$0xff] }
 0x754   :  { %v10343_v30 = vadd.f32 %v19617_v53, %v20979_v1  ;;  %v19671_v1 = vcombine.high %v19563_v24, %v19563_v24 }
 0x755   :  { %v10385_v6 = vsel %vm10353_vm9, %v10337_v29, %v10369_v18  ;;  %vm10527_vm9 = vcmp.gt.f32.partialorder %v19651_v45, 0.0 }
 0x756   :  { %v10375_v12 = vmul.f32 0.2, %v10343_v30  ;;  %vm10359_vm1 = vcmp.ge.f32.partialorder %v10343_v30, 0.0  ;;  %v19622_v49 = vsel %vm10615_vm10, %v10385_v6, -1e+30  ;;  %v10543_v63 = vsel %vm10527_vm9, 1, %v12256_v40 }
 0x757   :  { %v10656_v55 = vsel %vm10643_vm4, %v19622_v49, -inf  ;;  %v10598_v36 = vrot.slane %v10543_v63, %v19515_v13 }
 0x758   :  { %v10391_v62 = vsel %vm10359_vm1, %v10343_v30, %v10375_v12  ;;  %10657 = vmax.xlane.f32.xlu0 %v10656_v55  ;;  %v10466_v30 = vcombine.high %v10464_v32, %v10464_v32 }
 0x759   :  { %v19626_v42 = vsel %vm10621_vm11, %v10391_v62, -1e+30  ;;  %vm10616_vm11 = vcmp.eq.s32.totalorder %v10570_v14, 1  ;;  %vm10623_vm6 = vcmp.eq.s32.totalorder %v10598_v36, 1 }
 0x75a   :  { %v10674_v33 = vsel %vm10643_vm4, %v19626_v42, -inf  ;;  %v19675_v55 = vrot.slane %v10466_v30, %v19478_v56  ;;  %v19713_v30 = vcombine.high %v19651_v45, %v19651_v45 }
 0x75b   :  { %10675 = vmax.xlane.f32.xlu1 %v10674_v33 }
 0x75c   :  { %v19632_v20 = vpop.trf.xlu0 }
 0x75d   :  { %v10344_v37 = vadd.f32 %v19632_v20, %v20980_v58 }
 0x75f   :  { %v10376_v50 = vmul.f32 0.2, %v10344_v37  ;;  %vm10360_vm7 = vcmp.ge.f32.partialorder %v10344_v37, 0.0 }
 0x761   :  { %v10392_v15 = vsel %vm10360_vm7, %v10344_v37, %v10376_v50  ;;  %vm10521_vm7 = vcmp.gt.f32.partialorder %v19671_v1, 0.0  ;;  %v19691_v50 = vcombine.high %v19639_v28, %v19639_v28 }
 0x762   :  { %v19643_v11 = vsel %vm10622_vm8, %v10392_v15, -1e+30  ;;  %v10537_v33 = vsel %vm10521_vm7, 1, %v12256_v40  ;;  %vm10528_vm8 = vcmp.gt.f32.partialorder %v19675_v55, 0.0 }
 0x763   :  { %v10677_v17 = vsel %vm10643_vm4, %v19643_v11, -inf  ;;  %v10574_v46 = vrot.slane %v10537_v33, %v19515_v13  ;;  %v10544_v37 = vsel %vm10528_vm8, 1, %v12256_v40  ;;  %vm10529_vm8 = vcmp.gt.f32.partialorder %v19713_v30, 0.0 }
 0x764   :  { %10678 = vmax.xlane.f32.xlu1 %v10677_v17  ;;  %v10602_v35 = vrot.slane %v10544_v37, %v19515_v13  ;;  %v19720_v33 = vcombine.high %v19675_v55, %v19675_v55 }
 0x765   :  { %vm10617_vm9 = vcmp.eq.s32.totalorder %v10574_v46, 1 }
 0x76c   :  { %v19654_v21 = vpop.trf.xlu1 }
 0x76d   :  { %v10338_v2 = vadd.f32 %v19654_v21, %v20981_v47 }
 0x76f   :  { %v10370_v43 = vmul.f32 0.2, %v10338_v2  ;;  %vm10354_vm10 = vcmp.ge.f32.partialorder %v10338_v2, 0.0 }
 0x771   :  { %v10386_v5 = vsel %vm10354_vm10, %v10338_v2, %v10370_v43  ;;  %vm10522_vm10 = vcmp.gt.f32.partialorder %v19691_v50, 0.0 }
 0x772   :  { %v19660_v54 = vsel %vm10616_vm11, %v10386_v5, -1e+30  ;;  %v10538_v5 = vsel %vm10522_vm10, 1, %v12256_v40 }
 0x773   :  { %v10659_v39 = vsel %vm10643_vm4, %v19660_v54, -inf }
 0x774   :  { %10660 = vmax.xlane.f32.xlu0 %v10659_v39  ;;  %v19665_v29 = vpop.trf.xlu0 }
 0x775   :  { %v10345_v18 = vadd.f32 %v19665_v29, %v20982_v9  ;;  %v10578_v9 = vrot.slane %v10538_v5, %v19515_v13  ;;  %v20987_v5 = vld [vmem:[#allocation28_spill] sm:$0xff] }
 0x777   :  { %v10377_v12 = vmul.f32 0.2, %v10345_v18  ;;  %vm10361_vm1 = vcmp.ge.f32.partialorder %v10345_v18, 0.0  ;;  %vm10618_vm7 = vcmp.eq.s32.totalorder %v10578_v9, 1 }
 0x779   :  { %v10393_v6 = vsel %vm10361_vm1, %v10345_v18, %v10377_v12  ;;  %vm10624_vm1 = vcmp.eq.s32.totalorder %v10602_v35, 1  ;;  %v20985_v12 = vld [vmem:[#allocation71_spill] sm:$0xff] }
 0x77a   :  { %v19677_v62 = vsel %vm10623_vm6, %v10393_v6, -1e+30 }
 0x77b   :  { %v10680_v48 = vsel %vm10643_vm4, %v19677_v62, -inf }
 0x77c   :  { %10681 = vmax.xlane.f32.xlu1 %v10680_v48 }
 0x780   :  { %v19684_v58 = vpop.trf.xlu1 }
 0x781   :  { %v10339_v56 = vadd.f32 %v19684_v58, %v20983_v23 }
 0x783   :  { %v10371_v15 = vmul.f32 0.2, %v10339_v56  ;;  %vm10355_vm0 = vcmp.ge.f32.partialorder %v10339_v56, 0.0 }
 0x784   :  { %v19694_v17 = vpop.trf.xlu0 }
 0x785   :  { %v10387_v32 = vsel %vm10355_vm0, %v10339_v56, %v10371_v15  ;;  %v10346_v14 = vadd.f32 %v19694_v17, %v20984_v27  ;;  %v10545_v56 = vsel %vm10529_vm8, 1, %v12256_v40  ;;  %vm10530_vm0 = vcmp.gt.f32.partialorder %v19720_v33, 0.0  ;;  %v20986_v27 = vld [vmem:[#allocation111_spill] sm:$0xff] }
 0x786   :  { %v19698_v47 = vsel %vm10617_vm9, %v10387_v32, -1e+30  ;;  %v10606_v15 = vrot.slane %v10545_v56, %v19515_v13  ;;  %v10546_v32 = vsel %vm10530_vm0, 1, %v12256_v40 }
 0x787   :  { %v10662_v2 = vsel %vm10643_vm4, %v19698_v47, -inf  ;;  %v10378_v43 = vmul.f32 0.2, %v10346_v14  ;;  %vm10362_vm11 = vcmp.ge.f32.partialorder %v10346_v14, 0.0 }
 0x788   :  { %10663 = vmax.xlane.f32.xlu0 %v10662_v2  ;;  %vm10625_vm10 = vcmp.eq.s32.totalorder %v10606_v15, 1 }
 0x789   :  { %v10394_v63 = vsel %vm10362_vm11, %v10346_v14, %v10378_v43  ;;  %v10610_v43 = vrot.slane %v10546_v32, %v19515_v13 }
 0x78a   :  { %v19704_v39 = vsel %vm10624_vm1, %v10394_v63, -1e+30 }
 0x78b   :  { %v10683_v36 = vsel %vm10643_vm4, %v19704_v39, -inf  ;;  %vm10626_vm1 = vcmp.eq.s32.totalorder %v10610_v43, 1 }
 0x78c   :  { %10684 = vmax.xlane.f32.xlu1 %v10683_v36 }
 0x78e   :  { %v19709_v18 = vpop.trf.xlu1 }
 0x78f   :  { %v10340_v6 = vadd.f32 %v19709_v18, %v20985_v12 }
 0x791   :  { %v10372_v48 = vmul.f32 0.2, %v10340_v6  ;;  %vm10356_vm6 = vcmp.ge.f32.partialorder %v10340_v6, 0.0 }
 0x793   :  { %v10388_v46 = vsel %vm10356_vm6, %v10340_v6, %v10372_v48  ;;  %vm11304_vm6 = vcmask 259072  }
 0x794   :  { %v19722_v37 = vsel %vm10618_vm7, %v10388_v46, -1e+30 }
 0x795   :  { %v10665_v23 = vsel %vm10643_vm4, %v19722_v37, -inf }
 0x796   :  { %10666 = vmax.xlane.f32.xlu0 %v10665_v23 }
 0x799   :  { %v19729_v35 = vpop.trf.xlu0 }
 0x79a   :  { %v10347_v14 = vadd.f32 %v19729_v35, %v20986_v27 }
 0x79c   :  { %v10379_v2 = vmul.f32 0.2, %v10347_v14  ;;  %vm10363_vm9 = vcmp.ge.f32.partialorder %v10347_v14, 0.0 }
 0x79d   :  { %v19735_v63 = vpop.trf.xlu1 }
 0x79e   :  { %v10348_v36 = vadd.f32 %v19735_v63, %v20987_v5  ;;  %v10395_v9 = vsel %vm10363_vm9, %v10347_v14, %v10379_v2 }
 0x79f   :  { %v19739_v12 = vsel %vm10625_vm10, %v10395_v9, -1e+30 }
 0x7a0   :  { %v10380_v6 = vmul.f32 0.2, %v10348_v36  ;;  %v10686_v40 = vsel %vm10643_vm4, %v19739_v12, -inf  ;;  %vm10364_vm11 = vcmp.ge.f32.partialorder %v10348_v36, 0.0 }
 0x7a1   :  { %10687 = vmax.xlane.f32.xlu1 %v10686_v40 }
 0x7a2   :  { %v10396_v48 = vsel %vm10364_vm11, %v10348_v36, %v10380_v6 }
 0x7a3   :  { %v19743_v46 = vsel %vm10626_vm1, %v10396_v48, -1e+30 }
 0x7a4   :  { %v10689_v23 = vsel %vm10643_vm4, %v19743_v46, -inf }
 0x7a5   :  { %10690 = vmax.xlane.f32.xlu0 %v10689_v23 }
 0x7d5   :  { %v10649_v56 = vpop.xlane.xlu1 %10648 }
 0x7d6   :  { %v10693_v15 = vsub.f32 %v19547_v31, %v10649_v56 }
 0x7d7   :  { %v10646_v32 = vpop.xlane.xlu0 %10645 }
 0x7d8   :  { %v10710_v27 = vmul.f32 1.442695, %v10693_v15  ;;  %v10692_v14 = vsub.f32 %v19567_v16, %v10646_v32  ;;  %v10747_v16 = vrot.slane %v19492_v41, %v19515_v13 }
 0x7d9   :  { %v10652_v2 = vpop.xlane.xlu1 %10651 }
 0x7da   :  { %12138 = vpow2.f32 %v10710_v27  ;;  %v10708_v5 = vmul.f32 1.442695, %v10692_v14  ;;  %v10694_v43 = vsub.f32 %v19580_v34, %v10652_v2  ;;  %v10743_v34 = vrot.slane %v19495_v22, %v19515_v13 }
 0x7db   :  { %v10670_v9 = vpop.xlane.xlu0 %10669  ;;  %v10751_v14 = vrot.slane %v19503_v38, %v19515_v13  ;;  %v10775_v22 = vrot.slane %v19498_v59, %v19515_v13  ;;  %v10755_v59 = vrot.slane %v19527_v44, %v19515_v13 }
 0x7dc   :  { %12140 = vpow2.f32 %v10708_v5  ;;  %v10712_v36 = vmul.f32 1.442695, %v10694_v43  ;;  %v10700_v6 = vsub.f32 %v19587_v19, %v10670_v9 }
 0x7de   :  { %12142 = vpow2.f32 %v10712_v36  ;;  %v10724_v40 = vmul.f32 1.442695, %v10700_v6 }
 0x7df   :  { %v10655_v48 = vpop.xlane.xlu0 %10654 }
 0x7e0   :  { %12144 = vpow2.f32 %v10724_v40  ;;  %v10695_v31 = vsub.f32 %v19598_v0, %v10655_v48  ;;  %v10673_v23 = vpop.xlane.xlu1 %10672 }
 0x7e1   :  { %v10701_v56 = vsub.f32 %v19606_v10, %v10673_v23  ;;  %v10779_v23 = vrot.slane %v19531_v25, %v19515_v13 }
 0x7e2   :  { %v10714_v15 = vmul.f32 1.442695, %v10695_v31 }
 0x7e3   :  { %v10726_v32 = vmul.f32 1.442695, %v10701_v56 }
 0x7e4   :  { %v12139_v27 = vpop.eup %12138  ;;  %12146 = vpow2.f32 %v10714_v15 }
 0x7e5   :  { %12148 = vpow2.f32 %v10726_v32  ;;  %v19757_v19 = vmul.f32 %v12139_v27, %v10747_v16  ;;  %v10658_v2 = vpop.xlane.xlu0 %10657 }
 0x7e6   :  { %v12141_v0 = vpop.eup %12140  ;;  %v10696_v10 = vsub.f32 %v19622_v49, %v10658_v2  ;;  %v10783_v2 = vrot.slane %v19574_v60, %v19515_v13 }
 0x7e7   :  { %v10839_v41 = vsel %vm10643_vm4, %v19757_v19, 0.0  ;;  %v19764_v5 = vmul.f32 %v12141_v0, %v10743_v34 }
 0x7e8   :  { %v12143_v43 = vpop.eup %12142  ;;  %10840 = vadd.xlane.f32.xlu0 %v10839_v41  ;;  %v10676_v9 = vpop.xlane.xlu1 %10675  ;;  %v10716_v36 = vmul.f32 1.442695, %v10696_v10 }
 0x7e9   :  { %v10702_v6 = vsub.f32 %v19626_v42, %v10676_v9  ;;  %v10836_v38 = vsel %vm10643_vm4, %v19764_v5, 0.0  ;;  %v19771_v40 = vmul.f32 %v12143_v43, %v10751_v14  ;;  %v10759_v14 = vrot.slane %v19563_v24, %v19515_v13 }
 0x7ea   :  { %v12145_v49 = vpop.eup %12144  ;;  %10837 = vadd.xlane.f32.xlu1 %v10836_v38  ;;  %12150 = vpow2.f32 %v10716_v36 }
 0x7eb   :  { %v10728_v48 = vmul.f32 1.442695, %v10702_v6  ;;  %v19773_v31 = vmul.f32 %v12145_v49, %v10775_v22  ;;  %v10842_v42 = vsel %vm10643_vm4, %v19771_v40, 0.0 }
 0x7ed   :  { %12152 = vpow2.f32 %v10728_v48  ;;  %v10860_v56 = vsel %vm10643_vm4, %v19773_v31, 0.0 }
 0x7ee   :  { %v12147_v16 = vpop.eup %12146  ;;  %10843 = vadd.xlane.f32.xlu1 %v10842_v42  ;;  %10861 = vadd.xlane.f32.xlu0 %v10860_v56 }
 0x7ef   :  { %v12149_v15 = vpop.eup %12148  ;;  %v19783_v32 = vmul.f32 %v12147_v16, %v10755_v59  ;;  %v10763_v16 = vrot.slane %v19639_v28, %v19515_v13 }
 0x7f0   :  { %v19785_v34 = vmul.f32 %v12149_v15, %v10779_v23 }
 0x7f1   :  { %v10845_v44 = vsel %vm10643_vm4, %v19783_v32, 0.0  ;;  %v10679_v27 = vpop.xlane.xlu1 %10678 }
 0x7f2   :  { %10846 = vadd.xlane.f32.xlu0 %v10845_v44  ;;  %v10863_v25 = vsel %vm10643_vm4, %v19785_v34, 0.0  ;;  %v10703_v0 = vsub.f32 %v19643_v11, %v10679_v27  ;;  %v10787_v11 = vrot.slane %v19615_v57, %v19515_v13  ;;  %v10791_v27 = vrot.slane %v19651_v45, %v19515_v13 }
 0x7f3   :  { %10864 = vadd.xlane.f32.xlu1 %v10863_v25 }
 0x7f4   :  { %v12151_v10 = vpop.eup %12150  ;;  %v10730_v41 = vmul.f32 1.442695, %v10703_v0 }
 0x7f5   :  { %v19796_v22 = vmul.f32 %v12151_v10, %v10759_v14 }
 0x7f6   :  { %12154 = vpow2.f32 %v10730_v41 }
 0x7f7   :  { %v12153_v43 = vpop.eup %12152  ;;  %v10848_v9 = vsel %vm10643_vm4, %v19796_v22, 0.0 }
 0x7f8   :  { %v19800_v36 = vmul.f32 %v12153_v43, %v10783_v2  ;;  %10849 = vadd.xlane.f32.xlu0 %v10848_v9  ;;  %v10767_v43 = vrot.slane %v19671_v1, %v19515_v13 }
 0x7fa   :  { %v10866_v24 = vsel %vm10643_vm4, %v19800_v36, 0.0 }
 0x7fb   :  { %10867 = vadd.xlane.f32.xlu1 %v10866_v24 }
 0x800   :  { %v12155_v60 = vpop.eup %12154 }
 0x801   :  { %v10661_v6 = vpop.xlane.xlu0 %10660  ;;  %v19806_v38 = vmul.f32 %v12155_v60, %v10787_v11  ;;  %v10795_v60 = vrot.slane %v19675_v55, %v19515_v13 }
 0x802   :  { %v10697_v49 = vsub.f32 %v19660_v54, %v10661_v6 }
 0x803   :  { %v10869_v48 = vsel %vm10643_vm4, %v19806_v38, 0.0 }
 0x804   :  { %v10718_v59 = vmul.f32 1.442695, %v10697_v49  ;;  %10870 = vadd.xlane.f32.xlu1 %v10869_v48 }
 0x806   :  { %12156 = vpow2.f32 %v10718_v59  ;;  %v10771_v59 = vrot.slane %v19691_v50, %v19515_v13  ;;  %v10803_v50 = vrot.slane %v19720_v33, %v19515_v13 }
 0x809   :  { %v10682_v23 = vpop.xlane.xlu1 %10681 }
 0x80a   :  { %v10704_v42 = vsub.f32 %v19677_v62, %v10682_v23 }
 0x80c   :  { %v10732_v56 = vmul.f32 1.442695, %v10704_v42 }
 0x80e   :  { %12158 = vpow2.f32 %v10732_v56 }
 0x810   :  { %v12157_v57 = vpop.eup %12156 }
 0x811   :  { %v19814_v15 = vmul.f32 %v12157_v57, %v10763_v16 }
 0x813   :  { %v10851_v54 = vsel %vm10643_vm4, %v19814_v15, 0.0 }
 0x814   :  { %10852 = vadd.xlane.f32.xlu0 %v10851_v54 }
 0x815   :  { %v10664_v44 = vpop.xlane.xlu0 %10663 }
 0x816   :  { %v10698_v25 = vsub.f32 %v19698_v47, %v10664_v44  ;;  %v10799_v44 = vrot.slane %v19713_v30, %v19515_v13  ;;  %v10902_v30 = vmul.f32 %v19771_v40, %v19543_v51 }
 0x818   :  { %v12159_v14 = vpop.eup %12158  ;;  %v10720_v62 = vmul.f32 1.442695, %v10698_v25  ;;  %v10922_v13 = vsel %vm10643_vm4, %v10902_v30, 0.0 }
 0x819   :  { %v19821_v0 = vmul.f32 %v12159_v14, %v10791_v27  ;;  %v10685_v2 = vpop.xlane.xlu1 %10684  ;;  %v10900_v14 = vmul.f32 %v19764_v5, %v19505_v3  ;;  %v10909_v3 = vmul.f32 %v19785_v34, %v19590_v7  ;;  %v10908_v5 = vmul.f32 %v19773_v31, %v19521_v61 }
 0x81a   :  { %12160 = vpow2.f32 %v10720_v62  ;;  %v10705_v28 = vsub.f32 %v19704_v39, %v10685_v2  ;;  %v10911_v61 = vmul.f32 %v19806_v38, %v19632_v20  ;;  %v10904_v31 = vmul.f32 %v19796_v22, %v19602_v4 }
 0x81b   :  { %v10872_v10 = vsel %vm10643_vm4, %v19821_v0, 0.0  ;;  %v10916_v2 = vsel %vm10643_vm4, %v10900_v14, 0.0  ;;  %v10940_v51 = vsel %vm10643_vm4, %v10908_v5, 0.0 }
 0x81c   :  { %10873 = vadd.xlane.f32.xlu1 %v10872_v10  ;;  %v10734_v41 = vmul.f32 1.442695, %v10705_v28  ;;  %v10901_v10 = vmul.f32 %v19757_v19, %v19512_v26  ;;  %v10910_v26 = vmul.f32 %v19800_v36, %v19617_v53  ;;  %v10903_v19 = vmul.f32 %v19783_v32, %v19550_v8 }
 0x81d   :  { %v10949_v34 = vsel %vm10643_vm4, %v10911_v61, 0.0  ;;  %v10928_v53 = vsel %vm10643_vm4, %v10904_v31, 0.0  ;;  %v10912_v8 = vmul.f32 %v19821_v0, %v19665_v29  ;;  %v10905_v32 = vmul.f32 %v19814_v15, %v19654_v21 }
 0x81e   :  { %12162 = vpow2.f32 %v10734_v41  ;;  %v10919_v33 = vsel %vm10643_vm4, %v10901_v10, 0.0  ;;  %v10943_v41 = vsel %vm10643_vm4, %v10909_v3, 0.0  ;;  %v10946_v40 = vsel %vm10643_vm4, %v10910_v26, 0.0 }
 0x81f   :  { %v10925_v7 = vsel %vm10643_vm4, %v10903_v19, 0.0  ;;  %v10952_v36 = vsel %vm10643_vm4, %v10912_v8, 0.0  ;;  %v10931_v20 = vsel %vm10643_vm4, %v10905_v32, 0.0 }
 0x823   :  { %v10667_v45 = vpop.xlane.xlu0 %10666 }
 0x824   :  { %v10699_v47 = vsub.f32 %v19722_v37, %v10667_v45  ;;  %v12161_v9 = vpop.eup %12160  ;;  %v11106_v45 = vld [vmem:[%s20000_s14] sm:$0xff] }
 0x825   :  { %v19829_v24 = vmul.f32 %v12161_v9, %v10767_v43 }
 0x826   :  { %v10722_v11 = vmul.f32 1.442695, %v10699_v47 }
 0x827   :  { %v10854_v39 = vsel %vm10643_vm4, %v19829_v24, 0.0  ;;  %v10906_v22 = vmul.f32 %v19829_v24, %v19684_v58 }
 0x828   :  { %12164 = vpow2.f32 %v10722_v11  ;;  %v12163_v6 = vpop.eup %12162  ;;  %10855 = vadd.xlane.f32.xlu0 %v10854_v39 }
 0x829   :  { %v10833_v49 = vmul.f32 %v12163_v6, %v10795_v60  ;;  %v10934_v29 = vsel %vm10643_vm4, %v10906_v22, 0.0 }
 0x82b   :  { %v10875_v48 = vsel %vm10643_vm4, %v10833_v49, 0.0  ;;  %v10913_v4 = vmul.f32 %v10833_v49, %v19694_v17 }
 0x82c   :  { %10876 = vadd.xlane.f32.xlu1 %v10875_v48 }
 0x82d   :  { %v10955_v38 = vsel %vm10643_vm4, %v10913_v4, 0.0 }
 0x82e   :  { %v10688_v1 = vpop.xlane.xlu1 %10687 }
 0x82f   :  { %v10706_v37 = vsub.f32 %v19739_v12, %v10688_v1 }
 0x831   :  { %v10736_v23 = vmul.f32 1.442695, %v10706_v37 }
 0x832   :  { %v12165_v42 = vpop.eup %12164  ;;  %v10691_v56 = vpop.xlane.xlu0 %10690 }
 0x833   :  { %12166 = vpow2.f32 %v10736_v23  ;;  %v10707_v55 = vsub.f32 %v19743_v46, %v10691_v56  ;;  %v10827_v16 = vmul.f32 %v12165_v42, %v10771_v59 }
 0x835   :  { %v10738_v57 = vmul.f32 1.442695, %v10707_v55  ;;  %v10857_v54 = vsel %vm10643_vm4, %v10827_v16, 0.0  ;;  %v10907_v21 = vmul.f32 %v10827_v16, %v19709_v18  ;;  %v11107_v18 = vld [vmem:[%s20000_s14 + $0x8] sm:$0xff] }
 0x836   :  { %10858 = vadd.xlane.f32.xlu0 %v10857_v54  ;;  %v11813_v47 = vpack.c.bf16 %v11107_v18, %v11106_v45 }
 0x837   :  { %12168 = vpow2.f32 %v10738_v57  ;;  %v10937_v43 = vsel %vm10643_vm4, %v10907_v21, 0.0 }
 0x838   :  { %11814 = vmatprep.subr.bf16.mxu0 %v11813_v47 }
 0x839   :  { %11816 = vmatpush3.bf16.msra.mxu0 %v11813_v47 }
 0x83d   :  { %v12167_v27 = vpop.eup %12166 }
 0x83e   :  { %v10834_v12 = vmul.f32 %v12167_v27, %v10799_v44 }
 0x840   :  { %v10878_v25 = vsel %vm10643_vm4, %v10834_v12, 0.0  ;;  %v10914_v0 = vmul.f32 %v10834_v12, %v19729_v35  ;;  %v11108_v35 = vld [vmem:[%s20000_s14 + $0x10] sm:$0xff] }
 0x841   :  { %v12169_v46 = vpop.eup %12168  ;;  %10879 = vadd.xlane.f32.xlu1 %v10878_v25 }
 0x842   :  { %v10835_v62 = vmul.f32 %v12169_v46, %v10803_v50  ;;  %v10958_v15 = vsel %vm10643_vm4, %v10914_v0, 0.0 }
 0x844   :  { %v10881_v28 = vsel %vm10643_vm4, %v10835_v62, 0.0  ;;  %v10915_v17 = vmul.f32 %v10835_v62, %v19735_v63  ;;  %v11109_v63 = vld [vmem:[%s20000_s14 + $0x18] sm:$0xff] }
 0x845   :  { %10917 = vadd.xlane.f32.xlu1 %v10916_v2  ;;  %10882 = vadd.xlane.f32.xlu0 %v10881_v28  ;;  %v11817_v9 = vpack.c.bf16 %v11109_v63, %v11108_v35 }
 0x846   :  { %v10961_v58 = vsel %vm10643_vm4, %v10915_v17, 0.0  ;;  %vm11092_vm4 = vcmask 31744  }
 0x847   :  { %11818 = vmatprep.subr.bf16.mxu0 %v11817_v9 }
 0x848   :  { %11820 = vmatpush3.bf16.msra.mxu0 %v11817_v9 }
 0x849   :  { %10923 = vadd.xlane.f32.xlu1 %v10922_v13  ;;  %10920 = vadd.xlane.f32.xlu0 %v10919_v33 }
 0x84d   :  { %10944 = vadd.xlane.f32.xlu1 %v10943_v41  ;;  %10941 = vadd.xlane.f32.xlu0 %v10940_v51 }
 0x851   :  { %10947 = vadd.xlane.f32.xlu1 %v10946_v40  ;;  %10926 = vadd.xlane.f32.xlu0 %v10925_v7 }
 0x855   :  { %10950 = vadd.xlane.f32.xlu1 %v10949_v34  ;;  %10929 = vadd.xlane.f32.xlu0 %v10928_v53 }
 0x859   :  { %10953 = vadd.xlane.f32.xlu1 %v10952_v36  ;;  %10932 = vadd.xlane.f32.xlu0 %v10931_v20 }
 0x85d   :  { %10956 = vadd.xlane.f32.xlu1 %v10955_v38  ;;  %10935 = vadd.xlane.f32.xlu0 %v10934_v29 }
 0x861   :  { %10959 = vadd.xlane.f32.xlu1 %v10958_v15  ;;  %10938 = vadd.xlane.f32.xlu0 %v10937_v43 }
 0x865   :  { %10962 = vadd.xlane.f32.xlu0 %v10961_v58 }
 0x875   :  { %v10841_v11 = vpop.xlane.xlu0 %10840 }
 0x876   :  { %v10885_v57 = vmax.f32 %v10841_v11, 1e-30 }
 0x877   :  { %v10838_v24 = vpop.xlane.xlu1 %10837 }
 0x878   :  { %v10884_v27 = vmax.f32 %v10838_v24, 1e-30  ;;  %12170 = vrcp.f32 %v10885_v57 }
 0x87a   :  { %12172 = vrcp.f32 %v10884_v27 }
 0x87b   :  { %v10844_v60 = vpop.xlane.xlu1 %10843  ;;  %v10862_v39 = vpop.xlane.xlu0 %10861 }
 0x87c   :  { %v10886_v12 = vmax.f32 %v10844_v60, 1e-30  ;;  %v10892_v50 = vmax.f32 %v10862_v39, 1e-30 }
 0x87e   :  { %12174 = vrcp.f32 %v10886_v12 }
 0x87f   :  { %v10847_v49 = vpop.xlane.xlu0 %10846  ;;  %12176 = vrcp.f32 %v10892_v50 }
 0x880   :  { %v10865_v6 = vpop.xlane.xlu1 %10864  ;;  %v10887_v25 = vmax.f32 %v10847_v49, 1e-30 }
 0x881   :  { %v10893_v62 = vmax.f32 %v10865_v6, 1e-30 }
 0x882   :  { %12178 = vrcp.f32 %v10887_v25  ;;  %v12171_v40 = vpop.eup %12170 }
 0x883   :  { %12180 = vrcp.f32 %v10893_v62 }
 0x884   :  { %v12173_v61 = vpop.eup %12172 }
 0x885   :  { %v10850_v1 = vpop.xlane.xlu0 %10849 }
 0x886   :  { %v10888_v2 = vmax.f32 %v10850_v1, 1e-30 }
 0x888   :  { %v10868_v48 = vpop.xlane.xlu1 %10867  ;;  %12182 = vrcp.f32 %v10888_v2  ;;  %v12175_v31 = vpop.eup %12174 }
 0x889   :  { %v10894_v28 = vmax.f32 %v10868_v48, 1e-30  ;;  %v12177_v8 = vpop.eup %12176 }
 0x88b   :  { %12184 = vrcp.f32 %v10894_v28 }
 0x88c   :  { %v12179_v36 = vpop.eup %12178 }
 0x88d   :  { %v12181_v4 = vpop.eup %12180 }
 0x891   :  { %v10871_v37 = vpop.xlane.xlu1 %10870 }
 0x892   :  { %v10895_v33 = vmax.f32 %v10871_v37, 1e-30  ;;  %v12183_v38 = vpop.eup %12182 }
 0x895   :  { %v12185_v15 = vpop.eup %12184 }
 0x8a1   :  { %v10853_v59 = vpop.xlane.xlu0 %10852 }
 0x8a2   :  { %v10889_v30 = vmax.f32 %v10853_v59, 1e-30 }
 0x8a4   :  { %12186 = vrcp.f32 %v10889_v30 }
 0x8a5   :  { %12188 = vrcp.f32 %v10895_v33 }
 0x8a9   :  { %v10874_v23 = vpop.xlane.xlu1 %10873 }
 0x8aa   :  { %v10896_v5 = vmax.f32 %v10874_v23, 1e-30 }
 0x8ae   :  { %v12187_v58 = vpop.eup %12186 }
 0x8af   :  { %v12189_v18 = vpop.eup %12188 }
 0x8b5   :  { %v10856_v42 = vpop.xlane.xlu0 %10855 }
 0x8b6   :  { %v10890_v3 = vmax.f32 %v10856_v42, 1e-30 }
 0x8b8   :  { %12190 = vrcp.f32 %v10890_v3 }
 0x8b9   :  { %v10877_v56 = vpop.xlane.xlu1 %10876  ;;  %12192 = vrcp.f32 %v10896_v5 }
 0x8ba   :  { %v10897_v41 = vmax.f32 %v10877_v56, 1e-30 }
 0x8bc   :  { %12194 = vrcp.f32 %v10897_v41 }
 0x8c2   :  { %v12191_v24 = vpop.eup %12190 }
 0x8c3   :  { %v10859_v55 = vpop.xlane.xlu0 %10858  ;;  %v12193_v49 = vpop.eup %12192 }
 0x8c4   :  { %v10891_v19 = vmax.f32 %v10859_v55, 1e-30 }
 0x8c6   :  { %12196 = vrcp.f32 %v10891_v19  ;;  %v12195_v23 = vpop.eup %12194 }
 0x8ce   :  { %v10880_v16 = vpop.xlane.xlu1 %10879 }
 0x8cf   :  { %v10898_v7 = vmax.f32 %v10880_v16, 1e-30 }
 0x8d0   :  { %v12197_v55 = vpop.eup %12196 }
 0x8d1   :  { %12198 = vrcp.f32 %v10898_v7 }
 0x8d2   :  { %v10918_v54 = vpop.xlane.xlu1 %10917  ;;  %v10883_v44 = vpop.xlane.xlu0 %10882 }
 0x8d3   :  { %v10899_v20 = vmax.f32 %v10883_v44, 1e-30  ;;  %v10980_v22 = vmul.f32 %v12173_v61, %v10918_v54 }
 0x8d5   :  { %12200 = vrcp.f32 %v10899_v20  ;;  %v11015_v35 = vrot.slane %v10980_v22, %v17230_v52 }
 0x8d6   :  { %v10924_v14 = vpop.xlane.xlu1 %10923  ;;  %v10921_v46 = vpop.xlane.xlu0 %10920 }
 0x8d7   :  { %v10981_v32 = vmul.f32 %v12171_v40, %v10921_v46  ;;  %v10982_v29 = vmul.f32 %v12175_v31, %v10924_v14 }
 0x8d9   :  { %v11019_v43 = vrot.slane %v10981_v32, %v17230_v52  ;;  %v11023_v11 = vrot.slane %v10982_v29, %v17230_v52  ;;  %v11198_v29 = vld [vmem:[%s20002_s16 + $0x8] sm:$0xff] }
 0x8da   :  { %v10945_v10 = vpop.xlane.xlu1 %10944  ;;  %v10942_v13 = vpop.xlane.xlu0 %10941 }
 0x8db   :  { %v10989_v47 = vmul.f32 %v12181_v4, %v10945_v10  ;;  %v10988_v63 = vmul.f32 %v12177_v8, %v10942_v13  ;;  %v11076_v48 = vsel %vm9558_vm12, %v11019_v43, %v11015_v35  ;;  %v12199_v27 = vpop.eup %12198  ;;  %v12218_v35 = vld [vmem:[%s20289_s22 + $0x8] sm:$0xff] }
 0x8dc   :  { %v11077_v50 = vsel %vm9560_vm13, %v11023_v11, %v11076_v48  ;;  %v11563_v11 = vld [vmem:[%s20003_s17] ss:$0 sm:$0xff] }
 0x8dd   :  { %v11051_v16 = vrot.slane %v10989_v47, %v17230_v52  ;;  %v11047_v57 = vrot.slane %v10988_v63, %v17230_v52 }
 0x8de   :  { %v10948_v51 = vpop.xlane.xlu1 %10947  ;;  %v10927_v26 = vpop.xlane.xlu0 %10926 }
 0x8df   :  { %v10983_v17 = vmul.f32 %v12179_v36, %v10927_v26  ;;  %v10990_v60 = vmul.f32 %v12185_v15, %v10948_v51  ;;  %v11083_v33 = vsel %vm9558_vm12, %v11051_v16, %v11047_v57  ;;  %v12201_v51 = vpop.eup %12200  ;;  %v12217_v15 = vld [vmem:[%s20289_s22] sm:$0xff]  ;;  %vm20988_vm12 = vcmask 261120  }
 0x8e1   :  { %v11027_v1 = vrot.slane %v10983_v17, %v17230_v52  ;;  %v11055_v12 = vrot.slane %v10990_v60, %v17230_v52  ;;  %v11560_v60 = vld [vmem:[%s20001_s15] ss:$0 sm:$0xff]  ;;  %s12257_s15 = smov [#allocation3]  }
 0x8e2   :  { %v10951_v34 = vpop.xlane.xlu1 %10950  ;;  %v10930_v53 = vpop.xlane.xlu0 %10929  ;;  %s11344_s17 = sshll.u32 %s12257_s15, 4  ;;  %s11345_s17 = int_to_ptr.vmem [resolvable:$true] %s11344_s17 }
 0x8e3   :  { %v10984_v45 = vmul.f32 %v12183_v38, %v10930_v53  ;;  %v10991_v37 = vmul.f32 %v12189_v18, %v10951_v34  ;;  %v11078_v62 = vsel %vm9562_vm14, %v11027_v1, %v11077_v50  ;;  %v11084_v26 = vsel %vm9560_vm13, %v11055_v12, %v11083_v33  ;;  %v11197_v38 = vld [vmem:[%s20002_s16] sm:$0xff]  ;;  %vm20989_vm13 = vmmov %vm20988_vm12  ;;  %s12219_s29 = scalar_lea.vmem %s11345_s17, 256  ;;  %p12224_p1 = scmp.lt.s32.totalorder %s11345_s17, %s11345_s17 }
 0x8e4   :  { %p12220_p0 = scmp.ne.s32.totalorder %s11345_s17, %s12219_s29  ;;  %p12225_p2 = scmp.lt.s32.totalorder %s12219_s29, %s12219_s29 }
 0x8e5   :  { %v11031_v42 = vrot.slane %v10984_v45, %v17230_v52  ;;  %v11059_v2 = vrot.slane %v10991_v37, %v17230_v52  ;;  %v11200_v45 = vld [vmem:[%s20002_s16 + $0x18] sm:$0xff] }
 0x8e6   :  { %v10954_v0 = vpop.xlane.xlu1 %10953  ;;  %v10933_v21 = vpop.xlane.xlu0 %10932  ;;  %p12226_p3 = por %p12225_p2, %p12224_p1 }
 0x8e7   :  { %v10985_v9 = vmul.f32 %v12187_v58, %v10933_v21  ;;  %v10992_v56 = vmul.f32 %v12193_v49, %v10954_v0  ;;  %v11079_v10 = vsel %vm9564_vm15, %v11031_v42, %v11078_v62  ;;  %v11085_v61 = vsel %vm9562_vm14, %v11059_v2, %v11084_v26  ;;  %v11199_v58 = vld [vmem:[%s20002_s16 + $0x10] sm:$0xff]  ;;  %vm20990_vm14 = vmmov %vm20988_vm12 }
 0x8e8   :  { %v11821_v0 = vpack.c.bf16 %v11198_v29, %v11197_v38  ;;  %v11825_v63 = vpack.c.bf16 %v11200_v45, %v11199_v58  ;;  %p12227_p4 = pnand %p12226_p3, %p12220_p0 }
 0x8e9   :  { %v11035_v54 = vrot.slane %v10985_v9, %v17230_v52  ;;  %v11063_v13 = vrot.slane %v10992_v56, %v17230_v52 }
 0x8ea   :  { %v10957_v39 = vpop.xlane.xlu1 %10956  ;;  %v10936_v6 = vpop.xlane.xlu0 %10935  ;;  %11822 = vmatprep.subr.bf16.mxu0 %v11821_v0 }
 0x8eb   :  { %v10986_v59 = vmul.f32 %v12191_v24, %v10936_v6  ;;  %v10993_v44 = vmul.f32 %v12195_v23, %v10957_v39  ;;  %v11080_v3 = vsel %vm9566_vm2, %v11035_v54, %v11079_v10  ;;  %v11086_v53 = vsel %vm9564_vm15, %v11063_v13, %v11085_v61  ;;  %vm20991_vm15 = vmmov %vm20988_vm12 }
 0x8ed   :  { %v11039_v25 = vrot.slane %v10986_v59, %v17230_v52  ;;  %v11067_v5 = vrot.slane %v10993_v44, %v17230_v52 }
 0x8ee   :  { %v10960_v14 = vpop.xlane.xlu1 %10959  ;;  %v10939_v46 = vpop.xlane.xlu0 %10938 }
 0x8ef   :  { %v10994_v28 = vmul.f32 %v12199_v27, %v10960_v14  ;;  %v10987_v30 = vmul.f32 %v12197_v55, %v10939_v46  ;;  %v11081_v7 = vsel %vm9568_vm3, %v11039_v25, %v11080_v3  ;;  %v11087_v32 = vsel %vm9566_vm2, %v11067_v5, %v11086_v53  ;;  %vm20992_vm2 = vmmov %vm20988_vm12  ;;  %v11568_v55 = vld [vmem:[%s20004_s18] ss:$0 sm:$0xff] }
 0x8f1   :  { %v11043_v41 = vrot.slane %v10987_v30, %v17230_v52  ;;  %v11071_v19 = vrot.slane %v10994_v28, %v17230_v52 }
 0x8f2   :  { %v10963_v40 = vpop.xlane.xlu0 %10962 }
 0x8f3   :  { %v10995_v31 = vmul.f32 %v12201_v51, %v10963_v40  ;;  %v11082_v34 = vsel %vm9570_vm5, %v11043_v41, %v11081_v7  ;;  %v11088_v20 = vsel %vm9568_vm3, %v11071_v19, %v11087_v32  ;;  %vm20993_vm3 = vmmov %vm20992_vm2 }
 0x8f4   :  { %v11093_v8 = vsel %vm11092_vm4, %v11082_v34, 0.0 }
 0x8f5   :  { %v11075_v36 = vrot.slane %v10995_v31, %v17230_v52  ;;  %11094 = vadd.xlane.f32.xlu1 %v11093_v8 }
 0x8f7   :  { %v11089_v4 = vsel %vm9570_vm5, %v11075_v36, %v11088_v20  ;;  %vm11285_vm5 = vcmask 1041408  }
 0x8f8   :  { %v11096_v22 = vsel %vm11092_vm4, %v11089_v4, 0.0 }
 0x8f9   :  { %11097 = vadd.xlane.f32.xlu0 %v11096_v22 }
 0x982   :  { %v11095_v21 = vpop.xlane.xlu1 %11094 }
 0x983   :  { %v11100_v52 = vmul.f32 0.25, %v11095_v21 }
 0x985   :  { %v11102_v43 = vadd.f32 %v12217_v15, %v11100_v52 }
 0x986   :  { %v11098_v17 = vpop.xlane.xlu0 %11097 }
 0x987   :  { %11104 = vst.msk [vmem:[#allocation3] sm:$0xff] %vm20988_vm12, %v11102_v43  ;;  %v11101_v18 = vmul.f32 0.25, %v11098_v17  ;;  %11783 = vmatprep.mubr.msk.f32.mxu0 %vm20989_vm13, %v11102_v43 }
 0x989   :  { %v11103_v47 = vadd.f32 %v12218_v35, %v11101_v18 }
 0x98b   :  { %11105 = vst.msk [vmem:[#allocation3 + $0x8] sm:$0xff] %vm20990_vm14, %v11103_v47  ;;  %11784 = vmatmul.mubr.msk.f32.vlgmr.msra.gmra.mrb[30].mxu0 %vm20991_vm15, %v11103_v47 }
 0x98c   :  { %11824 = vmatpush3.bf16.msra.mxu0 %v11821_v0  ;;  %11794 = vmatprep.mubr.msk.f32.mxu0 %vm20992_vm2, %v11102_v43 }
 0x98d   :  { %11826 = vmatprep.subr.bf16.mxu0 %v11825_v63 }
 0x990   :  { %11828 = vmatpush3.bf16.msra.mxu0 %v11825_v63 }
 0x993   :  { %11795 = vmatmul.mubr.msk.f32.vlgmr.msra.gmra.mrb[32].mxu0 %vm20993_vm3, %v11103_v47 }
 0xa5e   :  { %v11785_v9 = vpop.f32.mrb[30].mxu0 }
 0xa5f   :  { %v11189_v24 = vpop.f32.mrb[31].mxu0 }
 0xa60   :  { %v11190_v1 = vadd.f32 %v11560_v60, %v11189_v24 }
 0xa66   :  { %v11796_v39 = vpop.f32.mrb[32].mxu0 }
 0xa67   :  { %v11280_v6 = vadd.f32 %v11796_v39, %v11563_v11  ;;  %v11274_v49 = vpop.f32.mrb[33].mxu0 }
 0xa68   :  { %v11275_v48 = vadd.f32 %v11563_v11, %v11274_v49 }
 0xa69   :  { %v11287_v37 = vrot.slane %v11280_v6, 6  ;;  %v11292_v59 = vrot.slane %v11280_v6, 2 }
 0xa6a   :  { %v11286_v23 = vrot.slane %v11275_v48, 6 }
 0xa6b   :  { %v11294_v42 = vadd.f32 %v11292_v59, %v11190_v1 }
 0xa6c   :  { %v11288_v56 = vsel %vm11285_vm5, %v11286_v23, %v11287_v37 }
 0xa6d   :  { %v11295_v16 = vmax.f32 %v11294_v42, 0.0  ;;  %v11290_v57 = vadd.f32 %v11288_v56, %v11190_v1 }
 0xa6f   :  { %v11325_v54 = vmul.f32 %v11568_v55, %v11295_v16  ;;  %v11291_v44 = vmax.f32 %v11290_v57, 0.0 }
 0xa71   :  { %v11326_v27 = vsel %vm11304_vm6, %v11325_v54, 0.0  ;;  %v11303_v12 = vmul.f32 %v11568_v55, %v11291_v44 }
 0xa72   :  { %11327 = vadd.xlane.f32.xlu0 %v11326_v27 }
 0xa73   :  { %v11305_v50 = vsel %vm11304_vm6, %v11303_v12, 0.0 }
 0xa74   :  { %11306 = vadd.xlane.f32.xlu1 %v11305_v50 }
 0xa75   :  { %12230 = shalt.err (!%p12227_p4)
}
 0xa76   :  { %s12231_s23 = scalar_lea.hbm %s20006_s20, 256 }
 0xa77   :  { %p12232_p5 = scmp.ne.s32.totalorder %s20006_s20, %s12231_s23  ;;  %p12235_p6 = scmp.lt.u32.totalorder %s12231_s23, %s20006_s20 }
 0xa79   :  { %p12237_p7 = pnand %p12235_p6, %p12232_p5 }
 0xa7b   :  { %12240 = shalt.err (!%p12237_p7)
}
 0xa7c   :  { %s12258_s12 = smov 128   ;;  %s12259_s14 = smov 8   ;;  %v11569_v25 = vld [vmem:[#allocation2] ss:$0 sm:$0xff]  ;;  %vm11316_vm7 = vcmask 5120  }
 0xa7d   :  { %11350 = dma.vmem_to_hbm [thread:$0]  %s11345_s17, 256, %s20006_s20, [#allocation4], %s12258_s12, %s12258_s12, %s12259_s14  }
 0xaff   :  { %v11328_v14 = vpop.xlane.xlu0 %11327 }
 0xb00   :  { %v11336_v46 = vadd.f32 %v11569_v25, %v11328_v14 }
 0xb01   :  { %v11307_v62 = vpop.xlane.xlu1 %11306 }
 0xb02   :  { %11570 = vst.msk [vmem:[%s20007_s21 + $0x8] sm:$0x3f] %vm11316_vm7, %v11336_v46  ;;  %v11315_v2 = vadd.f32 %v11569_v25, %v11307_v62 }
 0xb04   :  { %11317 = vst.msk [vmem:[%s20007_s21] sm:$0x3f] %vm11316_vm7, %v11315_v2 }
 0xb05   :  { %12241 = dma.done.wait [#allocation4], 256  }
 0xb06   :  { %12242 = vsyncadd [#allocation4], 4294967040 }
 0xb07   :  { %11358 = vsyncpa [#allocation4], 1 }

</bundles_post_ra>
